<compile_context>
chip_gen: v6e
topology: v6e:2x2x1
jax: 0.10.0
libtpu: 0.0.40
codegen_flags: <defaults>
</compile_context>

<pallas_src>
import jax
import jax.numpy as jnp
import numpy as np
from jax.experimental import pallas as pl
from jax.experimental.pallas import tpu as pltpu

BN_EPS = 1e-5
L2_EPS = 1e-12


# ---------------------------------------------------------------------------
# Kernel
# ---------------------------------------------------------------------------
def fmri_encoder_kernel(x_ref, w1_ref, w2_ref, w3_ref, w4_ref, b_ref,
                        out_ref, acc_ref):
    k = pl.program_id(1)
    nk = pl.num_programs(1)

    # ----- Layer-1 partial matmul, accumulated over the K ("arbitrary") axis.
    @pl.when(k == 0)
    def _():
        acc_ref[...] = jnp.zeros_like(acc_ref)

    acc_ref[...] += jnp.dot(x_ref[...], w1_ref[...],
                            preferred_element_type=jnp.float32)

    # ----- Epilogue: bias+ReLU for layer 1, layers 2-4, L2 normalize.
    @pl.when(k == nk - 1)
    def _():
        d1 = w1_ref.shape[1]
        d2 = w2_ref.shape[1]
        d3 = w3_ref.shape[1]
        d4 = w4_ref.shape[1]
        o2, o3, o4 = d1, d1 + d2, d1 + d2 + d3
        b1 = b_ref[:, 0:d1]
        b2 = b_ref[:, o2:o2 + d2]
        b3 = b_ref[:, o3:o3 + d3]
        b4 = b_ref[:, o4:o4 + d4]

        # Layer 1: bias + ReLU (BN1 already folded into W2/b2). Carry bf16.
        h = jnp.maximum(acc_ref[...] + b1, 0.0).astype(jnp.bfloat16)

        def lin(h, w_ref, b, relu):
            z = jnp.dot(h, w_ref[...], preferred_element_type=jnp.float32) + b
            return jnp.maximum(z, 0.0).astype(jnp.bfloat16) if relu else z

        h = lin(h, w2_ref, b2, True)    # Linear2 + ReLU (BN2 folded into W3/b3)
        h = lin(h, w3_ref, b3, True)    # Linear3 + ReLU (BN3 folded into W4/b4)
        h = lin(h, w4_ref, b4, False)   # Linear4 -> embedding (f32)

        # F.normalize(h, dim=1): h / max(||h||, eps) == h * rsqrt(max(||h||^2, eps^2))
        sumsq = jnp.sum(h * h, axis=1, keepdims=True)
        inv = jax.lax.rsqrt(jnp.maximum(sumsq, L2_EPS * L2_EPS))
        out_ref[...] = (h * inv).astype(out_ref.dtype)


# ---------------------------------------------------------------------------
# Host-side parameter construction & BN folding
# ---------------------------------------------------------------------------
def make_params(key, input_dim, embedding_dim):
    """Deterministic synthetic parameters matching FMRIEncoder layer shapes."""
    dims = [input_dim, 1024, 512, 256, embedding_dim]
    n_keys = 4 * 2 + 3 * 4
    keys = jax.random.split(key, n_keys)
    ki = iter(range(n_keys))
    params = []
    for layer in range(4):
        fan_in, fan_out = dims[layer], dims[layer + 1]
        scale = 1.0 / np.sqrt(fan_in)
        w = jax.random.uniform(keys[next(ki)], (fan_in, fan_out),
                               jnp.float32, -scale, scale)
        b = jax.random.uniform(keys[next(ki)], (1, fan_out),
                               jnp.float32, -scale, scale)
        params.extend([w, b])
        if layer < 3:  # BatchNorm1d after the first three blocks
            gamma = 1.0 + 0.1 * jax.random.normal(keys[next(ki)], (1, fan_out), jnp.float32)
            beta = 0.1 * jax.random.normal(keys[next(ki)], (1, fan_out), jnp.float32)
            running_mean = 0.05 * jax.random.normal(keys[next(ki)], (1, fan_out), jnp.float32)
            running_var = jnp.abs(
                1.0 + 0.1 * jax.random.normal(keys[next(ki)], (1, fan_out), jnp.float32))
            params.extend([gamma, beta, running_mean, running_var])
    return params


def fold_params(params):
    """Fold eval-mode BatchNorm (which follows each ReLU) into the NEXT Linear.

    BN(a) = a*c + d with c = gamma*rsqrt(var+eps), d = beta - mean*c, and
    (a*c + d) @ W + b == a @ (c.T * W) + (d @ W + b).
    Folded weights stored in bf16; biases stay f32.
    NOTE: very small running_var inflates |c| and can amplify bf16 rounding of
    the folded weights -- worth a sanity check on real checkpoints.
    """
    (w1, b1, g1, be1, m1, v1,
     w2, b2, g2, be2, m2, v2,
     w3, b3, g3, be3, m3, v3,
     w4, b4) = params

    def bn_affine(g, be, m, v):
        c = g * jax.lax.rsqrt(v + BN_EPS)
        d = be - m * c
        return c, d

    c1, d1 = bn_affine(g1, be1, m1, v1)
    c2, d2 = bn_affine(g2, be2, m2, v2)
    c3, d3 = bn_affine(g3, be3, m3, v3)

    fw = [w1, w2 * c1.T, w3 * c2.T, w4 * c3.T]
    fb = [b1, d1 @ w2 + b2, d2 @ w3 + b3, d3 @ w4 + b4]

    weights = [w.astype(jnp.bfloat16) for w in fw]
    biases = [b.astype(jnp.float32) for b in fb]
    return weights, biases


# ---------------------------------------------------------------------------
# Wrapper
# ---------------------------------------------------------------------------
def _round_up(x, m):
    return ((x + m - 1) // m) * m


def _choose_batch_tile(B, tb_max):
    if B <= 8:
        return max(B, 1)
    # >= 2 tiles so the "parallel" batch axis can shard across v7x's 2 TCs;
    # rows a multiple of 8 (sublane); capped at tb_max (~256-wide MXU match).
    return min(tb_max, _round_up(pl.cdiv(B, 2), 8))


def fmri_encoder_forward(x, weights, biases, *, tb_max=256, tk_max=4096):
    B, D = x.shape
    E = weights[3].shape[1]

    # Batch tiling.
    TB = _choose_batch_tile(B, tb_max)
    Bp = _round_up(B, TB)

    # K (input_dim) tiling for layer 1.
    assert tk_max % 128 == 0
    TK = min(tk_max, _round_up(D, 128))
    Dp = _round_up(D, TK)
    nk = Dp // TK

    # Lane-dense output last dim.
    Ep = _round_up(E, 128)

    # Host-side prep: bf16 x, zero padding (zero rows/cols are exact no-ops).
    x = x.astype(jnp.bfloat16)
    if (Bp, Dp) != (B, D):
        x = jnp.pad(x, ((0, Bp - B), (0, Dp - D)))

    w1, w2, w3, w4 = weights
    b1, b2, b3, b4 = biases
    if Dp != D:
        w1 = jnp.pad(w1, ((0, Dp - D), (0, 0)))
    if Ep != E:
        w4 = jnp.pad(w4, ((0, 0), (0, Ep - E)))
        b4 = jnp.pad(b4, ((0, 0), (0, Ep - E)))
    b_packed = jnp.concatenate([b1, b2, b3, b4], axis=1).astype(jnp.float32)

    H1 = w1.shape[1]
    grid = (Bp // TB, nk)

    in_specs = [
        pl.BlockSpec((TB, TK), lambda i, k: (i, k)),   # x: streamed per (batch, K) tile
        pl.BlockSpec((TK, H1), lambda i, k: (k, 0)),   # W1: K-tiled
        pl.BlockSpec(w2.shape, lambda i, k: (0, 0)),   # W2..W4 / biases: VMEM-resident
        pl.BlockSpec(w3.shape, lambda i, k: (0, 0)),
        pl.BlockSpec(w4.shape, lambda i, k: (0, 0)),
        pl.BlockSpec(b_packed.shape, lambda i, k: (0, 0)),
    ]

    out = pl.pallas_call(
        fmri_encoder_kernel,
        out_shape=jax.ShapeDtypeStruct((Bp, Ep), jnp.float32),
        grid=grid,
        in_specs=in_specs,
        out_specs=pl.BlockSpec((TB, Ep), lambda i, k: (i, 0)),
        scratch_shapes=[pltpu.VMEM((TB, H1), jnp.float32)],
        compiler_params=pltpu.CompilerParams(
            dimension_semantics=("parallel", "arbitrary"),
            vmem_limit_bytes=32 << 20,
        ),
    )(x, w1, w2, w3, w4, b_packed)
    return out[:B, :E]


# ---------------------------------------------------------------------------
# References
# ---------------------------------------------------------------------------
def reference_forward_f32(x, params):
    """Exact eval-mode semantics of the PyTorch module, full f32."""
    (w1, b1, g1, be1, m1, v1,
     w2, b2, g2, be2, m2, v2,
     w3, b3, g3, be3, m3, v3,
     w4, b4) = params

    def block(h, w, b, g, be, m, v):
        z = jnp.maximum(h @ w + b, 0.0)                   # Linear + ReLU (+Dropout=id)
        return (z - m) / jnp.sqrt(v + BN_EPS) * g + be    # BatchNorm1d (eval)

    h = block(x, w1, b1, g1, be1, m1, v1)
    h = block(h, w2, b2, g2, be2, m2, v2)
    h = block(h, w3, b3, g3, be3, m3, v3)
    h = h @ w4 + b4
    norm = jnp.sqrt(jnp.sum(h * h, axis=1, keepdims=True))
    return h / jnp.maximum(norm, L2_EPS)


def reference_forward_folded(x, weights, biases):
    """Same math as the kernel (bf16 weights/activations, f32 accumulation)."""
    h = x.astype(jnp.bfloat16)
    for i, (w, b) in enumerate(zip(weights, biases)):
        z = jnp.dot(h, w, preferred_element_type=jnp.float32) + b
        h = jnp.maximum(z, 0.0).astype(jnp.bfloat16) if i < 3 else z
    sumsq = jnp.sum(h * h, axis=1, keepdims=True)
    return h * jax.lax.rsqrt(jnp.maximum(sumsq, L2_EPS * L2_EPS))


# ---------------------------------------------------------------------------
if __name__ == "__main__":
    # Module defaults: input_dim=3092 voxels, embedding_dim=512; small batch.
    B, INPUT_DIM, EMBEDDING_DIM = 8, 3092, 512

    key = jax.random.PRNGKey(0)
    kx, kp = jax.random.split(key)
    x = jax.random.normal(kx, (B, INPUT_DIM), jnp.float32)
    params = make_params(kp, INPUT_DIM, EMBEDDING_DIM)
    weights, biases = fold_params(params)

    # Default path (single K tile after padding input_dim to a 128 multiple).
    out = fmri_encoder_forward(x, weights, biases)
    out = jax.block_until_ready(out)
    assert out.shape == (B, EMBEDDING_DIM)

    # K-tiled path (forces several "arbitrary" steps over input_dim).
    out_ktiled = fmri_encoder_forward(x, weights, biases, tk_max=1024)
    out_ktiled = jax.block_until_ready(out_ktiled)
    assert out_ktiled.shape == (B, EMBEDDING_DIM)

    # (1) Kernel correctness vs. pure-JAX model of the exact folded/bf16 math.
    ref_folded = np.asarray(reference_forward_folded(x, weights, biases))
    np.testing.assert_allclose(np.asarray(out), ref_folded, rtol=2e-3, atol=2e-3)
    np.testing.assert_allclose(np.asarray(out_ktiled), ref_folded, rtol=2e-3, atol=2e-3)

    # (2) Semantic fidelity vs. the full-precision eval-mode module (both
    # outputs are unit vectors -> compare cosine similarity).
    ref_f32 = np.asarray(reference_forward_f32(x, params))
    cos = np.sum(np.asarray(out) * ref_f32, axis=1)
    assert np.min(cos) > 0.995, f"cosine similarity too low: {np.min(cos)}"

    print("KERNEL_OK")
</pallas_src>

<mosaic_0001>
module attributes {stable_mosaic.version = 11 : i64} {
  func.func @fmri_encoder_kernel(%arg0: i32, %arg1: i32, %arg2: memref<8x3200xbf16, #tpu.memory_space<vmem>>, %arg3: memref<3200x1024xbf16, #tpu.memory_space<vmem>>, %arg4: memref<1024x512xbf16, #tpu.memory_space<vmem>>, %arg5: memref<512x256xbf16, #tpu.memory_space<vmem>>, %arg6: memref<256x512xbf16, #tpu.memory_space<vmem>>, %arg7: memref<1x2304xf32, #tpu.memory_space<vmem>>, %arg8: memref<8x512xf32, #tpu.memory_space<vmem>>, %arg9: memref<8x1024xf32, #tpu.memory_space<vmem>>) attributes {dimension_semantics = [#tpu.dimension_semantics<parallel>, #tpu.dimension_semantics<arbitrary>], iteration_bounds = array<i64: 1, 1>, scalar_prefetch = 0 : i64, scratch_operands = 1 : i64, tpu.core_type = #tpu.core_type<tc>, window_params = [{transform_indices = @transform_0, window_bounds = array<i64: 8, 3200>}, {transform_indices = @transform_1, window_bounds = array<i64: 3200, 1024>}, {pipeline_mode = #tpu.pipeline_mode<synchronous>, transform_indices = @transform_2, window_bounds = array<i64: 1024, 512>}, {pipeline_mode = #tpu.pipeline_mode<synchronous>, transform_indices = @transform_3, window_bounds = array<i64: 512, 256>}, {pipeline_mode = #tpu.pipeline_mode<synchronous>, transform_indices = @transform_4, window_bounds = array<i64: 256, 512>}, {pipeline_mode = #tpu.pipeline_mode<synchronous>, transform_indices = @transform_5, window_bounds = array<i64: 1, 2304>}, {transform_indices = @transform_6, window_bounds = array<i64: 8, 512>}]} {
    %c0_i32 = arith.constant 0 : i32
    %0 = arith.cmpi eq, %arg1, %c0_i32 : i32
    %1 = arith.extui %0 : i1 to i32
    %c0_i32_0 = arith.constant 0 : i32
    %2 = arith.cmpi ne, %1, %c0_i32_0 : i32
    scf.if %2 {
      %cst_10 = arith.constant 0.000000e+00 : f32
      %12 = vector.broadcast %cst_10 : f32 to vector<8x1024xf32>
      %c0_11 = arith.constant 0 : index
      %c0_12 = arith.constant 0 : index
      %13 = vector.load %arg9[%c0_11, %c0_12] : memref<8x1024xf32, #tpu.memory_space<vmem>>, vector<8x1024xf32>
      tpu.vector_store %arg9[%c0_11, %c0_12], %12 {strides = array<i32>} : memref<8x1024xf32, #tpu.memory_space<vmem>>, vector<8x1024xf32>,
    } else {
    }
    %c0 = arith.constant 0 : index
    %c0_1 = arith.constant 0 : index
    %3 = vector.load %arg9[%c0, %c0_1] : memref<8x1024xf32, #tpu.memory_space<vmem>>, vector<8x1024xf32>
    %c0_2 = arith.constant 0 : index
    %c0_3 = arith.constant 0 : index
    %4 = vector.load %arg2[%c0_2, %c0_3] : memref<8x3200xbf16, #tpu.memory_space<vmem>>, vector<8x3200xbf16>
    %c0_4 = arith.constant 0 : index
    %c0_5 = arith.constant 0 : index
    %5 = vector.load %arg3[%c0_4, %c0_5] : memref<3200x1024xbf16, #tpu.memory_space<vmem>>, vector<3200x1024xbf16>
    %cst = arith.constant dense<0.000000e+00> : vector<8x1024xf32>
    %6 = tpu.matmul %4, %5, %cst {dimension_numbers = #tpu.dot_dimension_numbers<[1], [0], [0], [1], [0, 0, 1, 1], [], []>} : vector<8x3200xbf16>, vector<3200x1024xbf16>, vector<8x1024xf32> -> vector<8x1024xf32>
    %7 = arith.addf %3, %6 : vector<8x1024xf32>
    %c0_6 = arith.constant 0 : index
    %c0_7 = arith.constant 0 : index
    %8 = vector.load %arg9[%c0_6, %c0_7] : memref<8x1024xf32, #tpu.memory_space<vmem>>, vector<8x1024xf32>
    tpu.vector_store %arg9[%c0_6, %c0_7], %7 {strides = array<i32>} : memref<8x1024xf32, #tpu.memory_space<vmem>>, vector<8x1024xf32>,
    %c0_i32_8 = arith.constant 0 : i32
    %9 = arith.cmpi eq, %arg1, %c0_i32_8 : i32
    %10 = arith.extui %9 : i1 to i32
    %c0_i32_9 = arith.constant 0 : i32
    %11 = arith.cmpi ne, %10, %c0_i32_9 : i32
    scf.if %11 {
      %c0_10 = arith.constant 0 : index
      %c0_11 = arith.constant 0 : index
      %12 = vector.load %arg7[%c0_10, %c0_11] : memref<1x2304xf32, #tpu.memory_space<vmem>>, vector<1x1024xf32>
      %c0_12 = arith.constant 0 : index
      %c1024 = arith.constant 1024 : index
      %13 = vector.load %arg7[%c0_12, %c1024] : memref<1x2304xf32, #tpu.memory_space<vmem>>, vector<1x512xf32>
      %c0_13 = arith.constant 0 : index
      %c1536 = arith.constant 1536 : index
      %14 = vector.load %arg7[%c0_13, %c1536] : memref<1x2304xf32, #tpu.memory_space<vmem>>, vector<1x256xf32>
      %c0_14 = arith.constant 0 : index
      %c1792 = arith.constant 1792 : index
      %15 = vector.load %arg7[%c0_14, %c1792] : memref<1x2304xf32, #tpu.memory_space<vmem>>, vector<1x512xf32>
      %c0_15 = arith.constant 0 : index
      %c0_16 = arith.constant 0 : index
      %16 = vector.load %arg9[%c0_15, %c0_16] : memref<8x1024xf32, #tpu.memory_space<vmem>>, vector<8x1024xf32>
      %17 = vector.broadcast %12 : vector<1x1024xf32> to vector<8x1024xf32>
      %18 = arith.addf %16, %17 : vector<8x1024xf32>
      %cst_17 = arith.constant 0.000000e+00 : f32
      %19 = vector.broadcast %cst_17 : f32 to vector<8x1024xf32>
      %20 = arith.maximumf %18, %19 : vector<8x1024xf32>
      %21 = arith.truncf %20 : vector<8x1024xf32> to vector<8x1024xbf16>
      %c0_18 = arith.constant 0 : index
      %c0_19 = arith.constant 0 : index
      %22 = vector.load %arg4[%c0_18, %c0_19] : memref<1024x512xbf16, #tpu.memory_space<vmem>>, vector<1024x512xbf16>
      %cst_20 = arith.constant dense<0.000000e+00> : vector<8x512xf32>
      %23 = tpu.matmul %21, %22, %cst_20 {dimension_numbers = #tpu.dot_dimension_numbers<[1], [0], [0], [1], [0, 0, 1, 1], [], []>} : vector<8x1024xbf16>, vector<1024x512xbf16>, vector<8x512xf32> -> vector<8x512xf32>
      %24 = vector.broadcast %13 : vector<1x512xf32> to vector<8x512xf32>
      %25 = arith.addf %23, %24 : vector<8x512xf32>
      %cst_21 = arith.constant 0.000000e+00 : f32
      %26 = vector.broadcast %cst_21 : f32 to vector<8x512xf32>
      %27 = arith.maximumf %25, %26 : vector<8x512xf32>
      %28 = arith.truncf %27 : vector<8x512xf32> to vector<8x512xbf16>
      %c0_22 = arith.constant 0 : index
      %c0_23 = arith.constant 0 : index
      %29 = vector.load %arg5[%c0_22, %c0_23] : memref<512x256xbf16, #tpu.memory_space<vmem>>, vector<512x256xbf16>
      %cst_24 = arith.constant dense<0.000000e+00> : vector<8x256xf32>
      %30 = tpu.matmul %28, %29, %cst_24 {dimension_numbers = #tpu.dot_dimension_numbers<[1], [0], [0], [1], [0, 0, 1, 1], [], []>} : vector<8x512xbf16>, vector<512x256xbf16>, vector<8x256xf32> -> vector<8x256xf32>
      %31 = vector.broadcast %14 : vector<1x256xf32> to vector<8x256xf32>
      %32 = arith.addf %30, %31 : vector<8x256xf32>
      %cst_25 = arith.constant 0.000000e+00 : f32
      %33 = vector.broadcast %cst_25 : f32 to vector<8x256xf32>
      %34 = arith.maximumf %32, %33 : vector<8x256xf32>
      %35 = arith.truncf %34 : vector<8x256xf32> to vector<8x256xbf16>
      %c0_26 = arith.constant 0 : index
      %c0_27 = arith.constant 0 : index
      %36 = vector.load %arg6[%c0_26, %c0_27] : memref<256x512xbf16, #tpu.memory_space<vmem>>, vector<256x512xbf16>
      %cst_28 = arith.constant dense<0.000000e+00> : vector<8x512xf32>
      %37 = tpu.matmul %35, %36, %cst_28 {dimension_numbers = #tpu.dot_dimension_numbers<[1], [0], [0], [1], [0, 0, 1, 1], [], []>} : vector<8x256xbf16>, vector<256x512xbf16>, vector<8x512xf32> -> vector<8x512xf32>
      %38 = vector.broadcast %15 : vector<1x512xf32> to vector<8x512xf32>
      %39 = arith.addf %37, %38 : vector<8x512xf32>
      %40 = arith.mulf %39, %39 : vector<8x512xf32>
      %cst_29 = arith.constant dense<0.000000e+00> : vector<8xf32>
      %41 = vector.multi_reduction <add>, %40, %cst_29 [1] : vector<8x512xf32> to vector<8xf32>
      %42 = vector.shape_cast %41 : vector<8xf32> to vector<8x1xf32>
      %cst_30 = arith.constant 1.000000e-24 : f32
      %43 = vector.broadcast %cst_30 : f32 to vector<8x1xf32>
      %44 = arith.maximumf %42, %43 : vector<8x1xf32>
      %45 = math.rsqrt %44 : vector<8x1xf32>
      %46 = vector.broadcast %45 : vector<8x1xf32> to vector<8x512xf32>
      %47 = arith.mulf %39, %46 : vector<8x512xf32>
      %c0_31 = arith.constant 0 : index
      %c0_32 = arith.constant 0 : index
      %48 = vector.load %arg8[%c0_31, %c0_32] : memref<8x512xf32, #tpu.memory_space<vmem>>, vector<8x512xf32>
      tpu.vector_store %arg8[%c0_31, %c0_32], %47 {strides = array<i32>} : memref<8x512xf32, #tpu.memory_space<vmem>>, vector<8x512xf32>,
    } else {
    }
    return
  }
  func.func @transform_0(%arg0: i32, %arg1: i32) -> (i32, i32) {
    %c0_i32 = arith.constant 0 : i32
    return %arg0, %arg1 : i32, i32
  }
  func.func @transform_1(%arg0: i32, %arg1: i32) -> (i32, i32) {
    %c0_i32 = arith.constant 0 : i32
    %c0_i32_0 = arith.constant 0 : i32
    return %arg1, %c0_i32 : i32, i32
  }
  func.func @transform_2(%arg0: i32, %arg1: i32) -> (i32, i32) {
    %c0_i32 = arith.constant 0 : i32
    %c0_i32_0 = arith.constant 0 : i32
    %c0_i32_1 = arith.constant 0 : i32
    return %c0_i32, %c0_i32_0 : i32, i32
  }
  func.func @transform_3(%arg0: i32, %arg1: i32) -> (i32, i32) {
    %c0_i32 = arith.constant 0 : i32
    %c0_i32_0 = arith.constant 0 : i32
    %c0_i32_1 = arith.constant 0 : i32
    return %c0_i32, %c0_i32_0 : i32, i32
  }
  func.func @transform_4(%arg0: i32, %arg1: i32) -> (i32, i32) {
    %c0_i32 = arith.constant 0 : i32
    %c0_i32_0 = arith.constant 0 : i32
    %c0_i32_1 = arith.constant 0 : i32
    return %c0_i32, %c0_i32_0 : i32, i32
  }
  func.func @transform_5(%arg0: i32, %arg1: i32) -> (i32, i32) {
    %c0_i32 = arith.constant 0 : i32
    %c0_i32_0 = arith.constant 0 : i32
    %c0_i32_1 = arith.constant 0 : i32
    return %c0_i32, %c0_i32_0 : i32, i32
  }
  func.func @transform_6(%arg0: i32, %arg1: i32) -> (i32, i32) {
    %c0_i32 = arith.constant 0 : i32
    %c0_i32_0 = arith.constant 0 : i32
    return %arg0, %c0_i32 : i32, i32
  }
}

</mosaic_0001>

<bundles_post_ra>
// kernel: tpu_custom_call.1
= control target key start
LH: loop header
LB: loop body
LE: loop exit
PB: predicated region body
PF: predicated region fallthrough
CT: control target
= control target key end

     0   :  { %11 = vsyncpa [#allocation4], 0  ;;  %s18327_s0 = inlined_call_operand.hbm [shape: bf16[8,3200], index: 0, kind: input, shape index: {}]   ;;  %s18328_s1 = inlined_call_operand.hbm [shape: bf16[3200,1024], index: 1, kind: input, shape index: {}]   ;;  %s18329_s2 = inlined_call_operand.hbm [shape: bf16[1024,512], index: 2, kind: input, shape index: {}]   ;;  %s18330_s3 = inlined_call_operand.hbm [shape: bf16[512,256], index: 3, kind: input, shape index: {}]   ;;  %s18331_s4 = inlined_call_operand.hbm [shape: bf16[256,512], index: 4, kind: input, shape index: {}]   ;;  %s18332_s5 = inlined_call_operand.hbm [shape: f32[1,2304], index: 5, kind: input, shape index: {}]   ;;  %s18333_s6 = inlined_call_operand.hbm [shape: f32[8,512], index: 6, kind: output, shape index: {}]  }
   0x1   :  { %12 = vsyncpa [#allocation7], 0 }
   0x2   :  { %13 = vsyncpa [#allocation10], 0 }
   0x3   :  { %14 = vsyncpa [#allocation13], 0 }
   0x4   :  { %15 = vsyncpa [#allocation5], 0  ;;  %s17729_s21 = smov [#allocation6]  }
   0x5   :  { %s31_s22 = sshll.u32 %s17729_s21, 4  ;;  %s32_s22 = int_to_ptr.vmem [resolvable:$true] %s31_s22 }
   0x6   :  { %s17587_s23 = scalar_lea.vmem %s32_s22, 204800  ;;  %p17592_p1 = scmp.lt.s32.totalorder %s32_s22, %s32_s22 }
   0x7   :  { %p17588_p0 = scmp.ne.s32.totalorder %s32_s22, %s17587_s23  ;;  %p17593_p2 = scmp.lt.s32.totalorder %s17587_s23, %s17587_s23 }
   0x9   :  { %p17594_p3 = por %p17593_p2, %p17592_p1 }
   0xb   :  { %p17595_p4 = pnand %p17594_p3, %p17588_p0 }
   0xd   :  { %17598 = shalt.err (!%p17595_p4)
}
   0xe   :  { %s17730_s24 = smov 512   ;;  %s17731_s25 = smov 32  }
   0xf   :  { %37 = dma.hbm_to_vmem [thread:$0]  %s18328_s1, 204800, %s32_s22, [#allocation7], %s17730_s24, %s17730_s24, %s17731_s25  }
  0x10   :  { %s17732_s28 = smov [#allocation9]  }
  0x11   :  { %s55_s29 = sshll.u32 %s17732_s28, 4  ;;  %s56_s29 = int_to_ptr.vmem [resolvable:$true] %s55_s29 }
  0x12   :  { %s17607_s30 = scalar_lea.vmem %s56_s29, 8192  ;;  %p17612_p6 = scmp.lt.s32.totalorder %s56_s29, %s56_s29 }
  0x13   :  { %p17608_p5 = scmp.ne.s32.totalorder %s56_s29, %s17607_s30  ;;  %p17613_p7 = scmp.lt.s32.totalorder %s17607_s30, %s17607_s30 }
  0x15   :  { %p17614_p8 = por %p17613_p7, %p17612_p6 }
  0x17   :  { %p17615_p9 = pnand %p17614_p8, %p17608_p5 }
  0x19   :  { %17618 = shalt.err (!%p17615_p9)
}
  0x1a   :  { %s17733_s7 = smov 128   ;;  %s17734_s8 = smov 8  }
  0x1b   :  { %61 = dma.hbm_to_vmem [thread:$0]  %s18330_s3, 8192, %s56_s29, [#allocation10], %s17733_s7, %s17733_s7, %s17734_s8  }
  0x1c   :  { %s17735_s11 = smov [#allocation3]   ;;  %s17736_s13 = smov [#allocation8]  }
  0x1d   :  { %s22_s12 = sshll.u32 %s17735_s11, 4  ;;  %s43_s1 = sshll.u32 %s17736_s13, 4  ;;  %s23_s12 = int_to_ptr.vmem [resolvable:$true] %s22_s12  ;;  %s44_s1 = int_to_ptr.vmem [resolvable:$true] %s43_s1 }
  0x1e   :  { %s17627_s14 = scalar_lea.vmem %s23_s12, 1600  ;;  %p17632_p11 = scmp.lt.s32.totalorder %s23_s12, %s23_s12 }
  0x1f   :  { %p17628_p10 = scmp.ne.s32.totalorder %s23_s12, %s17627_s14  ;;  %p17633_p12 = scmp.lt.s32.totalorder %s17627_s14, %s17627_s14 }
  0x21   :  { %p17634_p13 = por %p17633_p12, %p17632_p11 }
  0x23   :  { %p17635_p0 = pnand %p17634_p13, %p17628_p10 }
  0x25   :  { %17638 = shalt.err (!%p17635_p0)
}
  0x26   :  { %25 = dma.hbm_to_vmem [thread:$0]  %s18327_s0, 1600, %s23_s12, [#allocation4]  }
  0x27   :  { %s17647_s17 = scalar_lea.vmem %s44_s1, 32768  ;;  %p17652_p2 = scmp.lt.s32.totalorder %s44_s1, %s44_s1 }
  0x28   :  { %p17648_p1 = scmp.ne.s32.totalorder %s44_s1, %s17647_s17  ;;  %p17653_p3 = scmp.lt.s32.totalorder %s17647_s17, %s17647_s17 }
  0x2a   :  { %p17654_p4 = por %p17653_p3, %p17652_p2 }
  0x2c   :  { %p17655_p5 = pnand %p17654_p4, %p17648_p1 }
  0x2e   :  { %17658 = shalt.err (!%p17655_p5)
}
  0x2f   :  { %s17737_s3 = smov 256   ;;  %s17738_s18 = smov 16  }
  0x30   :  { %49 = dma.hbm_to_vmem [thread:$0]  %s18329_s2, 32768, %s44_s1, [#allocation7], %s17737_s3, %s17737_s3, %s17738_s18  }
  0x31   :  { %s17739_s21 = smov [#allocation11]   ;;  %s17740_s23 = smov [#allocation12]  }
  0x32   :  { %s67_s22 = sshll.u32 %s17739_s21, 4  ;;  %s80_s24 = sshll.u32 %s17740_s23, 4  ;;  %s68_s22 = int_to_ptr.vmem [resolvable:$true] %s67_s22  ;;  %s81_s24 = int_to_ptr.vmem [resolvable:$true] %s80_s24 }
  0x33   :  { %s17667_s0 = scalar_lea.vmem %s68_s22, 8192  ;;  %p17672_p7 = scmp.lt.s32.totalorder %s68_s22, %s68_s22 }
  0x34   :  { %p17668_p6 = scmp.ne.s32.totalorder %s68_s22, %s17667_s0  ;;  %p17673_p8 = scmp.lt.s32.totalorder %s17667_s0, %s17667_s0 }
  0x36   :  { %p17674_p9 = por %p17673_p8, %p17672_p7 }
  0x38   :  { %p17675_p10 = pnand %p17674_p9, %p17668_p6 }
  0x3a   :  { %17678 = shalt.err (!%p17675_p10)
}
  0x3b   :  { %73 = dma.hbm_to_vmem [thread:$0]  %s18331_s4, 8192, %s68_s22, [#allocation10], %s17737_s3, %s17737_s3, %s17738_s18  }
  0x3c   :  { %s17687_s27 = scalar_lea.vmem %s81_s24, 288  ;;  %p17692_p12 = scmp.lt.s32.totalorder %s81_s24, %s81_s24 }
  0x3d   :  { %p17688_p11 = scmp.ne.s32.totalorder %s81_s24, %s17687_s27  ;;  %p17693_p13 = scmp.lt.s32.totalorder %s17687_s27, %s17687_s27 }
  0x3f   :  { %p17694_p0 = por %p17693_p13, %p17692_p12 }
  0x41   :  { %p17695_p1 = pnand %p17694_p0, %p17688_p11 }
  0x43   :  { %17698 = shalt.err (!%p17695_p1)
}
  0x44   :  { %83 = dma.hbm_to_vmem [thread:$0]  %s18332_s5, 288, %s81_s24, [#allocation13]  }
  0x45   :  { %17719 = dma.done.wait [#allocation4], 1600  }
  0x46   :  { %17720 = vsyncadd [#allocation4], 4294965696 }
  0x47   :  { %17721 = dma.done.wait [#allocation7], 237568  }
  0x48   :  { %17722 = vsyncadd [#allocation7], 4294729728 }
  0x49   :  { %17723 = dma.done.wait [#allocation10], 16384  }
  0x4a   :  { %17724 = vsyncadd [#allocation10], 4294950912 }
  0x4b   :  { %17725 = dma.done.wait [#allocation13], 288  }
  0x4c   :  { %17726 = vsyncadd [#allocation13], 4294967008  ;;  %v192_v0 = vld [vmem:[#allocation6 + $0x1c0] sm:$0xff]  ;;  %s17742_s4 = smov [#allocation14]  }
  0x4d   :  { %v196_v1 = vld [vmem:[#allocation6 + $0x1e0] sm:$0xff]  ;;  %s14938_s5 = sshll.u32 %s17742_s4, 4  ;;  %s14939_s5 = int_to_ptr.vmem [resolvable:$true] %s14938_s5 }
  0x4e   :  { %v320_v2 = vld [vmem:[#allocation6 + $0x5c0] sm:$0xff]  ;;  %v15032_v3 = vcombine.high %v192_v0, %v196_v1  ;;  %v15031_v5 = vcombine.low %v192_v0, %v196_v1  ;;  %s17699_s29 = scalar_lea.vmem %s14939_s5, 512  ;;  %p17704_p3 = scmp.lt.s32.totalorder %s14939_s5, %s14939_s5 }
  0x4f   :  { %v324_v4 = vld [vmem:[#allocation6 + $0x5e0] sm:$0xff]  ;;  %p17700_p2 = scmp.ne.s32.totalorder %s14939_s5, %s17699_s29  ;;  %p17705_p4 = scmp.lt.s32.totalorder %s17699_s29, %s17699_s29 }
  0x50   :  { %v184_v6 = vld [vmem:[#allocation6 + $0x180] sm:$0xff]  ;;  %v15160_v8 = vcombine.high %v320_v2, %v324_v4  ;;  %v15159_v9 = vcombine.low %v320_v2, %v324_v4  ;;  %9824 = vmatprep.subr.bf16.mxu0 %v15032_v3 }
  0x51   :  { %v188_v7 = vld [vmem:[#allocation6 + $0x1a0] sm:$0xff]  ;;  %9825 = vmatpush1.bf16.msra.mxu0 %v15031_v5  ;;  %p17706_p5 = por %p17705_p4, %p17704_p3 }
  0x52   :  { %v15024_v10 = vcombine.high %v184_v6, %v188_v7  ;;  %v312_v11 = vld [vmem:[#allocation6 + $0x580] sm:$0xff]  ;;  %9865 = vmatprep.subr.bf16.mxu1 %v15160_v8  ;;  %v15023_v18 = vcombine.low %v184_v6, %v188_v7 }
  0x53   :  { %v316_v12 = vld [vmem:[#allocation6 + $0x5a0] sm:$0xff]  ;;  %9866 = vmatpush1.bf16.msra.mxu1 %v15159_v9  ;;  %p17707_p6 = pnand %p17706_p5, %p17700_p2 }
  0x54   :  { %v176_v13 = vld [vmem:[#allocation6 + $0x140] sm:$0xff]  ;;  %v15152_v14 = vcombine.high %v312_v11, %v316_v12  ;;  %9826 = vmatprep.subr.bf16.mxu0 %v15024_v10  ;;  %v15151_v19 = vcombine.low %v312_v11, %v316_v12 }
  0x55   :  { %v180_v15 = vld [vmem:[#allocation6 + $0x160] sm:$0xff]  ;;  %9827 = vmatpush1.bf16.msra.mxu0 %v15023_v18 }
  0x56   :  { %v304_v16 = vld [vmem:[#allocation6 + $0x540] sm:$0xff]  ;;  %v15016_v20 = vcombine.high %v176_v13, %v180_v15  ;;  %9867 = vmatprep.subr.bf16.mxu1 %v15152_v14  ;;  %v15015_v26 = vcombine.low %v176_v13, %v180_v15 }
  0x57   :  { %v308_v17 = vld [vmem:[#allocation6 + $0x560] sm:$0xff]  ;;  %9868 = vmatpush1.bf16.msra.mxu1 %v15151_v19 }
  0x58   :  { %v15144_v21 = vcombine.high %v304_v16, %v308_v17  ;;  %v168_v22 = vld [vmem:[#allocation6 + $0x100] sm:$0xff]  ;;  %9828 = vmatprep.subr.bf16.mxu0 %v15016_v20  ;;  %v15143_v27 = vcombine.low %v304_v16, %v308_v17 }
  0x59   :  { %v172_v23 = vld [vmem:[#allocation6 + $0x120] sm:$0xff]  ;;  %9829 = vmatpush1.bf16.msra.mxu0 %v15015_v26 }
  0x5a   :  { %v296_v24 = vld [vmem:[#allocation6 + $0x500] sm:$0xff]  ;;  %v15008_v28 = vcombine.high %v168_v22, %v172_v23  ;;  %9869 = vmatprep.subr.bf16.mxu1 %v15144_v21  ;;  %v15007_v34 = vcombine.low %v168_v22, %v172_v23 }
  0x5b   :  { %v300_v25 = vld [vmem:[#allocation6 + $0x520] sm:$0xff]  ;;  %9870 = vmatpush1.bf16.msra.mxu1 %v15143_v27 }
  0x5c   :  { %v15136_v29 = vcombine.high %v296_v24, %v300_v25  ;;  %v160_v30 = vld [vmem:[#allocation6 + $0xc0] sm:$0xff]  ;;  %9830 = vmatprep.subr.bf16.mxu0 %v15008_v28  ;;  %v15135_v35 = vcombine.low %v296_v24, %v300_v25 }
  0x5d   :  { %v164_v31 = vld [vmem:[#allocation6 + $0xe0] sm:$0xff]  ;;  %9831 = vmatpush1.bf16.msra.mxu0 %v15007_v34 }
  0x5e   :  { %v288_v32 = vld [vmem:[#allocation6 + $0x4c0] sm:$0xff]  ;;  %v15000_v36 = vcombine.high %v160_v30, %v164_v31  ;;  %9871 = vmatprep.subr.bf16.mxu1 %v15136_v29  ;;  %v14999_v42 = vcombine.low %v160_v30, %v164_v31 }
  0x5f   :  { %v292_v33 = vld [vmem:[#allocation6 + $0x4e0] sm:$0xff]  ;;  %9872 = vmatpush1.bf16.msra.mxu1 %v15135_v35 }
  0x60   :  { %v15128_v37 = vcombine.high %v288_v32, %v292_v33  ;;  %v152_v38 = vld [vmem:[#allocation6 + $0x80] sm:$0xff]  ;;  %9832 = vmatprep.subr.bf16.mxu0 %v15000_v36  ;;  %v15127_v43 = vcombine.low %v288_v32, %v292_v33 }
  0x61   :  { %v156_v39 = vld [vmem:[#allocation6 + $0xa0] sm:$0xff]  ;;  %9833 = vmatpush1.bf16.msra.mxu0 %v14999_v42 }
  0x62   :  { %v280_v40 = vld [vmem:[#allocation6 + $0x480] sm:$0xff]  ;;  %v14992_v44 = vcombine.high %v152_v38, %v156_v39  ;;  %9873 = vmatprep.subr.bf16.mxu1 %v15128_v37  ;;  %v14991_v50 = vcombine.low %v152_v38, %v156_v39 }
  0x63   :  { %v284_v41 = vld [vmem:[#allocation6 + $0x4a0] sm:$0xff]  ;;  %9874 = vmatpush1.bf16.msra.mxu1 %v15127_v43 }
  0x64   :  { %v15120_v45 = vcombine.high %v280_v40, %v284_v41  ;;  %v144_v46 = vld [vmem:[#allocation6 + $0x40] sm:$0xff]  ;;  %9834 = vmatprep.subr.bf16.mxu0 %v14992_v44  ;;  %v15119_v51 = vcombine.low %v280_v40, %v284_v41 }
  0x65   :  { %v148_v47 = vld [vmem:[#allocation6 + $0x60] sm:$0xff]  ;;  %9835 = vmatpush1.bf16.msra.mxu0 %v14991_v50 }
  0x66   :  { %v272_v48 = vld [vmem:[#allocation6 + $0x440] sm:$0xff]  ;;  %v14984_v52 = vcombine.high %v144_v46, %v148_v47  ;;  %9875 = vmatprep.subr.bf16.mxu1 %v15120_v45  ;;  %v14983_v62 = vcombine.low %v144_v46, %v148_v47 }
  0x67   :  { %v276_v49 = vld [vmem:[#allocation6 + $0x460] sm:$0xff]  ;;  %9876 = vmatpush1.bf16.msra.mxu1 %v15119_v51 }
  0x68   :  { %v17796_v53 = vld [vmem:[#allocation3] sm:$0xff]  ;;  %v17798_v54 = vld [vmem:[#allocation3 + $0x8] sm:$0xff]  ;;  %v15112_v55 = vcombine.high %v272_v48, %v276_v49  ;;  %9836 = vmatprep.subr.bf16.mxu0 %v14984_v52  ;;  %v15111_v63 = vcombine.low %v272_v48, %v276_v49 }
  0x69   :  { %v136_v56 = vld [vmem:[#allocation6] sm:$0xff]  ;;  %v17802_v58 = vcombine.high %v17796_v53, %v17796_v53  ;;  %v17806_v59 = vcombine.high %v17798_v54, %v17798_v54  ;;  %9837 = vmatpush1.bf16.msra.mxu0 %v14983_v62 }
  0x6a   :  { %v140_v57 = vld [vmem:[#allocation6 + $0x20] sm:$0xff]  ;;  %9877 = vmatprep.subr.bf16.mxu1 %v15112_v55 }
  0x6b   :  { %v264_v60 = vld [vmem:[#allocation6 + $0x400] sm:$0xff]  ;;  %9856 = vmatprep.mubr.bf16.mxu0 %v17802_v58  ;;  %v14976_v0 = vcombine.high %v136_v56, %v140_v57  ;;  %9897 = vmatprep.mubr.bf16.mxu1 %v17806_v59  ;;  %v14975_v6 = vcombine.low %v136_v56, %v140_v57 }
  0x6c   :  { %v268_v61 = vld [vmem:[#allocation6 + $0x420] sm:$0xff]  ;;  %9878 = vmatpush1.bf16.msra.mxu1 %v15111_v63 }
  0x6d   :  { %v15104_v1 = vcombine.high %v264_v60, %v268_v61  ;;  %v256_v2 = vld [vmem:[#allocation6 + $0x3c0] sm:$0xff]  ;;  %9838 = vmatprep.subr.bf16.mxu0 %v14976_v0  ;;  %v15103_v7 = vcombine.low %v264_v60, %v268_v61 }
  0x6e   :  { %v260_v3 = vld [vmem:[#allocation6 + $0x3e0] sm:$0xff]  ;;  %9839 = vmatpush1.bf16.msra.mxu0 %v14975_v6 }
  0x6f   :  { %v384_v4 = vld [vmem:[#allocation6 + $0x7c0] sm:$0xff]  ;;  %v15096_v8 = vcombine.high %v256_v2, %v260_v3  ;;  %9879 = vmatprep.subr.bf16.mxu1 %v15104_v1  ;;  %v15095_v14 = vcombine.low %v256_v2, %v260_v3 }
  0x70   :  { %v388_v5 = vld [vmem:[#allocation6 + $0x7e0] sm:$0xff]  ;;  %9880 = vmatpush1.bf16.msra.mxu1 %v15103_v7 }
  0x71   :  { %v15224_v9 = vcombine.high %v384_v4, %v388_v5  ;;  %v248_v10 = vld [vmem:[#allocation6 + $0x380] sm:$0xff]  ;;  %9840 = vmatprep.subr.bf16.mxu0 %v15096_v8  ;;  %v15223_v15 = vcombine.low %v384_v4, %v388_v5 }
  0x72   :  { %v252_v11 = vld [vmem:[#allocation6 + $0x3a0] sm:$0xff]  ;;  %9841 = vmatpush2.bf16.msra.mxu0 %v15095_v14 }
  0x73   :  { %v376_v12 = vld [vmem:[#allocation6 + $0x780] sm:$0xff]  ;;  %v15088_v16 = vcombine.high %v248_v10, %v252_v11  ;;  %9881 = vmatprep.subr.bf16.mxu1 %v15224_v9  ;;  %v15087_v22 = vcombine.low %v248_v10, %v252_v11 }
  0x74   :  { %v380_v13 = vld [vmem:[#allocation6 + $0x7a0] sm:$0xff]  ;;  %9882 = vmatpush2.bf16.msra.mxu1 %v15223_v15 }
  0x75   :  { %v15216_v17 = vcombine.high %v376_v12, %v380_v13  ;;  %v240_v18 = vld [vmem:[#allocation6 + $0x340] sm:$0xff]  ;;  %9842 = vmatprep.subr.bf16.mxu0 %v15088_v16  ;;  %v15215_v23 = vcombine.low %v376_v12, %v380_v13  ;;  %v17812_v16 = vcombine.low %v17796_v53, %v17796_v53 }
  0x76   :  { %v244_v19 = vld [vmem:[#allocation6 + $0x360] sm:$0xff]  ;;  %9843 = vmatpush2.bf16.msra.mxu0 %v15087_v22  ;;  %v17820_v22 = vld [vmem:[#allocation3 + $0x18] sm:$0xff] }
  0x77   :  { %v368_v20 = vld [vmem:[#allocation6 + $0x740] sm:$0xff]  ;;  %v15080_v24 = vcombine.high %v240_v18, %v244_v19  ;;  %9883 = vmatprep.subr.bf16.mxu1 %v15216_v17  ;;  %v15079_v30 = vcombine.low %v240_v18, %v244_v19  ;;  %v17814_v19 = vld [vmem:[#allocation3 + $0x10] sm:$0xff] }
  0x78   :  { %v372_v21 = vld [vmem:[#allocation6 + $0x760] sm:$0xff]  ;;  %9884 = vmatpush2.bf16.msra.mxu1 %v15215_v23 }
  0x79   :  { %v15208_v25 = vcombine.high %v368_v20, %v372_v21  ;;  %v232_v26 = vld [vmem:[#allocation6 + $0x300] sm:$0xff]  ;;  %9844 = vmatprep.subr.bf16.mxu0 %v15080_v24  ;;  %v15207_v31 = vcombine.low %v368_v20, %v372_v21  ;;  %v17818_v20 = vcombine.low %v17798_v54, %v17798_v54 }
  0x7a   :  { %v236_v27 = vld [vmem:[#allocation6 + $0x320] sm:$0xff]  ;;  %9845 = vmatpush2.bf16.msra.mxu0 %v15079_v30 }
  0x7b   :  { %v360_v28 = vld [vmem:[#allocation6 + $0x700] sm:$0xff]  ;;  %v15072_v32 = vcombine.high %v232_v26, %v236_v27  ;;  %9885 = vmatprep.subr.bf16.mxu1 %v15208_v25  ;;  %v15071_v38 = vcombine.low %v232_v26, %v236_v27 }
  0x7c   :  { %v364_v29 = vld [vmem:[#allocation6 + $0x720] sm:$0xff]  ;;  %9886 = vmatpush2.bf16.msra.mxu1 %v15207_v31 }
  0x7d   :  { %v15200_v33 = vcombine.high %v360_v28, %v364_v29  ;;  %v224_v34 = vld [vmem:[#allocation6 + $0x2c0] sm:$0xff]  ;;  %9846 = vmatprep.subr.bf16.mxu0 %v15072_v32  ;;  %v15199_v39 = vcombine.low %v360_v28, %v364_v29  ;;  %v17824_v28 = vcombine.high %v17814_v19, %v17814_v19  ;;  %v17829_v29 = vcombine.high %v17820_v22, %v17820_v22 }
  0x7e   :  { %v228_v35 = vld [vmem:[#allocation6 + $0x2e0] sm:$0xff]  ;;  %9847 = vmatpush2.bf16.msra.mxu0 %v15071_v38 }
  0x7f   :  { %v352_v36 = vld [vmem:[#allocation6 + $0x6c0] sm:$0xff]  ;;  %v15064_v40 = vcombine.high %v224_v34, %v228_v35  ;;  %9887 = vmatprep.subr.bf16.mxu1 %v15200_v33  ;;  %v15063_v46 = vcombine.low %v224_v34, %v228_v35 }
  0x80   :  { %v356_v37 = vld [vmem:[#allocation6 + $0x6e0] sm:$0xff]  ;;  %9888 = vmatpush2.bf16.msra.mxu1 %v15199_v39 }
  0x81   :  { %v15192_v41 = vcombine.high %v352_v36, %v356_v37  ;;  %v216_v42 = vld [vmem:[#allocation6 + $0x280] sm:$0xff]  ;;  %9848 = vmatprep.subr.bf16.mxu0 %v15064_v40  ;;  %v15191_v47 = vcombine.low %v352_v36, %v356_v37 }
  0x82   :  { %v220_v43 = vld [vmem:[#allocation6 + $0x2a0] sm:$0xff]  ;;  %9849 = vmatpush2.bf16.msra.mxu0 %v15063_v46 }
  0x83   :  { %v344_v44 = vld [vmem:[#allocation6 + $0x680] sm:$0xff]  ;;  %v15056_v48 = vcombine.high %v216_v42, %v220_v43  ;;  %9889 = vmatprep.subr.bf16.mxu1 %v15192_v41  ;;  %v15055_v56 = vcombine.low %v216_v42, %v220_v43 }
  0x84   :  { %v348_v45 = vld [vmem:[#allocation6 + $0x6a0] sm:$0xff]  ;;  %9890 = vmatpush2.bf16.msra.mxu1 %v15191_v47 }
  0x85   :  { %v15184_v49 = vcombine.high %v344_v44, %v348_v45  ;;  %v208_v50 = vld [vmem:[#allocation6 + $0x240] sm:$0xff]  ;;  %9850 = vmatprep.subr.bf16.mxu0 %v15056_v48  ;;  %v15183_v57 = vcombine.low %v344_v44, %v348_v45 }
  0x86   :  { %v212_v51 = vld [vmem:[#allocation6 + $0x260] sm:$0xff]  ;;  %9851 = vmatpush2.bf16.msra.mxu0 %v15055_v56 }
  0x87   :  { %v336_v52 = vld [vmem:[#allocation6 + $0x640] sm:$0xff]  ;;  %v15048_v60 = vcombine.high %v208_v50, %v212_v51  ;;  %9891 = vmatprep.subr.bf16.mxu1 %v15184_v49  ;;  %v15047_v2 = vcombine.low %v208_v50, %v212_v51 }
  0x88   :  { %v340_v55 = vld [vmem:[#allocation6 + $0x660] sm:$0xff]  ;;  %9892 = vmatpush2.bf16.msra.mxu1 %v15183_v57 }
  0x89   :  { %v15176_v61 = vcombine.high %v336_v52, %v340_v55  ;;  %v200_v62 = vld [vmem:[#allocation6 + $0x200] sm:$0xff]  ;;  %9852 = vmatprep.subr.bf16.mxu0 %v15048_v60  ;;  %v15175_v3 = vcombine.low %v336_v52, %v340_v55 }
  0x8a   :  { %v204_v63 = vld [vmem:[#allocation6 + $0x220] sm:$0xff]  ;;  %9853 = vmatpush2.bf16.msra.mxu0 %v15047_v2 }
  0x8b   :  { %v328_v0 = vld [vmem:[#allocation6 + $0x600] sm:$0xff]  ;;  %v15040_v4 = vcombine.high %v200_v62, %v204_v63  ;;  %9893 = vmatprep.subr.bf16.mxu1 %v15176_v61  ;;  %v15039_v10 = vcombine.low %v200_v62, %v204_v63 }
  0x8c   :  { %v332_v1 = vld [vmem:[#allocation6 + $0x620] sm:$0xff]  ;;  %9894 = vmatpush2.bf16.msra.mxu1 %v15175_v3 }
  0x8d   :  { %v15168_v5 = vcombine.high %v328_v0, %v332_v1  ;;  %v448_v6 = vld [vmem:[#allocation6 + $0x9c0] sm:$0xff]  ;;  %9854 = vmatprep.subr.bf16.mxu0 %v15040_v4  ;;  %v15167_v11 = vcombine.low %v328_v0, %v332_v1 }
  0x8e   :  { %v452_v7 = vld [vmem:[#allocation6 + $0x9e0] sm:$0xff]  ;;  %9855 = vmatpush2.bf16.msra.mxu0 %v15039_v10 }
  0x8f   :  { %v576_v8 = vld [vmem:[#allocation6 + $0xdc0] sm:$0xff]  ;;  %v15288_v12 = vcombine.high %v448_v6, %v452_v7  ;;  %9895 = vmatprep.subr.bf16.mxu1 %v15168_v5  ;;  %v15287_v21 = vcombine.low %v448_v6, %v452_v7 }
  0x90   :  { %v580_v9 = vld [vmem:[#allocation6 + $0xde0] sm:$0xff]  ;;  %9896 = vmatpush2.bf16.msra.mxu1 %v15167_v11 }
  0x91   :  { %v15416_v13 = vcombine.high %v576_v8, %v580_v9  ;;  %v440_v14 = vld [vmem:[#allocation6 + $0x980] sm:$0xff]  ;;  %9906 = vmatprep.subr.bf16.mxu0 %v15288_v12  ;;  %v15415_v23 = vcombine.low %v576_v8, %v580_v9  ;;  %9857 = vmatmul.mubr.bf16.vlgmr.msra.gmra.mxu0 %v17812_v16 }
  0x92   :  { %v444_v15 = vld [vmem:[#allocation6 + $0x9a0] sm:$0xff]  ;;  %9907 = vmatpush1.bf16.msra.mxu0 %v15287_v21  ;;  %9938 = vmatprep.mubr.bf16.mxu0 %v17824_v28 }
  0x93   :  { %v568_v17 = vld [vmem:[#allocation6 + $0xd80] sm:$0xff]  ;;  %v15280_v24 = vcombine.high %v440_v14, %v444_v15  ;;  %9947 = vmatprep.subr.bf16.mxu1 %v15416_v13  ;;  %9898 = vmatmul.mubr.bf16.vlgmr.msra.gmra.mxu1 %v17818_v20  ;;  %v15279_v30 = vcombine.low %v440_v14, %v444_v15 }
  0x94   :  { %v572_v18 = vld [vmem:[#allocation6 + $0xda0] sm:$0xff]  ;;  %9948 = vmatpush1.bf16.msra.mxu1 %v15415_v23  ;;  %9979 = vmatprep.mubr.bf16.mxu1 %v17829_v29 }
  0x95   :  { %v15408_v25 = vcombine.high %v568_v17, %v572_v18  ;;  %v432_v53 = vld [vmem:[#allocation6 + $0x940] sm:$0xff]  ;;  %9908 = vmatprep.subr.bf16.mxu0 %v15280_v24  ;;  %v15407_v31 = vcombine.low %v568_v17, %v572_v18 }
  0x96   :  { %v436_v26 = vld [vmem:[#allocation6 + $0x960] sm:$0xff]  ;;  %9909 = vmatpush1.bf16.msra.mxu0 %v15279_v30 }
  0x97   :  { %v560_v27 = vld [vmem:[#allocation6 + $0xd40] sm:$0xff]  ;;  %v15272_v32 = vcombine.high %v432_v53, %v436_v26  ;;  %9949 = vmatprep.subr.bf16.mxu1 %v15408_v25  ;;  %v15271_v38 = vcombine.low %v432_v53, %v436_v26 }
  0x98   :  { %v564_v54 = vld [vmem:[#allocation6 + $0xd60] sm:$0xff]  ;;  %9950 = vmatpush1.bf16.msra.mxu1 %v15407_v31 }
  0x99   :  { %v424_v33 = vld [vmem:[#allocation6 + $0x900] sm:$0xff]  ;;  %v15400_v36 = vcombine.high %v560_v27, %v564_v54  ;;  %9910 = vmatprep.subr.bf16.mxu0 %v15272_v32  ;;  %v15399_v39 = vcombine.low %v560_v27, %v564_v54 }
  0x9a   :  { %v428_v34 = vld [vmem:[#allocation6 + $0x920] sm:$0xff]  ;;  %9911 = vmatpush1.bf16.msra.mxu0 %v15271_v38 }
  0x9b   :  { %v552_v35 = vld [vmem:[#allocation6 + $0xd00] sm:$0xff]  ;;  %v15264_v40 = vcombine.high %v424_v33, %v428_v34  ;;  %9951 = vmatprep.subr.bf16.mxu1 %v15400_v36  ;;  %v15263_v46 = vcombine.low %v424_v33, %v428_v34 }
  0x9c   :  { %v556_v37 = vld [vmem:[#allocation6 + $0xd20] sm:$0xff]  ;;  %9952 = vmatpush1.bf16.msra.mxu1 %v15399_v39 }
  0x9d   :  { %v416_v41 = vld [vmem:[#allocation6 + $0x8c0] sm:$0xff]  ;;  %v15392_v44 = vcombine.high %v552_v35, %v556_v37  ;;  %9912 = vmatprep.subr.bf16.mxu0 %v15264_v40  ;;  %v15391_v47 = vcombine.low %v552_v35, %v556_v37 }
  0x9e   :  { %v420_v42 = vld [vmem:[#allocation6 + $0x8e0] sm:$0xff]  ;;  %9913 = vmatpush1.bf16.msra.mxu0 %v15263_v46 }
  0x9f   :  { %v544_v43 = vld [vmem:[#allocation6 + $0xcc0] sm:$0xff]  ;;  %v15256_v48 = vcombine.high %v416_v41, %v420_v42  ;;  %9953 = vmatprep.subr.bf16.mxu1 %v15392_v44  ;;  %v15255_v56 = vcombine.low %v416_v41, %v420_v42 }
  0xa0   :  { %v548_v45 = vld [vmem:[#allocation6 + $0xce0] sm:$0xff]  ;;  %9954 = vmatpush1.bf16.msra.mxu1 %v15391_v47 }
  0xa1   :  { %v408_v49 = vld [vmem:[#allocation6 + $0x880] sm:$0xff]  ;;  %v15384_v52 = vcombine.high %v544_v43, %v548_v45  ;;  %9914 = vmatprep.subr.bf16.mxu0 %v15256_v48  ;;  %v15383_v57 = vcombine.low %v544_v43, %v548_v45 }
  0xa2   :  { %v412_v50 = vld [vmem:[#allocation6 + $0x8a0] sm:$0xff]  ;;  %9915 = vmatpush1.bf16.msra.mxu0 %v15255_v56 }
  0xa3   :  { %v536_v51 = vld [vmem:[#allocation6 + $0xc80] sm:$0xff]  ;;  %v15248_v60 = vcombine.high %v408_v49, %v412_v50  ;;  %9955 = vmatprep.subr.bf16.mxu1 %v15384_v52  ;;  %v15247_v2 = vcombine.low %v408_v49, %v412_v50 }
  0xa4   :  { %v540_v55 = vld [vmem:[#allocation6 + $0xca0] sm:$0xff]  ;;  %9956 = vmatpush1.bf16.msra.mxu1 %v15383_v57 }
  0xa5   :  { %v400_v61 = vld [vmem:[#allocation6 + $0x840] sm:$0xff]  ;;  %v15376_v0 = vcombine.high %v536_v51, %v540_v55  ;;  %9916 = vmatprep.subr.bf16.mxu0 %v15248_v60  ;;  %v15375_v3 = vcombine.low %v536_v51, %v540_v55 }
  0xa6   :  { %v404_v62 = vld [vmem:[#allocation6 + $0x860] sm:$0xff]  ;;  %9917 = vmatpush1.bf16.msra.mxu0 %v15247_v2 }
  0xa7   :  { %v528_v63 = vld [vmem:[#allocation6 + $0xc40] sm:$0xff]  ;;  %v15240_v4 = vcombine.high %v400_v61, %v404_v62  ;;  %9957 = vmatprep.subr.bf16.mxu1 %v15376_v0  ;;  %v15239_v10 = vcombine.low %v400_v61, %v404_v62 }
  0xa8   :  { %v532_v1 = vld [vmem:[#allocation6 + $0xc60] sm:$0xff]  ;;  %9958 = vmatpush1.bf16.msra.mxu1 %v15375_v3 }
  0xa9   :  { %v392_v5 = vld [vmem:[#allocation6 + $0x800] sm:$0xff]  ;;  %v15368_v8 = vcombine.high %v528_v63, %v532_v1  ;;  %9918 = vmatprep.subr.bf16.mxu0 %v15240_v4  ;;  %v15367_v11 = vcombine.low %v528_v63, %v532_v1 }
  0xaa   :  { %v396_v6 = vld [vmem:[#allocation6 + $0x820] sm:$0xff]  ;;  %9919 = vmatpush1.bf16.msra.mxu0 %v15239_v10 }
  0xab   :  { %v520_v7 = vld [vmem:[#allocation6 + $0xc00] sm:$0xff]  ;;  %v15232_v12 = vcombine.high %v392_v5, %v396_v6  ;;  %9959 = vmatprep.subr.bf16.mxu1 %v15368_v8  ;;  %v15231_v21 = vcombine.low %v392_v5, %v396_v6 }
  0xac   :  { %v524_v9 = vld [vmem:[#allocation6 + $0xc20] sm:$0xff]  ;;  %9960 = vmatpush1.bf16.msra.mxu1 %v15367_v11 }
  0xad   :  { %v512_v13 = vld [vmem:[#allocation6 + $0xbc0] sm:$0xff]  ;;  %v15360_v17 = vcombine.high %v520_v7, %v524_v9  ;;  %9920 = vmatprep.subr.bf16.mxu0 %v15232_v12  ;;  %v15359_v23 = vcombine.low %v520_v7, %v524_v9 }
  0xae   :  { %v516_v14 = vld [vmem:[#allocation6 + $0xbe0] sm:$0xff]  ;;  %9921 = vmatpush1.bf16.msra.mxu0 %v15231_v21 }
  0xaf   :  { %v640_v15 = vld [vmem:[#allocation6 + $0xfc0] sm:$0xff]  ;;  %v15352_v24 = vcombine.high %v512_v13, %v516_v14  ;;  %9961 = vmatprep.subr.bf16.mxu1 %v15360_v17  ;;  %v15351_v30 = vcombine.low %v512_v13, %v516_v14 }
  0xb0   :  { %v644_v18 = vld [vmem:[#allocation6 + $0xfe0] sm:$0xff]  ;;  %9962 = vmatpush1.bf16.msra.mxu1 %v15359_v23 }
  0xb1   :  { %v504_v25 = vld [vmem:[#allocation6 + $0xb80] sm:$0xff]  ;;  %v15480_v27 = vcombine.high %v640_v15, %v644_v18  ;;  %9922 = vmatprep.subr.bf16.mxu0 %v15352_v24  ;;  %v15479_v31 = vcombine.low %v640_v15, %v644_v18 }
  0xb2   :  { %v508_v53 = vld [vmem:[#allocation6 + $0xba0] sm:$0xff]  ;;  %9923 = vmatpush2.bf16.msra.mxu0 %v15351_v30 }
  0xb3   :  { %v632_v26 = vld [vmem:[#allocation6 + $0xf80] sm:$0xff]  ;;  %v15344_v32 = vcombine.high %v504_v25, %v508_v53  ;;  %9963 = vmatprep.subr.bf16.mxu1 %v15480_v27  ;;  %v15343_v38 = vcombine.low %v504_v25, %v508_v53 }
  0xb4   :  { %v636_v54 = vld [vmem:[#allocation6 + $0xfa0] sm:$0xff]  ;;  %9964 = vmatpush2.bf16.msra.mxu1 %v15479_v31 }
  0xb5   :  { %v496_v33 = vld [vmem:[#allocation6 + $0xb40] sm:$0xff]  ;;  %v15472_v36 = vcombine.high %v632_v26, %v636_v54  ;;  %9924 = vmatprep.subr.bf16.mxu0 %v15344_v32  ;;  %v15471_v39 = vcombine.low %v632_v26, %v636_v54 }
  0xb6   :  { %v500_v34 = vld [vmem:[#allocation6 + $0xb60] sm:$0xff]  ;;  %9925 = vmatpush2.bf16.msra.mxu0 %v15343_v38 }
  0xb7   :  { %v624_v35 = vld [vmem:[#allocation6 + $0xf40] sm:$0xff]  ;;  %v15336_v40 = vcombine.high %v496_v33, %v500_v34  ;;  %9965 = vmatprep.subr.bf16.mxu1 %v15472_v36  ;;  %v15335_v46 = vcombine.low %v496_v33, %v500_v34 }
  0xb8   :  { %v628_v37 = vld [vmem:[#allocation6 + $0xf60] sm:$0xff]  ;;  %9966 = vmatpush2.bf16.msra.mxu1 %v15471_v39  ;;  %v17838_v39 = vcombine.low %v17814_v19, %v17814_v19 }
  0xb9   :  { %v488_v41 = vld [vmem:[#allocation6 + $0xb00] sm:$0xff]  ;;  %v15464_v44 = vcombine.high %v624_v35, %v628_v37  ;;  %9926 = vmatprep.subr.bf16.mxu0 %v15336_v40  ;;  %v15463_v47 = vcombine.low %v624_v35, %v628_v37  ;;  %v17842_v40 = vcombine.low %v17820_v22, %v17820_v22 }
  0xba   :  { %v492_v42 = vld [vmem:[#allocation6 + $0xb20] sm:$0xff]  ;;  %9927 = vmatpush2.bf16.msra.mxu0 %v15335_v46 }
  0xbb   :  { %v616_v43 = vld [vmem:[#allocation6 + $0xf00] sm:$0xff]  ;;  %v15328_v48 = vcombine.high %v488_v41, %v492_v42  ;;  %9967 = vmatprep.subr.bf16.mxu1 %v15464_v44  ;;  %v15327_v56 = vcombine.low %v488_v41, %v492_v42 }
  0xbc   :  { %v620_v45 = vld [vmem:[#allocation6 + $0xf20] sm:$0xff]  ;;  %9968 = vmatpush2.bf16.msra.mxu1 %v15463_v47 }
  0xbd   :  { %v480_v49 = vld [vmem:[#allocation6 + $0xac0] sm:$0xff]  ;;  %v15456_v52 = vcombine.high %v616_v43, %v620_v45  ;;  %9928 = vmatprep.subr.bf16.mxu0 %v15328_v48  ;;  %v15455_v57 = vcombine.low %v616_v43, %v620_v45 }
  0xbe   :  { %v484_v50 = vld [vmem:[#allocation6 + $0xae0] sm:$0xff]  ;;  %9929 = vmatpush2.bf16.msra.mxu0 %v15327_v56 }
  0xbf   :  { %v608_v51 = vld [vmem:[#allocation6 + $0xec0] sm:$0xff]  ;;  %v15320_v60 = vcombine.high %v480_v49, %v484_v50  ;;  %9969 = vmatprep.subr.bf16.mxu1 %v15456_v52  ;;  %v15319_v2 = vcombine.low %v480_v49, %v484_v50 }
  0xc0   :  { %v612_v55 = vld [vmem:[#allocation6 + $0xee0] sm:$0xff]  ;;  %9970 = vmatpush2.bf16.msra.mxu1 %v15455_v57 }
  0xc1   :  { %v472_v61 = vld [vmem:[#allocation6 + $0xa80] sm:$0xff]  ;;  %v15448_v0 = vcombine.high %v608_v51, %v612_v55  ;;  %9930 = vmatprep.subr.bf16.mxu0 %v15320_v60  ;;  %v15447_v3 = vcombine.low %v608_v51, %v612_v55 }
  0xc2   :  { %v476_v62 = vld [vmem:[#allocation6 + $0xaa0] sm:$0xff]  ;;  %9931 = vmatpush2.bf16.msra.mxu0 %v15319_v2 }
  0xc3   :  { %v600_v63 = vld [vmem:[#allocation6 + $0xe80] sm:$0xff]  ;;  %v15312_v4 = vcombine.high %v472_v61, %v476_v62  ;;  %9971 = vmatprep.subr.bf16.mxu1 %v15448_v0  ;;  %v15311_v10 = vcombine.low %v472_v61, %v476_v62 }
  0xc4   :  { %v604_v1 = vld [vmem:[#allocation6 + $0xea0] sm:$0xff]  ;;  %9972 = vmatpush2.bf16.msra.mxu1 %v15447_v3 }
  0xc5   :  { %v464_v5 = vld [vmem:[#allocation6 + $0xa40] sm:$0xff]  ;;  %v15440_v8 = vcombine.high %v600_v63, %v604_v1  ;;  %9932 = vmatprep.subr.bf16.mxu0 %v15312_v4  ;;  %v15439_v11 = vcombine.low %v600_v63, %v604_v1 }
  0xc6   :  { %v468_v6 = vld [vmem:[#allocation6 + $0xa60] sm:$0xff]  ;;  %9933 = vmatpush2.bf16.msra.mxu0 %v15311_v10 }
  0xc7   :  { %v592_v7 = vld [vmem:[#allocation6 + $0xe40] sm:$0xff]  ;;  %v15304_v12 = vcombine.high %v464_v5, %v468_v6  ;;  %9973 = vmatprep.subr.bf16.mxu1 %v15440_v8  ;;  %v15303_v21 = vcombine.low %v464_v5, %v468_v6 }
  0xc8   :  { %v596_v9 = vld [vmem:[#allocation6 + $0xe60] sm:$0xff]  ;;  %9974 = vmatpush2.bf16.msra.mxu1 %v15439_v11 }
  0xc9   :  { %v456_v13 = vld [vmem:[#allocation6 + $0xa00] sm:$0xff]  ;;  %v15432_v17 = vcombine.high %v592_v7, %v596_v9  ;;  %9934 = vmatprep.subr.bf16.mxu0 %v15304_v12  ;;  %v15431_v23 = vcombine.low %v592_v7, %v596_v9 }
  0xca   :  { %v460_v14 = vld [vmem:[#allocation6 + $0xa20] sm:$0xff]  ;;  %9935 = vmatpush2.bf16.msra.mxu0 %v15303_v21 }
  0xcb   :  { %v584_v15 = vld [vmem:[#allocation6 + $0xe00] sm:$0xff]  ;;  %v15296_v24 = vcombine.high %v456_v13, %v460_v14  ;;  %9975 = vmatprep.subr.bf16.mxu1 %v15432_v17  ;;  %v15295_v30 = vcombine.low %v456_v13, %v460_v14 }
  0xcc   :  { %v588_v18 = vld [vmem:[#allocation6 + $0xe20] sm:$0xff]  ;;  %9976 = vmatpush2.bf16.msra.mxu1 %v15431_v23 }
  0xcd   :  { %v704_v25 = vld [vmem:[#allocation6 + $0x11c0] sm:$0xff]  ;;  %v15424_v27 = vcombine.high %v584_v15, %v588_v18  ;;  %9936 = vmatprep.subr.bf16.mxu0 %v15296_v24  ;;  %v15423_v32 = vcombine.low %v584_v15, %v588_v18 }
  0xce   :  { %v708_v53 = vld [vmem:[#allocation6 + $0x11e0] sm:$0xff]  ;;  %9937 = vmatpush2.bf16.msra.mxu0 %v15295_v30 }
  0xcf   :  { %v832_v26 = vld [vmem:[#allocation6 + $0x15c0] sm:$0xff]  ;;  %v15544_v33 = vcombine.high %v704_v25, %v708_v53  ;;  %9977 = vmatprep.subr.bf16.mxu1 %v15424_v27  ;;  %v15543_v41 = vcombine.low %v704_v25, %v708_v53 }
  0xd0   :  { %v836_v54 = vld [vmem:[#allocation6 + $0x15e0] sm:$0xff]  ;;  %9978 = vmatpush2.bf16.msra.mxu1 %v15423_v32 }
  0xd1   :  { %v696_v31 = vld [vmem:[#allocation6 + $0x1180] sm:$0xff]  ;;  %v15672_v37 = vcombine.high %v832_v26, %v836_v54  ;;  %9988 = vmatprep.subr.bf16.mxu0 %v15544_v33  ;;  %v15671_v43 = vcombine.low %v832_v26, %v836_v54  ;;  %9939 = vmatmul.mubr.bf16.vlgmr.msra.gmra.mxu0 %v17838_v39 }
  0xd2   :  { %v700_v34 = vld [vmem:[#allocation6 + $0x11a0] sm:$0xff]  ;;  %9989 = vmatpush1.bf16.msra.mxu0 %v15543_v41 }
  0xd3   :  { %v824_v35 = vld [vmem:[#allocation6 + $0x1580] sm:$0xff]  ;;  %v15536_v44 = vcombine.high %v696_v31, %v700_v34  ;;  %10029 = vmatprep.subr.bf16.mxu1 %v15672_v37  ;;  %9980 = vmatmul.mubr.bf16.vlgmr.msra.gmra.mxu1 %v17842_v40  ;;  %v15535_v50 = vcombine.low %v696_v31, %v700_v34 }
  0xd4   :  { %v828_v36 = vld [vmem:[#allocation6 + $0x15a0] sm:$0xff]  ;;  %10030 = vmatpush1.bf16.msra.mxu1 %v15671_v43 }
  0xd5   :  { %v17834_v38 = vld [vmem:[#allocation3 + $0x20] sm:$0xff]  ;;  %v17844_v42 = vld [vmem:[#allocation3 + $0x28] sm:$0xff]  ;;  %v15664_v48 = vcombine.high %v824_v35, %v828_v36  ;;  %9990 = vmatprep.subr.bf16.mxu0 %v15536_v44  ;;  %v15663_v51 = vcombine.low %v824_v35, %v828_v36 }
  0xd6   :  { %v688_v45 = vld [vmem:[#allocation6 + $0x1140] sm:$0xff]  ;;  %v17848_v19 = vcombine.high %v17834_v38, %v17834_v38  ;;  %v17853_v22 = vcombine.high %v17844_v42, %v17844_v42  ;;  %9991 = vmatpush1.bf16.msra.mxu0 %v15535_v50 }
  0xd7   :  { %v692_v46 = vld [vmem:[#allocation6 + $0x1160] sm:$0xff]  ;;  %10031 = vmatprep.subr.bf16.mxu1 %v15664_v48 }
  0xd8   :  { %v816_v47 = vld [vmem:[#allocation6 + $0x1540] sm:$0xff]  ;;  %v15528_v52 = vcombine.high %v688_v45, %v692_v46  ;;  %10020 = vmatprep.mubr.bf16.mxu0 %v17848_v19  ;;  %10061 = vmatprep.mubr.bf16.mxu1 %v17853_v22  ;;  %v15527_v62 = vcombine.low %v688_v45, %v692_v46 }
  0xd9   :  { %v820_v49 = vld [vmem:[#allocation6 + $0x1560] sm:$0xff]  ;;  %10032 = vmatpush1.bf16.msra.mxu1 %v15663_v51 }
  0xda   :  { %v680_v55 = vld [vmem:[#allocation6 + $0x1100] sm:$0xff]  ;;  %v15656_v60 = vcombine.high %v816_v47, %v820_v49  ;;  %9992 = vmatprep.subr.bf16.mxu0 %v15528_v52  ;;  %v15655_v63 = vcombine.low %v816_v47, %v820_v49 }
  0xdb   :  { %v684_v56 = vld [vmem:[#allocation6 + $0x1120] sm:$0xff]  ;;  %9993 = vmatpush1.bf16.msra.mxu0 %v15527_v62 }
  0xdc   :  { %v808_v57 = vld [vmem:[#allocation6 + $0x1500] sm:$0xff]  ;;  %v15520_v0 = vcombine.high %v680_v55, %v684_v56  ;;  %10033 = vmatprep.subr.bf16.mxu1 %v15656_v60  ;;  %v15519_v6 = vcombine.low %v680_v55, %v684_v56 }
  0xdd   :  { %v812_v61 = vld [vmem:[#allocation6 + $0x1520] sm:$0xff]  ;;  %10034 = vmatpush1.bf16.msra.mxu1 %v15655_v63 }
  0xde   :  { %v672_v1 = vld [vmem:[#allocation6 + $0x10c0] sm:$0xff]  ;;  %v15648_v4 = vcombine.high %v808_v57, %v812_v61  ;;  %9994 = vmatprep.subr.bf16.mxu0 %v15520_v0  ;;  %v15647_v7 = vcombine.low %v808_v57, %v812_v61 }
  0xdf   :  { %v676_v2 = vld [vmem:[#allocation6 + $0x10e0] sm:$0xff]  ;;  %9995 = vmatpush1.bf16.msra.mxu0 %v15519_v6 }
  0xe0   :  { %v800_v3 = vld [vmem:[#allocation6 + $0x14c0] sm:$0xff]  ;;  %v15512_v8 = vcombine.high %v672_v1, %v676_v2  ;;  %10035 = vmatprep.subr.bf16.mxu1 %v15648_v4  ;;  %v15511_v14 = vcombine.low %v672_v1, %v676_v2 }
  0xe1   :  { %v804_v5 = vld [vmem:[#allocation6 + $0x14e0] sm:$0xff]  ;;  %10036 = vmatpush1.bf16.msra.mxu1 %v15647_v7 }
  0xe2   :  { %v664_v9 = vld [vmem:[#allocation6 + $0x1080] sm:$0xff]  ;;  %v15640_v12 = vcombine.high %v800_v3, %v804_v5  ;;  %9996 = vmatprep.subr.bf16.mxu0 %v15512_v8  ;;  %v15639_v15 = vcombine.low %v800_v3, %v804_v5 }
  0xe3   :  { %v668_v10 = vld [vmem:[#allocation6 + $0x10a0] sm:$0xff]  ;;  %9997 = vmatpush1.bf16.msra.mxu0 %v15511_v14 }
  0xe4   :  { %v792_v11 = vld [vmem:[#allocation6 + $0x1480] sm:$0xff]  ;;  %v15504_v17 = vcombine.high %v664_v9, %v668_v10  ;;  %10037 = vmatprep.subr.bf16.mxu1 %v15640_v12  ;;  %v15503_v53 = vcombine.low %v664_v9, %v668_v10 }
  0xe5   :  { %v796_v13 = vld [vmem:[#allocation6 + $0x14a0] sm:$0xff]  ;;  %10038 = vmatpush1.bf16.msra.mxu1 %v15639_v15 }
  0xe6   :  { %v656_v18 = vld [vmem:[#allocation6 + $0x1040] sm:$0xff]  ;;  %v15632_v24 = vcombine.high %v792_v11, %v796_v13  ;;  %9998 = vmatprep.subr.bf16.mxu0 %v15504_v17  ;;  %v15631_v26 = vcombine.low %v792_v11, %v796_v13 }
  0xe7   :  { %v660_v21 = vld [vmem:[#allocation6 + $0x1060] sm:$0xff]  ;;  %9999 = vmatpush1.bf16.msra.mxu0 %v15503_v53 }
  0xe8   :  { %v784_v23 = vld [vmem:[#allocation6 + $0x1440] sm:$0xff]  ;;  %v15496_v27 = vcombine.high %v656_v18, %v660_v21  ;;  %10039 = vmatprep.subr.bf16.mxu1 %v15632_v24  ;;  %v15495_v34 = vcombine.low %v656_v18, %v660_v21 }
  0xe9   :  { %v788_v25 = vld [vmem:[#allocation6 + $0x1460] sm:$0xff]  ;;  %10040 = vmatpush1.bf16.msra.mxu1 %v15631_v26 }
  0xea   :  { %v648_v54 = vld [vmem:[#allocation6 + $0x1000] sm:$0xff]  ;;  %v15624_v32 = vcombine.high %v784_v23, %v788_v25  ;;  %10000 = vmatprep.subr.bf16.mxu0 %v15496_v27  ;;  %v15623_v35 = vcombine.low %v784_v23, %v788_v25 }
  0xeb   :  { %v652_v30 = vld [vmem:[#allocation6 + $0x1020] sm:$0xff]  ;;  %10001 = vmatpush1.bf16.msra.mxu0 %v15495_v34 }
  0xec   :  { %v776_v31 = vld [vmem:[#allocation6 + $0x1400] sm:$0xff]  ;;  %v15488_v36 = vcombine.high %v648_v54, %v652_v30  ;;  %10041 = vmatprep.subr.bf16.mxu1 %v15624_v32  ;;  %v15487_v46 = vcombine.low %v648_v54, %v652_v30 }
  0xed   :  { %v780_v33 = vld [vmem:[#allocation6 + $0x1420] sm:$0xff]  ;;  %10042 = vmatpush1.bf16.msra.mxu1 %v15623_v35 }
  0xee   :  { %v768_v37 = vld [vmem:[#allocation6 + $0x13c0] sm:$0xff]  ;;  %v15616_v44 = vcombine.high %v776_v31, %v780_v33  ;;  %10002 = vmatprep.subr.bf16.mxu0 %v15488_v36  ;;  %v15615_v47 = vcombine.low %v776_v31, %v780_v33 }
  0xef   :  { %v772_v41 = vld [vmem:[#allocation6 + $0x13e0] sm:$0xff]  ;;  %10003 = vmatpush1.bf16.msra.mxu0 %v15487_v46 }
  0xf0   :  { %v896_v43 = vld [vmem:[#allocation6 + $0x17c0] sm:$0xff]  ;;  %v15608_v48 = vcombine.high %v768_v37, %v772_v41  ;;  %10043 = vmatprep.subr.bf16.mxu1 %v15616_v44  ;;  %v15607_v56 = vcombine.low %v768_v37, %v772_v41 }
  0xf1   :  { %v900_v45 = vld [vmem:[#allocation6 + $0x17e0] sm:$0xff]  ;;  %10044 = vmatpush1.bf16.msra.mxu1 %v15615_v47 }
  0xf2   :  { %v760_v49 = vld [vmem:[#allocation6 + $0x1380] sm:$0xff]  ;;  %v15736_v52 = vcombine.high %v896_v43, %v900_v45  ;;  %10004 = vmatprep.subr.bf16.mxu0 %v15608_v48  ;;  %v15735_v57 = vcombine.low %v896_v43, %v900_v45 }
  0xf3   :  { %v764_v50 = vld [vmem:[#allocation6 + $0x13a0] sm:$0xff]  ;;  %10005 = vmatpush2.bf16.msra.mxu0 %v15607_v56 }
  0xf4   :  { %v888_v51 = vld [vmem:[#allocation6 + $0x1780] sm:$0xff]  ;;  %v15600_v60 = vcombine.high %v760_v49, %v764_v50  ;;  %10045 = vmatprep.subr.bf16.mxu1 %v15736_v52  ;;  %v15599_v2 = vcombine.low %v760_v49, %v764_v50 }
  0xf5   :  { %v892_v55 = vld [vmem:[#allocation6 + $0x17a0] sm:$0xff]  ;;  %10046 = vmatpush2.bf16.msra.mxu1 %v15735_v57 }
  0xf6   :  { %v752_v61 = vld [vmem:[#allocation6 + $0x1340] sm:$0xff]  ;;  %v15728_v0 = vcombine.high %v888_v51, %v892_v55  ;;  %10006 = vmatprep.subr.bf16.mxu0 %v15600_v60  ;;  %v15727_v3 = vcombine.low %v888_v51, %v892_v55 }
  0xf7   :  { %v756_v62 = vld [vmem:[#allocation6 + $0x1360] sm:$0xff]  ;;  %10007 = vmatpush2.bf16.msra.mxu0 %v15599_v2 }
  0xf8   :  { %v880_v63 = vld [vmem:[#allocation6 + $0x1740] sm:$0xff]  ;;  %v15592_v4 = vcombine.high %v752_v61, %v756_v62  ;;  %10047 = vmatprep.subr.bf16.mxu1 %v15728_v0  ;;  %v15591_v10 = vcombine.low %v752_v61, %v756_v62 }
  0xf9   :  { %v884_v1 = vld [vmem:[#allocation6 + $0x1760] sm:$0xff]  ;;  %10048 = vmatpush2.bf16.msra.mxu1 %v15727_v3 }
  0xfa   :  { %v744_v5 = vld [vmem:[#allocation6 + $0x1300] sm:$0xff]  ;;  %v15720_v8 = vcombine.high %v880_v63, %v884_v1  ;;  %10008 = vmatprep.subr.bf16.mxu0 %v15592_v4  ;;  %v15719_v11 = vcombine.low %v880_v63, %v884_v1 }
  0xfb   :  { %v748_v6 = vld [vmem:[#allocation6 + $0x1320] sm:$0xff]  ;;  %10009 = vmatpush2.bf16.msra.mxu0 %v15591_v10  ;;  %v17868_v10 = vld [vmem:[#allocation3 + $0x38] sm:$0xff] }
  0xfc   :  { %v872_v7 = vld [vmem:[#allocation6 + $0x1700] sm:$0xff]  ;;  %v15584_v12 = vcombine.high %v744_v5, %v748_v6  ;;  %10049 = vmatprep.subr.bf16.mxu1 %v15720_v8  ;;  %v15583_v21 = vcombine.low %v744_v5, %v748_v6  ;;  %v17858_v6 = vld [vmem:[#allocation3 + $0x30] sm:$0xff]  ;;  %v17866_v8 = vcombine.low %v17844_v42, %v17844_v42  ;;  %v17877_v42 = vcombine.high %v17868_v10, %v17868_v10 }
  0xfd   :  { %v876_v9 = vld [vmem:[#allocation6 + $0x1720] sm:$0xff]  ;;  %10050 = vmatpush2.bf16.msra.mxu1 %v15719_v11 }
  0xfe   :  { %v736_v13 = vld [vmem:[#allocation6 + $0x12c0] sm:$0xff]  ;;  %v15712_v17 = vcombine.high %v872_v7, %v876_v9  ;;  %10010 = vmatprep.subr.bf16.mxu0 %v15584_v12  ;;  %v15711_v23 = vcombine.low %v872_v7, %v876_v9  ;;  %v17862_v7 = vcombine.low %v17834_v38, %v17834_v38  ;;  %v17872_v38 = vcombine.high %v17858_v6, %v17858_v6 }
  0xff   :  { %v740_v14 = vld [vmem:[#allocation6 + $0x12e0] sm:$0xff]  ;;  %10011 = vmatpush2.bf16.msra.mxu0 %v15583_v21 }
 0x100   :  { %v864_v15 = vld [vmem:[#allocation6 + $0x16c0] sm:$0xff]  ;;  %v15576_v24 = vcombine.high %v736_v13, %v740_v14  ;;  %10051 = vmatprep.subr.bf16.mxu1 %v15712_v17  ;;  %v15575_v30 = vcombine.low %v736_v13, %v740_v14 }
 0x101   :  { %v868_v18 = vld [vmem:[#allocation6 + $0x16e0] sm:$0xff]  ;;  %10052 = vmatpush2.bf16.msra.mxu1 %v15711_v23 }
 0x102   :  { %v728_v25 = vld [vmem:[#allocation6 + $0x1280] sm:$0xff]  ;;  %v15704_v27 = vcombine.high %v864_v15, %v868_v18  ;;  %10012 = vmatprep.subr.bf16.mxu0 %v15576_v24  ;;  %v15703_v31 = vcombine.low %v864_v15, %v868_v18 }
 0x103   :  { %v732_v53 = vld [vmem:[#allocation6 + $0x12a0] sm:$0xff]  ;;  %10013 = vmatpush2.bf16.msra.mxu0 %v15575_v30 }
 0x104   :  { %v856_v26 = vld [vmem:[#allocation6 + $0x1680] sm:$0xff]  ;;  %v15568_v32 = vcombine.high %v728_v25, %v732_v53  ;;  %10053 = vmatprep.subr.bf16.mxu1 %v15704_v27  ;;  %v15567_v41 = vcombine.low %v728_v25, %v732_v53 }
 0x105   :  { %v860_v54 = vld [vmem:[#allocation6 + $0x16a0] sm:$0xff]  ;;  %10054 = vmatpush2.bf16.msra.mxu1 %v15703_v31 }
 0x106   :  { %v720_v33 = vld [vmem:[#allocation6 + $0x1240] sm:$0xff]  ;;  %v15696_v36 = vcombine.high %v856_v26, %v860_v54  ;;  %10014 = vmatprep.subr.bf16.mxu0 %v15568_v32  ;;  %v15695_v43 = vcombine.low %v856_v26, %v860_v54 }
 0x107   :  { %v724_v34 = vld [vmem:[#allocation6 + $0x1260] sm:$0xff]  ;;  %10015 = vmatpush2.bf16.msra.mxu0 %v15567_v41 }
 0x108   :  { %v848_v35 = vld [vmem:[#allocation6 + $0x1640] sm:$0xff]  ;;  %v15560_v44 = vcombine.high %v720_v33, %v724_v34  ;;  %10055 = vmatprep.subr.bf16.mxu1 %v15696_v36  ;;  %v15559_v50 = vcombine.low %v720_v33, %v724_v34 }
 0x109   :  { %v852_v37 = vld [vmem:[#allocation6 + $0x1660] sm:$0xff]  ;;  %10056 = vmatpush2.bf16.msra.mxu1 %v15695_v43 }
 0x10a   :  { %v712_v45 = vld [vmem:[#allocation6 + $0x1200] sm:$0xff]  ;;  %v15688_v48 = vcombine.high %v848_v35, %v852_v37  ;;  %10016 = vmatprep.subr.bf16.mxu0 %v15560_v44  ;;  %v15687_v51 = vcombine.low %v848_v35, %v852_v37 }
 0x10b   :  { %v716_v46 = vld [vmem:[#allocation6 + $0x1220] sm:$0xff]  ;;  %10017 = vmatpush2.bf16.msra.mxu0 %v15559_v50 }
 0x10c   :  { %v840_v47 = vld [vmem:[#allocation6 + $0x1600] sm:$0xff]  ;;  %v15552_v52 = vcombine.high %v712_v45, %v716_v46  ;;  %10057 = vmatprep.subr.bf16.mxu1 %v15688_v48  ;;  %v15551_v62 = vcombine.low %v712_v45, %v716_v46 }
 0x10d   :  { %v844_v49 = vld [vmem:[#allocation6 + $0x1620] sm:$0xff]  ;;  %10058 = vmatpush2.bf16.msra.mxu1 %v15687_v51 }
 0x10e   :  { %v960_v55 = vld [vmem:[#allocation6 + $0x19c0] sm:$0xff]  ;;  %v15680_v60 = vcombine.high %v840_v47, %v844_v49  ;;  %10018 = vmatprep.subr.bf16.mxu0 %v15552_v52  ;;  %v15679_v0 = vcombine.low %v840_v47, %v844_v49 }
 0x10f   :  { %v964_v56 = vld [vmem:[#allocation6 + $0x19e0] sm:$0xff]  ;;  %10019 = vmatpush2.bf16.msra.mxu0 %v15551_v62 }
 0x110   :  { %v1088_v57 = vld [vmem:[#allocation6 + $0x1dc0] sm:$0xff]  ;;  %v15800_v1 = vcombine.high %v960_v55, %v964_v56  ;;  %10059 = vmatprep.subr.bf16.mxu1 %v15680_v60  ;;  %v15799_v9 = vcombine.low %v960_v55, %v964_v56 }
 0x111   :  { %v1092_v61 = vld [vmem:[#allocation6 + $0x1de0] sm:$0xff]  ;;  %10060 = vmatpush2.bf16.msra.mxu1 %v15679_v0 }
 0x112   :  { %v952_v63 = vld [vmem:[#allocation6 + $0x1980] sm:$0xff]  ;;  %v15928_v5 = vcombine.high %v1088_v57, %v1092_v61  ;;  %10070 = vmatprep.subr.bf16.mxu0 %v15800_v1  ;;  %v15927_v11 = vcombine.low %v1088_v57, %v1092_v61  ;;  %10021 = vmatmul.mubr.bf16.vlgmr.msra.gmra.mxu0 %v17862_v7 }
 0x113   :  { %v956_v2 = vld [vmem:[#allocation6 + $0x19a0] sm:$0xff]  ;;  %10071 = vmatpush1.bf16.msra.mxu0 %v15799_v9  ;;  %10102 = vmatprep.mubr.bf16.mxu0 %v17872_v38 }
 0x114   :  { %v1080_v3 = vld [vmem:[#allocation6 + $0x1d80] sm:$0xff]  ;;  %v15792_v12 = vcombine.high %v952_v63, %v956_v2  ;;  %10111 = vmatprep.subr.bf16.mxu1 %v15928_v5  ;;  %10062 = vmatmul.mubr.bf16.vlgmr.msra.gmra.mxu1 %v17866_v8  ;;  %v15791_v21 = vcombine.low %v952_v63, %v956_v2 }
 0x115   :  { %v1084_v4 = vld [vmem:[#allocation6 + $0x1da0] sm:$0xff]  ;;  %10112 = vmatpush1.bf16.msra.mxu1 %v15927_v11  ;;  %10143 = vmatprep.mubr.bf16.mxu1 %v17877_v42 }
 0x116   :  { %v944_v13 = vld [vmem:[#allocation6 + $0x1940] sm:$0xff]  ;;  %v15920_v17 = vcombine.high %v1080_v3, %v1084_v4  ;;  %10072 = vmatprep.subr.bf16.mxu0 %v15792_v12  ;;  %v15919_v23 = vcombine.low %v1080_v3, %v1084_v4 }
 0x117   :  { %v948_v14 = vld [vmem:[#allocation6 + $0x1960] sm:$0xff]  ;;  %10073 = vmatpush1.bf16.msra.mxu0 %v15791_v21 }
 0x118   :  { %v1072_v15 = vld [vmem:[#allocation6 + $0x1d40] sm:$0xff]  ;;  %v15784_v24 = vcombine.high %v944_v13, %v948_v14  ;;  %10113 = vmatprep.subr.bf16.mxu1 %v15920_v17  ;;  %v15783_v30 = vcombine.low %v944_v13, %v948_v14 }
 0x119   :  { %v1076_v18 = vld [vmem:[#allocation6 + $0x1d60] sm:$0xff]  ;;  %10114 = vmatpush1.bf16.msra.mxu1 %v15919_v23 }
 0x11a   :  { %v936_v25 = vld [vmem:[#allocation6 + $0x1900] sm:$0xff]  ;;  %v15912_v27 = vcombine.high %v1072_v15, %v1076_v18  ;;  %10074 = vmatprep.subr.bf16.mxu0 %v15784_v24  ;;  %v15911_v31 = vcombine.low %v1072_v15, %v1076_v18 }
 0x11b   :  { %v940_v53 = vld [vmem:[#allocation6 + $0x1920] sm:$0xff]  ;;  %10075 = vmatpush1.bf16.msra.mxu0 %v15783_v30 }
 0x11c   :  { %v1064_v26 = vld [vmem:[#allocation6 + $0x1d00] sm:$0xff]  ;;  %v15776_v32 = vcombine.high %v936_v25, %v940_v53  ;;  %10115 = vmatprep.subr.bf16.mxu1 %v15912_v27  ;;  %v15775_v41 = vcombine.low %v936_v25, %v940_v53 }
 0x11d   :  { %v1068_v54 = vld [vmem:[#allocation6 + $0x1d20] sm:$0xff]  ;;  %10116 = vmatpush1.bf16.msra.mxu1 %v15911_v31 }
 0x11e   :  { %v928_v33 = vld [vmem:[#allocation6 + $0x18c0] sm:$0xff]  ;;  %v15904_v36 = vcombine.high %v1064_v26, %v1068_v54  ;;  %10076 = vmatprep.subr.bf16.mxu0 %v15776_v32  ;;  %v15903_v43 = vcombine.low %v1064_v26, %v1068_v54 }
 0x11f   :  { %v932_v34 = vld [vmem:[#allocation6 + $0x18e0] sm:$0xff]  ;;  %10077 = vmatpush1.bf16.msra.mxu0 %v15775_v41 }
 0x120   :  { %v1056_v35 = vld [vmem:[#allocation6 + $0x1cc0] sm:$0xff]  ;;  %v15768_v44 = vcombine.high %v928_v33, %v932_v34  ;;  %10117 = vmatprep.subr.bf16.mxu1 %v15904_v36  ;;  %v15767_v50 = vcombine.low %v928_v33, %v932_v34 }
 0x121   :  { %v1060_v37 = vld [vmem:[#allocation6 + $0x1ce0] sm:$0xff]  ;;  %10118 = vmatpush1.bf16.msra.mxu1 %v15903_v43 }
 0x122   :  { %v920_v45 = vld [vmem:[#allocation6 + $0x1880] sm:$0xff]  ;;  %v15896_v48 = vcombine.high %v1056_v35, %v1060_v37  ;;  %10078 = vmatprep.subr.bf16.mxu0 %v15768_v44  ;;  %v15895_v51 = vcombine.low %v1056_v35, %v1060_v37 }
 0x123   :  { %v924_v46 = vld [vmem:[#allocation6 + $0x18a0] sm:$0xff]  ;;  %10079 = vmatpush1.bf16.msra.mxu0 %v15767_v50 }
 0x124   :  { %v1048_v47 = vld [vmem:[#allocation6 + $0x1c80] sm:$0xff]  ;;  %v15760_v52 = vcombine.high %v920_v45, %v924_v46  ;;  %10119 = vmatprep.subr.bf16.mxu1 %v15896_v48  ;;  %v15759_v62 = vcombine.low %v920_v45, %v924_v46 }
 0x125   :  { %v1052_v49 = vld [vmem:[#allocation6 + $0x1ca0] sm:$0xff]  ;;  %10120 = vmatpush1.bf16.msra.mxu1 %v15895_v51 }
 0x126   :  { %v912_v55 = vld [vmem:[#allocation6 + $0x1840] sm:$0xff]  ;;  %v15888_v60 = vcombine.high %v1048_v47, %v1052_v49  ;;  %10080 = vmatprep.subr.bf16.mxu0 %v15760_v52  ;;  %v15887_v63 = vcombine.low %v1048_v47, %v1052_v49 }
 0x127   :  { %v916_v56 = vld [vmem:[#allocation6 + $0x1860] sm:$0xff]  ;;  %10081 = vmatpush1.bf16.msra.mxu0 %v15759_v62 }
 0x128   :  { %v1040_v57 = vld [vmem:[#allocation6 + $0x1c40] sm:$0xff]  ;;  %v15752_v0 = vcombine.high %v912_v55, %v916_v56  ;;  %10121 = vmatprep.subr.bf16.mxu1 %v15888_v60  ;;  %v15751_v9 = vcombine.low %v912_v55, %v916_v56 }
 0x129   :  { %v1044_v61 = vld [vmem:[#allocation6 + $0x1c60] sm:$0xff]  ;;  %10122 = vmatpush1.bf16.msra.mxu1 %v15887_v63 }
 0x12a   :  { %v904_v1 = vld [vmem:[#allocation6 + $0x1800] sm:$0xff]  ;;  %v15880_v4 = vcombine.high %v1040_v57, %v1044_v61  ;;  %10082 = vmatprep.subr.bf16.mxu0 %v15752_v0  ;;  %v15879_v11 = vcombine.low %v1040_v57, %v1044_v61 }
 0x12b   :  { %v908_v2 = vld [vmem:[#allocation6 + $0x1820] sm:$0xff]  ;;  %10083 = vmatpush1.bf16.msra.mxu0 %v15751_v9 }
 0x12c   :  { %v1032_v3 = vld [vmem:[#allocation6 + $0x1c00] sm:$0xff]  ;;  %v15744_v12 = vcombine.high %v904_v1, %v908_v2  ;;  %10123 = vmatprep.subr.bf16.mxu1 %v15880_v4  ;;  %v15743_v21 = vcombine.low %v904_v1, %v908_v2 }
 0x12d   :  { %v1036_v5 = vld [vmem:[#allocation6 + $0x1c20] sm:$0xff]  ;;  %10124 = vmatpush1.bf16.msra.mxu1 %v15879_v11 }
 0x12e   :  { %v1024_v13 = vld [vmem:[#allocation6 + $0x1bc0] sm:$0xff]  ;;  %v15872_v17 = vcombine.high %v1032_v3, %v1036_v5  ;;  %10084 = vmatprep.subr.bf16.mxu0 %v15744_v12  ;;  %v15871_v23 = vcombine.low %v1032_v3, %v1036_v5 }
 0x12f   :  { %v1028_v14 = vld [vmem:[#allocation6 + $0x1be0] sm:$0xff]  ;;  %10085 = vmatpush1.bf16.msra.mxu0 %v15743_v21 }
 0x130   :  { %v1152_v15 = vld [vmem:[#allocation6 + $0x1fc0] sm:$0xff]  ;;  %v15864_v24 = vcombine.high %v1024_v13, %v1028_v14  ;;  %10125 = vmatprep.subr.bf16.mxu1 %v15872_v17  ;;  %v15863_v30 = vcombine.low %v1024_v13, %v1028_v14 }
 0x131   :  { %v1156_v18 = vld [vmem:[#allocation6 + $0x1fe0] sm:$0xff]  ;;  %10126 = vmatpush1.bf16.msra.mxu1 %v15871_v23 }
 0x132   :  { %v1016_v25 = vld [vmem:[#allocation6 + $0x1b80] sm:$0xff]  ;;  %v15992_v27 = vcombine.high %v1152_v15, %v1156_v18  ;;  %10086 = vmatprep.subr.bf16.mxu0 %v15864_v24  ;;  %v15991_v31 = vcombine.low %v1152_v15, %v1156_v18 }
 0x133   :  { %v1020_v53 = vld [vmem:[#allocation6 + $0x1ba0] sm:$0xff]  ;;  %10087 = vmatpush2.bf16.msra.mxu0 %v15863_v30 }
 0x134   :  { %v1144_v26 = vld [vmem:[#allocation6 + $0x1f80] sm:$0xff]  ;;  %v15856_v32 = vcombine.high %v1016_v25, %v1020_v53  ;;  %10127 = vmatprep.subr.bf16.mxu1 %v15992_v27  ;;  %v15855_v41 = vcombine.low %v1016_v25, %v1020_v53 }
 0x135   :  { %v1148_v54 = vld [vmem:[#allocation6 + $0x1fa0] sm:$0xff]  ;;  %10128 = vmatpush2.bf16.msra.mxu1 %v15991_v31 }
 0x136   :  { %v1008_v33 = vld [vmem:[#allocation6 + $0x1b40] sm:$0xff]  ;;  %v15984_v36 = vcombine.high %v1144_v26, %v1148_v54  ;;  %10088 = vmatprep.subr.bf16.mxu0 %v15856_v32  ;;  %v15983_v43 = vcombine.low %v1144_v26, %v1148_v54 }
 0x137   :  { %v1012_v34 = vld [vmem:[#allocation6 + $0x1b60] sm:$0xff]  ;;  %10089 = vmatpush2.bf16.msra.mxu0 %v15855_v41 }
 0x138   :  { %v1136_v35 = vld [vmem:[#allocation6 + $0x1f40] sm:$0xff]  ;;  %v15848_v44 = vcombine.high %v1008_v33, %v1012_v34  ;;  %10129 = vmatprep.subr.bf16.mxu1 %v15984_v36  ;;  %v15847_v50 = vcombine.low %v1008_v33, %v1012_v34 }
 0x139   :  { %v1140_v37 = vld [vmem:[#allocation6 + $0x1f60] sm:$0xff]  ;;  %10130 = vmatpush2.bf16.msra.mxu1 %v15983_v43 }
 0x13a   :  { %v1000_v45 = vld [vmem:[#allocation6 + $0x1b00] sm:$0xff]  ;;  %v15976_v48 = vcombine.high %v1136_v35, %v1140_v37  ;;  %10090 = vmatprep.subr.bf16.mxu0 %v15848_v44  ;;  %v15975_v51 = vcombine.low %v1136_v35, %v1140_v37 }
 0x13b   :  { %v1004_v46 = vld [vmem:[#allocation6 + $0x1b20] sm:$0xff]  ;;  %10091 = vmatpush2.bf16.msra.mxu0 %v15847_v50 }
 0x13c   :  { %v1128_v47 = vld [vmem:[#allocation6 + $0x1f00] sm:$0xff]  ;;  %v15840_v52 = vcombine.high %v1000_v45, %v1004_v46  ;;  %10131 = vmatprep.subr.bf16.mxu1 %v15976_v48  ;;  %v15839_v62 = vcombine.low %v1000_v45, %v1004_v46 }
 0x13d   :  { %v1132_v49 = vld [vmem:[#allocation6 + $0x1f20] sm:$0xff]  ;;  %10132 = vmatpush2.bf16.msra.mxu1 %v15975_v51  ;;  %v17886_v51 = vcombine.low %v17858_v6, %v17858_v6 }
 0x13e   :  { %v992_v55 = vld [vmem:[#allocation6 + $0x1ac0] sm:$0xff]  ;;  %v15968_v60 = vcombine.high %v1128_v47, %v1132_v49  ;;  %10092 = vmatprep.subr.bf16.mxu0 %v15840_v52  ;;  %v15967_v63 = vcombine.low %v1128_v47, %v1132_v49  ;;  %v17890_v52 = vcombine.low %v17868_v10, %v17868_v10 }
 0x13f   :  { %v996_v56 = vld [vmem:[#allocation6 + $0x1ae0] sm:$0xff]  ;;  %10093 = vmatpush2.bf16.msra.mxu0 %v15839_v62 }
 0x140   :  { %v1120_v57 = vld [vmem:[#allocation6 + $0x1ec0] sm:$0xff]  ;;  %v15832_v0 = vcombine.high %v992_v55, %v996_v56  ;;  %10133 = vmatprep.subr.bf16.mxu1 %v15968_v60  ;;  %v15831_v9 = vcombine.low %v992_v55, %v996_v56 }
 0x141   :  { %v1124_v61 = vld [vmem:[#allocation6 + $0x1ee0] sm:$0xff]  ;;  %10134 = vmatpush2.bf16.msra.mxu1 %v15967_v63 }
 0x142   :  { %v984_v1 = vld [vmem:[#allocation6 + $0x1a80] sm:$0xff]  ;;  %v15960_v4 = vcombine.high %v1120_v57, %v1124_v61  ;;  %10094 = vmatprep.subr.bf16.mxu0 %v15832_v0  ;;  %v15959_v11 = vcombine.low %v1120_v57, %v1124_v61 }
 0x143   :  { %v988_v2 = vld [vmem:[#allocation6 + $0x1aa0] sm:$0xff]  ;;  %10095 = vmatpush2.bf16.msra.mxu0 %v15831_v9 }
 0x144   :  { %v1112_v3 = vld [vmem:[#allocation6 + $0x1e80] sm:$0xff]  ;;  %v15824_v12 = vcombine.high %v984_v1, %v988_v2  ;;  %10135 = vmatprep.subr.bf16.mxu1 %v15960_v4  ;;  %v15823_v21 = vcombine.low %v984_v1, %v988_v2 }
 0x145   :  { %v1116_v5 = vld [vmem:[#allocation6 + $0x1ea0] sm:$0xff]  ;;  %10136 = vmatpush2.bf16.msra.mxu1 %v15959_v11 }
 0x146   :  { %v976_v13 = vld [vmem:[#allocation6 + $0x1a40] sm:$0xff]  ;;  %v15952_v17 = vcombine.high %v1112_v3, %v1116_v5  ;;  %10096 = vmatprep.subr.bf16.mxu0 %v15824_v12  ;;  %v15951_v23 = vcombine.low %v1112_v3, %v1116_v5 }
 0x147   :  { %v980_v14 = vld [vmem:[#allocation6 + $0x1a60] sm:$0xff]  ;;  %10097 = vmatpush2.bf16.msra.mxu0 %v15823_v21 }
 0x148   :  { %v1104_v15 = vld [vmem:[#allocation6 + $0x1e40] sm:$0xff]  ;;  %v15816_v24 = vcombine.high %v976_v13, %v980_v14  ;;  %10137 = vmatprep.subr.bf16.mxu1 %v15952_v17  ;;  %v15815_v30 = vcombine.low %v976_v13, %v980_v14 }
 0x149   :  { %v1108_v18 = vld [vmem:[#allocation6 + $0x1e60] sm:$0xff]  ;;  %10138 = vmatpush2.bf16.msra.mxu1 %v15951_v23 }
 0x14a   :  { %v968_v25 = vld [vmem:[#allocation6 + $0x1a00] sm:$0xff]  ;;  %v15944_v27 = vcombine.high %v1104_v15, %v1108_v18  ;;  %10098 = vmatprep.subr.bf16.mxu0 %v15816_v24  ;;  %v15943_v31 = vcombine.low %v1104_v15, %v1108_v18 }
 0x14b   :  { %v972_v53 = vld [vmem:[#allocation6 + $0x1a20] sm:$0xff]  ;;  %10099 = vmatpush2.bf16.msra.mxu0 %v15815_v30 }
 0x14c   :  { %v1096_v26 = vld [vmem:[#allocation6 + $0x1e00] sm:$0xff]  ;;  %v15808_v32 = vcombine.high %v968_v25, %v972_v53  ;;  %10139 = vmatprep.subr.bf16.mxu1 %v15944_v27  ;;  %v15807_v41 = vcombine.low %v968_v25, %v972_v53 }
 0x14d   :  { %v1100_v54 = vld [vmem:[#allocation6 + $0x1e20] sm:$0xff]  ;;  %10140 = vmatpush2.bf16.msra.mxu1 %v15943_v31 }
 0x14e   :  { %v1216_v33 = vld [vmem:[#allocation6 + $0x21c0] sm:$0xff]  ;;  %v15936_v36 = vcombine.high %v1096_v26, %v1100_v54  ;;  %10100 = vmatprep.subr.bf16.mxu0 %v15808_v32  ;;  %v15935_v44 = vcombine.low %v1096_v26, %v1100_v54 }
 0x14f   :  { %v1220_v34 = vld [vmem:[#allocation6 + $0x21e0] sm:$0xff]  ;;  %10101 = vmatpush2.bf16.msra.mxu0 %v15807_v41 }
 0x150   :  { %v1344_v35 = vld [vmem:[#allocation6 + $0x25c0] sm:$0xff]  ;;  %v16056_v45 = vcombine.high %v1216_v33, %v1220_v34  ;;  %10141 = vmatprep.subr.bf16.mxu1 %v15936_v36  ;;  %v16055_v55 = vcombine.low %v1216_v33, %v1220_v34 }
 0x151   :  { %v1348_v37 = vld [vmem:[#allocation6 + $0x25e0] sm:$0xff]  ;;  %10142 = vmatpush2.bf16.msra.mxu1 %v15935_v44  ;;  %v9858_v2 = vpop.f32.mrf.mxu0 }
 0x152   :  { %v1208_v43 = vld [vmem:[#allocation6 + $0x2180] sm:$0xff]  ;;  %v16184_v49 = vcombine.high %v1344_v35, %v1348_v37  ;;  %10152 = vmatprep.subr.bf16.mxu0 %v16056_v45  ;;  %v16183_v57 = vcombine.low %v1344_v35, %v1348_v37  ;;  %10103 = vmatmul.mubr.bf16.vlgmr.msra.gmra.mxu0 %v17886_v51 }
 0x153   :  { %v1212_v46 = vld [vmem:[#allocation6 + $0x21a0] sm:$0xff]  ;;  %v9899_v3 = vpop.f32.mrf.mxu1  ;;  %10153 = vmatpush1.bf16.msra.mxu0 %v16055_v55  ;;  %v9860_v9 = vpop.f32.mrf.mxu0 }
 0x154   :  { %v1336_v47 = vld [vmem:[#allocation6 + $0x2580] sm:$0xff]  ;;  %v16048_v60 = vcombine.high %v1208_v43, %v1212_v46  ;;  %10193 = vmatprep.subr.bf16.mxu1 %v16184_v49  ;;  %10144 = vmatmul.mubr.bf16.vlgmr.msra.gmra.mxu1 %v17890_v52  ;;  %v16047_v4 = vcombine.low %v1208_v43, %v1212_v46  ;;  %v17904_v5 = vadd.f32 %v9899_v3, %v9858_v2 }
 0x155   :  { %v1340_v48 = vld [vmem:[#allocation6 + $0x25a0] sm:$0xff]  ;;  %10194 = vmatpush1.bf16.msra.mxu1 %v16183_v57  ;;  %v9901_v14 = vpop.f32.mrf.mxu1  ;;  %v9862_v21 = vpop.f32.mrf.mxu0 }
 0x156   :  { %v17882_v50 = vld [vmem:[#allocation3 + $0x40] sm:$0xff]  ;;  %v17892_v56 = vld [vmem:[#allocation3 + $0x48] sm:$0xff]  ;;  %v16176_v0 = vcombine.high %v1336_v47, %v1340_v48  ;;  %10154 = vmatprep.subr.bf16.mxu0 %v16048_v60  ;;  %v16175_v11 = vcombine.low %v1336_v47, %v1340_v48  ;;  %v17907_v18 = vadd.f32 %v9901_v14, %v9860_v9 }
 0x157   :  { %v1200_v61 = vld [vmem:[#allocation6 + $0x2140] sm:$0xff]  ;;  %v17896_v6 = vcombine.high %v17882_v50, %v17882_v50  ;;  %v17901_v10 = vcombine.high %v17892_v56, %v17892_v56  ;;  %v9903_v25 = vpop.f32.mrf.mxu1  ;;  %10155 = vmatpush1.bf16.msra.mxu0 %v16047_v4  ;;  %v9863_v26 = vpop.f32.mrf.mxu0 }
 0x158   :  { %v1204_v62 = vld [vmem:[#allocation6 + $0x2160] sm:$0xff]  ;;  %10195 = vmatprep.subr.bf16.mxu1 %v16176_v0 }
 0x159   :  { %v1328_v63 = vld [vmem:[#allocation6 + $0x2540] sm:$0xff]  ;;  %v16040_v12 = vcombine.high %v1200_v61, %v1204_v62  ;;  %10184 = vmatprep.mubr.bf16.mxu0 %v17896_v6  ;;  %10225 = vmatprep.mubr.bf16.mxu1 %v17901_v10  ;;  %v16039_v53 = vcombine.low %v1200_v61, %v1204_v62  ;;  %v9904_v30 = vpop.f32.mrf.mxu1 }
 0x15a   :  { %v1332_v1 = vld [vmem:[#allocation6 + $0x2560] sm:$0xff]  ;;  %10196 = vmatpush1.bf16.msra.mxu1 %v16175_v11 }
 0x15b   :  { %v1192_v13 = vld [vmem:[#allocation6 + $0x2100] sm:$0xff]  ;;  %v16168_v15 = vcombine.high %v1328_v63, %v1332_v1  ;;  %10156 = vmatprep.subr.bf16.mxu0 %v16040_v12  ;;  %v16167_v27 = vcombine.low %v1328_v63, %v1332_v1 }
 0x15c   :  { %v1196_v17 = vld [vmem:[#allocation6 + $0x2120] sm:$0xff]  ;;  %10157 = vmatpush1.bf16.msra.mxu0 %v16039_v53 }
 0x15d   :  { %v1320_v23 = vld [vmem:[#allocation6 + $0x2500] sm:$0xff]  ;;  %v16032_v54 = vcombine.high %v1192_v13, %v1196_v17  ;;  %10197 = vmatprep.subr.bf16.mxu1 %v16168_v15  ;;  %v16031_v36 = vcombine.low %v1192_v13, %v1196_v17 }
 0x15e   :  { %v1324_v24 = vld [vmem:[#allocation6 + $0x2520] sm:$0xff]  ;;  %10198 = vmatpush1.bf16.msra.mxu1 %v16167_v27 }
 0x15f   :  { %v16160_v31 = vcombine.high %v1320_v23, %v1324_v24  ;;  %v1184_v32 = vld [vmem:[#allocation6 + $0x20c0] sm:$0xff]  ;;  %10158 = vmatprep.subr.bf16.mxu0 %v16032_v54  ;;  %v16159_v37 = vcombine.low %v1320_v23, %v1324_v24 }
 0x160   :  { %v1188_v33 = vld [vmem:[#allocation6 + $0x20e0] sm:$0xff]  ;;  %10159 = vmatpush1.bf16.msra.mxu0 %v16031_v36 }
 0x161   :  { %v1312_v34 = vld [vmem:[#allocation6 + $0x24c0] sm:$0xff]  ;;  %v16024_v41 = vcombine.high %v1184_v32, %v1188_v33  ;;  %10199 = vmatprep.subr.bf16.mxu1 %v16160_v31  ;;  %v16023_v48 = vcombine.low %v1184_v32, %v1188_v33 }
 0x162   :  { %v1316_v35 = vld [vmem:[#allocation6 + $0x24e0] sm:$0xff]  ;;  %10200 = vmatpush1.bf16.msra.mxu1 %v16159_v37 }
 0x163   :  { %v16152_v43 = vcombine.high %v1312_v34, %v1316_v35  ;;  %v1176_v44 = vld [vmem:[#allocation6 + $0x2080] sm:$0xff]  ;;  %10160 = vmatprep.subr.bf16.mxu0 %v16024_v41  ;;  %v16151_v49 = vcombine.low %v1312_v34, %v1316_v35 }
 0x164   :  { %v1180_v45 = vld [vmem:[#allocation6 + $0x20a0] sm:$0xff]  ;;  %10161 = vmatpush1.bf16.msra.mxu0 %v16023_v48 }
 0x165   :  { %v1304_v46 = vld [vmem:[#allocation6 + $0x2480] sm:$0xff]  ;;  %v16016_v55 = vcombine.high %v1176_v44, %v1180_v45  ;;  %10201 = vmatprep.subr.bf16.mxu1 %v16152_v43  ;;  %v16015_v0 = vcombine.low %v1176_v44, %v1180_v45 }
 0x166   :  { %v1308_v47 = vld [vmem:[#allocation6 + $0x24a0] sm:$0xff]  ;;  %10202 = vmatpush1.bf16.msra.mxu1 %v16151_v49 }
 0x167   :  { %v16144_v57 = vcombine.high %v1304_v46, %v1308_v47  ;;  %v1168_v60 = vld [vmem:[#allocation6 + $0x2040] sm:$0xff]  ;;  %10162 = vmatprep.subr.bf16.mxu0 %v16016_v55  ;;  %v16143_v1 = vcombine.low %v1304_v46, %v1308_v47 }
 0x168   :  { %v1172_v61 = vld [vmem:[#allocation6 + $0x2060] sm:$0xff]  ;;  %10163 = vmatpush1.bf16.msra.mxu0 %v16015_v0 }
 0x169   :  { %v1296_v62 = vld [vmem:[#allocation6 + $0x2440] sm:$0xff]  ;;  %v16008_v2 = vcombine.high %v1168_v60, %v1172_v61  ;;  %10203 = vmatprep.subr.bf16.mxu1 %v16144_v57  ;;  %v16007_v13 = vcombine.low %v1168_v60, %v1172_v61 }
 0x16a   :  { %v1300_v63 = vld [vmem:[#allocation6 + $0x2460] sm:$0xff]  ;;  %10204 = vmatpush1.bf16.msra.mxu1 %v16143_v1 }
 0x16b   :  { %v16136_v3 = vcombine.high %v1296_v62, %v1300_v63  ;;  %v1160_v4 = vld [vmem:[#allocation6 + $0x2000] sm:$0xff]  ;;  %10164 = vmatprep.subr.bf16.mxu0 %v16008_v2  ;;  %v16135_v14 = vcombine.low %v1296_v62, %v1300_v63 }
 0x16c   :  { %v1164_v9 = vld [vmem:[#allocation6 + $0x2020] sm:$0xff]  ;;  %10165 = vmatpush1.bf16.msra.mxu0 %v16007_v13 }
 0x16d   :  { %v1288_v11 = vld [vmem:[#allocation6 + $0x2400] sm:$0xff]  ;;  %v16000_v15 = vcombine.high %v1160_v4, %v1164_v9  ;;  %10205 = vmatprep.subr.bf16.mxu1 %v16136_v3  ;;  %v15999_v53 = vcombine.low %v1160_v4, %v1164_v9 }
 0x16e   :  { %v1292_v12 = vld [vmem:[#allocation6 + $0x2420] sm:$0xff]  ;;  %10206 = vmatpush1.bf16.msra.mxu1 %v16135_v14 }
 0x16f   :  { %v16128_v17 = vcombine.high %v1288_v11, %v1292_v12  ;;  %v1280_v21 = vld [vmem:[#allocation6 + $0x23c0] sm:$0xff]  ;;  %10166 = vmatprep.subr.bf16.mxu0 %v16000_v15  ;;  %v16127_v26 = vcombine.low %v1288_v11, %v1292_v12 }
 0x170   :  { %v1284_v23 = vld [vmem:[#allocation6 + $0x23e0] sm:$0xff]  ;;  %10167 = vmatpush1.bf16.msra.mxu0 %v15999_v53 }
 0x171   :  { %v1408_v24 = vld [vmem:[#allocation6 + $0x27c0] sm:$0xff]  ;;  %v16120_v27 = vcombine.high %v1280_v21, %v1284_v23  ;;  %10207 = vmatprep.subr.bf16.mxu1 %v16128_v17  ;;  %v16119_v34 = vcombine.low %v1280_v21, %v1284_v23 }
 0x172   :  { %v1412_v25 = vld [vmem:[#allocation6 + $0x27e0] sm:$0xff]  ;;  %10208 = vmatpush1.bf16.msra.mxu1 %v16127_v26 }
 0x173   :  { %v16248_v54 = vcombine.high %v1408_v24, %v1412_v25  ;;  %v1272_v30 = vld [vmem:[#allocation6 + $0x2380] sm:$0xff]  ;;  %10168 = vmatprep.subr.bf16.mxu0 %v16120_v27  ;;  %v16247_v35 = vcombine.low %v1408_v24, %v1412_v25 }
 0x174   :  { %v1276_v31 = vld [vmem:[#allocation6 + $0x23a0] sm:$0xff]  ;;  %10169 = vmatpush2.bf16.msra.mxu0 %v16119_v34 }
 0x175   :  { %v1400_v32 = vld [vmem:[#allocation6 + $0x2780] sm:$0xff]  ;;  %v16112_v36 = vcombine.high %v1272_v30, %v1276_v31  ;;  %10209 = vmatprep.subr.bf16.mxu1 %v16248_v54  ;;  %v16111_v46 = vcombine.low %v1272_v30, %v1276_v31 }
 0x176   :  { %v1404_v33 = vld [vmem:[#allocation6 + $0x27a0] sm:$0xff]  ;;  %10210 = vmatpush2.bf16.msra.mxu1 %v16247_v35 }
 0x177   :  { %v16240_v37 = vcombine.high %v1400_v32, %v1404_v33  ;;  %v1264_v41 = vld [vmem:[#allocation6 + $0x2340] sm:$0xff]  ;;  %10170 = vmatprep.subr.bf16.mxu0 %v16112_v36  ;;  %v16239_v47 = vcombine.low %v1400_v32, %v1404_v33 }
 0x178   :  { %v1268_v43 = vld [vmem:[#allocation6 + $0x2360] sm:$0xff]  ;;  %10171 = vmatpush2.bf16.msra.mxu0 %v16111_v46 }
 0x179   :  { %v1392_v44 = vld [vmem:[#allocation6 + $0x2740] sm:$0xff]  ;;  %v16104_v48 = vcombine.high %v1264_v41, %v1268_v43  ;;  %10211 = vmatprep.subr.bf16.mxu1 %v16240_v37  ;;  %v16103_v62 = vcombine.low %v1264_v41, %v1268_v43 }
 0x17a   :  { %v1396_v45 = vld [vmem:[#allocation6 + $0x2760] sm:$0xff]  ;;  %10212 = vmatpush2.bf16.msra.mxu1 %v16239_v47 }
 0x17b   :  { %v16232_v49 = vcombine.high %v1392_v44, %v1396_v45  ;;  %v1256_v55 = vld [vmem:[#allocation6 + $0x2300] sm:$0xff]  ;;  %10172 = vmatprep.subr.bf16.mxu0 %v16104_v48  ;;  %v16231_v63 = vcombine.low %v1392_v44, %v1396_v45 }
 0x17c   :  { %v1260_v57 = vld [vmem:[#allocation6 + $0x2320] sm:$0xff]  ;;  %10173 = vmatpush2.bf16.msra.mxu0 %v16103_v62 }
 0x17d   :  { %v1384_v60 = vld [vmem:[#allocation6 + $0x2700] sm:$0xff]  ;;  %v16096_v0 = vcombine.high %v1256_v55, %v1260_v57  ;;  %10213 = vmatprep.subr.bf16.mxu1 %v16232_v49  ;;  %v16095_v11 = vcombine.low %v1256_v55, %v1260_v57 }
 0x17e   :  { %v1388_v61 = vld [vmem:[#allocation6 + $0x2720] sm:$0xff]  ;;  %10214 = vmatpush2.bf16.msra.mxu1 %v16231_v63 }
 0x17f   :  { %v16224_v1 = vcombine.high %v1384_v60, %v1388_v61  ;;  %v1248_v2 = vld [vmem:[#allocation6 + $0x22c0] sm:$0xff]  ;;  %10174 = vmatprep.subr.bf16.mxu0 %v16096_v0  ;;  %v16223_v12 = vcombine.low %v1384_v60, %v1388_v61 }
 0x180   :  { %v1252_v3 = vld [vmem:[#allocation6 + $0x22e0] sm:$0xff]  ;;  %10175 = vmatpush2.bf16.msra.mxu0 %v16095_v11  ;;  %v17918_v11 = vcombine.low %v17892_v56, %v17892_v56 }
 0x181   :  { %v1376_v4 = vld [vmem:[#allocation6 + $0x26c0] sm:$0xff]  ;;  %v16088_v13 = vcombine.high %v1248_v2, %v1252_v3  ;;  %10215 = vmatprep.subr.bf16.mxu1 %v16224_v1  ;;  %v16087_v24 = vcombine.low %v1248_v2, %v1252_v3  ;;  %v17912_v2 = vcombine.low %v17882_v50, %v17882_v50 }
 0x182   :  { %v1380_v9 = vld [vmem:[#allocation6 + $0x26e0] sm:$0xff]  ;;  %10216 = vmatpush2.bf16.msra.mxu1 %v16223_v12 }
 0x183   :  { %v16216_v14 = vcombine.high %v1376_v4, %v1380_v9  ;;  %v1240_v15 = vld [vmem:[#allocation6 + $0x2280] sm:$0xff]  ;;  %10176 = vmatprep.subr.bf16.mxu0 %v16088_v13  ;;  %v16215_v25 = vcombine.low %v1376_v4, %v1380_v9  ;;  %v17914_v9 = vld [vmem:[#allocation3 + $0x50] sm:$0xff]  ;;  %v17920_v13 = vld [vmem:[#allocation3 + $0x58] sm:$0xff] }
 0x184   :  { %v1244_v17 = vld [vmem:[#allocation6 + $0x22a0] sm:$0xff]  ;;  %10177 = vmatpush2.bf16.msra.mxu0 %v16087_v24 }
 0x185   :  { %v1368_v21 = vld [vmem:[#allocation6 + $0x2680] sm:$0xff]  ;;  %v16080_v53 = vcombine.high %v1240_v15, %v1244_v17  ;;  %10217 = vmatprep.subr.bf16.mxu1 %v16216_v14  ;;  %v16079_v32 = vcombine.low %v1240_v15, %v1244_v17 }
 0x186   :  { %v1372_v23 = vld [vmem:[#allocation6 + $0x26a0] sm:$0xff]  ;;  %10218 = vmatpush2.bf16.msra.mxu1 %v16215_v25 }
 0x187   :  { %v16208_v26 = vcombine.high %v1368_v21, %v1372_v23  ;;  %v1232_v27 = vld [vmem:[#allocation6 + $0x2240] sm:$0xff]  ;;  %10178 = vmatprep.subr.bf16.mxu0 %v16080_v53  ;;  %v16207_v33 = vcombine.low %v1368_v21, %v1372_v23  ;;  %v17924_v23 = vcombine.high %v17914_v9, %v17914_v9  ;;  %v17929_v53 = vcombine.high %v17920_v13, %v17920_v13 }
 0x188   :  { %v1236_v54 = vld [vmem:[#allocation6 + $0x2260] sm:$0xff]  ;;  %10179 = vmatpush2.bf16.msra.mxu0 %v16079_v32 }
 0x189   :  { %v1360_v30 = vld [vmem:[#allocation6 + $0x2640] sm:$0xff]  ;;  %v16072_v34 = vcombine.high %v1232_v27, %v1236_v54  ;;  %10219 = vmatprep.subr.bf16.mxu1 %v16208_v26  ;;  %v16071_v44 = vcombine.low %v1232_v27, %v1236_v54 }
 0x18a   :  { %v1364_v31 = vld [vmem:[#allocation6 + $0x2660] sm:$0xff]  ;;  %10220 = vmatpush2.bf16.msra.mxu1 %v16207_v33 }
 0x18b   :  { %v16200_v35 = vcombine.high %v1360_v30, %v1364_v31  ;;  %v1224_v36 = vld [vmem:[#allocation6 + $0x2200] sm:$0xff]  ;;  %10180 = vmatprep.subr.bf16.mxu0 %v16072_v34  ;;  %v16199_v45 = vcombine.low %v1360_v30, %v1364_v31 }
 0x18c   :  { %v1228_v37 = vld [vmem:[#allocation6 + $0x2220] sm:$0xff]  ;;  %10181 = vmatpush2.bf16.msra.mxu0 %v16071_v44 }
 0x18d   :  { %v1352_v41 = vld [vmem:[#allocation6 + $0x2600] sm:$0xff]  ;;  %v16064_v46 = vcombine.high %v1224_v36, %v1228_v37  ;;  %10221 = vmatprep.subr.bf16.mxu1 %v16200_v35  ;;  %v16063_v60 = vcombine.low %v1224_v36, %v1228_v37 }
 0x18e   :  { %v1356_v43 = vld [vmem:[#allocation6 + $0x2620] sm:$0xff]  ;;  %10222 = vmatpush2.bf16.msra.mxu1 %v16199_v45 }
 0x18f   :  { %v16192_v47 = vcombine.high %v1352_v41, %v1356_v43  ;;  %v1472_v48 = vld [vmem:[#allocation6 + $0x29c0] sm:$0xff]  ;;  %10182 = vmatprep.subr.bf16.mxu0 %v16064_v46  ;;  %v16191_v61 = vcombine.low %v1352_v41, %v1356_v43 }
 0x190   :  { %v1476_v49 = vld [vmem:[#allocation6 + $0x29e0] sm:$0xff]  ;;  %10183 = vmatpush2.bf16.msra.mxu0 %v16063_v60 }
 0x191   :  { %v1600_v55 = vld [vmem:[#allocation6 + $0x2dc0] sm:$0xff]  ;;  %v16312_v62 = vcombine.high %v1472_v48, %v1476_v49  ;;  %10223 = vmatprep.subr.bf16.mxu1 %v16192_v47  ;;  %v16311_v12 = vcombine.low %v1472_v48, %v1476_v49  ;;  %v9940_v24 = vpop.f32.mrf.mxu0 }
 0x192   :  { %v1604_v57 = vld [vmem:[#allocation6 + $0x2de0] sm:$0xff]  ;;  %10224 = vmatpush2.bf16.msra.mxu1 %v16191_v61  ;;  %v9941_v26 = vadd.f32 %v9940_v24, %v17904_v5 }
 0x193   :  { %v16440_v63 = vcombine.high %v1600_v55, %v1604_v57  ;;  %v1464_v0 = vld [vmem:[#allocation6 + $0x2980] sm:$0xff]  ;;  %10234 = vmatprep.subr.bf16.mxu0 %v16312_v62  ;;  %v16439_v14 = vcombine.low %v1600_v55, %v1604_v57  ;;  %10185 = vmatmul.mubr.bf16.vlgmr.msra.gmra.mxu0 %v17912_v2  ;;  %v9981_v27 = vpop.f32.mrf.mxu1  ;;  %v9942_v30 = vpop.f32.mrf.mxu0 }
 0x194   :  { %v1468_v1 = vld [vmem:[#allocation6 + $0x29a0] sm:$0xff]  ;;  %10235 = vmatpush1.bf16.msra.mxu0 %v16311_v12  ;;  %v17933_v33 = vadd.f32 %v9981_v27, %v9941_v26  ;;  %v9943_v34 = vadd.f32 %v9942_v30, %v17907_v18  ;;  %10266 = vmatprep.mubr.bf16.mxu0 %v17924_v23 }
 0x195   :  { %v1592_v3 = vld [vmem:[#allocation6 + $0x2d80] sm:$0xff]  ;;  %v16304_v15 = vcombine.high %v1464_v0, %v1468_v1  ;;  %10275 = vmatprep.subr.bf16.mxu1 %v16440_v63  ;;  %10226 = vmatmul.mubr.bf16.vlgmr.msra.gmra.mxu1 %v17918_v11  ;;  %v16303_v54 = vcombine.low %v1464_v0, %v1468_v1  ;;  %v9983_v35 = vpop.f32.mrf.mxu1  ;;  %v9944_v5 = vpop.f32.mrf.mxu0 }
 0x196   :  { %v1596_v4 = vld [vmem:[#allocation6 + $0x2da0] sm:$0xff]  ;;  %10276 = vmatpush1.bf16.msra.mxu1 %v16439_v14  ;;  %10307 = vmatprep.mubr.bf16.mxu1 %v17929_v53  ;;  %v17938_v45 = vadd.f32 %v9983_v35, %v9943_v34 }
 0x197   :  { %v16432_v17 = vcombine.high %v1592_v3, %v1596_v4  ;;  %v1456_v50 = vld [vmem:[#allocation6 + $0x2940] sm:$0xff]  ;;  %10236 = vmatprep.subr.bf16.mxu0 %v16304_v15  ;;  %v16431_v31 = vcombine.low %v1592_v3, %v1596_v4  ;;  %v9985_v46 = vpop.f32.mrf.mxu1  ;;  %v9945_v48 = vpop.f32.mrf.mxu0 }
 0x198   :  { %v1460_v21 = vld [vmem:[#allocation6 + $0x2960] sm:$0xff]  ;;  %10237 = vmatpush1.bf16.msra.mxu0 %v16303_v54 }
 0x199   :  { %v1584_v56 = vld [vmem:[#allocation6 + $0x2d40] sm:$0xff]  ;;  %v16296_v32 = vcombine.high %v1456_v50, %v1460_v21  ;;  %10277 = vmatprep.subr.bf16.mxu1 %v16432_v17  ;;  %v16295_v47 = vcombine.low %v1456_v50, %v1460_v21  ;;  %v9986_v55 = vpop.f32.mrf.mxu1 }
 0x19a   :  { %v1588_v25 = vld [vmem:[#allocation6 + $0x2d60] sm:$0xff]  ;;  %10278 = vmatpush1.bf16.msra.mxu1 %v16431_v31 }
 0x19b   :  { %v16424_v36 = vcombine.high %v1584_v56, %v1588_v25  ;;  %v1448_v37 = vld [vmem:[#allocation6 + $0x2900] sm:$0xff]  ;;  %10238 = vmatprep.subr.bf16.mxu0 %v16296_v32  ;;  %v16423_v18 = vcombine.low %v1584_v56, %v1588_v25 }
 0x19c   :  { %v1452_v41 = vld [vmem:[#allocation6 + $0x2920] sm:$0xff]  ;;  %10239 = vmatpush1.bf16.msra.mxu0 %v16295_v47 }
 0x19d   :  { %v1576_v43 = vld [vmem:[#allocation6 + $0x2d00] sm:$0xff]  ;;  %v16288_v49 = vcombine.high %v1448_v37, %v1452_v41  ;;  %10279 = vmatprep.subr.bf16.mxu1 %v16424_v36  ;;  %v16287_v0 = vcombine.low %v1448_v37, %v1452_v41 }
 0x19e   :  { %v1580_v44 = vld [vmem:[#allocation6 + $0x2d20] sm:$0xff]  ;;  %10280 = vmatpush1.bf16.msra.mxu1 %v16423_v18 }
 0x19f   :  { %v16416_v57 = vcombine.high %v1576_v43, %v1580_v44  ;;  %v1440_v60 = vld [vmem:[#allocation6 + $0x28c0] sm:$0xff]  ;;  %10240 = vmatprep.subr.bf16.mxu0 %v16288_v49  ;;  %v16415_v1 = vcombine.low %v1576_v43, %v1580_v44 }
 0x1a0   :  { %v1444_v61 = vld [vmem:[#allocation6 + $0x28e0] sm:$0xff]  ;;  %10241 = vmatpush1.bf16.msra.mxu0 %v16287_v0 }
 0x1a1   :  { %v1568_v62 = vld [vmem:[#allocation6 + $0x2cc0] sm:$0xff]  ;;  %v16280_v3 = vcombine.high %v1440_v60, %v1444_v61  ;;  %10281 = vmatprep.subr.bf16.mxu1 %v16416_v57  ;;  %v16279_v50 = vcombine.low %v1440_v60, %v1444_v61 }
 0x1a2   :  { %v1572_v63 = vld [vmem:[#allocation6 + $0x2ce0] sm:$0xff]  ;;  %10282 = vmatpush1.bf16.msra.mxu1 %v16415_v1 }
 0x1a3   :  { %v16408_v4 = vcombine.high %v1568_v62, %v1572_v63  ;;  %v1432_v12 = vld [vmem:[#allocation6 + $0x2880] sm:$0xff]  ;;  %10242 = vmatprep.subr.bf16.mxu0 %v16280_v3  ;;  %v16407_v21 = vcombine.low %v1568_v62, %v1572_v63 }
 0x1a4   :  { %v1436_v14 = vld [vmem:[#allocation6 + $0x28a0] sm:$0xff]  ;;  %10243 = vmatpush1.bf16.msra.mxu0 %v16279_v50 }
 0x1a5   :  { %v1560_v15 = vld [vmem:[#allocation6 + $0x2c80] sm:$0xff]  ;;  %v16272_v24 = vcombine.high %v1432_v12, %v1436_v14  ;;  %10283 = vmatprep.subr.bf16.mxu1 %v16408_v4  ;;  %v16271_v30 = vcombine.low %v1432_v12, %v1436_v14 }
 0x1a6   :  { %v1564_v17 = vld [vmem:[#allocation6 + $0x2ca0] sm:$0xff]  ;;  %10284 = vmatpush1.bf16.msra.mxu1 %v16407_v21 }
 0x1a7   :  { %v16400_v56 = vcombine.high %v1560_v15, %v1564_v17  ;;  %v1424_v25 = vld [vmem:[#allocation6 + $0x2840] sm:$0xff]  ;;  %10244 = vmatprep.subr.bf16.mxu0 %v16272_v24  ;;  %v16399_v31 = vcombine.low %v1560_v15, %v1564_v17 }
 0x1a8   :  { %v1428_v26 = vld [vmem:[#allocation6 + $0x2860] sm:$0xff]  ;;  %10245 = vmatpush1.bf16.msra.mxu0 %v16271_v30 }
 0x1a9   :  { %v1552_v27 = vld [vmem:[#allocation6 + $0x2c40] sm:$0xff]  ;;  %v16264_v32 = vcombine.high %v1424_v25, %v1428_v26  ;;  %10285 = vmatprep.subr.bf16.mxu1 %v16400_v56  ;;  %v16263_v5 = vcombine.low %v1424_v25, %v1428_v26 }
 0x1aa   :  { %v1556_v54 = vld [vmem:[#allocation6 + $0x2c60] sm:$0xff]  ;;  %10286 = vmatpush1.bf16.msra.mxu1 %v16399_v31 }
 0x1ab   :  { %v16392_v34 = vcombine.high %v1552_v27, %v1556_v54  ;;  %v1416_v35 = vld [vmem:[#allocation6 + $0x2800] sm:$0xff]  ;;  %10246 = vmatprep.subr.bf16.mxu0 %v16264_v32  ;;  %v16391_v43 = vcombine.low %v1552_v27, %v1556_v54 }
 0x1ac   :  { %v1420_v36 = vld [vmem:[#allocation6 + $0x2820] sm:$0xff]  ;;  %10247 = vmatpush1.bf16.msra.mxu0 %v16263_v5 }
 0x1ad   :  { %v1544_v37 = vld [vmem:[#allocation6 + $0x2c00] sm:$0xff]  ;;  %v16256_v44 = vcombine.high %v1416_v35, %v1420_v36  ;;  %10287 = vmatprep.subr.bf16.mxu1 %v16392_v34  ;;  %v16255_v55 = vcombine.low %v1416_v35, %v1420_v36 }
 0x1ae   :  { %v1548_v41 = vld [vmem:[#allocation6 + $0x2c20] sm:$0xff]  ;;  %10288 = vmatpush1.bf16.msra.mxu1 %v16391_v43 }
 0x1af   :  { %v16384_v46 = vcombine.high %v1544_v37, %v1548_v41  ;;  %v1536_v47 = vld [vmem:[#allocation6 + $0x2bc0] sm:$0xff]  ;;  %10248 = vmatprep.subr.bf16.mxu0 %v16256_v44  ;;  %v16383_v57 = vcombine.low %v1544_v37, %v1548_v41 }
 0x1b0   :  { %v1540_v48 = vld [vmem:[#allocation6 + $0x2be0] sm:$0xff]  ;;  %10249 = vmatpush1.bf16.msra.mxu0 %v16255_v55 }
 0x1b1   :  { %v1664_v18 = vld [vmem:[#allocation6 + $0x2fc0] sm:$0xff]  ;;  %v16376_v60 = vcombine.high %v1536_v47, %v1540_v48  ;;  %10289 = vmatprep.subr.bf16.mxu1 %v16384_v46  ;;  %v16375_v3 = vcombine.low %v1536_v47, %v1540_v48 }
 0x1b2   :  { %v1668_v49 = vld [vmem:[#allocation6 + $0x2fe0] sm:$0xff]  ;;  %10290 = vmatpush1.bf16.msra.mxu1 %v16383_v57 }
 0x1b3   :  { %v16504_v61 = vcombine.high %v1664_v18, %v1668_v49  ;;  %v1528_v62 = vld [vmem:[#allocation6 + $0x2b80] sm:$0xff]  ;;  %10250 = vmatprep.subr.bf16.mxu0 %v16376_v60  ;;  %v16503_v4 = vcombine.low %v1664_v18, %v1668_v49 }
 0x1b4   :  { %v1532_v63 = vld [vmem:[#allocation6 + $0x2ba0] sm:$0xff]  ;;  %10251 = vmatpush2.bf16.msra.mxu0 %v16375_v3 }
 0x1b5   :  { %v1656_v0 = vld [vmem:[#allocation6 + $0x2f80] sm:$0xff]  ;;  %v16368_v12 = vcombine.high %v1528_v62, %v1532_v63  ;;  %10291 = vmatprep.subr.bf16.mxu1 %v16504_v61  ;;  %v16367_v24 = vcombine.low %v1528_v62, %v1532_v63 }
 0x1b6   :  { %v1660_v1 = vld [vmem:[#allocation6 + $0x2fa0] sm:$0xff]  ;;  %10292 = vmatpush2.bf16.msra.mxu1 %v16503_v4 }
 0x1b7   :  { %v16496_v14 = vcombine.high %v1656_v0, %v1660_v1  ;;  %v1520_v15 = vld [vmem:[#allocation6 + $0x2b40] sm:$0xff]  ;;  %10252 = vmatprep.subr.bf16.mxu0 %v16368_v12  ;;  %v16495_v56 = vcombine.low %v1656_v0, %v1660_v1 }
 0x1b8   :  { %v1524_v17 = vld [vmem:[#allocation6 + $0x2b60] sm:$0xff]  ;;  %10253 = vmatpush2.bf16.msra.mxu0 %v16367_v24 }
 0x1b9   :  { %v1648_v50 = vld [vmem:[#allocation6 + $0x2f40] sm:$0xff]  ;;  %v16360_v25 = vcombine.high %v1520_v15, %v1524_v17  ;;  %10293 = vmatprep.subr.bf16.mxu1 %v16496_v14  ;;  %v16359_v32 = vcombine.low %v1520_v15, %v1524_v17 }
 0x1ba   :  { %v1652_v21 = vld [vmem:[#allocation6 + $0x2f60] sm:$0xff]  ;;  %10294 = vmatpush2.bf16.msra.mxu1 %v16495_v56 }
 0x1bb   :  { %v16488_v26 = vcombine.high %v1648_v50, %v1652_v21  ;;  %v1512_v27 = vld [vmem:[#allocation6 + $0x2b00] sm:$0xff]  ;;  %10254 = vmatprep.subr.bf16.mxu0 %v16360_v25  ;;  %v16487_v34 = vcombine.low %v1648_v50, %v1652_v21 }
 0x1bc   :  { %v1516_v54 = vld [vmem:[#allocation6 + $0x2b20] sm:$0xff]  ;;  %10255 = vmatpush2.bf16.msra.mxu0 %v16359_v32  ;;  %v193_v32 = vld [vmem:[#allocation6 + $0x1c8] sm:$0xff] }
 0x1bd   :  { %v1640_v30 = vld [vmem:[#allocation6 + $0x2f00] sm:$0xff]  ;;  %v16352_v35 = vcombine.high %v1512_v27, %v1516_v54  ;;  %10295 = vmatprep.subr.bf16.mxu1 %v16488_v26  ;;  %v16351_v44 = vcombine.low %v1512_v27, %v1516_v54 }
 0x1be   :  { %v1644_v31 = vld [vmem:[#allocation6 + $0x2f20] sm:$0xff]  ;;  %10296 = vmatpush2.bf16.msra.mxu1 %v16487_v34  ;;  %v197_v34 = vld [vmem:[#allocation6 + $0x1e8] sm:$0xff] }
 0x1bf   :  { %v16480_v36 = vcombine.high %v1640_v30, %v1644_v31  ;;  %v1504_v37 = vld [vmem:[#allocation6 + $0x2ac0] sm:$0xff]  ;;  %10256 = vmatprep.subr.bf16.mxu0 %v16352_v35  ;;  %v16479_v46 = vcombine.low %v1640_v30, %v1644_v31 }
 0x1c0   :  { %v1508_v41 = vld [vmem:[#allocation6 + $0x2ae0] sm:$0xff]  ;;  %10257 = vmatpush2.bf16.msra.mxu0 %v16351_v44  ;;  %v17942_v44 = vcombine.low %v17914_v9, %v17914_v9  ;;  %v177_v9 = vld [vmem:[#allocation6 + $0x148] sm:$0xff] }
 0x1c1   :  { %v1632_v5 = vld [vmem:[#allocation6 + $0x2ec0] sm:$0xff]  ;;  %v16344_v47 = vcombine.high %v1504_v37, %v1508_v41  ;;  %10297 = vmatprep.subr.bf16.mxu1 %v16480_v36  ;;  %v16343_v60 = vcombine.low %v1504_v37, %v1508_v41  ;;  %v15034_v41 = vcombine.high %v193_v32, %v197_v34 }
 0x1c2   :  { %v1636_v43 = vld [vmem:[#allocation6 + $0x2ee0] sm:$0xff]  ;;  %10298 = vmatpush2.bf16.msra.mxu1 %v16479_v46  ;;  %v185_v46 = vld [vmem:[#allocation6 + $0x188] sm:$0xff] }
 0x1c3   :  { %v16472_v48 = vcombine.high %v1632_v5, %v1636_v43  ;;  %v1496_v18 = vld [vmem:[#allocation6 + $0x2a80] sm:$0xff]  ;;  %10258 = vmatprep.subr.bf16.mxu0 %v16344_v47  ;;  %v16471_v61 = vcombine.low %v1632_v5, %v1636_v43  ;;  %v189_v47 = vld [vmem:[#allocation6 + $0x1a8] sm:$0xff] }
 0x1c4   :  { %v1500_v49 = vld [vmem:[#allocation6 + $0x2aa0] sm:$0xff]  ;;  %10259 = vmatpush2.bf16.msra.mxu0 %v16343_v60 }
 0x1c5   :  { %v1624_v55 = vld [vmem:[#allocation6 + $0x2e80] sm:$0xff]  ;;  %v16336_v62 = vcombine.high %v1496_v18, %v1500_v49  ;;  %10299 = vmatprep.subr.bf16.mxu1 %v16472_v48  ;;  %v16335_v12 = vcombine.low %v1496_v18, %v1500_v49  ;;  %v17946_v48 = vcombine.low %v17920_v13, %v17920_v13  ;;  %v15033_v49 = vcombine.low %v193_v32, %v197_v34 }
 0x1c6   :  { %v1628_v57 = vld [vmem:[#allocation6 + $0x2ea0] sm:$0xff]  ;;  %10300 = vmatpush2.bf16.msra.mxu1 %v16471_v61 }
 0x1c7   :  { %v16464_v63 = vcombine.high %v1624_v55, %v1628_v57  ;;  %v1488_v0 = vld [vmem:[#allocation6 + $0x2a40] sm:$0xff]  ;;  %10260 = vmatprep.subr.bf16.mxu0 %v16336_v62  ;;  %v16463_v14 = vcombine.low %v1624_v55, %v1628_v57  ;;  %v15026_v57 = vcombine.high %v185_v46, %v189_v47 }
 0x1c8   :  { %v1492_v1 = vld [vmem:[#allocation6 + $0x2a60] sm:$0xff]  ;;  %10261 = vmatpush2.bf16.msra.mxu0 %v16335_v12 }
 0x1c9   :  { %v1616_v3 = vld [vmem:[#allocation6 + $0x2e40] sm:$0xff]  ;;  %v16328_v15 = vcombine.high %v1488_v0, %v1492_v1  ;;  %10301 = vmatprep.subr.bf16.mxu1 %v16464_v63  ;;  %v16327_v25 = vcombine.low %v1488_v0, %v1492_v1  ;;  %v181_v63 = vld [vmem:[#allocation6 + $0x168] sm:$0xff] }
 0x1ca   :  { %v1620_v4 = vld [vmem:[#allocation6 + $0x2e60] sm:$0xff]  ;;  %10302 = vmatpush2.bf16.msra.mxu1 %v16463_v14 }
 0x1cb   :  { %v16456_v17 = vcombine.high %v1616_v3, %v1620_v4  ;;  %v1480_v50 = vld [vmem:[#allocation6 + $0x2a00] sm:$0xff]  ;;  %10262 = vmatprep.subr.bf16.mxu0 %v16328_v15  ;;  %v16455_v26 = vcombine.low %v1616_v3, %v1620_v4  ;;  %v15025_v4 = vcombine.low %v185_v46, %v189_v47 }
 0x1cc   :  { %v1484_v21 = vld [vmem:[#allocation6 + $0x2a20] sm:$0xff]  ;;  %10263 = vmatpush2.bf16.msra.mxu0 %v16327_v25  ;;  %v169_v25 = vld [vmem:[#allocation6 + $0x108] sm:$0xff] }
 0x1cd   :  { %v1608_v24 = vld [vmem:[#allocation6 + $0x2e00] sm:$0xff]  ;;  %v16320_v27 = vcombine.high %v1480_v50, %v1484_v21  ;;  %10303 = vmatprep.subr.bf16.mxu1 %v16456_v17  ;;  %v16319_v35 = vcombine.low %v1480_v50, %v1484_v21  ;;  %v15018_v50 = vcombine.high %v177_v9, %v181_v63 }
 0x1ce   :  { %v1612_v56 = vld [vmem:[#allocation6 + $0x2e20] sm:$0xff]  ;;  %10304 = vmatpush2.bf16.msra.mxu1 %v16455_v26  ;;  %v173_v26 = vld [vmem:[#allocation6 + $0x128] sm:$0xff] }
 0x1cf   :  { %v16448_v54 = vcombine.high %v1608_v24, %v1612_v56  ;;  %v1728_v30 = vld [vmem:[#allocation6 + $0x31c0] sm:$0xff]  ;;  %10264 = vmatprep.subr.bf16.mxu0 %v16320_v27  ;;  %v16447_v36 = vcombine.low %v1608_v24, %v1612_v56  ;;  %v15009_v46 = vcombine.low %v169_v25, %v173_v26 }
 0x1d0   :  { %v1732_v31 = vld [vmem:[#allocation6 + $0x31e0] sm:$0xff]  ;;  %10265 = vmatpush2.bf16.msra.mxu0 %v16319_v35  ;;  %v15010_v35 = vcombine.high %v169_v25, %v173_v26 }
 0x1d1   :  { %v16568_v37 = vcombine.high %v1728_v30, %v1732_v31  ;;  %10305 = vmatprep.subr.bf16.mxu1 %v16448_v54  ;;  %v1720_v5 = vld [vmem:[#allocation6 + $0x3180] sm:$0xff]  ;;  %v16567_v18 = vcombine.low %v1728_v30, %v1732_v31  ;;  %v15017_v31 = vcombine.low %v177_v9, %v181_v63 }
 0x1d2   :  { %v1724_v43 = vld [vmem:[#allocation6 + $0x31a0] sm:$0xff]  ;;  %10306 = vmatpush2.bf16.msra.mxu1 %v16447_v36  ;;  %v10022_v62 = vpop.f32.mrf.mxu0 }
 0x1d3   :  { %10316 = vmatprep.subr.bf16.mxu0 %v16568_v37  ;;  %v16560_v55 = vcombine.high %v1720_v5, %v1724_v43  ;;  %10357 = vmatprep.subr.bf16.mxu1 %v15034_v41  ;;  %v1712_v60 = vld [vmem:[#allocation6 + $0x3140] sm:$0xff]  ;;  %v10023_v0 = vadd.f32 %v10022_v62, %v17933_v33  ;;  %v16559_v13 = vcombine.low %v1720_v5, %v1724_v43  ;;  %v17741_v33 = vmov 0   ;;  %v161_v41 = vld [vmem:[#allocation6 + $0xc8] sm:$0xff] }
 0x1d4   :  { %v1716_v61 = vld [vmem:[#allocation6 + $0x3160] sm:$0xff]  ;;  %10267 = vmatmul.mubr.bf16.vlgmr.msra.gmra.mxu0 %v17942_v44  ;;  %v10063_v1 = vpop.f32.mrf.mxu1  ;;  %v10024_v3 = vpop.f32.mrf.mxu0  ;;  %v165_v5 = vld [vmem:[#allocation6 + $0xe8] sm:$0xff] }
 0x1d5   :  { %10308 = vmatmul.mubr.bf16.vlgmr.msra.gmra.mxu1 %v17946_v48  ;;  %10317 = vmatpush1.bf16.msra.mxu0 %v16567_v18  ;;  %v16552_v12 = vcombine.high %v1712_v60, %v1716_v61  ;;  %v17951_v14 = vadd.f32 %v10063_v1, %v10023_v0  ;;  %v10025_v15 = vadd.f32 %v10024_v3, %v17938_v45  ;;  %v1704_v21 = vld [vmem:[#allocation6 + $0x3100] sm:$0xff]  ;;  %v149_v3 = vld [vmem:[#allocation6 + $0x68] sm:$0xff] }
 0x1d6   :  { %10358 = vmatpush1.bf16.msra.mxu1 %v15033_v49  ;;  %10318 = vmatprep.subr.bf16.mxu0 %v16560_v55  ;;  %v10065_v17 = vpop.f32.mrf.mxu1  ;;  %v1708_v24 = vld [vmem:[#allocation6 + $0x3120] sm:$0xff]  ;;  %v10026_v56 = vpop.f32.mrf.mxu0  ;;  %v16551_v30 = vcombine.low %v1712_v60, %v1716_v61  ;;  %v15002_v18 = vcombine.high %v161_v41, %v165_v5  ;;  %v157_v60 = vld [vmem:[#allocation6 + $0xa8] sm:$0xff]  ;;  %v15001_v62 = vcombine.low %v161_v41, %v165_v5 }
 0x1d7   :  { %10359 = vmatprep.subr.bf16.mxu1 %v15026_v57  ;;  %10348 = vmatprep.mubr.bf16.mxu0 %v17741_v33  ;;  %v17956_v27 = vadd.f32 %v10065_v17, %v10025_v15  ;;  %v16544_v32 = vcombine.high %v1704_v21, %v1708_v24  ;;  %v1696_v36 = vld [vmem:[#allocation6 + $0x30c0] sm:$0xff]  ;;  %v16543_v43 = vcombine.low %v1704_v21, %v1708_v24  ;;  %v153_v57 = vld [vmem:[#allocation6 + $0x88] sm:$0xff] }
 0x1d8   :  { %10389 = vmatprep.mubr.bf16.mxu1 %v17802_v58  ;;  %v10067_v54 = vpop.f32.mrf.mxu1  ;;  %v10027_v45 = vpop.f32.mrf.mxu0  ;;  %v1700_v37 = vld [vmem:[#allocation6 + $0x30e0] sm:$0xff]  ;;  %v14994_v63 = vcombine.high %v153_v57, %v157_v60  ;;  %v137_v24 = vld [vmem:[#allocation6 + $0x8] sm:$0xff] }
 0x1d9   :  { %10319 = vmatpush1.bf16.msra.mxu0 %v16559_v13  ;;  %v16536_v47 = vcombine.high %v1696_v36, %v1700_v37  ;;  %v1688_v49 = vld [vmem:[#allocation6 + $0x3080] sm:$0xff]  ;;  %v16535_v61 = vcombine.low %v1696_v36, %v1700_v37  ;;  %v145_v13 = vld [vmem:[#allocation6 + $0x48] sm:$0xff] }
 0x1da   :  { %10360 = vmatpush1.bf16.msra.mxu1 %v15025_v4  ;;  %10320 = vmatprep.subr.bf16.mxu0 %v16552_v12  ;;  %v10068_v34 = vpop.f32.mrf.mxu1  ;;  %v1692_v55 = vld [vmem:[#allocation6 + $0x30a0] sm:$0xff]  ;;  %v14993_v12 = vcombine.low %v153_v57, %v157_v60  ;;  %v14986_v17 = vcombine.high %v145_v13, %v149_v3  ;;  %v141_v56 = vld [vmem:[#allocation6 + $0x28] sm:$0xff]  ;;  %v14985_v26 = vcombine.low %v145_v13, %v149_v3 }
 0x1db   :  { %10361 = vmatprep.subr.bf16.mxu1 %v15018_v50  ;;  %v16528_v9 = vcombine.high %v1688_v49, %v1692_v55  ;;  %v1680_v0 = vld [vmem:[#allocation6 + $0x3040] sm:$0xff]  ;;  %v16527_v4 = vcombine.low %v1688_v49, %v1692_v55  ;;  %v321_v45 = vld [vmem:[#allocation6 + $0x5c8] sm:$0xff]  ;;  %v14977_v36 = vcombine.low %v137_v24, %v141_v56 }
 0x1dc   :  { %v1684_v1 = vld [vmem:[#allocation6 + $0x3060] sm:$0xff]  ;;  %v261_v34 = vld [vmem:[#allocation6 + $0x3e8] sm:$0xff] }
 0x1dd   :  { %10321 = vmatpush1.bf16.msra.mxu0 %v16551_v30  ;;  %v16520_v15 = vcombine.high %v1680_v0, %v1684_v1  ;;  %v1672_v50 = vld [vmem:[#allocation6 + $0x3000] sm:$0xff]  ;;  %v16519_v25 = vcombine.low %v1680_v0, %v1684_v1  ;;  %v14978_v30 = vcombine.high %v137_v24, %v141_v56  ;;  %v313_v5 = vld [vmem:[#allocation6 + $0x588] sm:$0xff] }
 0x1de   :  { %10362 = vmatpush1.bf16.msra.mxu1 %v15017_v31  ;;  %10322 = vmatprep.subr.bf16.mxu0 %v16544_v32  ;;  %v1676_v21 = vld [vmem:[#allocation6 + $0x3020] sm:$0xff]  ;;  %v325_v31 = vld [vmem:[#allocation6 + $0x5e8] sm:$0xff] }
 0x1df   :  { %10363 = vmatprep.subr.bf16.mxu1 %v15010_v35  ;;  %v16512_v54 = vcombine.high %v1672_v50, %v1676_v21  ;;  %v257_v32 = vld [vmem:[#allocation6 + $0x3c8] sm:$0xff]  ;;  %v16511_v35 = vcombine.low %v1672_v50, %v1676_v21  ;;  %v15162_v37 = vcombine.high %v321_v45, %v325_v31  ;;  %v15161_v49 = vcombine.low %v321_v45, %v325_v31 }
 0x1e0   :  { %v15098_v41 = vcombine.high %v257_v32, %v261_v34  ;;  %v15097_v55 = vcombine.low %v257_v32, %v261_v34 }
 0x1e1   :  { %10323 = vmatpush1.bf16.msra.mxu0 %v16543_v43  ;;  %v317_v43 = vld [vmem:[#allocation6 + $0x5a8] sm:$0xff] }
 0x1e2   :  { %10364 = vmatpush1.bf16.msra.mxu1 %v15009_v46  ;;  %10324 = vmatprep.subr.bf16.mxu0 %v16536_v47  ;;  %v16997_v46 = vld [vmem:[#allocation3 + $0x60] ss:$0 sps:$4 sm:$0xff]   ;;  %v249_v47 = vld [vmem:[#allocation6 + $0x388] sm:$0xff]  ;;  %v15154_v57 = vcombine.high %v313_v5, %v317_v43  ;;  %v15153_v0 = vcombine.low %v313_v5, %v317_v43 }
 0x1e3   :  { %10365 = vmatprep.subr.bf16.mxu1 %v15002_v18  ;;  %v253_v18 = vld [vmem:[#allocation6 + $0x3a8] sm:$0xff] }
 0x1e4   :  { %v15090_v60 = vcombine.high %v249_v47, %v253_v18  ;;  %v15089_v1 = vcombine.low %v249_v47, %v253_v18  ;;  %v273_v18 = vld [vmem:[#allocation6 + $0x448] sm:$0xff] }
 0x1e5   :  { %10325 = vmatpush1.bf16.msra.mxu0 %v16535_v61  ;;  %v305_v61 = vld [vmem:[#allocation6 + $0x548] sm:$0xff] }
 0x1e6   :  { %10366 = vmatpush1.bf16.msra.mxu1 %v15001_v62  ;;  %10326 = vmatprep.subr.bf16.mxu0 %v16528_v9  ;;  %v309_v62 = vld [vmem:[#allocation6 + $0x568] sm:$0xff] }
 0x1e7   :  { %10367 = vmatprep.subr.bf16.mxu1 %v14994_v63  ;;  %v241_v9 = vld [vmem:[#allocation6 + $0x348] sm:$0xff]  ;;  %v15146_v13 = vcombine.high %v305_v61, %v309_v62  ;;  %v15145_v50 = vcombine.low %v305_v61, %v309_v62 }
 0x1e8   :  { %v245_v63 = vld [vmem:[#allocation6 + $0x368] sm:$0xff] }
 0x1e9   :  { %10327 = vmatpush1.bf16.msra.mxu0 %v16527_v4  ;;  %v15082_v3 = vcombine.high %v241_v9, %v245_v63  ;;  %v297_v4 = vld [vmem:[#allocation6 + $0x508] sm:$0xff]  ;;  %v15081_v21 = vcombine.low %v241_v9, %v245_v63 }
 0x1ea   :  { %10368 = vmatpush1.bf16.msra.mxu1 %v14993_v12  ;;  %10328 = vmatprep.subr.bf16.mxu0 %v16520_v15  ;;  %v301_v12 = vld [vmem:[#allocation6 + $0x528] sm:$0xff] }
 0x1eb   :  { %10369 = vmatprep.subr.bf16.mxu1 %v14986_v17  ;;  %v233_v15 = vld [vmem:[#allocation6 + $0x308] sm:$0xff]  ;;  %v15138_v24 = vcombine.high %v297_v4, %v301_v12  ;;  %v15137_v45 = vcombine.low %v297_v4, %v301_v12 }
 0x1ec   :  { %v237_v17 = vld [vmem:[#allocation6 + $0x328] sm:$0xff] }
 0x1ed   :  { %10329 = vmatpush1.bf16.msra.mxu0 %v16519_v25  ;;  %v15074_v56 = vcombine.high %v233_v15, %v237_v17  ;;  %v289_v25 = vld [vmem:[#allocation6 + $0x4c8] sm:$0xff]  ;;  %v15073_v31 = vcombine.low %v233_v15, %v237_v17 }
 0x1ee   :  { %10370 = vmatpush1.bf16.msra.mxu1 %v14985_v26  ;;  %10330 = vmatprep.subr.bf16.mxu0 %v16512_v54  ;;  %v293_v26 = vld [vmem:[#allocation6 + $0x4e8] sm:$0xff] }
 0x1ef   :  { %10371 = vmatprep.subr.bf16.mxu1 %v14978_v30  ;;  %v225_v54 = vld [vmem:[#allocation6 + $0x2c8] sm:$0xff]  ;;  %v15130_v32 = vcombine.high %v289_v25, %v293_v26  ;;  %v15129_v5 = vcombine.low %v289_v25, %v293_v26 }
 0x1f0   :  { %v229_v30 = vld [vmem:[#allocation6 + $0x2e8] sm:$0xff] }
 0x1f1   :  { %10331 = vmatpush1.bf16.msra.mxu0 %v16511_v35  ;;  %v15066_v34 = vcombine.high %v225_v54, %v229_v30  ;;  %v281_v35 = vld [vmem:[#allocation6 + $0x488] sm:$0xff]  ;;  %v15065_v43 = vcombine.low %v225_v54, %v229_v30 }
 0x1f2   :  { %10372 = vmatpush1.bf16.msra.mxu1 %v14977_v36  ;;  %10398 = vmatprep.subr.bf16.mxu0 %v15162_v37  ;;  %v285_v36 = vld [vmem:[#allocation6 + $0x4a8] sm:$0xff] }
 0x1f3   :  { %10373 = vmatprep.subr.bf16.mxu1 %v15098_v41  ;;  %v217_v37 = vld [vmem:[#allocation6 + $0x288] sm:$0xff] }
 0x1f4   :  { %10349 = vmatmul.mubr.bf16.vlgmr.msra.gmra.mxu0 %v16997_v46  ;;  %v221_v41 = vld [vmem:[#allocation6 + $0x2a8] sm:$0xff]  ;;  %v15122_v46 = vcombine.high %v281_v35, %v285_v36 }
 0x1f5   :  { %10399 = vmatpush1.bf16.msra.mxu0 %v15161_v49  ;;  %10430 = vmatprep.mubr.bf16.mxu0 %v17806_v59  ;;  %v15058_v47 = vcombine.high %v217_v37, %v221_v41  ;;  %v277_v49 = vld [vmem:[#allocation6 + $0x468] sm:$0xff]  ;;  %v15057_v61 = vcombine.low %v217_v37, %v221_v41 }
 0x1f6   :  { %10374 = vmatpush2.bf16.msra.mxu1 %v15097_v55  ;;  %10400 = vmatprep.subr.bf16.mxu0 %v15154_v57  ;;  %v209_v55 = vld [vmem:[#allocation6 + $0x248] sm:$0xff]  ;;  %v15114_v62 = vcombine.high %v273_v18, %v277_v49 }
 0x1f7   :  { %10375 = vmatprep.subr.bf16.mxu1 %v15090_v60  ;;  %v213_v57 = vld [vmem:[#allocation6 + $0x268] sm:$0xff]  ;;  %v15121_v60 = vcombine.low %v281_v35, %v285_v36 }
 0x1f8   :  { %v15050_v9 = vcombine.high %v209_v55, %v213_v57  ;;  %v265_v63 = vld [vmem:[#allocation6 + $0x408] sm:$0xff]  ;;  %v15049_v4 = vcombine.low %v209_v55, %v213_v57 }
 0x1f9   :  { %10401 = vmatpush1.bf16.msra.mxu0 %v15153_v0  ;;  %v269_v0 = vld [vmem:[#allocation6 + $0x428] sm:$0xff] }
 0x1fa   :  { %10376 = vmatpush2.bf16.msra.mxu1 %v15089_v1  ;;  %10402 = vmatprep.subr.bf16.mxu0 %v15146_v13  ;;  %v201_v1 = vld [vmem:[#allocation6 + $0x208] sm:$0xff]  ;;  %v15106_v12 = vcombine.high %v265_v63, %v269_v0 }
 0x1fb   :  { %10377 = vmatprep.subr.bf16.mxu1 %v15082_v3  ;;  %v205_v13 = vld [vmem:[#allocation6 + $0x228] sm:$0xff]  ;;  %v15113_v3 = vcombine.low %v273_v18, %v277_v49 }
 0x1fc   :  { %v15042_v15 = vcombine.high %v201_v1, %v205_v13  ;;  %v385_v17 = vld [vmem:[#allocation6 + $0x7c8] sm:$0xff]  ;;  %v15041_v25 = vcombine.low %v201_v1, %v205_v13 }
 0x1fd   :  { %10403 = vmatpush1.bf16.msra.mxu0 %v15145_v50  ;;  %v389_v50 = vld [vmem:[#allocation6 + $0x7e8] sm:$0xff] }
 0x1fe   :  { %10378 = vmatpush2.bf16.msra.mxu1 %v15081_v21  ;;  %10404 = vmatprep.subr.bf16.mxu0 %v15138_v24  ;;  %v449_v21 = vld [vmem:[#allocation6 + $0x9c8] sm:$0xff]  ;;  %v15226_v26 = vcombine.high %v385_v17, %v389_v50 }
 0x1ff   :  { %10379 = vmatprep.subr.bf16.mxu1 %v15074_v56  ;;  %v453_v24 = vld [vmem:[#allocation6 + $0x9e8] sm:$0xff]  ;;  %v15105_v56 = vcombine.low %v265_v63, %v269_v0 }
 0x200   :  { %v15290_v54 = vcombine.high %v449_v21, %v453_v24  ;;  %v377_v30 = vld [vmem:[#allocation6 + $0x788] sm:$0xff]  ;;  %v15289_v35 = vcombine.low %v449_v21, %v453_v24 }
 0x201   :  { %10405 = vmatpush1.bf16.msra.mxu0 %v15137_v45  ;;  %v381_v45 = vld [vmem:[#allocation6 + $0x7a8] sm:$0xff] }
 0x202   :  { %10380 = vmatpush2.bf16.msra.mxu1 %v15073_v31  ;;  %10406 = vmatprep.subr.bf16.mxu0 %v15130_v32  ;;  %v441_v31 = vld [vmem:[#allocation6 + $0x988] sm:$0xff]  ;;  %v15218_v36 = vcombine.high %v377_v30, %v381_v45  ;;  %v15217_v55 = vcombine.low %v377_v30, %v381_v45 }
 0x203   :  { %10381 = vmatprep.subr.bf16.mxu1 %v15066_v34  ;;  %v445_v32 = vld [vmem:[#allocation6 + $0x9a8] sm:$0xff]  ;;  %v15225_v34 = vcombine.low %v385_v17, %v389_v50 }
 0x204   :  { %v15282_v37 = vcombine.high %v441_v31, %v445_v32  ;;  %v369_v41 = vld [vmem:[#allocation6 + $0x748] sm:$0xff] }
 0x205   :  { %10407 = vmatpush1.bf16.msra.mxu0 %v15129_v5  ;;  %v373_v5 = vld [vmem:[#allocation6 + $0x768] sm:$0xff] }
 0x206   :  { %10382 = vmatpush2.bf16.msra.mxu1 %v15065_v43  ;;  %10408 = vmatprep.subr.bf16.mxu0 %v15122_v46  ;;  %v433_v46 = vld [vmem:[#allocation6 + $0x948] sm:$0xff]  ;;  %v15209_v17 = vcombine.low %v369_v41, %v373_v5 }
 0x207   :  { %10383 = vmatprep.subr.bf16.mxu1 %v15058_v47  ;;  %v437_v47 = vld [vmem:[#allocation6 + $0x968] sm:$0xff] }
 0x208   :  { %v15274_v0 = vcombine.high %v433_v46, %v437_v47  ;;  %v361_v1 = vld [vmem:[#allocation6 + $0x708] sm:$0xff]  ;;  %v15273_v21 = vcombine.low %v433_v46, %v437_v47 }
 0x209   :  { %10409 = vmatpush1.bf16.msra.mxu0 %v15121_v60  ;;  %v15281_v60 = vcombine.low %v441_v31, %v445_v32  ;;  %v365_v13 = vld [vmem:[#allocation6 + $0x728] sm:$0xff] }
 0x20a   :  { %10384 = vmatpush2.bf16.msra.mxu1 %v15057_v61  ;;  %10410 = vmatprep.subr.bf16.mxu0 %v15114_v62  ;;  %v15210_v61 = vcombine.high %v369_v41, %v373_v5  ;;  %v421_v30 = vld [vmem:[#allocation6 + $0x8e8] sm:$0xff]  ;;  %v15201_v45 = vcombine.low %v361_v1, %v365_v13 }
 0x20b   :  { %10385 = vmatprep.subr.bf16.mxu1 %v15050_v9  ;;  %v413_v41 = vld [vmem:[#allocation6 + $0x8a8] sm:$0xff] }
 0x20d   :  { %10411 = vmatpush1.bf16.msra.mxu0 %v15113_v3  ;;  %v425_v3 = vld [vmem:[#allocation6 + $0x908] sm:$0xff] }
 0x20e   :  { %10386 = vmatpush2.bf16.msra.mxu1 %v15049_v4  ;;  %10412 = vmatprep.subr.bf16.mxu0 %v15106_v12  ;;  %v429_v4 = vld [vmem:[#allocation6 + $0x928] sm:$0xff] }
 0x20f   :  { %10387 = vmatprep.subr.bf16.mxu1 %v15042_v15  ;;  %v15265_v31 = vcombine.low %v425_v3, %v429_v4 }
 0x211   :  { %10413 = vmatpush1.bf16.msra.mxu0 %v15105_v56  ;;  %v15266_v56 = vcombine.high %v425_v3, %v429_v4 }
 0x212   :  { %10388 = vmatpush2.bf16.msra.mxu1 %v15041_v25  ;;  %10414 = vmatprep.subr.bf16.mxu0 %v15226_v26  ;;  %v10104_v43 = vpop.f32.mrf.mxu0  ;;  %v353_v25 = vld [vmem:[#allocation6 + $0x6c8] sm:$0xff] }
 0x213   :  { %10439 = vmatprep.subr.bf16.mxu1 %v15290_v54  ;;  %v10105_v18 = vadd.f32 %v10104_v43, %v17951_v14  ;;  %v357_v26 = vld [vmem:[#allocation6 + $0x6e8] sm:$0xff] }
 0x214   :  { %v10145_v49 = vpop.f32.mrf.mxu1  ;;  %v10106_v57 = vpop.f32.mrf.mxu0  ;;  %v417_v54 = vld [vmem:[#allocation6 + $0x8c8] sm:$0xff]  ;;  %v15194_v32 = vcombine.high %v353_v25, %v357_v26  ;;  %v15193_v5 = vcombine.low %v353_v25, %v357_v26 }
 0x215   :  { %10390 = vmatmul.mubr.bf16.vlgmr.msra.gmra.mxu1 %v17812_v16  ;;  %10415 = vmatpush2.bf16.msra.mxu0 %v15225_v34  ;;  %v17961_v62 = vadd.f32 %v10145_v49, %v10105_v18  ;;  %v10107_v9 = vadd.f32 %v10106_v57, %v17956_v27  ;;  %v15202_v27 = vcombine.high %v361_v1, %v365_v13  ;;  %v337_v18 = vld [vmem:[#allocation6 + $0x648] sm:$0xff] }
 0x216   :  { %10440 = vmatpush1.bf16.msra.mxu1 %v15289_v35  ;;  %10416 = vmatprep.subr.bf16.mxu0 %v15218_v36  ;;  %v10147_v63 = vpop.f32.mrf.mxu1  ;;  %v10108_v14 = vpop.f32.mrf.mxu0  ;;  %v15258_v34 = vcombine.high %v417_v54, %v421_v30  ;;  %v345_v35 = vld [vmem:[#allocation6 + $0x688] sm:$0xff]  ;;  %v15257_v43 = vcombine.low %v417_v54, %v421_v30 }
 0x217   :  { %10441 = vmatprep.subr.bf16.mxu1 %v15282_v37  ;;  %10471 = vmatprep.mubr.bf16.mxu1 %v17824_v28  ;;  %v17965_v12 = vadd.f32 %v10147_v63, %v10107_v9  ;;  %v349_v36 = vld [vmem:[#allocation6 + $0x6a8] sm:$0xff] }
 0x218   :  { %v10149_v15 = vpop.f32.mrf.mxu1  ;;  %v10109_v50 = vpop.f32.mrf.mxu0  ;;  %v409_v37 = vld [vmem:[#allocation6 + $0x888] sm:$0xff]  ;;  %v15186_v46 = vcombine.high %v345_v35, %v349_v36 }
 0x219   :  { %10417 = vmatpush2.bf16.msra.mxu0 %v15217_v55  ;;  %v15250_v47 = vcombine.high %v409_v37, %v413_v41  ;;  %v341_v49 = vld [vmem:[#allocation6 + $0x668] sm:$0xff] }
 0x21a   :  { %10442 = vmatpush1.bf16.msra.mxu1 %v15281_v60  ;;  %10418 = vmatprep.subr.bf16.mxu0 %v15210_v61  ;;  %v10150_v24 = vpop.f32.mrf.mxu1  ;;  %v401_v55 = vld [vmem:[#allocation6 + $0x848] sm:$0xff]  ;;  %v15185_v60 = vcombine.low %v345_v35, %v349_v36  ;;  %v15249_v61 = vcombine.low %v409_v37, %v413_v41  ;;  %v15178_v9 = vcombine.high %v337_v18, %v341_v49 }
 0x21b   :  { %10443 = vmatprep.subr.bf16.mxu1 %v15274_v0  ;;  %v405_v57 = vld [vmem:[#allocation6 + $0x868] sm:$0xff]  ;;  %v15177_v3 = vcombine.low %v337_v18, %v341_v49 }
 0x21c   :  { %v15242_v63 = vcombine.high %v401_v55, %v405_v57  ;;  %v329_v0 = vld [vmem:[#allocation6 + $0x608] sm:$0xff]  ;;  %v15241_v4 = vcombine.low %v401_v55, %v405_v57 }
 0x21d   :  { %10419 = vmatpush2.bf16.msra.mxu0 %v15209_v17  ;;  %v333_v1 = vld [vmem:[#allocation6 + $0x628] sm:$0xff] }
 0x21e   :  { %10444 = vmatpush1.bf16.msra.mxu1 %v15273_v21  ;;  %10420 = vmatprep.subr.bf16.mxu0 %v15202_v27  ;;  %v393_v13 = vld [vmem:[#allocation6 + $0x808] sm:$0xff]  ;;  %v15170_v15 = vcombine.high %v329_v0, %v333_v1 }
 0x21f   :  { %10445 = vmatprep.subr.bf16.mxu1 %v15266_v56  ;;  %v397_v14 = vld [vmem:[#allocation6 + $0x828] sm:$0xff]  ;;  %v15169_v56 = vcombine.low %v329_v0, %v333_v1 }
 0x220   :  { %v15234_v17 = vcombine.high %v393_v13, %v397_v14  ;;  %v577_v50 = vld [vmem:[#allocation6 + $0xdc8] sm:$0xff]  ;;  %v15233_v25 = vcombine.low %v393_v13, %v397_v14 }
 0x221   :  { %10421 = vmatpush2.bf16.msra.mxu0 %v15201_v45  ;;  %v581_v21 = vld [vmem:[#allocation6 + $0xde8] sm:$0xff] }
 0x222   :  { %10446 = vmatpush1.bf16.msra.mxu1 %v15265_v31  ;;  %10422 = vmatprep.subr.bf16.mxu0 %v15194_v32  ;;  %v513_v27 = vld [vmem:[#allocation6 + $0xbc8] sm:$0xff]  ;;  %v15418_v26 = vcombine.high %v577_v50, %v581_v21 }
 0x223   :  { %10447 = vmatprep.subr.bf16.mxu1 %v15258_v34  ;;  %v517_v24 = vld [vmem:[#allocation6 + $0xbe8] sm:$0xff]  ;;  %v15417_v34 = vcombine.low %v577_v50, %v581_v21 }
 0x224   :  { %v15354_v54 = vcombine.high %v513_v27, %v517_v24  ;;  %v569_v30 = vld [vmem:[#allocation6 + $0xd88] sm:$0xff]  ;;  %v15353_v35 = vcombine.low %v513_v27, %v517_v24 }
 0x225   :  { %10423 = vmatpush2.bf16.msra.mxu0 %v15193_v5  ;;  %v573_v45 = vld [vmem:[#allocation6 + $0xda8] sm:$0xff] }
 0x226   :  { %10448 = vmatpush1.bf16.msra.mxu1 %v15257_v43  ;;  %10424 = vmatprep.subr.bf16.mxu0 %v15186_v46  ;;  %v505_v31 = vld [vmem:[#allocation6 + $0xb88] sm:$0xff]  ;;  %v15410_v36 = vcombine.high %v569_v30, %v573_v45 }
 0x227   :  { %10449 = vmatprep.subr.bf16.mxu1 %v15250_v47  ;;  %v509_v32 = vld [vmem:[#allocation6 + $0xba8] sm:$0xff]  ;;  %v15409_v47 = vcombine.low %v569_v30, %v573_v45 }
 0x228   :  { %v15346_v37 = vcombine.high %v505_v31, %v509_v32  ;;  %v561_v41 = vld [vmem:[#allocation6 + $0xd48] sm:$0xff]  ;;  %v15345_v18 = vcombine.low %v505_v31, %v509_v32 }
 0x229   :  { %10425 = vmatpush2.bf16.msra.mxu0 %v15185_v60  ;;  %v565_v5 = vld [vmem:[#allocation6 + $0xd68] sm:$0xff] }
 0x22a   :  { %10450 = vmatpush1.bf16.msra.mxu1 %v15249_v61  ;;  %10426 = vmatprep.subr.bf16.mxu0 %v15178_v9  ;;  %v497_v43 = vld [vmem:[#allocation6 + $0xb48] sm:$0xff]  ;;  %v15402_v49 = vcombine.high %v561_v41, %v565_v5 }
 0x22b   :  { %10451 = vmatprep.subr.bf16.mxu1 %v15242_v63  ;;  %v501_v46 = vld [vmem:[#allocation6 + $0xb68] sm:$0xff]  ;;  %v15401_v63 = vcombine.low %v561_v41, %v565_v5 }
 0x22c   :  { %v15338_v55 = vcombine.high %v497_v43, %v501_v46  ;;  %v553_v57 = vld [vmem:[#allocation6 + $0xd08] sm:$0xff]  ;;  %v15337_v0 = vcombine.low %v497_v43, %v501_v46 }
 0x22d   :  { %10427 = vmatpush2.bf16.msra.mxu0 %v15177_v3  ;;  %v557_v60 = vld [vmem:[#allocation6 + $0xd28] sm:$0xff] }
 0x22e   :  { %10452 = vmatpush1.bf16.msra.mxu1 %v15241_v4  ;;  %10428 = vmatprep.subr.bf16.mxu0 %v15170_v15  ;;  %v489_v61 = vld [vmem:[#allocation6 + $0xb08] sm:$0xff]  ;;  %v15394_v1 = vcombine.high %v553_v57, %v557_v60 }
 0x22f   :  { %10453 = vmatprep.subr.bf16.mxu1 %v15234_v17  ;;  %v493_v9 = vld [vmem:[#allocation6 + $0xb28] sm:$0xff]  ;;  %v15393_v17 = vcombine.low %v553_v57, %v557_v60 }
 0x230   :  { %v15330_v13 = vcombine.high %v489_v61, %v493_v9  ;;  %v545_v14 = vld [vmem:[#allocation6 + $0xcc8] sm:$0xff]  ;;  %v15329_v50 = vcombine.low %v489_v61, %v493_v9 }
 0x231   :  { %10429 = vmatpush2.bf16.msra.mxu0 %v15169_v56  ;;  %v549_v3 = vld [vmem:[#allocation6 + $0xce8] sm:$0xff] }
 0x232   :  { %10454 = vmatpush1.bf16.msra.mxu1 %v15233_v25  ;;  %10480 = vmatprep.subr.bf16.mxu0 %v15418_v26  ;;  %v481_v4 = vld [vmem:[#allocation6 + $0xac8] sm:$0xff]  ;;  %v15386_v21 = vcombine.high %v545_v14, %v549_v3 }
 0x233   :  { %10455 = vmatprep.subr.bf16.mxu1 %v15354_v54  ;;  %v485_v15 = vld [vmem:[#allocation6 + $0xae8] sm:$0xff]  ;;  %v15385_v54 = vcombine.low %v545_v14, %v549_v3 }
 0x234   :  { %10431 = vmatmul.mubr.bf16.vlgmr.msra.gmra.mxu0 %v17818_v20  ;;  %v15322_v27 = vcombine.high %v481_v4, %v485_v15  ;;  %v537_v24 = vld [vmem:[#allocation6 + $0xc88] sm:$0xff]  ;;  %v15321_v30 = vcombine.low %v481_v4, %v485_v15 }
 0x235   :  { %10481 = vmatpush1.bf16.msra.mxu0 %v15417_v34  ;;  %10512 = vmatprep.mubr.bf16.mxu0 %v17829_v29  ;;  %v541_v56 = vld [vmem:[#allocation6 + $0xca8] sm:$0xff] }
 0x236   :  { %10456 = vmatpush2.bf16.msra.mxu1 %v15353_v35  ;;  %10482 = vmatprep.subr.bf16.mxu0 %v15410_v36  ;;  %v473_v25 = vld [vmem:[#allocation6 + $0xa88] sm:$0xff]  ;;  %v15378_v45 = vcombine.high %v537_v24, %v541_v56 }
 0x237   :  { %10457 = vmatprep.subr.bf16.mxu1 %v15346_v37  ;;  %v477_v26 = vld [vmem:[#allocation6 + $0xaa8] sm:$0xff]  ;;  %v15377_v37 = vcombine.low %v537_v24, %v541_v56 }
 0x238   :  { %v15314_v31 = vcombine.high %v473_v25, %v477_v26  ;;  %v529_v32 = vld [vmem:[#allocation6 + $0xc48] sm:$0xff]  ;;  %v15313_v41 = vcombine.low %v473_v25, %v477_v26 }
 0x239   :  { %10483 = vmatpush1.bf16.msra.mxu0 %v15409_v47  ;;  %v533_v34 = vld [vmem:[#allocation6 + $0xc68] sm:$0xff] }
 0x23a   :  { %10458 = vmatpush2.bf16.msra.mxu1 %v15345_v18  ;;  %10484 = vmatprep.subr.bf16.mxu0 %v15402_v49  ;;  %v465_v35 = vld [vmem:[#allocation6 + $0xa48] sm:$0xff]  ;;  %v15370_v5 = vcombine.high %v529_v32, %v533_v34 }
 0x23b   :  { %10459 = vmatprep.subr.bf16.mxu1 %v15338_v55  ;;  %v469_v36 = vld [vmem:[#allocation6 + $0xa68] sm:$0xff]  ;;  %v15369_v55 = vcombine.low %v529_v32, %v533_v34 }
 0x23c   :  { %v15306_v43 = vcombine.high %v465_v35, %v469_v36  ;;  %v521_v46 = vld [vmem:[#allocation6 + $0xc08] sm:$0xff]  ;;  %v15305_v57 = vcombine.low %v465_v35, %v469_v36 }
 0x23d   :  { %10485 = vmatpush1.bf16.msra.mxu0 %v15401_v63  ;;  %v525_v47 = vld [vmem:[#allocation6 + $0xc28] sm:$0xff] }
 0x23e   :  { %10460 = vmatpush2.bf16.msra.mxu1 %v15337_v0  ;;  %10486 = vmatprep.subr.bf16.mxu0 %v15394_v1  ;;  %v457_v18 = vld [vmem:[#allocation6 + $0xa08] sm:$0xff]  ;;  %v15362_v60 = vcombine.high %v521_v46, %v525_v47 }
 0x23f   :  { %10461 = vmatprep.subr.bf16.mxu1 %v15330_v13  ;;  %v461_v49 = vld [vmem:[#allocation6 + $0xa28] sm:$0xff]  ;;  %v15361_v13 = vcombine.low %v521_v46, %v525_v47 }
 0x240   :  { %v15298_v61 = vcombine.high %v457_v18, %v461_v49  ;;  %v641_v9 = vld [vmem:[#allocation6 + $0xfc8] sm:$0xff]  ;;  %v15297_v14 = vcombine.low %v457_v18, %v461_v49 }
 0x241   :  { %10487 = vmatpush1.bf16.msra.mxu0 %v15393_v17  ;;  %v645_v63 = vld [vmem:[#allocation6 + $0xfe8] sm:$0xff] }
 0x242   :  { %10462 = vmatpush2.bf16.msra.mxu1 %v15329_v50  ;;  %10488 = vmatprep.subr.bf16.mxu0 %v15386_v21  ;;  %v705_v0 = vld [vmem:[#allocation6 + $0x11c8] sm:$0xff]  ;;  %v15482_v3 = vcombine.high %v641_v9, %v645_v63 }
 0x243   :  { %10463 = vmatprep.subr.bf16.mxu1 %v15322_v27  ;;  %v709_v1 = vld [vmem:[#allocation6 + $0x11e8] sm:$0xff]  ;;  %v15481_v27 = vcombine.low %v641_v9, %v645_v63 }
 0x244   :  { %v15546_v4 = vcombine.high %v705_v0, %v709_v1  ;;  %v633_v15 = vld [vmem:[#allocation6 + $0xf88] sm:$0xff]  ;;  %v15545_v24 = vcombine.low %v705_v0, %v709_v1 }
 0x245   :  { %10489 = vmatpush1.bf16.msra.mxu0 %v15385_v54  ;;  %v637_v17 = vld [vmem:[#allocation6 + $0xfa8] sm:$0xff] }
 0x246   :  { %10464 = vmatpush2.bf16.msra.mxu1 %v15321_v30  ;;  %10490 = vmatprep.subr.bf16.mxu0 %v15378_v45  ;;  %v697_v50 = vld [vmem:[#allocation6 + $0x1188] sm:$0xff]  ;;  %v15474_v56 = vcombine.high %v633_v15, %v637_v17  ;;  %v15473_v35 = vcombine.low %v633_v15, %v637_v17 }
 0x247   :  { %10465 = vmatprep.subr.bf16.mxu1 %v15314_v31  ;;  %v701_v21 = vld [vmem:[#allocation6 + $0x11a8] sm:$0xff] }
 0x248   :  { %v15538_v25 = vcombine.high %v697_v50, %v701_v21  ;;  %v625_v26 = vld [vmem:[#allocation6 + $0xf48] sm:$0xff] }
 0x249   :  { %10491 = vmatpush1.bf16.msra.mxu0 %v15377_v37  ;;  %v629_v54 = vld [vmem:[#allocation6 + $0xf68] sm:$0xff]  ;;  %v15537_v37 = vcombine.low %v697_v50, %v701_v21 }
 0x24a   :  { %10466 = vmatpush2.bf16.msra.mxu1 %v15313_v41  ;;  %10492 = vmatprep.subr.bf16.mxu0 %v15370_v5  ;;  %v689_v45 = vld [vmem:[#allocation6 + $0x1148] sm:$0xff]  ;;  %v15466_v41 = vcombine.high %v625_v26, %v629_v54  ;;  %v15465_v9 = vcombine.low %v625_v26, %v629_v54 }
 0x24b   :  { %10467 = vmatprep.subr.bf16.mxu1 %v15306_v43  ;;  %v693_v31 = vld [vmem:[#allocation6 + $0x1168] sm:$0xff] }
 0x24c   :  { %v15530_v47 = vcombine.high %v689_v45, %v693_v31  ;;  %v617_v18 = vld [vmem:[#allocation6 + $0xf08] sm:$0xff]  ;;  %v15529_v0 = vcombine.low %v689_v45, %v693_v31 }
 0x24d   :  { %10493 = vmatpush1.bf16.msra.mxu0 %v15369_v55  ;;  %v621_v49 = vld [vmem:[#allocation6 + $0xf28] sm:$0xff] }
 0x24e   :  { %10468 = vmatpush2.bf16.msra.mxu1 %v15305_v57  ;;  %10494 = vmatprep.subr.bf16.mxu0 %v15362_v60  ;;  %v681_v55 = vld [vmem:[#allocation6 + $0x1108] sm:$0xff]  ;;  %v15457_v17 = vcombine.low %v617_v18, %v621_v49 }
 0x24f   :  { %10469 = vmatprep.subr.bf16.mxu1 %v15298_v61  ;;  %v685_v57 = vld [vmem:[#allocation6 + $0x1128] sm:$0xff] }
 0x250   :  { %v677_v15 = vld [vmem:[#allocation6 + $0x10e8] sm:$0xff]  ;;  %v15521_v50 = vcombine.low %v681_v55, %v685_v57 }
 0x251   :  { %10495 = vmatpush1.bf16.msra.mxu0 %v15361_v13  ;;  %v15522_v13 = vcombine.high %v681_v55, %v685_v57  ;;  %v669_v26 = vld [vmem:[#allocation6 + $0x10a8] sm:$0xff] }
 0x252   :  { %10470 = vmatpush2.bf16.msra.mxu1 %v15297_v14  ;;  %10496 = vmatprep.subr.bf16.mxu0 %v15482_v3  ;;  %v609_v14 = vld [vmem:[#allocation6 + $0xec8] sm:$0xff] }
 0x253   :  { %10521 = vmatprep.subr.bf16.mxu1 %v15546_v4  ;;  %v10186_v30 = vpop.f32.mrf.mxu0  ;;  %v613_v3 = vld [vmem:[#allocation6 + $0xee8] sm:$0xff] }
 0x254   :  { %v10187_v32 = vadd.f32 %v10186_v30, %v17961_v62  ;;  %v673_v4 = vld [vmem:[#allocation6 + $0x10c8] sm:$0xff]  ;;  %v15450_v21 = vcombine.high %v609_v14, %v613_v3  ;;  %v15449_v54 = vcombine.low %v609_v14, %v613_v3 }
 0x255   :  { %v10227_v34 = vpop.f32.mrf.mxu1  ;;  %10472 = vmatmul.mubr.bf16.vlgmr.msra.gmra.mxu1 %v17838_v39  ;;  %10497 = vmatpush2.bf16.msra.mxu0 %v15481_v27  ;;  %v10188_v36 = vpop.f32.mrf.mxu0  ;;  %v15514_v27 = vcombine.high %v673_v4, %v677_v15  ;;  %v15513_v30 = vcombine.low %v673_v4, %v677_v15  ;;  %v825_v15 = vld [vmem:[#allocation6 + $0x1588] sm:$0xff] }
 0x256   :  { %10522 = vmatpush1.bf16.msra.mxu1 %v15545_v24  ;;  %10498 = vmatprep.subr.bf16.mxu0 %v15474_v56  ;;  %v17971_v5 = vadd.f32 %v10227_v34, %v10187_v32  ;;  %v10189_v43 = vadd.f32 %v10188_v36, %v17965_v12  ;;  %v15458_v12 = vcombine.high %v617_v18, %v621_v49  ;;  %v601_v24 = vld [vmem:[#allocation6 + $0xe88] sm:$0xff] }
 0x257   :  { %v10229_v46 = vpop.f32.mrf.mxu1  ;;  %10523 = vmatprep.subr.bf16.mxu1 %v15538_v25  ;;  %10553 = vmatprep.mubr.bf16.mxu1 %v17848_v19  ;;  %v10190_v62 = vpop.f32.mrf.mxu0  ;;  %v605_v56 = vld [vmem:[#allocation6 + $0xea8] sm:$0xff] }
 0x258   :  { %v17975_v60 = vadd.f32 %v10229_v46, %v10189_v43  ;;  %v665_v25 = vld [vmem:[#allocation6 + $0x1088] sm:$0xff]  ;;  %v15442_v45 = vcombine.high %v601_v24, %v605_v56 }
 0x259   :  { %v10231_v61 = vpop.f32.mrf.mxu1  ;;  %10499 = vmatpush2.bf16.msra.mxu0 %v15473_v35  ;;  %v10191_v63 = vpop.f32.mrf.mxu0  ;;  %v15506_v31 = vcombine.high %v665_v25, %v669_v26  ;;  %v593_v32 = vld [vmem:[#allocation6 + $0xe48] sm:$0xff] }
 0x25a   :  { %10524 = vmatpush1.bf16.msra.mxu1 %v15537_v37  ;;  %10500 = vmatprep.subr.bf16.mxu0 %v15466_v41  ;;  %v597_v34 = vld [vmem:[#allocation6 + $0xe68] sm:$0xff]  ;;  %v15441_v37 = vcombine.low %v601_v24, %v605_v56  ;;  %v15505_v41 = vcombine.low %v665_v25, %v669_v26 }
 0x25b   :  { %v10232_v1 = vpop.f32.mrf.mxu1  ;;  %10525 = vmatprep.subr.bf16.mxu1 %v15530_v47  ;;  %v657_v35 = vld [vmem:[#allocation6 + $0x1048] sm:$0xff]  ;;  %v15434_v43 = vcombine.high %v593_v32, %v597_v34  ;;  %v15433_v55 = vcombine.low %v593_v32, %v597_v34 }
 0x25c   :  { %v661_v36 = vld [vmem:[#allocation6 + $0x1068] sm:$0xff] }
 0x25d   :  { %10501 = vmatpush2.bf16.msra.mxu0 %v15465_v9  ;;  %v15498_v46 = vcombine.high %v657_v35, %v661_v36  ;;  %v585_v47 = vld [vmem:[#allocation6 + $0xe08] sm:$0xff]  ;;  %v15497_v57 = vcombine.low %v657_v35, %v661_v36 }
 0x25e   :  { %10526 = vmatpush1.bf16.msra.mxu1 %v15529_v0  ;;  %10502 = vmatprep.subr.bf16.mxu0 %v15458_v12  ;;  %v589_v18 = vld [vmem:[#allocation6 + $0xe28] sm:$0xff] }
 0x25f   :  { %10527 = vmatprep.subr.bf16.mxu1 %v15522_v13  ;;  %v649_v49 = vld [vmem:[#allocation6 + $0x1008] sm:$0xff]  ;;  %v15426_v61 = vcombine.high %v585_v47, %v589_v18  ;;  %v15425_v13 = vcombine.low %v585_v47, %v589_v18 }
 0x260   :  { %v653_v62 = vld [vmem:[#allocation6 + $0x1028] sm:$0xff] }
 0x261   :  { %10503 = vmatpush2.bf16.msra.mxu0 %v15457_v17  ;;  %v15490_v9 = vcombine.high %v649_v49, %v653_v62  ;;  %v833_v63 = vld [vmem:[#allocation6 + $0x15c8] sm:$0xff]  ;;  %v15489_v14 = vcombine.low %v649_v49, %v653_v62 }
 0x262   :  { %10528 = vmatpush1.bf16.msra.mxu1 %v15521_v50  ;;  %10504 = vmatprep.subr.bf16.mxu0 %v15450_v21  ;;  %v837_v0 = vld [vmem:[#allocation6 + $0x15e8] sm:$0xff] }
 0x263   :  { %10529 = vmatprep.subr.bf16.mxu1 %v15514_v27  ;;  %v769_v12 = vld [vmem:[#allocation6 + $0x13c8] sm:$0xff]  ;;  %v15674_v3 = vcombine.high %v833_v63, %v837_v0  ;;  %v15673_v27 = vcombine.low %v833_v63, %v837_v0 }
 0x264   :  { %v773_v1 = vld [vmem:[#allocation6 + $0x13e8] sm:$0xff] }
 0x265   :  { %10505 = vmatpush2.bf16.msra.mxu0 %v15449_v54  ;;  %v15610_v4 = vcombine.high %v769_v12, %v773_v1  ;;  %v829_v17 = vld [vmem:[#allocation6 + $0x15a8] sm:$0xff]  ;;  %v15609_v24 = vcombine.low %v769_v12, %v773_v1 }
 0x266   :  { %10530 = vmatpush1.bf16.msra.mxu1 %v15513_v30  ;;  %10506 = vmatprep.subr.bf16.mxu0 %v15442_v45  ;;  %v761_v50 = vld [vmem:[#allocation6 + $0x1388] sm:$0xff]  ;;  %v15666_v56 = vcombine.high %v825_v15, %v829_v17 }
 0x267   :  { %10531 = vmatprep.subr.bf16.mxu1 %v15506_v31  ;;  %v765_v21 = vld [vmem:[#allocation6 + $0x13a8] sm:$0xff]  ;;  %v15665_v31 = vcombine.low %v825_v15, %v829_v17 }
 0x268   :  { %v15602_v25 = vcombine.high %v761_v50, %v765_v21  ;;  %v817_v26 = vld [vmem:[#allocation6 + $0x1548] sm:$0xff]  ;;  %v15601_v32 = vcombine.low %v761_v50, %v765_v21 }
 0x269   :  { %10507 = vmatpush2.bf16.msra.mxu0 %v15441_v37  ;;  %v821_v54 = vld [vmem:[#allocation6 + $0x1568] sm:$0xff] }
 0x26a   :  { %10532 = vmatpush1.bf16.msra.mxu1 %v15505_v41  ;;  %10508 = vmatprep.subr.bf16.mxu0 %v15434_v43  ;;  %v753_v30 = vld [vmem:[#allocation6 + $0x1348] sm:$0xff]  ;;  %v15658_v34 = vcombine.high %v817_v26, %v821_v54 }
 0x26b   :  { %10533 = vmatprep.subr.bf16.mxu1 %v15498_v46  ;;  %v757_v45 = vld [vmem:[#allocation6 + $0x1368] sm:$0xff]  ;;  %v15657_v46 = vcombine.low %v817_v26, %v821_v54 }
 0x26c   :  { %v15594_v35 = vcombine.high %v753_v30, %v757_v45  ;;  %v809_v36 = vld [vmem:[#allocation6 + $0x1508] sm:$0xff]  ;;  %v15593_v47 = vcombine.low %v753_v30, %v757_v45 }
 0x26d   :  { %10509 = vmatpush2.bf16.msra.mxu0 %v15433_v55  ;;  %v813_v37 = vld [vmem:[#allocation6 + $0x1528] sm:$0xff] }
 0x26e   :  { %10534 = vmatpush1.bf16.msra.mxu1 %v15497_v57  ;;  %10510 = vmatprep.subr.bf16.mxu0 %v15426_v61  ;;  %v745_v41 = vld [vmem:[#allocation6 + $0x1308] sm:$0xff]  ;;  %v15650_v18 = vcombine.high %v809_v36, %v813_v37 }
 0x26f   :  { %10535 = vmatprep.subr.bf16.mxu1 %v15490_v9  ;;  %v749_v43 = vld [vmem:[#allocation6 + $0x1328] sm:$0xff]  ;;  %v15649_v9 = vcombine.low %v809_v36, %v813_v37 }
 0x270   :  { %v15586_v49 = vcombine.high %v745_v41, %v749_v43  ;;  %v801_v62 = vld [vmem:[#allocation6 + $0x14c8] sm:$0xff]  ;;  %v15585_v63 = vcombine.low %v745_v41, %v749_v43 }
 0x271   :  { %10511 = vmatpush2.bf16.msra.mxu0 %v15425_v13  ;;  %v805_v55 = vld [vmem:[#allocation6 + $0x14e8] sm:$0xff] }
 0x272   :  { %10536 = vmatpush1.bf16.msra.mxu1 %v15489_v14  ;;  %10562 = vmatprep.subr.bf16.mxu0 %v15674_v3  ;;  %v737_v57 = vld [vmem:[#allocation6 + $0x12c8] sm:$0xff]  ;;  %v15642_v0 = vcombine.high %v801_v62, %v805_v55 }
 0x273   :  { %10537 = vmatprep.subr.bf16.mxu1 %v15610_v4  ;;  %v741_v61 = vld [vmem:[#allocation6 + $0x12e8] sm:$0xff]  ;;  %v15641_v4 = vcombine.low %v801_v62, %v805_v55 }
 0x274   :  { %10513 = vmatmul.mubr.bf16.vlgmr.msra.gmra.mxu0 %v17842_v40  ;;  %v15578_v12 = vcombine.high %v737_v57, %v741_v61  ;;  %v793_v1 = vld [vmem:[#allocation6 + $0x1488] sm:$0xff]  ;;  %v15577_v15 = vcombine.low %v737_v57, %v741_v61 }
 0x275   :  { %10563 = vmatpush1.bf16.msra.mxu0 %v15673_v27  ;;  %10594 = vmatprep.mubr.bf16.mxu0 %v17853_v22  ;;  %v797_v13 = vld [vmem:[#allocation6 + $0x14a8] sm:$0xff] }
 0x276   :  { %10538 = vmatpush2.bf16.msra.mxu1 %v15609_v24  ;;  %10564 = vmatprep.subr.bf16.mxu0 %v15666_v56  ;;  %v729_v14 = vld [vmem:[#allocation6 + $0x1288] sm:$0xff]  ;;  %v15634_v17 = vcombine.high %v793_v1, %v797_v13 }
 0x277   :  { %10539 = vmatprep.subr.bf16.mxu1 %v15602_v25  ;;  %v733_v3 = vld [vmem:[#allocation6 + $0x12a8] sm:$0xff]  ;;  %v15633_v25 = vcombine.low %v793_v1, %v797_v13 }
 0x278   :  { %v15570_v50 = vcombine.high %v729_v14, %v733_v3  ;;  %v785_v21 = vld [vmem:[#allocation6 + $0x1448] sm:$0xff]  ;;  %v15569_v26 = vcombine.low %v729_v14, %v733_v3 }
 0x279   :  { %10565 = vmatpush1.bf16.msra.mxu0 %v15665_v31  ;;  %v789_v27 = vld [vmem:[#allocation6 + $0x1468] sm:$0xff] }
 0x27a   :  { %10540 = vmatpush2.bf16.msra.mxu1 %v15601_v32  ;;  %10566 = vmatprep.subr.bf16.mxu0 %v15658_v34  ;;  %v721_v24 = vld [vmem:[#allocation6 + $0x1248] sm:$0xff]  ;;  %v15626_v54 = vcombine.high %v785_v21, %v789_v27 }
 0x27b   :  { %10541 = vmatprep.subr.bf16.mxu1 %v15594_v35  ;;  %v725_v56 = vld [vmem:[#allocation6 + $0x1268] sm:$0xff]  ;;  %v15625_v35 = vcombine.low %v785_v21, %v789_v27 }
 0x27c   :  { %v15562_v30 = vcombine.high %v721_v24, %v725_v56  ;;  %v777_v45 = vld [vmem:[#allocation6 + $0x1408] sm:$0xff]  ;;  %v15561_v36 = vcombine.low %v721_v24, %v725_v56 }
 0x27d   :  { %10567 = vmatpush1.bf16.msra.mxu0 %v15657_v46  ;;  %v781_v31 = vld [vmem:[#allocation6 + $0x1428] sm:$0xff] }
 0x27e   :  { %10542 = vmatpush2.bf16.msra.mxu1 %v15593_v47  ;;  %10568 = vmatprep.subr.bf16.mxu0 %v15650_v18  ;;  %v713_v32 = vld [vmem:[#allocation6 + $0x1208] sm:$0xff]  ;;  %v15618_v37 = vcombine.high %v777_v45, %v781_v31 }
 0x27f   :  { %10543 = vmatprep.subr.bf16.mxu1 %v15586_v49  ;;  %v717_v34 = vld [vmem:[#allocation6 + $0x1228] sm:$0xff]  ;;  %v15617_v49 = vcombine.low %v777_v45, %v781_v31 }
 0x280   :  { %v15554_v41 = vcombine.high %v713_v32, %v717_v34  ;;  %v897_v43 = vld [vmem:[#allocation6 + $0x17c8] sm:$0xff]  ;;  %v15553_v62 = vcombine.low %v713_v32, %v717_v34 }
 0x281   :  { %10569 = vmatpush1.bf16.msra.mxu0 %v15649_v9  ;;  %v901_v46 = vld [vmem:[#allocation6 + $0x17e8] sm:$0xff] }
 0x282   :  { %10544 = vmatpush2.bf16.msra.mxu1 %v15585_v63  ;;  %10570 = vmatprep.subr.bf16.mxu0 %v15642_v0  ;;  %v961_v47 = vld [vmem:[#allocation6 + $0x19c8] sm:$0xff]  ;;  %v15738_v55 = vcombine.high %v897_v43, %v901_v46 }
 0x283   :  { %10545 = vmatprep.subr.bf16.mxu1 %v15578_v12  ;;  %v965_v18 = vld [vmem:[#allocation6 + $0x19e8] sm:$0xff]  ;;  %v15737_v12 = vcombine.low %v897_v43, %v901_v46 }
 0x284   :  { %v15802_v57 = vcombine.high %v961_v47, %v965_v18  ;;  %v889_v61 = vld [vmem:[#allocation6 + $0x1788] sm:$0xff]  ;;  %v15801_v1 = vcombine.low %v961_v47, %v965_v18 }
 0x285   :  { %10571 = vmatpush1.bf16.msra.mxu0 %v15641_v4  ;;  %v893_v9 = vld [vmem:[#allocation6 + $0x17a8] sm:$0xff] }
 0x286   :  { %10546 = vmatpush2.bf16.msra.mxu1 %v15577_v15  ;;  %10572 = vmatprep.subr.bf16.mxu0 %v15634_v17  ;;  %v953_v63 = vld [vmem:[#allocation6 + $0x1988] sm:$0xff]  ;;  %v15730_v13 = vcombine.high %v889_v61, %v893_v9  ;;  %v15729_v24 = vcombine.low %v889_v61, %v893_v9 }
 0x287   :  { %10547 = vmatprep.subr.bf16.mxu1 %v15570_v50  ;;  %v957_v0 = vld [vmem:[#allocation6 + $0x19a8] sm:$0xff] }
 0x288   :  { %v15794_v14 = vcombine.high %v953_v63, %v957_v0  ;;  %v881_v3 = vld [vmem:[#allocation6 + $0x1748] sm:$0xff] }
 0x289   :  { %10573 = vmatpush1.bf16.msra.mxu0 %v15633_v25  ;;  %v885_v4 = vld [vmem:[#allocation6 + $0x1768] sm:$0xff]  ;;  %v15793_v25 = vcombine.low %v953_v63, %v957_v0 }
 0x28a   :  { %10548 = vmatpush2.bf16.msra.mxu1 %v15569_v26  ;;  %10574 = vmatprep.subr.bf16.mxu0 %v15626_v54  ;;  %v945_v17 = vld [vmem:[#allocation6 + $0x1948] sm:$0xff]  ;;  %v15722_v26 = vcombine.high %v881_v3, %v885_v4  ;;  %v15721_v43 = vcombine.low %v881_v3, %v885_v4 }
 0x28b   :  { %10549 = vmatprep.subr.bf16.mxu1 %v15562_v30  ;;  %v949_v50 = vld [vmem:[#allocation6 + $0x1968] sm:$0xff] }
 0x28c   :  { %v15786_v31 = vcombine.high %v945_v17, %v949_v50  ;;  %v873_v32 = vld [vmem:[#allocation6 + $0x1708] sm:$0xff]  ;;  %v15785_v47 = vcombine.low %v945_v17, %v949_v50 }
 0x28d   :  { %10575 = vmatpush1.bf16.msra.mxu0 %v15625_v35  ;;  %v877_v34 = vld [vmem:[#allocation6 + $0x1728] sm:$0xff] }
 0x28e   :  { %10550 = vmatpush2.bf16.msra.mxu1 %v15561_v36  ;;  %10576 = vmatprep.subr.bf16.mxu0 %v15618_v37  ;;  %v937_v35 = vld [vmem:[#allocation6 + $0x1908] sm:$0xff]  ;;  %v15713_v9 = vcombine.low %v873_v32, %v877_v34 }
 0x28f   :  { %10551 = vmatprep.subr.bf16.mxu1 %v15554_v41  ;;  %v941_v36 = vld [vmem:[#allocation6 + $0x1928] sm:$0xff] }
 0x290   :  { %v933_v61 = vld [vmem:[#allocation6 + $0x18e8] sm:$0xff]  ;;  %v15777_v63 = vcombine.low %v937_v35, %v941_v36 }
 0x291   :  { %10577 = vmatpush1.bf16.msra.mxu0 %v15617_v49  ;;  %v15778_v49 = vcombine.high %v937_v35, %v941_v36  ;;  %v925_v3 = vld [vmem:[#allocation6 + $0x18a8] sm:$0xff] }
 0x292   :  { %10552 = vmatpush2.bf16.msra.mxu1 %v15553_v62  ;;  %10578 = vmatprep.subr.bf16.mxu0 %v15738_v55  ;;  %v865_v62 = vld [vmem:[#allocation6 + $0x16c8] sm:$0xff] }
 0x293   :  { %10603 = vmatprep.subr.bf16.mxu1 %v15802_v57  ;;  %v869_v55 = vld [vmem:[#allocation6 + $0x16e8] sm:$0xff] }
 0x294   :  { %v10268_v15 = vpop.f32.mrf.mxu0  ;;  %v929_v57 = vld [vmem:[#allocation6 + $0x18c8] sm:$0xff]  ;;  %v15706_v0 = vcombine.high %v865_v62, %v869_v55  ;;  %v15705_v4 = vcombine.low %v865_v62, %v869_v55 }
 0x295   :  { %v10269_v21 = vadd.f32 %v10268_v15, %v17971_v5  ;;  %v10309_v27 = vpop.f32.mrf.mxu1  ;;  %10554 = vmatmul.mubr.bf16.vlgmr.msra.gmra.mxu1 %v17862_v7  ;;  %10579 = vmatpush2.bf16.msra.mxu0 %v15737_v12  ;;  %v15770_v12 = vcombine.high %v929_v57, %v933_v61  ;;  %v15769_v15 = vcombine.low %v929_v57, %v933_v61  ;;  %v1081_v61 = vld [vmem:[#allocation6 + $0x1d88] sm:$0xff] }
 0x296   :  { %10604 = vmatpush1.bf16.msra.mxu1 %v15801_v1  ;;  %v10270_v56 = vpop.f32.mrf.mxu0  ;;  %10580 = vmatprep.subr.bf16.mxu0 %v15730_v13  ;;  %v857_v1 = vld [vmem:[#allocation6 + $0x1688] sm:$0xff] }
 0x297   :  { %v17981_v54 = vadd.f32 %v10309_v27, %v10269_v21  ;;  %v10271_v30 = vadd.f32 %v10270_v56, %v17975_v60  ;;  %v10311_v45 = vpop.f32.mrf.mxu1  ;;  %10605 = vmatprep.subr.bf16.mxu1 %v15794_v14  ;;  %10635 = vmatprep.mubr.bf16.mxu1 %v17872_v38  ;;  %v15714_v60 = vcombine.high %v873_v32, %v877_v34  ;;  %v861_v13 = vld [vmem:[#allocation6 + $0x16a8] sm:$0xff] }
 0x298   :  { %v10272_v5 = vpop.f32.mrf.mxu0  ;;  %v921_v14 = vld [vmem:[#allocation6 + $0x1888] sm:$0xff]  ;;  %v15698_v17 = vcombine.high %v857_v1, %v861_v13 }
 0x299   :  { %v17985_v37 = vadd.f32 %v10311_v45, %v10271_v30  ;;  %v10313_v41 = vpop.f32.mrf.mxu1  ;;  %10581 = vmatpush2.bf16.msra.mxu0 %v15729_v24  ;;  %v15762_v50 = vcombine.high %v921_v14, %v925_v3  ;;  %v849_v21 = vld [vmem:[#allocation6 + $0x1648] sm:$0xff] }
 0x29a   :  { %10606 = vmatpush1.bf16.msra.mxu1 %v15793_v25  ;;  %v10273_v46 = vpop.f32.mrf.mxu0  ;;  %10582 = vmatprep.subr.bf16.mxu0 %v15722_v26  ;;  %v853_v27 = vld [vmem:[#allocation6 + $0x1668] sm:$0xff]  ;;  %v15697_v25 = vcombine.low %v857_v1, %v861_v13  ;;  %v15761_v26 = vcombine.low %v921_v14, %v925_v3 }
 0x29b   :  { %v10314_v18 = vpop.f32.mrf.mxu1  ;;  %10607 = vmatprep.subr.bf16.mxu1 %v15786_v31  ;;  %v913_v24 = vld [vmem:[#allocation6 + $0x1848] sm:$0xff]  ;;  %v15690_v30 = vcombine.high %v849_v21, %v853_v27  ;;  %v15689_v35 = vcombine.low %v849_v21, %v853_v27 }
 0x29c   :  { %v917_v56 = vld [vmem:[#allocation6 + $0x1868] sm:$0xff] }
 0x29d   :  { %10583 = vmatpush2.bf16.msra.mxu0 %v15721_v43  ;;  %v15754_v45 = vcombine.high %v913_v24, %v917_v56  ;;  %v841_v31 = vld [vmem:[#allocation6 + $0x1608] sm:$0xff]  ;;  %v15753_v36 = vcombine.low %v913_v24, %v917_v56 }
 0x29e   :  { %10608 = vmatpush1.bf16.msra.mxu1 %v15785_v47  ;;  %10584 = vmatprep.subr.bf16.mxu0 %v15714_v60  ;;  %v845_v32 = vld [vmem:[#allocation6 + $0x1628] sm:$0xff] }
 0x29f   :  { %10609 = vmatprep.subr.bf16.mxu1 %v15778_v49  ;;  %v905_v34 = vld [vmem:[#allocation6 + $0x1808] sm:$0xff]  ;;  %v15682_v41 = vcombine.high %v841_v31, %v845_v32  ;;  %v15681_v49 = vcombine.low %v841_v31, %v845_v32 }
 0x2a0   :  { %v909_v5 = vld [vmem:[#allocation6 + $0x1828] sm:$0xff] }
 0x2a1   :  { %10585 = vmatpush2.bf16.msra.mxu0 %v15713_v9  ;;  %v15746_v43 = vcombine.high %v905_v34, %v909_v5  ;;  %v1089_v46 = vld [vmem:[#allocation6 + $0x1dc8] sm:$0xff]  ;;  %v15745_v62 = vcombine.low %v905_v34, %v909_v5 }
 0x2a2   :  { %10610 = vmatpush1.bf16.msra.mxu1 %v15777_v63  ;;  %10586 = vmatprep.subr.bf16.mxu0 %v15706_v0  ;;  %v1093_v47 = vld [vmem:[#allocation6 + $0x1de8] sm:$0xff] }
 0x2a3   :  { %10611 = vmatprep.subr.bf16.mxu1 %v15770_v12  ;;  %v1025_v60 = vld [vmem:[#allocation6 + $0x1bc8] sm:$0xff]  ;;  %v15930_v55 = vcombine.high %v1089_v46, %v1093_v47  ;;  %v15929_v12 = vcombine.low %v1089_v46, %v1093_v47 }
 0x2a4   :  { %v1029_v18 = vld [vmem:[#allocation6 + $0x1be8] sm:$0xff] }
 0x2a5   :  { %10587 = vmatpush2.bf16.msra.mxu0 %v15705_v4  ;;  %v15866_v57 = vcombine.high %v1025_v60, %v1029_v18  ;;  %v1085_v9 = vld [vmem:[#allocation6 + $0x1da8] sm:$0xff]  ;;  %v15865_v1 = vcombine.low %v1025_v60, %v1029_v18 }
 0x2a6   :  { %10612 = vmatpush1.bf16.msra.mxu1 %v15769_v15  ;;  %10588 = vmatprep.subr.bf16.mxu0 %v15698_v17  ;;  %v1017_v63 = vld [vmem:[#allocation6 + $0x1b88] sm:$0xff]  ;;  %v15922_v13 = vcombine.high %v1081_v61, %v1085_v9  ;;  %v15921_v27 = vcombine.low %v1081_v61, %v1085_v9 }
 0x2a7   :  { %10613 = vmatprep.subr.bf16.mxu1 %v15762_v50  ;;  %v1021_v0 = vld [vmem:[#allocation6 + $0x1ba8] sm:$0xff] }
 0x2a8   :  { %v15858_v14 = vcombine.high %v1017_v63, %v1021_v0  ;;  %v1073_v3 = vld [vmem:[#allocation6 + $0x1d48] sm:$0xff]  ;;  %v15857_v56 = vcombine.low %v1017_v63, %v1021_v0 }
 0x2a9   :  { %10589 = vmatpush2.bf16.msra.mxu0 %v15697_v25  ;;  %v1077_v4 = vld [vmem:[#allocation6 + $0x1d68] sm:$0xff] }
 0x2aa   :  { %10614 = vmatpush1.bf16.msra.mxu1 %v15761_v26  ;;  %10590 = vmatprep.subr.bf16.mxu0 %v15690_v30  ;;  %v1009_v17 = vld [vmem:[#allocation6 + $0x1b48] sm:$0xff]  ;;  %v15914_v25 = vcombine.high %v1073_v3, %v1077_v4  ;;  %v15913_v5 = vcombine.low %v1073_v3, %v1077_v4 }
 0x2ab   :  { %10615 = vmatprep.subr.bf16.mxu1 %v15754_v45  ;;  %v1013_v50 = vld [vmem:[#allocation6 + $0x1b68] sm:$0xff] }
 0x2ac   :  { %v15850_v30 = vcombine.high %v1009_v17, %v1013_v50  ;;  %v1065_v45 = vld [vmem:[#allocation6 + $0x1d08] sm:$0xff] }
 0x2ad   :  { %10591 = vmatpush2.bf16.msra.mxu0 %v15689_v35  ;;  %v1069_v31 = vld [vmem:[#allocation6 + $0x1d28] sm:$0xff] }
 0x2ae   :  { %10616 = vmatpush1.bf16.msra.mxu1 %v15753_v36  ;;  %10592 = vmatprep.subr.bf16.mxu0 %v15682_v41  ;;  %v1001_v34 = vld [vmem:[#allocation6 + $0x1b08] sm:$0xff]  ;;  %v15849_v36 = vcombine.low %v1009_v17, %v1013_v50  ;;  %v15906_v41 = vcombine.high %v1065_v45, %v1069_v31  ;;  %v15905_v18 = vcombine.low %v1065_v45, %v1069_v31 }
 0x2af   :  { %10617 = vmatprep.subr.bf16.mxu1 %v15746_v43  ;;  %v1057_v46 = vld [vmem:[#allocation6 + $0x1cc8] sm:$0xff] }
 0x2b0   :  { %v1061_v47 = vld [vmem:[#allocation6 + $0x1ce8] sm:$0xff] }
 0x2b1   :  { %10593 = vmatpush2.bf16.msra.mxu0 %v15681_v49  ;;  %v997_v60 = vld [vmem:[#allocation6 + $0x1ae8] sm:$0xff]  ;;  %v15897_v0 = vcombine.low %v1057_v46, %v1061_v47 }
 0x2b2   :  { %10618 = vmatpush1.bf16.msra.mxu1 %v15745_v62  ;;  %10644 = vmatprep.subr.bf16.mxu0 %v15930_v55  ;;  %v15898_v62 = vcombine.high %v1057_v46, %v1061_v47  ;;  %v1053_v61 = vld [vmem:[#allocation6 + $0x1ca8] sm:$0xff] }
 0x2b3   :  { %10619 = vmatprep.subr.bf16.mxu1 %v15866_v57  ;;  %v1049_v57 = vld [vmem:[#allocation6 + $0x1c88] sm:$0xff] }
 0x2b4   :  { %v10350_v15 = vpop.f32.mrf.mxu0  ;;  %10595 = vmatmul.mubr.bf16.vlgmr.msra.gmra.mxu0 %v17866_v8  ;;  %v985_v9 = vld [vmem:[#allocation6 + $0x1a88] sm:$0xff]  ;;  %v15889_v17 = vcombine.low %v1049_v57, %v1053_v61 }
 0x2b5   :  { %v17989_v21 = vadd.f32 %v10350_v15, %v17981_v54  ;;  %10645 = vmatpush1.bf16.msra.mxu0 %v15929_v12  ;;  %10676 = vmatprep.mubr.bf16.mxu0 %v17877_v42  ;;  %v1005_v54 = vld [vmem:[#allocation6 + $0x1b28] sm:$0xff] }
 0x2b6   :  { %10620 = vmatpush2.bf16.msra.mxu1 %v15865_v1  ;;  %v10352_v24 = vpop.f32.mrf.mxu0  ;;  %10646 = vmatprep.subr.bf16.mxu0 %v15922_v13  ;;  %v15842_v43 = vcombine.high %v1001_v34, %v1005_v54  ;;  %v15841_v49 = vcombine.low %v1001_v34, %v1005_v54  ;;  %v989_v63 = vld [vmem:[#allocation6 + $0x1aa8] sm:$0xff]  ;;  %v15890_v1 = vcombine.high %v1049_v57, %v1053_v61 }
 0x2b7   :  { %v17993_v26 = vadd.f32 %v10352_v24, %v17985_v37  ;;  %10621 = vmatprep.subr.bf16.mxu1 %v15858_v14  ;;  %v993_v37 = vld [vmem:[#allocation6 + $0x1ac8] sm:$0xff]  ;;  %v15826_v13 = vcombine.high %v985_v9, %v989_v63  ;;  %v15825_v50 = vcombine.low %v985_v9, %v989_v63 }
 0x2b8   :  { %v10354_v32 = vpop.f32.mrf.mxu0  ;;  %v15834_v55 = vcombine.high %v993_v37, %v997_v60  ;;  %v15833_v12 = vcombine.low %v993_v37, %v997_v60  ;;  %v1041_v14 = vld [vmem:[#allocation6 + $0x1c48] sm:$0xff] }
 0x2b9   :  { %10647 = vmatpush1.bf16.msra.mxu0 %v15921_v27  ;;  %v1045_v3 = vld [vmem:[#allocation6 + $0x1c68] sm:$0xff] }
 0x2ba   :  { %10622 = vmatpush2.bf16.msra.mxu1 %v15857_v56  ;;  %v10355_v35 = vpop.f32.mrf.mxu0  ;;  %10648 = vmatprep.subr.bf16.mxu0 %v15914_v25  ;;  %v977_v4 = vld [vmem:[#allocation6 + $0x1a48] sm:$0xff]  ;;  %v15882_v27 = vcombine.high %v1041_v14, %v1045_v3  ;;  %v15881_v31 = vcombine.low %v1041_v14, %v1045_v3 }
 0x2bb   :  { %10623 = vmatprep.subr.bf16.mxu1 %v15850_v30  ;;  %v981_v15 = vld [vmem:[#allocation6 + $0x1a68] sm:$0xff] }
 0x2bc   :  { %v15818_v24 = vcombine.high %v977_v4, %v981_v15  ;;  %v1033_v56 = vld [vmem:[#allocation6 + $0x1c08] sm:$0xff]  ;;  %v15817_v32 = vcombine.low %v977_v4, %v981_v15 }
 0x2bd   :  { %10649 = vmatpush1.bf16.msra.mxu0 %v15913_v5  ;;  %v1037_v25 = vld [vmem:[#allocation6 + $0x1c28] sm:$0xff] }
 0x2be   :  { %10624 = vmatpush2.bf16.msra.mxu1 %v15849_v36  ;;  %10650 = vmatprep.subr.bf16.mxu0 %v15906_v41  ;;  %v969_v30 = vld [vmem:[#allocation6 + $0x1a08] sm:$0xff]  ;;  %v15874_v34 = vcombine.high %v1033_v56, %v1037_v25 }
 0x2bf   :  { %10625 = vmatprep.subr.bf16.mxu1 %v15842_v43  ;;  %v973_v45 = vld [vmem:[#allocation6 + $0x1a28] sm:$0xff]  ;;  %v15873_v43 = vcombine.low %v1033_v56, %v1037_v25 }
 0x2c0   :  { %v15810_v54 = vcombine.high %v969_v30, %v973_v45  ;;  %v1153_v5 = vld [vmem:[#allocation6 + $0x1fc8] sm:$0xff]  ;;  %v15809_v46 = vcombine.low %v969_v30, %v973_v45 }
 0x2c1   :  { %10651 = vmatpush1.bf16.msra.mxu0 %v15905_v18  ;;  %v1157_v35 = vld [vmem:[#allocation6 + $0x1fe8] sm:$0xff] }
 0x2c2   :  { %10626 = vmatpush2.bf16.msra.mxu1 %v15841_v49  ;;  %10652 = vmatprep.subr.bf16.mxu0 %v15898_v62  ;;  %v1217_v36 = vld [vmem:[#allocation6 + $0x21c8] sm:$0xff]  ;;  %v15994_v47 = vcombine.high %v1153_v5, %v1157_v35 }
 0x2c3   :  { %10627 = vmatprep.subr.bf16.mxu1 %v15834_v55  ;;  %v1221_v41 = vld [vmem:[#allocation6 + $0x21e8] sm:$0xff]  ;;  %v15993_v55 = vcombine.low %v1153_v5, %v1157_v35 }
 0x2c4   :  { %v16058_v37 = vcombine.high %v1217_v36, %v1221_v41  ;;  %v1145_v60 = vld [vmem:[#allocation6 + $0x1f88] sm:$0xff]  ;;  %v16057_v57 = vcombine.low %v1217_v36, %v1221_v41 }
 0x2c5   :  { %10653 = vmatpush1.bf16.msra.mxu0 %v15897_v0  ;;  %v1149_v18 = vld [vmem:[#allocation6 + $0x1fa8] sm:$0xff] }
 0x2c6   :  { %10628 = vmatpush2.bf16.msra.mxu1 %v15833_v12  ;;  %10654 = vmatprep.subr.bf16.mxu0 %v15890_v1  ;;  %v1209_v49 = vld [vmem:[#allocation6 + $0x2188] sm:$0xff]  ;;  %v15986_v61 = vcombine.high %v1145_v60, %v1149_v18  ;;  %v15985_v14 = vcombine.low %v1145_v60, %v1149_v18 }
 0x2c7   :  { %10629 = vmatprep.subr.bf16.mxu1 %v15826_v13  ;;  %v1213_v62 = vld [vmem:[#allocation6 + $0x21a8] sm:$0xff] }
 0x2c8   :  { %v16050_v9 = vcombine.high %v1209_v49, %v1213_v62  ;;  %v1137_v63 = vld [vmem:[#allocation6 + $0x1f48] sm:$0xff]  ;;  %v16049_v3 = vcombine.low %v1209_v49, %v1213_v62 }
 0x2c9   :  { %10655 = vmatpush1.bf16.msra.mxu0 %v15889_v17  ;;  %v1141_v0 = vld [vmem:[#allocation6 + $0x1f68] sm:$0xff] }
 0x2ca   :  { %10630 = vmatpush2.bf16.msra.mxu1 %v15825_v50  ;;  %10656 = vmatprep.subr.bf16.mxu0 %v15882_v27  ;;  %v1201_v12 = vld [vmem:[#allocation6 + $0x2148] sm:$0xff]  ;;  %v15978_v4 = vcombine.high %v1137_v63, %v1141_v0  ;;  %v15977_v30 = vcombine.low %v1137_v63, %v1141_v0 }
 0x2cb   :  { %10631 = vmatprep.subr.bf16.mxu1 %v15818_v24  ;;  %v1205_v1 = vld [vmem:[#allocation6 + $0x2168] sm:$0xff] }
 0x2cc   :  { %v16042_v17 = vcombine.high %v1201_v12, %v1205_v1  ;;  %v1129_v50 = vld [vmem:[#allocation6 + $0x1f08] sm:$0xff]  ;;  %v16041_v45 = vcombine.low %v1201_v12, %v1205_v1 }
 0x2cd   :  { %10657 = vmatpush1.bf16.msra.mxu0 %v15881_v31  ;;  %v1133_v27 = vld [vmem:[#allocation6 + $0x1f28] sm:$0xff] }
 0x2ce   :  { %10632 = vmatpush2.bf16.msra.mxu1 %v15817_v32  ;;  %10658 = vmatprep.subr.bf16.mxu0 %v15874_v34  ;;  %v1193_v24 = vld [vmem:[#allocation6 + $0x2108] sm:$0xff]  ;;  %v15970_v31 = vcombine.high %v1129_v50, %v1133_v27  ;;  %v15969_v41 = vcombine.low %v1129_v50, %v1133_v27 }
 0x2cf   :  { %10633 = vmatprep.subr.bf16.mxu1 %v15810_v54  ;;  %v1197_v56 = vld [vmem:[#allocation6 + $0x2128] sm:$0xff] }
 0x2d0   :  { %v16034_v34 = vcombine.high %v1193_v24, %v1197_v56  ;;  %v1121_v54 = vld [vmem:[#allocation6 + $0x1ec8] sm:$0xff] }
 0x2d1   :  { %10659 = vmatpush1.bf16.msra.mxu0 %v15873_v43  ;;  %v1125_v5 = vld [vmem:[#allocation6 + $0x1ee8] sm:$0xff]  ;;  %v16033_v43 = vcombine.low %v1193_v24, %v1197_v56 }
 0x2d2   :  { %10634 = vmatpush2.bf16.msra.mxu1 %v15809_v46  ;;  %10660 = vmatprep.subr.bf16.mxu0 %v15994_v47  ;;  %v1185_v35 = vld [vmem:[#allocation6 + $0x20c8] sm:$0xff]  ;;  %v15962_v46 = vcombine.high %v1121_v54, %v1125_v5  ;;  %v15961_v62 = vcombine.low %v1121_v54, %v1125_v5 }
 0x2d3   :  { %10685 = vmatprep.subr.bf16.mxu1 %v16058_v37  ;;  %v1189_v36 = vld [vmem:[#allocation6 + $0x20e8] sm:$0xff] }
 0x2d4   :  { %v16026_v47 = vcombine.high %v1185_v35, %v1189_v36  ;;  %v1113_v37 = vld [vmem:[#allocation6 + $0x1e88] sm:$0xff] }
 0x2d5   :  { %v17995_v13 = vpop.f32.mrf.mxu1  ;;  %10636 = vmatmul.mubr.bf16.vlgmr.msra.gmra.mxu1 %v17886_v51  ;;  %10661 = vmatpush2.bf16.msra.mxu0 %v15993_v55  ;;  %v1117_v60 = vld [vmem:[#allocation6 + $0x1ea8] sm:$0xff]  ;;  %v16025_v55 = vcombine.low %v1185_v35, %v1189_v36 }
 0x2d6   :  { %10686 = vmatpush1.bf16.msra.mxu1 %v16057_v57  ;;  %10662 = vmatprep.subr.bf16.mxu0 %v15986_v61  ;;  %v1177_v18 = vld [vmem:[#allocation6 + $0x2088] sm:$0xff]  ;;  %v15954_v57 = vcombine.high %v1113_v37, %v1117_v60  ;;  %v15953_v1 = vcombine.low %v1113_v37, %v1117_v60 }
 0x2d7   :  { %v17998_v15 = vpop.f32.mrf.mxu1  ;;  %10687 = vmatprep.subr.bf16.mxu1 %v16050_v9  ;;  %10717 = vmatprep.mubr.bf16.mxu1 %v17896_v6  ;;  %v1181_v49 = vld [vmem:[#allocation6 + $0x20a8] sm:$0xff] }
 0x2d8   :  { %v16018_v61 = vcombine.high %v1177_v18, %v1181_v49  ;;  %v1105_v9 = vld [vmem:[#allocation6 + $0x1e48] sm:$0xff] }
 0x2d9   :  { %v10395_v25 = vpop.f32.mrf.mxu1  ;;  %10663 = vmatpush2.bf16.msra.mxu0 %v15985_v14  ;;  %v1109_v63 = vld [vmem:[#allocation6 + $0x1e68] sm:$0xff]  ;;  %v16017_v14 = vcombine.low %v1177_v18, %v1181_v49 }
 0x2da   :  { %10688 = vmatpush1.bf16.msra.mxu1 %v16049_v3  ;;  %10664 = vmatprep.subr.bf16.mxu0 %v15978_v4  ;;  %v1169_v0 = vld [vmem:[#allocation6 + $0x2048] sm:$0xff]  ;;  %v15946_v3 = vcombine.high %v1105_v9, %v1109_v63  ;;  %v15945_v56 = vcombine.low %v1105_v9, %v1109_v63 }
 0x2db   :  { %v10396_v32 = vpop.f32.mrf.mxu1  ;;  %10689 = vmatprep.subr.bf16.mxu1 %v16042_v17  ;;  %v1173_v12 = vld [vmem:[#allocation6 + $0x2068] sm:$0xff] }
 0x2dc   :  { %v16010_v4 = vcombine.high %v1169_v0, %v1173_v12  ;;  %v1097_v17 = vld [vmem:[#allocation6 + $0x1e08] sm:$0xff]  ;;  %v16009_v25 = vcombine.low %v1169_v0, %v1173_v12 }
 0x2dd   :  { %10665 = vmatpush2.bf16.msra.mxu0 %v15977_v30  ;;  %v1101_v50 = vld [vmem:[#allocation6 + $0x1e28] sm:$0xff] }
 0x2de   :  { %10690 = vmatpush1.bf16.msra.mxu1 %v16041_v45  ;;  %10666 = vmatprep.subr.bf16.mxu0 %v15970_v31  ;;  %v1161_v27 = vld [vmem:[#allocation6 + $0x2008] sm:$0xff]  ;;  %v15938_v30 = vcombine.high %v1097_v17, %v1101_v50  ;;  %v15937_v5 = vcombine.low %v1097_v17, %v1101_v50 }
 0x2df   :  { %10691 = vmatprep.subr.bf16.mxu1 %v16034_v34  ;;  %v1165_v24 = vld [vmem:[#allocation6 + $0x2028] sm:$0xff] }
 0x2e0   :  { %v16002_v45 = vcombine.high %v1161_v27, %v1165_v24  ;;  %v1345_v31 = vld [vmem:[#allocation6 + $0x25c8] sm:$0xff]  ;;  %v16001_v35 = vcombine.low %v1161_v27, %v1165_v24 }
 0x2e1   :  { %10667 = vmatpush2.bf16.msra.mxu0 %v15969_v41  ;;  %v1349_v32 = vld [vmem:[#allocation6 + $0x25e8] sm:$0xff] }
 0x2e2   :  { %10692 = vmatpush1.bf16.msra.mxu1 %v16033_v43  ;;  %10668 = vmatprep.subr.bf16.mxu0 %v15962_v46  ;;  %v1281_v34 = vld [vmem:[#allocation6 + $0x23c8] sm:$0xff]  ;;  %v16186_v36 = vcombine.high %v1345_v31, %v1349_v32  ;;  %v16185_v60 = vcombine.low %v1345_v31, %v1349_v32 }
 0x2e3   :  { %10693 = vmatprep.subr.bf16.mxu1 %v16026_v47  ;;  %v1285_v54 = vld [vmem:[#allocation6 + $0x23e8] sm:$0xff] }
 0x2e4   :  { %v16122_v41 = vcombine.high %v1281_v34, %v1285_v54  ;;  %v1337_v43 = vld [vmem:[#allocation6 + $0x2588] sm:$0xff]  ;;  %v16121_v18 = vcombine.low %v1281_v34, %v1285_v54 }
 0x2e5   :  { %10669 = vmatpush2.bf16.msra.mxu0 %v15961_v62  ;;  %v1341_v46 = vld [vmem:[#allocation6 + $0x25a8] sm:$0xff] }
 0x2e6   :  { %10694 = vmatpush1.bf16.msra.mxu1 %v16025_v55  ;;  %10670 = vmatprep.subr.bf16.mxu0 %v15954_v57  ;;  %v1273_v47 = vld [vmem:[#allocation6 + $0x2388] sm:$0xff]  ;;  %v16178_v49 = vcombine.high %v1337_v43, %v1341_v46  ;;  %v16177_v12 = vcombine.low %v1337_v43, %v1341_v46 }
 0x2e7   :  { %10695 = vmatprep.subr.bf16.mxu1 %v16018_v61  ;;  %v1277_v37 = vld [vmem:[#allocation6 + $0x23a8] sm:$0xff] }
 0x2e8   :  { %v16114_v62 = vcombine.high %v1273_v47, %v1277_v37  ;;  %v1329_v55 = vld [vmem:[#allocation6 + $0x2548] sm:$0xff] }
 0x2e9   :  { %10671 = vmatpush2.bf16.msra.mxu0 %v15953_v1  ;;  %v1333_v57 = vld [vmem:[#allocation6 + $0x2568] sm:$0xff] }
 0x2ea   :  { %10696 = vmatpush1.bf16.msra.mxu1 %v16017_v14  ;;  %10672 = vmatprep.subr.bf16.mxu0 %v15946_v3  ;;  %v1265_v9 = vld [vmem:[#allocation6 + $0x2348] sm:$0xff]  ;;  %v16113_v14 = vcombine.low %v1273_v47, %v1277_v37  ;;  %v16170_v3 = vcombine.high %v1329_v55, %v1333_v57 }
 0x2eb   :  { %10697 = vmatprep.subr.bf16.mxu1 %v16010_v4  ;;  %v1269_v63 = vld [vmem:[#allocation6 + $0x2368] sm:$0xff] }
 0x2ec   :  { %v16106_v17 = vcombine.high %v1265_v9, %v1269_v63  ;;  %v1321_v50 = vld [vmem:[#allocation6 + $0x2508] sm:$0xff] }
 0x2ed   :  { %10673 = vmatpush2.bf16.msra.mxu0 %v15945_v56  ;;  %v1325_v27 = vld [vmem:[#allocation6 + $0x2528] sm:$0xff] }
 0x2ee   :  { %10698 = vmatpush1.bf16.msra.mxu1 %v16009_v25  ;;  %10674 = vmatprep.subr.bf16.mxu0 %v15938_v30  ;;  %v1257_v56 = vld [vmem:[#allocation6 + $0x2308] sm:$0xff]  ;;  %v16169_v25 = vcombine.low %v1329_v55, %v1333_v57  ;;  %v16162_v31 = vcombine.high %v1321_v50, %v1325_v27 }
 0x2ef   :  { %10699 = vmatprep.subr.bf16.mxu1 %v16002_v45  ;;  %v16105_v45 = vcombine.low %v1265_v9, %v1269_v63  ;;  %v1313_v34 = vld [vmem:[#allocation6 + $0x24c8] sm:$0xff] }
 0x2f0   :  { %v1317_v54 = vld [vmem:[#allocation6 + $0x24e8] sm:$0xff] }
 0x2f1   :  { %10675 = vmatpush2.bf16.msra.mxu0 %v15937_v5  ;;  %v1253_v5 = vld [vmem:[#allocation6 + $0x22e8] sm:$0xff] }
 0x2f2   :  { %10700 = vmatpush1.bf16.msra.mxu1 %v16001_v35  ;;  %10726 = vmatprep.subr.bf16.mxu0 %v16186_v36  ;;  %v16161_v35 = vcombine.low %v1321_v50, %v1325_v27  ;;  %v1305_v46 = vld [vmem:[#allocation6 + $0x2488] sm:$0xff] }
 0x2f3   :  { %10701 = vmatprep.subr.bf16.mxu1 %v16122_v41  ;;  %v16154_v41 = vcombine.high %v1313_v34, %v1317_v54  ;;  %v1309_v47 = vld [vmem:[#allocation6 + $0x24a8] sm:$0xff] }
 0x2f4   :  { %v10432_v61 = vpop.f32.mrf.mxu0  ;;  %10677 = vmatmul.mubr.bf16.vlgmr.msra.gmra.mxu0 %v17890_v52  ;;  %v1241_v37 = vld [vmem:[#allocation6 + $0x2288] sm:$0xff] }
 0x2f5   :  { %v18003_v0 = vadd.f32 %v10432_v61, %v17995_v13  ;;  %10727 = vmatpush1.bf16.msra.mxu0 %v16185_v60  ;;  %10758 = vmatprep.mubr.bf16.mxu0 %v17901_v10  ;;  %v1261_v13 = vld [vmem:[#allocation6 + $0x2328] sm:$0xff] }
 0x2f6   :  { %10702 = vmatpush2.bf16.msra.mxu1 %v16121_v18  ;;  %v10434_v1 = vpop.f32.mrf.mxu0  ;;  %10728 = vmatprep.subr.bf16.mxu0 %v16178_v49  ;;  %v16098_v32 = vcombine.high %v1257_v56, %v1261_v13  ;;  %v16097_v36 = vcombine.low %v1257_v56, %v1261_v13  ;;  %v1245_v60 = vld [vmem:[#allocation6 + $0x22a8] sm:$0xff]  ;;  %v16153_v18 = vcombine.low %v1313_v34, %v1317_v54 }
 0x2f7   :  { %v18007_v4 = vadd.f32 %v10434_v1, %v17998_v15  ;;  %10703 = vmatprep.subr.bf16.mxu1 %v16114_v62  ;;  %v1249_v15 = vld [vmem:[#allocation6 + $0x22c8] sm:$0xff]  ;;  %v16146_v62 = vcombine.high %v1305_v46, %v1309_v47  ;;  %v16082_v55 = vcombine.high %v1241_v37, %v1245_v60  ;;  %v16081_v1 = vcombine.low %v1241_v37, %v1245_v60 }
 0x2f8   :  { %v10436_v24 = vpop.f32.mrf.mxu0  ;;  %v16090_v43 = vcombine.high %v1249_v15, %v1253_v5  ;;  %v16089_v49 = vcombine.low %v1249_v15, %v1253_v5  ;;  %v1297_v57 = vld [vmem:[#allocation6 + $0x2448] sm:$0xff] }
 0x2f9   :  { %10729 = vmatpush1.bf16.msra.mxu0 %v16177_v12  ;;  %v1301_v61 = vld [vmem:[#allocation6 + $0x2468] sm:$0xff]  ;;  %v16145_v12 = vcombine.low %v1305_v46, %v1309_v47 }
 0x2fa   :  { %10704 = vmatpush2.bf16.msra.mxu1 %v16113_v14  ;;  %v10437_v30 = vpop.f32.mrf.mxu0  ;;  %10730 = vmatprep.subr.bf16.mxu0 %v16170_v3  ;;  %v1233_v9 = vld [vmem:[#allocation6 + $0x2248] sm:$0xff]  ;;  %v16138_v14 = vcombine.high %v1297_v57, %v1301_v61  ;;  %v16137_v56 = vcombine.low %v1297_v57, %v1301_v61 }
 0x2fb   :  { %10705 = vmatprep.subr.bf16.mxu1 %v16106_v17  ;;  %v1237_v63 = vld [vmem:[#allocation6 + $0x2268] sm:$0xff] }
 0x2fc   :  { %v16074_v3 = vcombine.high %v1233_v9, %v1237_v63  ;;  %v1289_v17 = vld [vmem:[#allocation6 + $0x2408] sm:$0xff]  ;;  %v16073_v13 = vcombine.low %v1233_v9, %v1237_v63 }
 0x2fd   :  { %10731 = vmatpush1.bf16.msra.mxu0 %v16169_v25  ;;  %v1293_v50 = vld [vmem:[#allocation6 + $0x2428] sm:$0xff] }
 0x2fe   :  { %10706 = vmatpush2.bf16.msra.mxu1 %v16105_v45  ;;  %10732 = vmatprep.subr.bf16.mxu0 %v16162_v31  ;;  %v1225_v27 = vld [vmem:[#allocation6 + $0x2208] sm:$0xff]  ;;  %v16130_v25 = vcombine.high %v1289_v17, %v1293_v50  ;;  %v16129_v54 = vcombine.low %v1289_v17, %v1293_v50 }
 0x2ff   :  { %10707 = vmatprep.subr.bf16.mxu1 %v16098_v32  ;;  %v1229_v24 = vld [vmem:[#allocation6 + $0x2228] sm:$0xff] }
 0x300   :  { %v16066_v30 = vcombine.high %v1225_v27, %v1229_v24  ;;  %v1409_v45 = vld [vmem:[#allocation6 + $0x27c8] sm:$0xff]  ;;  %v16065_v15 = vcombine.low %v1225_v27, %v1229_v24 }
 0x301   :  { %10733 = vmatpush1.bf16.msra.mxu0 %v16161_v35  ;;  %v1413_v31 = vld [vmem:[#allocation6 + $0x27e8] sm:$0xff] }
 0x302   :  { %10708 = vmatpush2.bf16.msra.mxu1 %v16097_v36  ;;  %10734 = vmatprep.subr.bf16.mxu0 %v16154_v41  ;;  %v1473_v32 = vld [vmem:[#allocation6 + $0x29c8] sm:$0xff]  ;;  %v16250_v5 = vcombine.high %v1409_v45, %v1413_v31  ;;  %v16249_v47 = vcombine.low %v1409_v45, %v1413_v31 }
 0x303   :  { %10709 = vmatprep.subr.bf16.mxu1 %v16090_v43  ;;  %v1477_v34 = vld [vmem:[#allocation6 + $0x29e8] sm:$0xff] }
 0x304   :  { %v16314_v35 = vcombine.high %v1473_v32, %v1477_v34  ;;  %v1401_v36 = vld [vmem:[#allocation6 + $0x2788] sm:$0xff]  ;;  %v16313_v37 = vcombine.low %v1473_v32, %v1477_v34 }
 0x305   :  { %10735 = vmatpush1.bf16.msra.mxu0 %v16153_v18  ;;  %v1405_v41 = vld [vmem:[#allocation6 + $0x27a8] sm:$0xff] }
 0x306   :  { %10710 = vmatpush2.bf16.msra.mxu1 %v16089_v49  ;;  %10736 = vmatprep.subr.bf16.mxu0 %v16146_v62  ;;  %v1465_v43 = vld [vmem:[#allocation6 + $0x2988] sm:$0xff]  ;;  %v16242_v60 = vcombine.high %v1401_v36, %v1405_v41  ;;  %v16241_v9 = vcombine.low %v1401_v36, %v1405_v41 }
 0x307   :  { %10711 = vmatprep.subr.bf16.mxu1 %v16082_v55  ;;  %v1469_v46 = vld [vmem:[#allocation6 + $0x29a8] sm:$0xff] }
 0x308   :  { %v16306_v18 = vcombine.high %v1465_v43, %v1469_v46  ;;  %v1393_v49 = vld [vmem:[#allocation6 + $0x2748] sm:$0xff] }
 0x309   :  { %10737 = vmatpush1.bf16.msra.mxu0 %v16145_v12  ;;  %v1397_v62 = vld [vmem:[#allocation6 + $0x2768] sm:$0xff]  ;;  %v16305_v12 = vcombine.low %v1465_v43, %v1469_v46 }
 0x30a   :  { %10712 = vmatpush2.bf16.msra.mxu1 %v16081_v1  ;;  %10738 = vmatprep.subr.bf16.mxu0 %v16138_v14  ;;  %v1457_v55 = vld [vmem:[#allocation6 + $0x2948] sm:$0xff]  ;;  %v16234_v1 = vcombine.high %v1393_v49, %v1397_v62 }
 0x30b   :  { %10713 = vmatprep.subr.bf16.mxu1 %v16074_v3  ;;  %v1461_v57 = vld [vmem:[#allocation6 + $0x2968] sm:$0xff] }
 0x30c   :  { %v16298_v3 = vcombine.high %v1457_v55, %v1461_v57  ;;  %v1385_v17 = vld [vmem:[#allocation6 + $0x2708] sm:$0xff] }
 0x30d   :  { %10739 = vmatpush1.bf16.msra.mxu0 %v16137_v56  ;;  %v1389_v50 = vld [vmem:[#allocation6 + $0x2728] sm:$0xff] }
 0x30e   :  { %10714 = vmatpush2.bf16.msra.mxu1 %v16073_v13  ;;  %10740 = vmatprep.subr.bf16.mxu0 %v16130_v25  ;;  %v1449_v24 = vld [vmem:[#allocation6 + $0x2908] sm:$0xff]  ;;  %v16297_v25 = vcombine.low %v1457_v55, %v1461_v57 }
 0x30f   :  { %10715 = vmatprep.subr.bf16.mxu1 %v16066_v30  ;;  %v1453_v56 = vld [vmem:[#allocation6 + $0x2928] sm:$0xff]  ;;  %v16226_v30 = vcombine.high %v1385_v17, %v1389_v50 }
 0x310   :  { %v16290_v31 = vcombine.high %v1449_v24, %v1453_v56  ;;  %v1377_v32 = vld [vmem:[#allocation6 + $0x26c8] sm:$0xff] }
 0x311   :  { %10741 = vmatpush1.bf16.msra.mxu0 %v16129_v54  ;;  %v1381_v34 = vld [vmem:[#allocation6 + $0x26e8] sm:$0xff] }
 0x312   :  { %10716 = vmatpush2.bf16.msra.mxu1 %v16065_v15  ;;  %10742 = vmatprep.subr.bf16.mxu0 %v16250_v5  ;;  %v1441_v54 = vld [vmem:[#allocation6 + $0x28c8] sm:$0xff]  ;;  %v16225_v5 = vcombine.low %v1385_v17, %v1389_v50 }
 0x313   :  { %10767 = vmatprep.subr.bf16.mxu1 %v16314_v35  ;;  %v1445_v15 = vld [vmem:[#allocation6 + $0x28e8] sm:$0xff]  ;;  %v16218_v35 = vcombine.high %v1377_v32, %v1381_v34 }
 0x314   :  { %v16282_v36 = vcombine.high %v1441_v54, %v1445_v15  ;;  %v1369_v41 = vld [vmem:[#allocation6 + $0x2688] sm:$0xff] }
 0x315   :  { %v10473_v61 = vpop.f32.mrf.mxu1  ;;  %10718 = vmatmul.mubr.bf16.vlgmr.msra.gmra.mxu1 %v17912_v2  ;;  %10743 = vmatpush2.bf16.msra.mxu0 %v16249_v47  ;;  %v1373_v43 = vld [vmem:[#allocation6 + $0x26a8] sm:$0xff] }
 0x316   :  { %v18011_v63 = vadd.f32 %v10473_v61, %v18003_v0  ;;  %10768 = vmatpush1.bf16.msra.mxu1 %v16313_v37  ;;  %10744 = vmatprep.subr.bf16.mxu0 %v16242_v60  ;;  %v16233_v0 = vcombine.low %v1393_v49, %v1397_v62  ;;  %v1433_v46 = vld [vmem:[#allocation6 + $0x2888] sm:$0xff]  ;;  %v16217_v37 = vcombine.low %v1377_v32, %v1381_v34 }
 0x317   :  { %v10475_v14 = vpop.f32.mrf.mxu1  ;;  %10769 = vmatprep.subr.bf16.mxu1 %v16306_v18  ;;  %10799 = vmatprep.mubr.bf16.mxu1 %v17924_v23  ;;  %v1437_v47 = vld [vmem:[#allocation6 + $0x28a8] sm:$0xff]  ;;  %v16281_v60 = vcombine.low %v1441_v54, %v1445_v15  ;;  %v16210_v18 = vcombine.high %v1369_v41, %v1373_v43 }
 0x318   :  { %v18015_v27 = vadd.f32 %v10475_v14, %v18007_v4  ;;  %v16289_v4 = vcombine.low %v1449_v24, %v1453_v56  ;;  %v16274_v49 = vcombine.high %v1433_v46, %v1437_v47  ;;  %v1361_v62 = vld [vmem:[#allocation6 + $0x2648] sm:$0xff] }
 0x319   :  { %v10477_v13 = vpop.f32.mrf.mxu1  ;;  %10745 = vmatpush2.bf16.msra.mxu0 %v16241_v9  ;;  %v1365_v55 = vld [vmem:[#allocation6 + $0x2668] sm:$0xff]  ;;  %v16209_v9 = vcombine.low %v1369_v41, %v1373_v43 }
 0x31a   :  { %10770 = vmatpush1.bf16.msra.mxu1 %v16305_v12  ;;  %10746 = vmatprep.subr.bf16.mxu0 %v16234_v1  ;;  %v1425_v57 = vld [vmem:[#allocation6 + $0x2848] sm:$0xff]  ;;  %v16273_v12 = vcombine.low %v1433_v46, %v1437_v47  ;;  %v16202_v1 = vcombine.high %v1361_v62, %v1365_v55  ;;  %v16201_v56 = vcombine.low %v1361_v62, %v1365_v55 }
 0x31b   :  { %v10478_v45 = vpop.f32.mrf.mxu1  ;;  %10771 = vmatprep.subr.bf16.mxu1 %v16298_v3  ;;  %v1429_v61 = vld [vmem:[#allocation6 + $0x2868] sm:$0xff] }
 0x31c   :  { %v16266_v14 = vcombine.high %v1425_v57, %v1429_v61  ;;  %v1353_v3 = vld [vmem:[#allocation6 + $0x2608] sm:$0xff]  ;;  %v16265_v13 = vcombine.low %v1425_v57, %v1429_v61 }
 0x31d   :  { %10747 = vmatpush2.bf16.msra.mxu0 %v16233_v0  ;;  %v1357_v17 = vld [vmem:[#allocation6 + $0x2628] sm:$0xff] }
 0x31e   :  { %10772 = vmatpush1.bf16.msra.mxu1 %v16297_v25  ;;  %10748 = vmatprep.subr.bf16.mxu0 %v16226_v30  ;;  %v1417_v50 = vld [vmem:[#allocation6 + $0x2808] sm:$0xff]  ;;  %v16194_v0 = vcombine.high %v1353_v3, %v1357_v17  ;;  %v16193_v34 = vcombine.low %v1353_v3, %v1357_v17 }
 0x31f   :  { %10773 = vmatprep.subr.bf16.mxu1 %v16290_v31  ;;  %v1421_v24 = vld [vmem:[#allocation6 + $0x2828] sm:$0xff] }
 0x320   :  { %v16258_v25 = vcombine.high %v1417_v50, %v1421_v24  ;;  %v1601_v30 = vld [vmem:[#allocation6 + $0x2dc8] sm:$0xff]  ;;  %v16257_v54 = vcombine.low %v1417_v50, %v1421_v24 }
 0x321   :  { %10749 = vmatpush2.bf16.msra.mxu0 %v16225_v5  ;;  %v1605_v45 = vld [vmem:[#allocation6 + $0x2de8] sm:$0xff] }
 0x322   :  { %10774 = vmatpush1.bf16.msra.mxu1 %v16289_v4  ;;  %10750 = vmatprep.subr.bf16.mxu0 %v16218_v35  ;;  %v1537_v31 = vld [vmem:[#allocation6 + $0x2bc8] sm:$0xff]  ;;  %v16442_v15 = vcombine.high %v1601_v30, %v1605_v45  ;;  %v16441_v43 = vcombine.low %v1601_v30, %v1605_v45 }
 0x323   :  { %10775 = vmatprep.subr.bf16.mxu1 %v16282_v36  ;;  %v1541_v32 = vld [vmem:[#allocation6 + $0x2be8] sm:$0xff] }
 0x324   :  { %v16378_v5 = vcombine.high %v1537_v31, %v1541_v32  ;;  %v1593_v4 = vld [vmem:[#allocation6 + $0x2d88] sm:$0xff]  ;;  %v16377_v46 = vcombine.low %v1537_v31, %v1541_v32 }
 0x325   :  { %10751 = vmatpush2.bf16.msra.mxu0 %v16217_v37  ;;  %v1597_v35 = vld [vmem:[#allocation6 + $0x2da8] sm:$0xff] }
 0x326   :  { %10776 = vmatpush1.bf16.msra.mxu1 %v16281_v60  ;;  %10752 = vmatprep.subr.bf16.mxu0 %v16210_v18  ;;  %v1529_v36 = vld [vmem:[#allocation6 + $0x2b88] sm:$0xff]  ;;  %v16434_v47 = vcombine.high %v1593_v4, %v1597_v35  ;;  %v16433_v61 = vcombine.low %v1593_v4, %v1597_v35 }
 0x327   :  { %10777 = vmatprep.subr.bf16.mxu1 %v16274_v49  ;;  %v1533_v41 = vld [vmem:[#allocation6 + $0x2ba8] sm:$0xff] }
 0x328   :  { %v16370_v37 = vcombine.high %v1529_v36, %v1533_v41  ;;  %v1585_v60 = vld [vmem:[#allocation6 + $0x2d48] sm:$0xff] }
 0x329   :  { %10753 = vmatpush2.bf16.msra.mxu0 %v16209_v9  ;;  %v1589_v18 = vld [vmem:[#allocation6 + $0x2d68] sm:$0xff] }
 0x32a   :  { %10778 = vmatpush1.bf16.msra.mxu1 %v16273_v12  ;;  %10754 = vmatprep.subr.bf16.mxu0 %v16202_v1  ;;  %v1521_v62 = vld [vmem:[#allocation6 + $0x2b48] sm:$0xff]  ;;  %v16369_v12 = vcombine.low %v1529_v36, %v1533_v41  ;;  %v16426_v1 = vcombine.high %v1585_v60, %v1589_v18 }
 0x32b   :  { %10779 = vmatprep.subr.bf16.mxu1 %v16266_v14  ;;  %v1525_v55 = vld [vmem:[#allocation6 + $0x2b68] sm:$0xff] }
 0x32c   :  { %v16362_v3 = vcombine.high %v1521_v62, %v1525_v55  ;;  %v1577_v17 = vld [vmem:[#allocation6 + $0x2d08] sm:$0xff] }
 0x32d   :  { %10755 = vmatpush2.bf16.msra.mxu0 %v16201_v56  ;;  %v1581_v50 = vld [vmem:[#allocation6 + $0x2d28] sm:$0xff] }
 0x32e   :  { %10780 = vmatpush1.bf16.msra.mxu1 %v16265_v13  ;;  %10756 = vmatprep.subr.bf16.mxu0 %v16194_v0  ;;  %v1513_v56 = vld [vmem:[#allocation6 + $0x2b08] sm:$0xff]  ;;  %v16425_v13 = vcombine.low %v1585_v60, %v1589_v18  ;;  %v16418_v30 = vcombine.high %v1577_v17, %v1581_v50 }
 0x32f   :  { %10781 = vmatprep.subr.bf16.mxu1 %v16258_v25  ;;  %v16361_v25 = vcombine.low %v1521_v62, %v1525_v55  ;;  %v1569_v31 = vld [vmem:[#allocation6 + $0x2cc8] sm:$0xff] }
 0x330   :  { %v1573_v32 = vld [vmem:[#allocation6 + $0x2ce8] sm:$0xff] }
 0x331   :  { %10757 = vmatpush2.bf16.msra.mxu0 %v16193_v34  ;;  %v1509_v34 = vld [vmem:[#allocation6 + $0x2ae8] sm:$0xff] }
 0x332   :  { %10782 = vmatpush1.bf16.msra.mxu1 %v16257_v54  ;;  %10808 = vmatprep.subr.bf16.mxu0 %v16442_v15  ;;  %v16417_v54 = vcombine.low %v1577_v17, %v1581_v50  ;;  %v1561_v35 = vld [vmem:[#allocation6 + $0x2c88] sm:$0xff] }
 0x333   :  { %10783 = vmatprep.subr.bf16.mxu1 %v16378_v5  ;;  %v16410_v5 = vcombine.high %v1569_v31, %v1573_v32  ;;  %v1565_v36 = vld [vmem:[#allocation6 + $0x2ca8] sm:$0xff] }
 0x334   :  { %v10514_v49 = vpop.f32.mrf.mxu0  ;;  %10759 = vmatmul.mubr.bf16.vlgmr.msra.gmra.mxu0 %v17918_v11  ;;  %v1497_v41 = vld [vmem:[#allocation6 + $0x2a88] sm:$0xff] }
 0x335   :  { %v18019_v57 = vadd.f32 %v10514_v49, %v18011_v63  ;;  %10809 = vmatpush1.bf16.msra.mxu0 %v16441_v43  ;;  %10840 = vmatprep.mubr.bf16.mxu0 %v17929_v53  ;;  %v1517_v63 = vld [vmem:[#allocation6 + $0x2b28] sm:$0xff] }
 0x336   :  { %10784 = vmatpush2.bf16.msra.mxu1 %v16377_v46  ;;  %v10516_v9 = vpop.f32.mrf.mxu0  ;;  %10810 = vmatprep.subr.bf16.mxu0 %v16434_v47  ;;  %v16354_v45 = vcombine.high %v1513_v56, %v1517_v63  ;;  %v16353_v15 = vcombine.low %v1513_v56, %v1517_v63  ;;  %v1501_v43 = vld [vmem:[#allocation6 + $0x2aa8] sm:$0xff]  ;;  %v16409_v46 = vcombine.low %v1569_v31, %v1573_v32 }
 0x337   :  { %v18023_v14 = vadd.f32 %v10516_v9, %v18015_v27  ;;  %10785 = vmatprep.subr.bf16.mxu1 %v16370_v37  ;;  %v1505_v27 = vld [vmem:[#allocation6 + $0x2ac8] sm:$0xff]  ;;  %v16402_v37 = vcombine.high %v1561_v35, %v1565_v36  ;;  %v16338_v60 = vcombine.high %v1497_v41, %v1501_v43  ;;  %v16337_v9 = vcombine.low %v1497_v41, %v1501_v43 }
 0x338   :  { %v10518_v24 = vpop.f32.mrf.mxu0  ;;  %v16346_v4 = vcombine.high %v1505_v27, %v1509_v34  ;;  %v16345_v47 = vcombine.low %v1505_v27, %v1509_v34  ;;  %v1553_v18 = vld [vmem:[#allocation6 + $0x2c48] sm:$0xff] }
 0x339   :  { %10811 = vmatpush1.bf16.msra.mxu0 %v16433_v61  ;;  %v1557_v49 = vld [vmem:[#allocation6 + $0x2c68] sm:$0xff]  ;;  %v16401_v61 = vcombine.low %v1561_v35, %v1565_v36 }
 0x33a   :  { %10786 = vmatpush2.bf16.msra.mxu1 %v16369_v12  ;;  %v10519_v0 = vpop.f32.mrf.mxu0  ;;  %10812 = vmatprep.subr.bf16.mxu0 %v16426_v1  ;;  %v1489_v62 = vld [vmem:[#allocation6 + $0x2a48] sm:$0xff]  ;;  %v16394_v12 = vcombine.high %v1553_v18, %v1557_v49  ;;  %v16393_v56 = vcombine.low %v1553_v18, %v1557_v49 }
 0x33b   :  { %10787 = vmatprep.subr.bf16.mxu1 %v16362_v3  ;;  %v1493_v55 = vld [vmem:[#allocation6 + $0x2a68] sm:$0xff] }
 0x33c   :  { %v16330_v1 = vcombine.high %v1489_v62, %v1493_v55  ;;  %v1545_v3 = vld [vmem:[#allocation6 + $0x2c08] sm:$0xff]  ;;  %v16329_v63 = vcombine.low %v1489_v62, %v1493_v55 }
 0x33d   :  { %10813 = vmatpush1.bf16.msra.mxu0 %v16425_v13  ;;  %v1549_v17 = vld [vmem:[#allocation6 + $0x2c28] sm:$0xff] }
 0x33e   :  { %10788 = vmatpush2.bf16.msra.mxu1 %v16361_v25  ;;  %10814 = vmatprep.subr.bf16.mxu0 %v16418_v30  ;;  %v1481_v50 = vld [vmem:[#allocation6 + $0x2a08] sm:$0xff]  ;;  %v16386_v13 = vcombine.high %v1545_v3, %v1549_v17  ;;  %v16385_v32 = vcombine.low %v1545_v3, %v1549_v17 }
 0x33f   :  { %10789 = vmatprep.subr.bf16.mxu1 %v16354_v45  ;;  %v1485_v24 = vld [vmem:[#allocation6 + $0x2a28] sm:$0xff] }
 0x340   :  { %v16322_v0 = vcombine.high %v1481_v50, %v1485_v24  ;;  %v1665_v25 = vld [vmem:[#allocation6 + $0x2fc8] sm:$0xff]  ;;  %v16321_v27 = vcombine.low %v1481_v50, %v1485_v24 }
 0x341   :  { %10815 = vmatpush1.bf16.msra.mxu0 %v16417_v54  ;;  %v1669_v30 = vld [vmem:[#allocation6 + $0x2fe8] sm:$0xff] }
 0x342   :  { %10790 = vmatpush2.bf16.msra.mxu1 %v16353_v15  ;;  %10816 = vmatprep.subr.bf16.mxu0 %v16410_v5  ;;  %v1729_v45 = vld [vmem:[#allocation6 + $0x31c8] sm:$0xff]  ;;  %v16506_v34 = vcombine.high %v1665_v25, %v1669_v30  ;;  %v16505_v36 = vcombine.low %v1665_v25, %v1669_v30 }
 0x343   :  { %10791 = vmatprep.subr.bf16.mxu1 %v16346_v4  ;;  %v1733_v31 = vld [vmem:[#allocation6 + $0x31e8] sm:$0xff] }
 0x344   :  { %v16570_v54 = vcombine.high %v1729_v45, %v1733_v31  ;;  %v1657_v15 = vld [vmem:[#allocation6 + $0x2f88] sm:$0xff]  ;;  %v16569_v41 = vcombine.low %v1729_v45, %v1733_v31 }
 0x345   :  { %10817 = vmatpush1.bf16.msra.mxu0 %v16409_v46  ;;  %v1661_v5 = vld [vmem:[#allocation6 + $0x2fa8] sm:$0xff] }
 0x346   :  { %10792 = vmatpush2.bf16.msra.mxu1 %v16345_v47  ;;  %10818 = vmatprep.subr.bf16.mxu0 %v16402_v37  ;;  %v1721_v4 = vld [vmem:[#allocation6 + $0x3188] sm:$0xff]  ;;  %v16498_v43 = vcombine.high %v1657_v15, %v1661_v5  ;;  %v16497_v62 = vcombine.low %v1657_v15, %v1661_v5 }
 0x347   :  { %10793 = vmatprep.subr.bf16.mxu1 %v16338_v60  ;;  %v1725_v35 = vld [vmem:[#allocation6 + $0x31a8] sm:$0xff] }
 0x348   :  { %v16562_v46 = vcombine.high %v1721_v4, %v1725_v35  ;;  %v1649_v47 = vld [vmem:[#allocation6 + $0x2f48] sm:$0xff] }
 0x349   :  { %10819 = vmatpush1.bf16.msra.mxu0 %v16401_v61  ;;  %v1653_v37 = vld [vmem:[#allocation6 + $0x2f68] sm:$0xff]  ;;  %v16561_v61 = vcombine.low %v1721_v4, %v1725_v35 }
 0x34a   :  { %10794 = vmatpush2.bf16.msra.mxu1 %v16337_v9  ;;  %10820 = vmatprep.subr.bf16.mxu0 %v16394_v12  ;;  %v1713_v60 = vld [vmem:[#allocation6 + $0x3148] sm:$0xff]  ;;  %v16490_v9 = vcombine.high %v1649_v47, %v1653_v37 }
 0x34b   :  { %10795 = vmatprep.subr.bf16.mxu1 %v16330_v1  ;;  %v1717_v18 = vld [vmem:[#allocation6 + $0x3168] sm:$0xff] }
 0x34c   :  { %v16554_v1 = vcombine.high %v1713_v60, %v1717_v18  ;;  %v1641_v3 = vld [vmem:[#allocation6 + $0x2f08] sm:$0xff] }
 0x34d   :  { %10821 = vmatpush1.bf16.msra.mxu0 %v16393_v56  ;;  %v1645_v17 = vld [vmem:[#allocation6 + $0x2f28] sm:$0xff] }
 0x34e   :  { %10796 = vmatpush2.bf16.msra.mxu1 %v16329_v63  ;;  %10822 = vmatprep.subr.bf16.mxu0 %v16386_v13  ;;  %v1705_v24 = vld [vmem:[#allocation6 + $0x3108] sm:$0xff]  ;;  %v16553_v13 = vcombine.low %v1713_v60, %v1717_v18 }
 0x34f   :  { %10797 = vmatprep.subr.bf16.mxu1 %v16322_v0  ;;  %v1709_v56 = vld [vmem:[#allocation6 + $0x3128] sm:$0xff]  ;;  %v16482_v0 = vcombine.high %v1641_v3, %v1645_v17 }
 0x350   :  { %v16546_v30 = vcombine.high %v1705_v24, %v1709_v56  ;;  %v1633_v45 = vld [vmem:[#allocation6 + $0x2ec8] sm:$0xff] }
 0x351   :  { %10823 = vmatpush1.bf16.msra.mxu0 %v16385_v32  ;;  %v1637_v31 = vld [vmem:[#allocation6 + $0x2ee8] sm:$0xff] }
 0x352   :  { %10798 = vmatpush2.bf16.msra.mxu1 %v16321_v27  ;;  %10824 = vmatprep.subr.bf16.mxu0 %v16506_v34  ;;  %v1697_v32 = vld [vmem:[#allocation6 + $0x30c8] sm:$0xff]  ;;  %v16481_v34 = vcombine.low %v1641_v3, %v1645_v17 }
 0x353   :  { %10849 = vmatprep.subr.bf16.mxu1 %v16570_v54  ;;  %v1701_v27 = vld [vmem:[#allocation6 + $0x30e8] sm:$0xff]  ;;  %v16474_v54 = vcombine.high %v1633_v45, %v1637_v31 }
 0x354   :  { %v16538_v15 = vcombine.high %v1697_v32, %v1701_v27  ;;  %v1625_v5 = vld [vmem:[#allocation6 + $0x2e88] sm:$0xff] }
 0x355   :  { %v10555_v49 = vpop.f32.mrf.mxu1  ;;  %10800 = vmatmul.mubr.bf16.vlgmr.msra.gmra.mxu1 %v17942_v44  ;;  %10825 = vmatpush2.bf16.msra.mxu0 %v16505_v36  ;;  %v1629_v4 = vld [vmem:[#allocation6 + $0x2ea8] sm:$0xff] }
 0x356   :  { %v18027_v55 = vadd.f32 %v10555_v49, %v18019_v57  ;;  %10850 = vmatpush1.bf16.msra.mxu1 %v16569_v41  ;;  %10826 = vmatprep.subr.bf16.mxu0 %v16498_v43  ;;  %v16489_v57 = vcombine.low %v1649_v47, %v1653_v37  ;;  %v1689_v35 = vld [vmem:[#allocation6 + $0x3088] sm:$0xff]  ;;  %v16473_v41 = vcombine.low %v1633_v45, %v1637_v31  ;;  %v326_v45 = vld [vmem:[#allocation6 + $0x5f0] sm:$0xff] }
 0x357   :  { %v10557_v12 = vpop.f32.mrf.mxu1  ;;  %10851 = vmatprep.subr.bf16.mxu1 %v16562_v46  ;;  %10881 = vmatprep.mubr.bf16.mxu1 %v17741_v33  ;;  %v1693_v36 = vld [vmem:[#allocation6 + $0x30a8] sm:$0xff]  ;;  %v16537_v43 = vcombine.low %v1697_v32, %v1701_v27  ;;  %v16466_v46 = vcombine.high %v1625_v5, %v1629_v4 }
 0x358   :  { %v18031_v50 = vadd.f32 %v10557_v12, %v18023_v14  ;;  %v16545_v14 = vcombine.low %v1705_v24, %v1709_v56  ;;  %v16530_v47 = vcombine.high %v1689_v35, %v1693_v36  ;;  %v1617_v37 = vld [vmem:[#allocation6 + $0x2e48] sm:$0xff] }
 0x359   :  { %v10559_v63 = vpop.f32.mrf.mxu1  ;;  %10827 = vmatpush2.bf16.msra.mxu0 %v16497_v62  ;;  %v1621_v60 = vld [vmem:[#allocation6 + $0x2e68] sm:$0xff]  ;;  %v16465_v62 = vcombine.low %v1625_v5, %v1629_v4  ;;  %v318_v5 = vld [vmem:[#allocation6 + $0x5b0] sm:$0xff] }
 0x35a   :  { %10852 = vmatpush1.bf16.msra.mxu1 %v16561_v61  ;;  %10828 = vmatprep.subr.bf16.mxu0 %v16490_v9  ;;  %v1681_v18 = vld [vmem:[#allocation6 + $0x3048] sm:$0xff]  ;;  %v16529_v61 = vcombine.low %v1689_v35, %v1693_v36  ;;  %v16458_v9 = vcombine.high %v1617_v37, %v1621_v60  ;;  %v16457_v56 = vcombine.low %v1617_v37, %v1621_v60  ;;  %v306_v37 = vld [vmem:[#allocation6 + $0x550] sm:$0xff] }
 0x35b   :  { %v10560_v25 = vpop.f32.mrf.mxu1  ;;  %10853 = vmatprep.subr.bf16.mxu1 %v16554_v1  ;;  %v1685_v49 = vld [vmem:[#allocation6 + $0x3068] sm:$0xff]  ;;  %v310_v60 = vld [vmem:[#allocation6 + $0x570] sm:$0xff] }
 0x35c   :  { %v16522_v12 = vcombine.high %v1681_v18, %v1685_v49  ;;  %v1609_v1 = vld [vmem:[#allocation6 + $0x2e08] sm:$0xff]  ;;  %v16521_v63 = vcombine.low %v1681_v18, %v1685_v49  ;;  %v198_v25 = vld [vmem:[#allocation6 + $0x1f0] sm:$0xff]  ;;  %v17576_v49 = vld [vmem:[#allocation3 + $0x60] ss:$0 sps:$4 sm:$0xff]  }
 0x35d   :  { %10829 = vmatpush2.bf16.msra.mxu0 %v16489_v57  ;;  %v1613_v3 = vld [vmem:[#allocation6 + $0x2e28] sm:$0xff] }
 0x35e   :  { %10854 = vmatpush1.bf16.msra.mxu1 %v16553_v13  ;;  %10830 = vmatprep.subr.bf16.mxu0 %v16482_v0  ;;  %v1673_v17 = vld [vmem:[#allocation6 + $0x3008] sm:$0xff]  ;;  %v16450_v57 = vcombine.high %v1609_v1, %v1613_v3  ;;  %v194_v0 = vld [vmem:[#allocation6 + $0x1d0] sm:$0xff]  ;;  %v16449_v31 = vcombine.low %v1609_v1, %v1613_v3  ;;  %v15148_v3 = vcombine.high %v306_v37, %v310_v60 }
 0x35f   :  { %10855 = vmatprep.subr.bf16.mxu1 %v16546_v30  ;;  %v1677_v24 = vld [vmem:[#allocation6 + $0x3028] sm:$0xff]  ;;  %v322_v30 = vld [vmem:[#allocation6 + $0x5d0] sm:$0xff]  ;;  %v15036_v27 = vcombine.high %v194_v0, %v198_v25  ;;  %v15035_v4 = vcombine.low %v194_v0, %v198_v25  ;;  %v15147_v0 = vcombine.low %v306_v37, %v310_v60 }
 0x360   :  { %v16514_v13 = vcombine.high %v1673_v17, %v1677_v24  ;;  %v16513_v32 = vcombine.low %v1673_v17, %v1677_v24  ;;  %v15163_v35 = vcombine.low %v322_v30, %v326_v45  ;;  %v170_v17 = vld [vmem:[#allocation6 + $0x110] sm:$0xff] }
 0x361   :  { %10831 = vmatpush2.bf16.msra.mxu0 %v16481_v34  ;;  %v15164_v34 = vcombine.high %v322_v30, %v326_v45  ;;  %v174_v24 = vld [vmem:[#allocation6 + $0x130] sm:$0xff] }
 0x362   :  { %10856 = vmatpush1.bf16.msra.mxu1 %v16545_v14  ;;  %10832 = vmatprep.subr.bf16.mxu0 %v16474_v54  ;;  %v186_v14 = vld [vmem:[#allocation6 + $0x190] sm:$0xff]  ;;  %v15012_v25 = vcombine.high %v170_v17, %v174_v24 }
 0x363   :  { %10857 = vmatprep.subr.bf16.mxu1 %v16538_v15  ;;  %v190_v54 = vld [vmem:[#allocation6 + $0x1b0] sm:$0xff] }
 0x364   :  { %v314_v15 = vld [vmem:[#allocation6 + $0x590] sm:$0xff]  ;;  %v15028_v36 = vcombine.high %v186_v14, %v190_v54 }
 0x365   :  { %10833 = vmatpush2.bf16.msra.mxu0 %v16473_v41  ;;  %v15156_v41 = vcombine.high %v314_v15, %v318_v5  ;;  %v162_v30 = vld [vmem:[#allocation6 + $0xd0] sm:$0xff] }
 0x366   :  { %10858 = vmatpush1.bf16.msra.mxu1 %v16537_v43  ;;  %10834 = vmatprep.subr.bf16.mxu0 %v16466_v46  ;;  %v178_v43 = vld [vmem:[#allocation6 + $0x150] sm:$0xff] }
 0x367   :  { %10859 = vmatprep.subr.bf16.mxu1 %v16530_v47  ;;  %v182_v46 = vld [vmem:[#allocation6 + $0x170] sm:$0xff] }
 0x368   :  { %v166_v45 = vld [vmem:[#allocation6 + $0xf0] sm:$0xff] }
 0x369   :  { %10835 = vmatpush2.bf16.msra.mxu0 %v16465_v62  ;;  %v15027_v62 = vcombine.low %v186_v14, %v190_v54  ;;  %v15004_v14 = vcombine.high %v162_v30, %v166_v45  ;;  %v150_v37 = vld [vmem:[#allocation6 + $0x70] sm:$0xff] }
 0x36a   :  { %10860 = vmatpush1.bf16.msra.mxu1 %v16529_v61  ;;  %10836 = vmatprep.subr.bf16.mxu0 %v16458_v9  ;;  %v15155_v9 = vcombine.low %v314_v15, %v318_v5  ;;  %v154_v15 = vld [vmem:[#allocation6 + $0x90] sm:$0xff] }
 0x36b   :  { %10861 = vmatprep.subr.bf16.mxu1 %v16522_v12  ;;  %v15020_v12 = vcombine.high %v178_v43, %v182_v46  ;;  %v158_v5 = vld [vmem:[#allocation6 + $0xb0] sm:$0xff] }
 0x36c   :  { %v274_v60 = vld [vmem:[#allocation6 + $0x450] sm:$0xff] }
 0x36d   :  { %10837 = vmatpush2.bf16.msra.mxu0 %v16457_v56  ;;  %v298_v56 = vld [vmem:[#allocation6 + $0x510] sm:$0xff] }
 0x36e   :  { %10862 = vmatpush1.bf16.msra.mxu1 %v16521_v63  ;;  %10838 = vmatprep.subr.bf16.mxu0 %v16450_v57  ;;  %v302_v63 = vld [vmem:[#allocation6 + $0x530] sm:$0xff]  ;;  %v15019_v57 = vcombine.low %v178_v43, %v182_v46  ;;  %v14996_v43 = vcombine.high %v154_v15, %v158_v5 }
 0x36f   :  { %10863 = vmatprep.subr.bf16.mxu1 %v16514_v13 }
 0x371   :  { %10839 = vmatpush2.bf16.msra.mxu0 %v16449_v31  ;;  %v290_v31 = vld [vmem:[#allocation6 + $0x4d0] sm:$0xff] }
 0x372   :  { %10864 = vmatpush1.bf16.msra.mxu1 %v16513_v32  ;;  %10890 = vmatprep.subr.bf16.mxu0 %v15036_v27  ;;  %v294_v32 = vld [vmem:[#allocation6 + $0x4f0] sm:$0xff]  ;;  %v15011_v27 = vcombine.low %v170_v17, %v174_v24 }
 0x373   :  { %10931 = vmatprep.subr.bf16.mxu1 %v15164_v34  ;;  %v15139_v34 = vcombine.low %v298_v56, %v302_v63  ;;  %v15132_v54 = vcombine.high %v290_v31, %v294_v32  ;;  %v142_v17 = vld [vmem:[#allocation6 + $0x30] sm:$0xff] }
 0x374   :  { %v10596_v47 = vpop.f32.mrf.mxu0  ;;  %10841 = vmatmul.mubr.bf16.vlgmr.msra.gmra.mxu0 %v17946_v48  ;;  %v266_v24 = vld [vmem:[#allocation6 + $0x410] sm:$0xff] }
 0x375   :  { %v18035_v18 = vadd.f32 %v10596_v47, %v18027_v55  ;;  %10882 = vmatmul.mubr.bf16.vlgmr.msra.gmra.mxu1 %v17576_v49  ;;  %10891 = vmatpush1.bf16.msra.mxu0 %v15035_v4  ;;  %v282_v4 = vld [vmem:[#allocation6 + $0x490] sm:$0xff] }
 0x376   :  { %10932 = vmatpush1.bf16.msra.mxu1 %v15163_v35  ;;  %v10598_v61 = vpop.f32.mrf.mxu0  ;;  %10892 = vmatprep.subr.bf16.mxu0 %v15028_v36  ;;  %v286_v35 = vld [vmem:[#allocation6 + $0x4b0] sm:$0xff]  ;;  %v15003_v36 = vcombine.low %v162_v30, %v166_v45 }
 0x377   :  { %v18038_v1 = vadd.f32 %v10598_v61, %v18031_v50  ;;  %10933 = vmatprep.subr.bf16.mxu1 %v15156_v41  ;;  %10922 = vmatprep.mubr.bf16.mxu0 %v17802_v58  ;;  %v15140_v50 = vcombine.high %v298_v56, %v302_v63  ;;  %v15131_v41 = vcombine.low %v290_v31, %v294_v32  ;;  %v146_v47 = vld [vmem:[#allocation6 + $0x50] sm:$0xff] }
 0x378   :  { %v10600_v55 = vpop.f32.mrf.mxu0  ;;  %10963 = vmatprep.mubr.bf16.mxu1 %v17806_v59  ;;  %v15124_v46 = vcombine.high %v282_v4, %v286_v35  ;;  %v278_v49 = vld [vmem:[#allocation6 + $0x470] sm:$0xff]  ;;  %v15123_v61 = vcombine.low %v282_v4, %v286_v35  ;;  %v14987_v56 = vcombine.low %v146_v47, %v150_v37 }
 0x379   :  { %10893 = vmatpush1.bf16.msra.mxu0 %v15027_v62  ;;  %v14995_v62 = vcombine.low %v154_v15, %v158_v5  ;;  %v270_v55 = vld [vmem:[#allocation6 + $0x430] sm:$0xff]  ;;  %v15115_v63 = vcombine.low %v274_v60, %v278_v49 }
 0x37a   :  { %10934 = vmatpush1.bf16.msra.mxu1 %v15155_v9  ;;  %v10601_v13 = vpop.f32.mrf.mxu0  ;;  %10894 = vmatprep.subr.bf16.mxu0 %v15020_v12  ;;  %v14988_v9 = vcombine.high %v146_v47, %v150_v37  ;;  %v15116_v12 = vcombine.high %v274_v60, %v278_v49  ;;  %v390_v30 = vld [vmem:[#allocation6 + $0x7f0] sm:$0xff]  ;;  %v15107_v31 = vcombine.low %v266_v24, %v270_v55 }
 0x37b   :  { %10935 = vmatprep.subr.bf16.mxu1 %v15148_v3  ;;  %v138_v3 = vld [vmem:[#allocation6 + $0x10] sm:$0xff]  ;;  %v15108_v13 = vcombine.high %v266_v24, %v270_v55 }
 0x37c   :  { %v14979_v45 = vcombine.low %v138_v3, %v142_v17  ;;  %v382_v15 = vld [vmem:[#allocation6 + $0x7b0] sm:$0xff] }
 0x37d   :  { %10895 = vmatpush1.bf16.msra.mxu0 %v15019_v57  ;;  %v14980_v57 = vcombine.high %v138_v3, %v142_v17  ;;  %v374_v47 = vld [vmem:[#allocation6 + $0x770] sm:$0xff] }
 0x37e   :  { %10936 = vmatpush1.bf16.msra.mxu1 %v15147_v0  ;;  %10896 = vmatprep.subr.bf16.mxu0 %v15012_v25  ;;  %v258_v0 = vld [vmem:[#allocation6 + $0x3d0] sm:$0xff] }
 0x37f   :  { %10937 = vmatprep.subr.bf16.mxu1 %v15140_v50  ;;  %v262_v25 = vld [vmem:[#allocation6 + $0x3f0] sm:$0xff] }
 0x380   :  { %v386_v50 = vld [vmem:[#allocation6 + $0x7d0] sm:$0xff]  ;;  %v15100_v32 = vcombine.high %v258_v0, %v262_v25  ;;  %v15099_v5 = vcombine.low %v258_v0, %v262_v25 }
 0x381   :  { %10897 = vmatpush1.bf16.msra.mxu0 %v15011_v27  ;;  %v15228_v27 = vcombine.high %v386_v50, %v390_v30  ;;  %v15227_v4 = vcombine.low %v386_v50, %v390_v30  ;;  %v234_v3 = vld [vmem:[#allocation6 + $0x310] sm:$0xff] }
 0x382   :  { %10938 = vmatpush1.bf16.msra.mxu1 %v15139_v34  ;;  %10898 = vmatprep.subr.bf16.mxu0 %v15004_v14  ;;  %v250_v34 = vld [vmem:[#allocation6 + $0x390] sm:$0xff] }
 0x383   :  { %10939 = vmatprep.subr.bf16.mxu1 %v15132_v54  ;;  %v254_v14 = vld [vmem:[#allocation6 + $0x3b0] sm:$0xff] }
 0x384   :  { %v378_v54 = vld [vmem:[#allocation6 + $0x790] sm:$0xff]  ;;  %v15092_v35 = vcombine.high %v250_v34, %v254_v14  ;;  %v15091_v60 = vcombine.low %v250_v34, %v254_v14 }
 0x385   :  { %10899 = vmatpush1.bf16.msra.mxu0 %v15003_v36  ;;  %v15220_v36 = vcombine.high %v378_v54, %v382_v15  ;;  %v238_v17 = vld [vmem:[#allocation6 + $0x330] sm:$0xff] }
 0x386   :  { %10940 = vmatpush1.bf16.msra.mxu1 %v15131_v41  ;;  %10900 = vmatprep.subr.bf16.mxu0 %v14996_v43  ;;  %v242_v41 = vld [vmem:[#allocation6 + $0x350] sm:$0xff] }
 0x387   :  { %10941 = vmatprep.subr.bf16.mxu1 %v15124_v46  ;;  %v246_v43 = vld [vmem:[#allocation6 + $0x370] sm:$0xff] }
 0x388   :  { %v370_v46 = vld [vmem:[#allocation6 + $0x750] sm:$0xff] }
 0x389   :  { %10901 = vmatpush1.bf16.msra.mxu0 %v14995_v62  ;;  %v15219_v62 = vcombine.low %v378_v54, %v382_v15  ;;  %v362_v55 = vld [vmem:[#allocation6 + $0x710] sm:$0xff] }
 0x38a   :  { %10942 = vmatpush1.bf16.msra.mxu1 %v15123_v61  ;;  %10902 = vmatprep.subr.bf16.mxu0 %v14988_v9  ;;  %v15084_v61 = vcombine.high %v242_v41, %v246_v43  ;;  %v226_v50 = vld [vmem:[#allocation6 + $0x2d0] sm:$0xff] }
 0x38b   :  { %10943 = vmatprep.subr.bf16.mxu1 %v15116_v12  ;;  %v15212_v12 = vcombine.high %v370_v46, %v374_v47  ;;  %v230_v30 = vld [vmem:[#allocation6 + $0x2f0] sm:$0xff] }
 0x38c   :  { %v218_v14 = vld [vmem:[#allocation6 + $0x290] sm:$0xff] }
 0x38d   :  { %10903 = vmatpush1.bf16.msra.mxu0 %v14987_v56  ;;  %v366_v56 = vld [vmem:[#allocation6 + $0x730] sm:$0xff] }
 0x38e   :  { %10944 = vmatpush1.bf16.msra.mxu1 %v15115_v63  ;;  %10904 = vmatprep.subr.bf16.mxu0 %v14980_v57  ;;  %v15083_v57 = vcombine.low %v242_v41, %v246_v43  ;;  %v15204_v25 = vcombine.high %v362_v55, %v366_v56  ;;  %v222_v54 = vld [vmem:[#allocation6 + $0x2b0] sm:$0xff] }
 0x38f   :  { %10945 = vmatprep.subr.bf16.mxu1 %v15108_v13  ;;  %v15076_v13 = vcombine.high %v234_v3, %v238_v17  ;;  %v346_v15 = vld [vmem:[#allocation6 + $0x690] sm:$0xff] }
 0x390   :  { %v210_v43 = vld [vmem:[#allocation6 + $0x250] sm:$0xff] }
 0x391   :  { %10905 = vmatpush1.bf16.msra.mxu0 %v14979_v45  ;;  %v354_v45 = vld [vmem:[#allocation6 + $0x6d0] sm:$0xff] }
 0x392   :  { %10946 = vmatpush1.bf16.msra.mxu1 %v15107_v31  ;;  %10906 = vmatprep.subr.bf16.mxu0 %v15100_v32  ;;  %v358_v31 = vld [vmem:[#allocation6 + $0x6f0] sm:$0xff]  ;;  %v15075_v32 = vcombine.low %v234_v3, %v238_v17 }
 0x393   :  { %10947 = vmatprep.subr.bf16.mxu1 %v15228_v27  ;;  %v15068_v27 = vcombine.high %v226_v50, %v230_v30  ;;  %v15196_v34 = vcombine.high %v354_v45, %v358_v31  ;;  %v206_v3 = vld [vmem:[#allocation6 + $0x230] sm:$0xff] }
 0x394   :  { %v330_v17 = vld [vmem:[#allocation6 + $0x610] sm:$0xff] }
 0x395   :  { %v10637_v37 = vpop.f32.mrf.mxu1  ;;  %10907 = vmatpush2.bf16.msra.mxu0 %v15099_v5  ;;  %v350_v5 = vld [vmem:[#allocation6 + $0x6b0] sm:$0xff] }
 0x396   :  { %v18043_v49 = vadd.f32 %v10637_v37, %v18035_v18  ;;  %10948 = vmatpush2.bf16.msra.mxu1 %v15227_v4  ;;  %10908 = vmatprep.subr.bf16.mxu0 %v15092_v35  ;;  %v15211_v18 = vcombine.low %v370_v46, %v374_v47  ;;  %v15067_v4 = vcombine.low %v226_v50, %v230_v30  ;;  %v214_v46 = vld [vmem:[#allocation6 + $0x270] sm:$0xff] }
 0x397   :  { %v10639_v9 = vpop.f32.mrf.mxu1  ;;  %10949 = vmatprep.subr.bf16.mxu1 %v15220_v36  ;;  %v15195_v35 = vcombine.low %v354_v45, %v358_v31  ;;  %v15060_v36 = vcombine.high %v218_v14, %v222_v54  ;;  %v15188_v41 = vcombine.high %v346_v15, %v350_v5  ;;  %v338_v47 = vld [vmem:[#allocation6 + $0x650] sm:$0xff] }
 0x398   :  { %v18046_v24 = vadd.f32 %v10639_v9, %v18038_v1  ;;  %v15203_v1 = vcombine.low %v362_v55, %v366_v56  ;;  %v342_v37 = vld [vmem:[#allocation6 + $0x670] sm:$0xff]  ;;  %v15051_v56 = vcombine.low %v210_v43, %v214_v46 }
 0x399   :  { %v10641_v63 = vpop.f32.mrf.mxu1  ;;  %10909 = vmatpush2.bf16.msra.mxu0 %v15091_v60  ;;  %v15059_v60 = vcombine.low %v218_v14, %v222_v54  ;;  %v15180_v9 = vcombine.high %v338_v47, %v342_v37  ;;  %v334_v55 = vld [vmem:[#allocation6 + $0x630] sm:$0xff] }
 0x39a   :  { %10950 = vmatpush2.bf16.msra.mxu1 %v15219_v62  ;;  %10910 = vmatprep.subr.bf16.mxu0 %v15084_v61  ;;  %v15187_v62 = vcombine.low %v346_v15, %v350_v5  ;;  %v15052_v61 = vcombine.high %v210_v43, %v214_v46  ;;  %v15179_v63 = vcombine.low %v338_v47, %v342_v37  ;;  %v582_v50 = vld [vmem:[#allocation6 + $0xdf0] sm:$0xff] }
 0x39b   :  { %v10642_v0 = vpop.f32.mrf.mxu1  ;;  %10951 = vmatprep.subr.bf16.mxu1 %v15212_v12  ;;  %v202_v12 = vld [vmem:[#allocation6 + $0x210] sm:$0xff]  ;;  %v15171_v45 = vcombine.low %v330_v17, %v334_v55 }
 0x39c   :  { %v454_v0 = vld [vmem:[#allocation6 + $0x9f0] sm:$0xff]  ;;  %v15043_v30 = vcombine.low %v202_v12, %v206_v3 }
 0x39d   :  { %10911 = vmatpush2.bf16.msra.mxu0 %v15083_v57  ;;  %v15044_v57 = vcombine.high %v202_v12, %v206_v3  ;;  %v574_v14 = vld [vmem:[#allocation6 + $0xdb0] sm:$0xff] }
 0x39e   :  { %10952 = vmatpush2.bf16.msra.mxu1 %v15211_v18  ;;  %10912 = vmatprep.subr.bf16.mxu0 %v15076_v13  ;;  %v15172_v18 = vcombine.high %v330_v17, %v334_v55  ;;  %v450_v13 = vld [vmem:[#allocation6 + $0x9d0] sm:$0xff] }
 0x39f   :  { %10953 = vmatprep.subr.bf16.mxu1 %v15204_v25  ;;  %v578_v25 = vld [vmem:[#allocation6 + $0xdd0] sm:$0xff]  ;;  %v15292_v31 = vcombine.high %v450_v13, %v454_v0  ;;  %v15291_v54 = vcombine.low %v450_v13, %v454_v0 }
 0x3a0   :  { %v15419_v15 = vcombine.low %v578_v25, %v582_v50  ;;  %v562_v43 = vld [vmem:[#allocation6 + $0xd50] sm:$0xff] }
 0x3a1   :  { %10913 = vmatpush2.bf16.msra.mxu0 %v15075_v32  ;;  %v15420_v32 = vcombine.high %v578_v25, %v582_v50  ;;  %v566_v46 = vld [vmem:[#allocation6 + $0xd70] sm:$0xff] }
 0x3a2   :  { %10954 = vmatpush2.bf16.msra.mxu1 %v15203_v1  ;;  %10914 = vmatprep.subr.bf16.mxu0 %v15068_v27  ;;  %v442_v1 = vld [vmem:[#allocation6 + $0x990] sm:$0xff]  ;;  %v15404_v12 = vcombine.high %v562_v43, %v566_v46 }
 0x3a3   :  { %10955 = vmatprep.subr.bf16.mxu1 %v15196_v34  ;;  %v446_v27 = vld [vmem:[#allocation6 + $0x9b0] sm:$0xff] }
 0x3a4   :  { %v570_v34 = vld [vmem:[#allocation6 + $0xd90] sm:$0xff]  ;;  %v15284_v5 = vcombine.high %v442_v1, %v446_v27  ;;  %v15283_v37 = vcombine.low %v442_v1, %v446_v27 }
 0x3a5   :  { %10915 = vmatpush2.bf16.msra.mxu0 %v15067_v4  ;;  %v15412_v4 = vcombine.high %v570_v34, %v574_v14  ;;  %v426_v3 = vld [vmem:[#allocation6 + $0x910] sm:$0xff] }
 0x3a6   :  { %10956 = vmatpush2.bf16.msra.mxu1 %v15195_v35  ;;  %10916 = vmatprep.subr.bf16.mxu0 %v15060_v36  ;;  %v434_v35 = vld [vmem:[#allocation6 + $0x950] sm:$0xff] }
 0x3a7   :  { %10957 = vmatprep.subr.bf16.mxu1 %v15188_v41  ;;  %v438_v36 = vld [vmem:[#allocation6 + $0x970] sm:$0xff] }
 0x3a8   :  { %v430_v17 = vld [vmem:[#allocation6 + $0x930] sm:$0xff] }
 0x3a9   :  { %10917 = vmatpush2.bf16.msra.mxu0 %v15059_v60  ;;  %v554_v55 = vld [vmem:[#allocation6 + $0xd10] sm:$0xff]  ;;  %v15268_v13 = vcombine.high %v426_v3, %v430_v17 }
 0x3aa   :  { %10958 = vmatpush2.bf16.msra.mxu1 %v15187_v62  ;;  %10918 = vmatprep.subr.bf16.mxu0 %v15052_v61  ;;  %v15411_v62 = vcombine.low %v570_v34, %v574_v14  ;;  %v15276_v61 = vcombine.high %v434_v35, %v438_v36  ;;  %v418_v0 = vld [vmem:[#allocation6 + $0x8d0] sm:$0xff] }
 0x3ab   :  { %10959 = vmatprep.subr.bf16.mxu1 %v15180_v9  ;;  %v422_v25 = vld [vmem:[#allocation6 + $0x8f0] sm:$0xff] }
 0x3ac   :  { %v546_v50 = vld [vmem:[#allocation6 + $0xcd0] sm:$0xff] }
 0x3ad   :  { %10919 = vmatpush2.bf16.msra.mxu0 %v15051_v56  ;;  %v558_v56 = vld [vmem:[#allocation6 + $0xd30] sm:$0xff] }
 0x3ae   :  { %10960 = vmatpush2.bf16.msra.mxu1 %v15179_v63  ;;  %10920 = vmatprep.subr.bf16.mxu0 %v15044_v57  ;;  %v15275_v63 = vcombine.low %v434_v35, %v438_v36  ;;  %v410_v27 = vld [vmem:[#allocation6 + $0x890] sm:$0xff] }
 0x3af   :  { %10961 = vmatprep.subr.bf16.mxu1 %v15172_v18  ;;  %v15403_v18 = vcombine.low %v562_v43, %v566_v46  ;;  %v414_v34 = vld [vmem:[#allocation6 + $0x8b0] sm:$0xff] }
 0x3b0   :  { %v538_v14 = vld [vmem:[#allocation6 + $0xc90] sm:$0xff] }
 0x3b1   :  { %10921 = vmatpush2.bf16.msra.mxu0 %v15043_v30  ;;  %v550_v30 = vld [vmem:[#allocation6 + $0xcf0] sm:$0xff] }
 0x3b2   :  { %10962 = vmatpush2.bf16.msra.mxu1 %v15171_v45  ;;  %10972 = vmatprep.subr.bf16.mxu0 %v15292_v31  ;;  %v15267_v45 = vcombine.low %v426_v3, %v430_v17  ;;  %v15395_v31 = vcombine.low %v554_v55, %v558_v56  ;;  %v15388_v1 = vcombine.high %v546_v50, %v550_v30  ;;  %v402_v36 = vld [vmem:[#allocation6 + $0x850] sm:$0xff] }
 0x3b3   :  { %11013 = vmatprep.subr.bf16.mxu1 %v15420_v32  ;;  %v15260_v32 = vcombine.high %v418_v0, %v422_v25  ;;  %v530_v43 = vld [vmem:[#allocation6 + $0xc50] sm:$0xff] }
 0x3b4   :  { %v10678_v41 = vpop.f32.mrf.mxu0  ;;  %10923 = vmatmul.mubr.bf16.vlgmr.msra.gmra.mxu0 %v17812_v16  ;;  %v534_v46 = vld [vmem:[#allocation6 + $0xc70] sm:$0xff] }
 0x3b5   :  { %v18050_v47 = vadd.f32 %v10678_v41, %v18043_v49  ;;  %10964 = vmatmul.mubr.bf16.vlgmr.msra.gmra.mxu1 %v17818_v20  ;;  %10973 = vmatpush1.bf16.msra.mxu0 %v15291_v54  ;;  %v542_v54 = vld [vmem:[#allocation6 + $0xcb0] sm:$0xff] }
 0x3b6   :  { %11014 = vmatpush1.bf16.msra.mxu1 %v15419_v15  ;;  %v10680_v60 = vpop.f32.mrf.mxu0  ;;  %10974 = vmatprep.subr.bf16.mxu0 %v15284_v5  ;;  %v15259_v15 = vcombine.low %v418_v0, %v422_v25  ;;  %v15387_v5 = vcombine.low %v546_v50, %v550_v30  ;;  %v15380_v35 = vcombine.high %v538_v14, %v542_v54  ;;  %v406_v41 = vld [vmem:[#allocation6 + $0x870] sm:$0xff] }
 0x3b7   :  { %v18054_v9 = vadd.f32 %v10680_v60, %v18046_v24  ;;  %11015 = vmatprep.subr.bf16.mxu1 %v15412_v4  ;;  %11004 = vmatprep.mubr.bf16.mxu0 %v17824_v28  ;;  %v15396_v24 = vcombine.high %v554_v55, %v558_v56  ;;  %v15252_v4 = vcombine.high %v410_v27, %v414_v34  ;;  %v398_v3 = vld [vmem:[#allocation6 + $0x830] sm:$0xff] }
 0x3b8   :  { %v10682_v49 = vpop.f32.mrf.mxu0  ;;  %11045 = vmatprep.mubr.bf16.mxu1 %v17829_v29  ;;  %v15379_v60 = vcombine.low %v538_v14, %v542_v54  ;;  %v522_v17 = vld [vmem:[#allocation6 + $0xc10] sm:$0xff]  ;;  %v15243_v55 = vcombine.low %v402_v36, %v406_v41  ;;  %v15371_v56 = vcombine.low %v530_v43, %v534_v46 }
 0x3b9   :  { %10975 = vmatpush1.bf16.msra.mxu0 %v15283_v37  ;;  %v15251_v37 = vcombine.low %v410_v27, %v414_v34  ;;  %v526_v49 = vld [vmem:[#allocation6 + $0xc30] sm:$0xff] }
 0x3ba   :  { %11016 = vmatpush1.bf16.msra.mxu1 %v15411_v62  ;;  %v10683_v57 = vpop.f32.mrf.mxu0  ;;  %10976 = vmatprep.subr.bf16.mxu0 %v15276_v61  ;;  %v15244_v62 = vcombine.high %v402_v36, %v406_v41  ;;  %v15372_v61 = vcombine.high %v530_v43, %v534_v46  ;;  %v646_v0 = vld [vmem:[#allocation6 + $0xff0] sm:$0xff]  ;;  %v15363_v50 = vcombine.low %v522_v17, %v526_v49 }
 0x3bb   :  { %11017 = vmatprep.subr.bf16.mxu1 %v15404_v12  ;;  %v394_v12 = vld [vmem:[#allocation6 + $0x810] sm:$0xff]  ;;  %v15364_v57 = vcombine.high %v522_v17, %v526_v49 }
 0x3bc   :  { %v15235_v25 = vcombine.low %v394_v12, %v398_v3  ;;  %v638_v27 = vld [vmem:[#allocation6 + $0xfb0] sm:$0xff] }
 0x3bd   :  { %10977 = vmatpush1.bf16.msra.mxu0 %v15275_v63  ;;  %v15236_v63 = vcombine.high %v394_v12, %v398_v3  ;;  %v630_v36 = vld [vmem:[#allocation6 + $0xf70] sm:$0xff] }
 0x3be   :  { %11018 = vmatpush1.bf16.msra.mxu1 %v15403_v18  ;;  %10978 = vmatprep.subr.bf16.mxu0 %v15268_v13  ;;  %v514_v18 = vld [vmem:[#allocation6 + $0xbd0] sm:$0xff] }
 0x3bf   :  { %11019 = vmatprep.subr.bf16.mxu1 %v15396_v24  ;;  %v518_v13 = vld [vmem:[#allocation6 + $0xbf0] sm:$0xff] }
 0x3c0   :  { %v642_v24 = vld [vmem:[#allocation6 + $0xfd0] sm:$0xff]  ;;  %v15356_v30 = vcombine.high %v514_v18, %v518_v13  ;;  %v15355_v34 = vcombine.low %v514_v18, %v518_v13 }
 0x3c1   :  { %10979 = vmatpush1.bf16.msra.mxu0 %v15267_v45  ;;  %v15484_v45 = vcombine.high %v642_v24, %v646_v0  ;;  %v15483_v14 = vcombine.low %v642_v24, %v646_v0  ;;  %v490_v12 = vld [vmem:[#allocation6 + $0xb10] sm:$0xff] }
 0x3c2   :  { %11020 = vmatpush1.bf16.msra.mxu1 %v15395_v31  ;;  %10980 = vmatprep.subr.bf16.mxu0 %v15260_v32  ;;  %v506_v31 = vld [vmem:[#allocation6 + $0xb90] sm:$0xff] }
 0x3c3   :  { %11021 = vmatprep.subr.bf16.mxu1 %v15388_v1  ;;  %v510_v32 = vld [vmem:[#allocation6 + $0xbb0] sm:$0xff] }
 0x3c4   :  { %v634_v1 = vld [vmem:[#allocation6 + $0xf90] sm:$0xff]  ;;  %v15348_v54 = vcombine.high %v506_v31, %v510_v32  ;;  %v15347_v43 = vcombine.low %v506_v31, %v510_v32 }
 0x3c5   :  { %10981 = vmatpush1.bf16.msra.mxu0 %v15259_v15  ;;  %v15476_v15 = vcombine.high %v634_v1, %v638_v27  ;;  %v494_v3 = vld [vmem:[#allocation6 + $0xb30] sm:$0xff] }
 0x3c6   :  { %11022 = vmatpush1.bf16.msra.mxu1 %v15387_v5  ;;  %10982 = vmatprep.subr.bf16.mxu0 %v15252_v4  ;;  %v498_v5 = vld [vmem:[#allocation6 + $0xb50] sm:$0xff] }
 0x3c7   :  { %11023 = vmatprep.subr.bf16.mxu1 %v15380_v35  ;;  %v502_v4 = vld [vmem:[#allocation6 + $0xb70] sm:$0xff] }
 0x3c8   :  { %v626_v35 = vld [vmem:[#allocation6 + $0xf50] sm:$0xff] }
 0x3c9   :  { %10983 = vmatpush1.bf16.msra.mxu0 %v15251_v37  ;;  %v15475_v37 = vcombine.low %v634_v1, %v638_v27  ;;  %v618_v49 = vld [vmem:[#allocation6 + $0xf10] sm:$0xff] }
 0x3ca   :  { %11024 = vmatpush1.bf16.msra.mxu1 %v15379_v60  ;;  %10984 = vmatprep.subr.bf16.mxu0 %v15244_v62  ;;  %v15340_v60 = vcombine.high %v498_v5, %v502_v4  ;;  %v482_v24 = vld [vmem:[#allocation6 + $0xad0] sm:$0xff] }
 0x3cb   :  { %11025 = vmatprep.subr.bf16.mxu1 %v15372_v61  ;;  %v15468_v61 = vcombine.high %v626_v35, %v630_v36  ;;  %v486_v0 = vld [vmem:[#allocation6 + $0xaf0] sm:$0xff] }
 0x3cc   :  { %v474_v32 = vld [vmem:[#allocation6 + $0xa90] sm:$0xff] }
 0x3cd   :  { %10985 = vmatpush1.bf16.msra.mxu0 %v15243_v55  ;;  %v622_v55 = vld [vmem:[#allocation6 + $0xf30] sm:$0xff] }
 0x3ce   :  { %11026 = vmatpush1.bf16.msra.mxu1 %v15371_v56  ;;  %10986 = vmatprep.subr.bf16.mxu0 %v15236_v63  ;;  %v15339_v63 = vcombine.low %v498_v5, %v502_v4  ;;  %v15460_v13 = vcombine.high %v618_v49, %v622_v55  ;;  %v478_v1 = vld [vmem:[#allocation6 + $0xab0] sm:$0xff] }
 0x3cf   :  { %11027 = vmatprep.subr.bf16.mxu1 %v15364_v57  ;;  %v15332_v57 = vcombine.high %v490_v12, %v494_v3  ;;  %v602_v27 = vld [vmem:[#allocation6 + $0xe90] sm:$0xff] }
 0x3d0   :  { %v466_v4 = vld [vmem:[#allocation6 + $0xa50] sm:$0xff] }
 0x3d1   :  { %10987 = vmatpush1.bf16.msra.mxu0 %v15235_v25  ;;  %v610_v25 = vld [vmem:[#allocation6 + $0xed0] sm:$0xff] }
 0x3d2   :  { %11028 = vmatpush1.bf16.msra.mxu1 %v15363_v50  ;;  %10988 = vmatprep.subr.bf16.mxu0 %v15356_v30  ;;  %v614_v50 = vld [vmem:[#allocation6 + $0xef0] sm:$0xff]  ;;  %v15331_v30 = vcombine.low %v490_v12, %v494_v3 }
 0x3d3   :  { %11029 = vmatprep.subr.bf16.mxu1 %v15484_v45  ;;  %v15324_v45 = vcombine.high %v482_v24, %v486_v0  ;;  %v15452_v31 = vcombine.high %v610_v25, %v614_v50  ;;  %v462_v12 = vld [vmem:[#allocation6 + $0xa30] sm:$0xff] }
 0x3d4   :  { %v586_v3 = vld [vmem:[#allocation6 + $0xe10] sm:$0xff] }
 0x3d5   :  { %v10719_v41 = vpop.f32.mrf.mxu1  ;;  %10989 = vmatpush2.bf16.msra.mxu0 %v15355_v34  ;;  %v606_v34 = vld [vmem:[#allocation6 + $0xeb0] sm:$0xff] }
 0x3d6   :  { %v18059_v46 = vadd.f32 %v10719_v41, %v18050_v47  ;;  %11030 = vmatpush2.bf16.msra.mxu1 %v15483_v14  ;;  %10990 = vmatprep.subr.bf16.mxu0 %v15348_v54  ;;  %v15467_v47 = vcombine.low %v626_v35, %v630_v36  ;;  %v15323_v14 = vcombine.low %v482_v24, %v486_v0  ;;  %v470_v35 = vld [vmem:[#allocation6 + $0xa70] sm:$0xff] }
 0x3d7   :  { %v10721_v62 = vpop.f32.mrf.mxu1  ;;  %11031 = vmatprep.subr.bf16.mxu1 %v15476_v15  ;;  %v15451_v54 = vcombine.low %v610_v25, %v614_v50  ;;  %v15316_v15 = vcombine.high %v474_v32, %v478_v1  ;;  %v15444_v5 = vcombine.high %v602_v27, %v606_v34  ;;  %v594_v36 = vld [vmem:[#allocation6 + $0xe50] sm:$0xff] }
 0x3d8   :  { %v18062_v17 = vadd.f32 %v10721_v62, %v18054_v9  ;;  %v15459_v9 = vcombine.low %v618_v49, %v622_v55  ;;  %v598_v41 = vld [vmem:[#allocation6 + $0xe70] sm:$0xff]  ;;  %v15307_v55 = vcombine.low %v466_v4, %v470_v35 }
 0x3d9   :  { %v10723_v56 = vpop.f32.mrf.mxu1  ;;  %10991 = vmatpush2.bf16.msra.mxu0 %v15347_v43  ;;  %v15315_v43 = vcombine.low %v474_v32, %v478_v1  ;;  %v15436_v62 = vcombine.high %v594_v36, %v598_v41  ;;  %v590_v49 = vld [vmem:[#allocation6 + $0xe30] sm:$0xff] }
 0x3da   :  { %11032 = vmatpush2.bf16.msra.mxu1 %v15475_v37  ;;  %10992 = vmatprep.subr.bf16.mxu0 %v15340_v60  ;;  %v15443_v37 = vcombine.low %v602_v27, %v606_v34  ;;  %v15308_v60 = vcombine.high %v466_v4, %v470_v35  ;;  %v15435_v56 = vcombine.low %v594_v36, %v598_v41  ;;  %v838_v24 = vld [vmem:[#allocation6 + $0x15f0] sm:$0xff] }
 0x3db   :  { %v10724_v18 = vpop.f32.mrf.mxu1  ;;  %11033 = vmatprep.subr.bf16.mxu1 %v15468_v61  ;;  %v458_v61 = vld [vmem:[#allocation6 + $0xa10] sm:$0xff]  ;;  %v15427_v25 = vcombine.low %v586_v3, %v590_v49 }
 0x3dc   :  { %v710_v18 = vld [vmem:[#allocation6 + $0x11f0] sm:$0xff]  ;;  %v15299_v0 = vcombine.low %v458_v61, %v462_v12 }
 0x3dd   :  { %10993 = vmatpush2.bf16.msra.mxu0 %v15339_v63  ;;  %v15300_v63 = vcombine.high %v458_v61, %v462_v12  ;;  %v830_v32 = vld [vmem:[#allocation6 + $0x15b0] sm:$0xff] }
 0x3de   :  { %11034 = vmatpush2.bf16.msra.mxu1 %v15467_v47  ;;  %10994 = vmatprep.subr.bf16.mxu0 %v15332_v57  ;;  %v15428_v47 = vcombine.high %v586_v3, %v590_v49  ;;  %v706_v57 = vld [vmem:[#allocation6 + $0x11d0] sm:$0xff] }
 0x3df   :  { %11035 = vmatprep.subr.bf16.mxu1 %v15460_v13  ;;  %v834_v13 = vld [vmem:[#allocation6 + $0x15d0] sm:$0xff]  ;;  %v15548_v50 = vcombine.high %v706_v57, %v710_v18  ;;  %v15547_v1 = vcombine.low %v706_v57, %v710_v18 }
 0x3e0   :  { %v15675_v27 = vcombine.low %v834_v13, %v838_v24  ;;  %v818_v4 = vld [vmem:[#allocation6 + $0x1550] sm:$0xff] }
 0x3e1   :  { %10995 = vmatpush2.bf16.msra.mxu0 %v15331_v30  ;;  %v15676_v30 = vcombine.high %v834_v13, %v838_v24  ;;  %v822_v35 = vld [vmem:[#allocation6 + $0x1570] sm:$0xff] }
 0x3e2   :  { %11036 = vmatpush2.bf16.msra.mxu1 %v15459_v9  ;;  %10996 = vmatprep.subr.bf16.mxu0 %v15324_v45  ;;  %v698_v9 = vld [vmem:[#allocation6 + $0x1190] sm:$0xff]  ;;  %v15660_v61 = vcombine.high %v818_v4, %v822_v35 }
 0x3e3   :  { %11037 = vmatprep.subr.bf16.mxu1 %v15452_v31  ;;  %v702_v45 = vld [vmem:[#allocation6 + $0x11b0] sm:$0xff] }
 0x3e4   :  { %v826_v31 = vld [vmem:[#allocation6 + $0x1590] sm:$0xff]  ;;  %v15540_v34 = vcombine.high %v698_v9, %v702_v45  ;;  %v15539_v41 = vcombine.low %v698_v9, %v702_v45 }
 0x3e5   :  { %10997 = vmatpush2.bf16.msra.mxu0 %v15323_v14  ;;  %v15668_v14 = vcombine.high %v826_v31, %v830_v32  ;;  %v682_v12 = vld [vmem:[#allocation6 + $0x1110] sm:$0xff] }
 0x3e6   :  { %11038 = vmatpush2.bf16.msra.mxu1 %v15451_v54  ;;  %10998 = vmatprep.subr.bf16.mxu0 %v15316_v15  ;;  %v690_v54 = vld [vmem:[#allocation6 + $0x1150] sm:$0xff] }
 0x3e7   :  { %11039 = vmatprep.subr.bf16.mxu1 %v15444_v5  ;;  %v694_v15 = vld [vmem:[#allocation6 + $0x1170] sm:$0xff] }
 0x3e8   :  { %v686_v3 = vld [vmem:[#allocation6 + $0x1130] sm:$0xff] }
 0x3e9   :  { %10999 = vmatpush2.bf16.msra.mxu0 %v15315_v43  ;;  %v810_v49 = vld [vmem:[#allocation6 + $0x1510] sm:$0xff]  ;;  %v15524_v57 = vcombine.high %v682_v12, %v686_v3 }
 0x3ea   :  { %11040 = vmatpush2.bf16.msra.mxu1 %v15443_v37  ;;  %11000 = vmatprep.subr.bf16.mxu0 %v15308_v60  ;;  %v15667_v37 = vcombine.low %v826_v31, %v830_v32  ;;  %v15532_v60 = vcombine.high %v690_v54, %v694_v15  ;;  %v674_v18 = vld [vmem:[#allocation6 + $0x10d0] sm:$0xff] }
 0x3eb   :  { %11041 = vmatprep.subr.bf16.mxu1 %v15436_v62  ;;  %v678_v13 = vld [vmem:[#allocation6 + $0x10f0] sm:$0xff] }
 0x3ec   :  { %v802_v24 = vld [vmem:[#allocation6 + $0x14d0] sm:$0xff] }
 0x3ed   :  { %11001 = vmatpush2.bf16.msra.mxu0 %v15307_v55  ;;  %v814_v55 = vld [vmem:[#allocation6 + $0x1530] sm:$0xff] }
 0x3ee   :  { %11042 = vmatpush2.bf16.msra.mxu1 %v15435_v56  ;;  %11002 = vmatprep.subr.bf16.mxu0 %v15300_v63  ;;  %v15531_v56 = vcombine.low %v690_v54, %v694_v15  ;;  %v666_v45 = vld [vmem:[#allocation6 + $0x1090] sm:$0xff] }
 0x3ef   :  { %11043 = vmatprep.subr.bf16.mxu1 %v15428_v47  ;;  %v15659_v47 = vcombine.low %v818_v4, %v822_v35  ;;  %v670_v31 = vld [vmem:[#allocation6 + $0x10b0] sm:$0xff] }
 0x3f0   :  { %v794_v32 = vld [vmem:[#allocation6 + $0x1490] sm:$0xff] }
 0x3f1   :  { %11003 = vmatpush2.bf16.msra.mxu0 %v15299_v0  ;;  %v806_v0 = vld [vmem:[#allocation6 + $0x14f0] sm:$0xff] }
 0x3f2   :  { %11044 = vmatpush2.bf16.msra.mxu1 %v15427_v25  ;;  %11054 = vmatprep.subr.bf16.mxu0 %v15548_v50  ;;  %v15523_v25 = vcombine.low %v682_v12, %v686_v3  ;;  %v15651_v50 = vcombine.low %v810_v49, %v814_v55  ;;  %v15644_v9 = vcombine.high %v802_v24, %v806_v0  ;;  %v658_v15 = vld [vmem:[#allocation6 + $0x1050] sm:$0xff] }
 0x3f3   :  { %11095 = vmatprep.subr.bf16.mxu1 %v15676_v30  ;;  %v15516_v30 = vcombine.high %v674_v18, %v678_v13  ;;  %v786_v4 = vld [vmem:[#allocation6 + $0x1450] sm:$0xff] }
 0x3f4   :  { %v10760_v5 = vpop.f32.mrf.mxu0  ;;  %11005 = vmatmul.mubr.bf16.vlgmr.msra.gmra.mxu0 %v17838_v39  ;;  %v790_v35 = vld [vmem:[#allocation6 + $0x1470] sm:$0xff] }
 0x3f5   :  { %v18066_v36 = vadd.f32 %v10760_v5, %v18059_v46  ;;  %11046 = vmatmul.mubr.bf16.vlgmr.msra.gmra.mxu1 %v17842_v40  ;;  %11055 = vmatpush1.bf16.msra.mxu0 %v15547_v1  ;;  %v798_v1 = vld [vmem:[#allocation6 + $0x14b0] sm:$0xff] }
 0x3f6   :  { %11096 = vmatpush1.bf16.msra.mxu1 %v15675_v27  ;;  %v10762_v43 = vpop.f32.mrf.mxu0  ;;  %11056 = vmatprep.subr.bf16.mxu0 %v15540_v34  ;;  %v15515_v27 = vcombine.low %v674_v18, %v678_v13  ;;  %v15643_v34 = vcombine.low %v802_v24, %v806_v0  ;;  %v15636_v54 = vcombine.high %v794_v32, %v798_v1  ;;  %v662_v5 = vld [vmem:[#allocation6 + $0x1070] sm:$0xff] }
 0x3f7   :  { %v18070_v62 = vadd.f32 %v10762_v43, %v18062_v17  ;;  %11097 = vmatprep.subr.bf16.mxu1 %v15668_v14  ;;  %11086 = vmatprep.mubr.bf16.mxu0 %v17848_v19  ;;  %v15652_v17 = vcombine.high %v810_v49, %v814_v55  ;;  %v15508_v14 = vcombine.high %v666_v45, %v670_v31  ;;  %v654_v12 = vld [vmem:[#allocation6 + $0x1030] sm:$0xff] }
 0x3f8   :  { %v10764_v46 = vpop.f32.mrf.mxu0  ;;  %11127 = vmatprep.mubr.bf16.mxu1 %v17853_v22  ;;  %v15635_v43 = vcombine.low %v794_v32, %v798_v1  ;;  %v778_v3 = vld [vmem:[#allocation6 + $0x1410] sm:$0xff]  ;;  %v15499_v49 = vcombine.low %v658_v15, %v662_v5  ;;  %v15627_v55 = vcombine.low %v786_v4, %v790_v35 }
 0x3f9   :  { %11057 = vmatpush1.bf16.msra.mxu0 %v15539_v41  ;;  %v15507_v41 = vcombine.low %v666_v45, %v670_v31  ;;  %v782_v46 = vld [vmem:[#allocation6 + $0x1430] sm:$0xff] }
 0x3fa   :  { %11098 = vmatpush1.bf16.msra.mxu1 %v15667_v37  ;;  %v10765_v63 = vpop.f32.mrf.mxu0  ;;  %11058 = vmatprep.subr.bf16.mxu0 %v15532_v60  ;;  %v15500_v37 = vcombine.high %v658_v15, %v662_v5  ;;  %v15628_v60 = vcombine.high %v786_v4, %v790_v35  ;;  %v902_v18 = vld [vmem:[#allocation6 + $0x17f0] sm:$0xff]  ;;  %v15619_v24 = vcombine.low %v778_v3, %v782_v46 }
 0x3fb   :  { %11099 = vmatprep.subr.bf16.mxu1 %v15660_v61  ;;  %v650_v61 = vld [vmem:[#allocation6 + $0x1010] sm:$0xff]  ;;  %v15620_v63 = vcombine.high %v778_v3, %v782_v46 }
 0x3fc   :  { %v15491_v13 = vcombine.low %v650_v61, %v654_v12  ;;  %v894_v45 = vld [vmem:[#allocation6 + $0x17b0] sm:$0xff] }
 0x3fd   :  { %11059 = vmatpush1.bf16.msra.mxu0 %v15531_v56  ;;  %v15492_v56 = vcombine.high %v650_v61, %v654_v12  ;;  %v886_v15 = vld [vmem:[#allocation6 + $0x1770] sm:$0xff] }
 0x3fe   :  { %11100 = vmatpush1.bf16.msra.mxu1 %v15659_v47  ;;  %11060 = vmatprep.subr.bf16.mxu0 %v15524_v57  ;;  %v770_v47 = vld [vmem:[#allocation6 + $0x13d0] sm:$0xff] }
 0x3ff   :  { %11101 = vmatprep.subr.bf16.mxu1 %v15652_v17  ;;  %v774_v57 = vld [vmem:[#allocation6 + $0x13f0] sm:$0xff] }
 0x400   :  { %v898_v17 = vld [vmem:[#allocation6 + $0x17d0] sm:$0xff]  ;;  %v15612_v0 = vcombine.high %v770_v47, %v774_v57  ;;  %v15611_v31 = vcombine.low %v770_v47, %v774_v57 }
 0x401   :  { %11061 = vmatpush1.bf16.msra.mxu0 %v15523_v25  ;;  %v15740_v25 = vcombine.high %v898_v17, %v902_v18  ;;  %v15739_v32 = vcombine.low %v898_v17, %v902_v18  ;;  %v746_v61 = vld [vmem:[#allocation6 + $0x1310] sm:$0xff] }
 0x402   :  { %11102 = vmatpush1.bf16.msra.mxu1 %v15651_v50  ;;  %11062 = vmatprep.subr.bf16.mxu0 %v15516_v30  ;;  %v762_v50 = vld [vmem:[#allocation6 + $0x1390] sm:$0xff] }
 0x403   :  { %11103 = vmatprep.subr.bf16.mxu1 %v15644_v9  ;;  %v766_v30 = vld [vmem:[#allocation6 + $0x13b0] sm:$0xff] }
 0x404   :  { %v890_v9 = vld [vmem:[#allocation6 + $0x1790] sm:$0xff]  ;;  %v15604_v1 = vcombine.high %v762_v50, %v766_v30  ;;  %v15603_v4 = vcombine.low %v762_v50, %v766_v30 }
 0x405   :  { %11063 = vmatpush1.bf16.msra.mxu0 %v15515_v27  ;;  %v15732_v27 = vcombine.high %v890_v9, %v894_v45  ;;  %v750_v12 = vld [vmem:[#allocation6 + $0x1330] sm:$0xff] }
 0x406   :  { %11104 = vmatpush1.bf16.msra.mxu1 %v15643_v34  ;;  %11064 = vmatprep.subr.bf16.mxu0 %v15508_v14  ;;  %v754_v34 = vld [vmem:[#allocation6 + $0x1350] sm:$0xff] }
 0x407   :  { %11105 = vmatprep.subr.bf16.mxu1 %v15636_v54  ;;  %v758_v14 = vld [vmem:[#allocation6 + $0x1370] sm:$0xff] }
 0x408   :  { %v882_v54 = vld [vmem:[#allocation6 + $0x1750] sm:$0xff] }
 0x409   :  { %11065 = vmatpush1.bf16.msra.mxu0 %v15507_v41  ;;  %v15731_v41 = vcombine.low %v890_v9, %v894_v45  ;;  %v874_v46 = vld [vmem:[#allocation6 + $0x1710] sm:$0xff] }
 0x40a   :  { %11106 = vmatpush1.bf16.msra.mxu1 %v15635_v43  ;;  %11066 = vmatprep.subr.bf16.mxu0 %v15500_v37  ;;  %v15596_v43 = vcombine.high %v754_v34, %v758_v14  ;;  %v738_v17 = vld [vmem:[#allocation6 + $0x12d0] sm:$0xff] }
 0x40b   :  { %11107 = vmatprep.subr.bf16.mxu1 %v15628_v60  ;;  %v15724_v60 = vcombine.high %v882_v54, %v886_v15  ;;  %v742_v18 = vld [vmem:[#allocation6 + $0x12f0] sm:$0xff] }
 0x40c   :  { %v730_v30 = vld [vmem:[#allocation6 + $0x1290] sm:$0xff] }
 0x40d   :  { %11067 = vmatpush1.bf16.msra.mxu0 %v15499_v49  ;;  %v878_v49 = vld [vmem:[#allocation6 + $0x1730] sm:$0xff] }
 0x40e   :  { %11108 = vmatpush1.bf16.msra.mxu1 %v15627_v55  ;;  %11068 = vmatprep.subr.bf16.mxu0 %v15492_v56  ;;  %v15595_v56 = vcombine.low %v754_v34, %v758_v14  ;;  %v15716_v57 = vcombine.high %v874_v46, %v878_v49  ;;  %v734_v9 = vld [vmem:[#allocation6 + $0x12b0] sm:$0xff] }
 0x40f   :  { %11109 = vmatprep.subr.bf16.mxu1 %v15620_v63  ;;  %v15588_v63 = vcombine.high %v746_v61, %v750_v12  ;;  %v858_v45 = vld [vmem:[#allocation6 + $0x1690] sm:$0xff] }
 0x410   :  { %v722_v14 = vld [vmem:[#allocation6 + $0x1250] sm:$0xff] }
 0x411   :  { %11069 = vmatpush1.bf16.msra.mxu0 %v15491_v13  ;;  %v866_v13 = vld [vmem:[#allocation6 + $0x16d0] sm:$0xff] }
 0x412   :  { %11110 = vmatpush1.bf16.msra.mxu1 %v15619_v24  ;;  %11070 = vmatprep.subr.bf16.mxu0 %v15612_v0  ;;  %v870_v24 = vld [vmem:[#allocation6 + $0x16f0] sm:$0xff]  ;;  %v15587_v0 = vcombine.low %v746_v61, %v750_v12 }
 0x413   :  { %11111 = vmatprep.subr.bf16.mxu1 %v15740_v25  ;;  %v15580_v25 = vcombine.high %v738_v17, %v742_v18  ;;  %v15708_v50 = vcombine.high %v866_v13, %v870_v24  ;;  %v718_v61 = vld [vmem:[#allocation6 + $0x1230] sm:$0xff] }
 0x414   :  { %v842_v12 = vld [vmem:[#allocation6 + $0x1610] sm:$0xff] }
 0x415   :  { %v10801_v5 = vpop.f32.mrf.mxu1  ;;  %11071 = vmatpush2.bf16.msra.mxu0 %v15611_v31  ;;  %v862_v31 = vld [vmem:[#allocation6 + $0x16b0] sm:$0xff] }
 0x416   :  { %v18075_v35 = vadd.f32 %v10801_v5, %v18066_v36  ;;  %11112 = vmatpush2.bf16.msra.mxu1 %v15739_v32  ;;  %11072 = vmatprep.subr.bf16.mxu0 %v15604_v1  ;;  %v15723_v36 = vcombine.low %v882_v54, %v886_v15  ;;  %v15579_v32 = vcombine.low %v738_v17, %v742_v18  ;;  %v726_v54 = vld [vmem:[#allocation6 + $0x1270] sm:$0xff] }
 0x417   :  { %v10803_v37 = vpop.f32.mrf.mxu1  ;;  %11113 = vmatprep.subr.bf16.mxu1 %v15732_v27  ;;  %v15707_v1 = vcombine.low %v866_v13, %v870_v24  ;;  %v15572_v27 = vcombine.high %v730_v30, %v734_v9  ;;  %v15700_v34 = vcombine.high %v858_v45, %v862_v31  ;;  %v850_v15 = vld [vmem:[#allocation6 + $0x1650] sm:$0xff] }
 0x418   :  { %v18078_v3 = vadd.f32 %v10803_v37, %v18070_v62  ;;  %v15715_v62 = vcombine.low %v874_v46, %v878_v49  ;;  %v854_v5 = vld [vmem:[#allocation6 + $0x1670] sm:$0xff]  ;;  %v15563_v49 = vcombine.low %v722_v14, %v726_v54 }
 0x419   :  { %v10805_v55 = vpop.f32.mrf.mxu1  ;;  %11073 = vmatpush2.bf16.msra.mxu0 %v15603_v4  ;;  %v15571_v4 = vcombine.low %v730_v30, %v734_v9  ;;  %v15692_v37 = vcombine.high %v850_v15, %v854_v5  ;;  %v846_v46 = vld [vmem:[#allocation6 + $0x1630] sm:$0xff] }
 0x41a   :  { %11114 = vmatpush2.bf16.msra.mxu1 %v15731_v41  ;;  %11074 = vmatprep.subr.bf16.mxu0 %v15596_v43  ;;  %v15699_v41 = vcombine.low %v858_v45, %v862_v31  ;;  %v15564_v43 = vcombine.high %v722_v14, %v726_v54  ;;  %v15691_v55 = vcombine.low %v850_v15, %v854_v5  ;;  %v1094_v17 = vld [vmem:[#allocation6 + $0x1df0] sm:$0xff] }
 0x41b   :  { %v10806_v47 = vpop.f32.mrf.mxu1  ;;  %11115 = vmatprep.subr.bf16.mxu1 %v15724_v60  ;;  %v714_v60 = vld [vmem:[#allocation6 + $0x1210] sm:$0xff]  ;;  %v15683_v13 = vcombine.low %v842_v12, %v846_v46 }
 0x41c   :  { %v966_v47 = vld [vmem:[#allocation6 + $0x19f0] sm:$0xff]  ;;  %v15555_v18 = vcombine.low %v714_v60, %v718_v61 }
 0x41d   :  { %11075 = vmatpush2.bf16.msra.mxu0 %v15595_v56  ;;  %v15556_v56 = vcombine.high %v714_v60, %v718_v61  ;;  %v1086_v30 = vld [vmem:[#allocation6 + $0x1db0] sm:$0xff] }
 0x41e   :  { %11116 = vmatpush2.bf16.msra.mxu1 %v15723_v36  ;;  %11076 = vmatprep.subr.bf16.mxu0 %v15588_v63  ;;  %v15684_v36 = vcombine.high %v842_v12, %v846_v46  ;;  %v962_v63 = vld [vmem:[#allocation6 + $0x19d0] sm:$0xff] }
 0x41f   :  { %11117 = vmatprep.subr.bf16.mxu1 %v15716_v57  ;;  %v1090_v57 = vld [vmem:[#allocation6 + $0x1dd0] sm:$0xff]  ;;  %v15804_v24 = vcombine.high %v962_v63, %v966_v47  ;;  %v15803_v9 = vcombine.low %v962_v63, %v966_v47 }
 0x420   :  { %v15931_v45 = vcombine.low %v1090_v57, %v1094_v17  ;;  %v1074_v14 = vld [vmem:[#allocation6 + $0x1d50] sm:$0xff] }
 0x421   :  { %11077 = vmatpush2.bf16.msra.mxu0 %v15587_v0  ;;  %v15932_v0 = vcombine.high %v1090_v57, %v1094_v17  ;;  %v1078_v54 = vld [vmem:[#allocation6 + $0x1d70] sm:$0xff] }
 0x422   :  { %11118 = vmatpush2.bf16.msra.mxu1 %v15715_v62  ;;  %11078 = vmatprep.subr.bf16.mxu0 %v15580_v25  ;;  %v954_v62 = vld [vmem:[#allocation6 + $0x1990] sm:$0xff]  ;;  %v15916_v46 = vcombine.high %v1074_v14, %v1078_v54 }
 0x423   :  { %11119 = vmatprep.subr.bf16.mxu1 %v15708_v50  ;;  %v958_v25 = vld [vmem:[#allocation6 + $0x19b0] sm:$0xff] }
 0x424   :  { %v1082_v50 = vld [vmem:[#allocation6 + $0x1d90] sm:$0xff]  ;;  %v15796_v31 = vcombine.high %v954_v62, %v958_v25 }
 0x425   :  { %11079 = vmatpush2.bf16.msra.mxu0 %v15579_v32  ;;  %v15924_v32 = vcombine.high %v1082_v50, %v1086_v30 }
 0x426   :  { %11120 = vmatpush2.bf16.msra.mxu1 %v15707_v1  ;;  %11080 = vmatprep.subr.bf16.mxu0 %v15572_v27  ;;  %v946_v1 = vld [vmem:[#allocation6 + $0x1950] sm:$0xff] }
 0x427   :  { %11121 = vmatprep.subr.bf16.mxu1 %v15700_v34  ;;  %v950_v27 = vld [vmem:[#allocation6 + $0x1970] sm:$0xff] }
 0x428   :  { %v15787_v57 = vcombine.low %v946_v1, %v950_v27 }
 0x429   :  { %11081 = vmatpush2.bf16.msra.mxu0 %v15571_v4  ;;  %v15795_v4 = vcombine.low %v954_v62, %v958_v25  ;;  %v934_v62 = vld [vmem:[#allocation6 + $0x18f0] sm:$0xff] }
 0x42a   :  { %11122 = vmatpush2.bf16.msra.mxu1 %v15699_v41  ;;  %11082 = vmatprep.subr.bf16.mxu0 %v15564_v43  ;;  %v15923_v43 = vcombine.low %v1082_v50, %v1086_v30  ;;  %v1058_v25 = vld [vmem:[#allocation6 + $0x1cd0] sm:$0xff] }
 0x42b   :  { %11123 = vmatprep.subr.bf16.mxu1 %v15692_v37  ;;  %v15788_v37 = vcombine.high %v946_v1, %v950_v27  ;;  %v1062_v50 = vld [vmem:[#allocation6 + $0x1cf0] sm:$0xff] }
 0x42c   :  { %v926_v1 = vld [vmem:[#allocation6 + $0x18b0] sm:$0xff] }
 0x42d   :  { %11083 = vmatpush2.bf16.msra.mxu0 %v15563_v49  ;;  %v938_v49 = vld [vmem:[#allocation6 + $0x1910] sm:$0xff] }
 0x42e   :  { %11124 = vmatpush2.bf16.msra.mxu1 %v15691_v55  ;;  %11084 = vmatprep.subr.bf16.mxu0 %v15556_v56  ;;  %v942_v55 = vld [vmem:[#allocation6 + $0x1930] sm:$0xff] }
 0x42f   :  { %11125 = vmatprep.subr.bf16.mxu1 %v15684_v36  ;;  %v1066_v56 = vld [vmem:[#allocation6 + $0x1d10] sm:$0xff]  ;;  %v15779_v30 = vcombine.low %v938_v49, %v942_v55 }
 0x430   :  { %v1070_v36 = vld [vmem:[#allocation6 + $0x1d30] sm:$0xff] }
 0x431   :  { %11085 = vmatpush2.bf16.msra.mxu0 %v15555_v18  ;;  %v15780_v18 = vcombine.high %v938_v49, %v942_v55  ;;  %v1050_v27 = vld [vmem:[#allocation6 + $0x1c90] sm:$0xff] }
 0x432   :  { %11126 = vmatpush2.bf16.msra.mxu1 %v15683_v13  ;;  %11136 = vmatprep.subr.bf16.mxu0 %v15804_v24  ;;  %v15908_v24 = vcombine.high %v1066_v56, %v1070_v36  ;;  %v906_v55 = vld [vmem:[#allocation6 + $0x1810] sm:$0xff] }
 0x433   :  { %11177 = vmatprep.subr.bf16.mxu1 %v15932_v0  ;;  %v930_v0 = vld [vmem:[#allocation6 + $0x18d0] sm:$0xff] }
 0x434   :  { %v10842_v34 = vpop.f32.mrf.mxu0  ;;  %11087 = vmatmul.mubr.bf16.vlgmr.msra.gmra.mxu0 %v17862_v7 }
 0x435   :  { %v10843_v15 = vadd.f32 %v10842_v34, %v18075_v35  ;;  %v10883_v5 = vpop.f32.mrf.mxu1  ;;  %11128 = vmatmul.mubr.bf16.vlgmr.msra.gmra.mxu1 %v17866_v8  ;;  %11137 = vmatpush1.bf16.msra.mxu0 %v15803_v9  ;;  %v15907_v9 = vcombine.low %v1066_v56, %v1070_v36  ;;  %v1054_v34 = vld [vmem:[#allocation6 + $0x1cb0] sm:$0xff] }
 0x436   :  { %11178 = vmatpush1.bf16.msra.mxu1 %v15931_v45  ;;  %v10844_v41 = vpop.f32.mrf.mxu0  ;;  %11138 = vmatprep.subr.bf16.mxu0 %v15796_v31  ;;  %v15772_v45 = vcombine.high %v930_v0, %v934_v62  ;;  %v15900_v31 = vcombine.high %v1058_v25, %v1062_v50  ;;  %v1034_v56 = vld [vmem:[#allocation6 + $0x1c10] sm:$0xff] }
 0x437   :  { %v18083_v60 = vadd.f32 %v10883_v5, %v10843_v15  ;;  %v10845_v61 = vadd.f32 %v10844_v41, %v18078_v3  ;;  %v10885_v12 = vpop.f32.mrf.mxu1  ;;  %11179 = vmatprep.subr.bf16.mxu1 %v15924_v32  ;;  %11168 = vmatprep.mubr.bf16.mxu0 %v17872_v38  ;;  %v15915_v3 = vcombine.low %v1074_v14, %v1078_v54  ;;  %v922_v32 = vld [vmem:[#allocation6 + $0x1890] sm:$0xff] }
 0x438   :  { %v10846_v35 = vpop.f32.mrf.mxu0  ;;  %11209 = vmatprep.mubr.bf16.mxu1 %v17877_v42  ;;  %v15771_v14 = vcombine.low %v930_v0, %v934_v62  ;;  %v15899_v54 = vcombine.low %v1058_v25, %v1062_v50  ;;  %v15764_v15 = vcombine.high %v922_v32, %v926_v1  ;;  %v15892_v5 = vcombine.high %v1050_v27, %v1054_v34  ;;  %v918_v41 = vld [vmem:[#allocation6 + $0x1870] sm:$0xff] }
 0x439   :  { %v18088_v63 = vadd.f32 %v10885_v12, %v10845_v61  ;;  %v10887_v47 = vpop.f32.mrf.mxu1  ;;  %11139 = vmatpush1.bf16.msra.mxu0 %v15795_v4  ;;  %v914_v4 = vld [vmem:[#allocation6 + $0x1850] sm:$0xff]  ;;  %v15763_v61 = vcombine.low %v922_v32, %v926_v1  ;;  %v15891_v12 = vcombine.low %v1050_v27, %v1054_v34 }
 0x43a   :  { %11180 = vmatpush1.bf16.msra.mxu1 %v15923_v43  ;;  %v10847_v17 = vpop.f32.mrf.mxu0  ;;  %11140 = vmatprep.subr.bf16.mxu0 %v15788_v37  ;;  %v1042_v43 = vld [vmem:[#allocation6 + $0x1c50] sm:$0xff]  ;;  %v15755_v47 = vcombine.low %v914_v4, %v918_v41 }
 0x43b   :  { %v10888_v13 = vpop.f32.mrf.mxu1  ;;  %11181 = vmatprep.subr.bf16.mxu1 %v15916_v46  ;;  %v1046_v37 = vld [vmem:[#allocation6 + $0x1c70] sm:$0xff]  ;;  %v15756_v46 = vcombine.high %v914_v4, %v918_v41 }
 0x43c   :  { %v15884_v49 = vcombine.high %v1042_v43, %v1046_v37  ;;  %v910_v35 = vld [vmem:[#allocation6 + $0x1830] sm:$0xff] }
 0x43d   :  { %11141 = vmatpush1.bf16.msra.mxu0 %v15787_v57  ;;  %v1038_v36 = vld [vmem:[#allocation6 + $0x1c30] sm:$0xff]  ;;  %v15883_v57 = vcombine.low %v1042_v43, %v1046_v37  ;;  %v15748_v17 = vcombine.high %v906_v55, %v910_v35  ;;  %v15747_v62 = vcombine.low %v906_v55, %v910_v35 }
 0x43e   :  { %11182 = vmatpush1.bf16.msra.mxu1 %v15915_v3  ;;  %11142 = vmatprep.subr.bf16.mxu0 %v15780_v18  ;;  %v15876_v3 = vcombine.high %v1034_v56, %v1038_v36  ;;  %v1026_v18 = vld [vmem:[#allocation6 + $0x1bd0] sm:$0xff]  ;;  %v15875_v25 = vcombine.low %v1034_v56, %v1038_v36 }
 0x43f   :  { %11183 = vmatprep.subr.bf16.mxu1 %v15908_v24  ;;  %v1030_v13 = vld [vmem:[#allocation6 + $0x1bf0] sm:$0xff] }
 0x440   :  { %v1154_v24 = vld [vmem:[#allocation6 + $0x1fd0] sm:$0xff]  ;;  %v15868_v50 = vcombine.high %v1026_v18, %v1030_v13  ;;  %v15867_v1 = vcombine.low %v1026_v18, %v1030_v13 }
 0x441   :  { %11143 = vmatpush1.bf16.msra.mxu0 %v15779_v30  ;;  %v1158_v0 = vld [vmem:[#allocation6 + $0x1ff0] sm:$0xff] }
 0x442   :  { %11184 = vmatpush1.bf16.msra.mxu1 %v15907_v9  ;;  %11144 = vmatprep.subr.bf16.mxu0 %v15772_v45  ;;  %v15996_v30 = vcombine.high %v1154_v24, %v1158_v0  ;;  %v1018_v9 = vld [vmem:[#allocation6 + $0x1b90] sm:$0xff]  ;;  %v15995_v27 = vcombine.low %v1154_v24, %v1158_v0 }
 0x443   :  { %11185 = vmatprep.subr.bf16.mxu1 %v15900_v31  ;;  %v1022_v45 = vld [vmem:[#allocation6 + $0x1bb0] sm:$0xff] }
 0x444   :  { %v1146_v31 = vld [vmem:[#allocation6 + $0x1f90] sm:$0xff]  ;;  %v15860_v34 = vcombine.high %v1018_v9, %v1022_v45  ;;  %v15859_v41 = vcombine.low %v1018_v9, %v1022_v45 }
 0x445   :  { %11145 = vmatpush1.bf16.msra.mxu0 %v15771_v14  ;;  %v1150_v32 = vld [vmem:[#allocation6 + $0x1fb0] sm:$0xff] }
 0x446   :  { %11186 = vmatpush1.bf16.msra.mxu1 %v15899_v54  ;;  %11146 = vmatprep.subr.bf16.mxu0 %v15764_v15  ;;  %v15988_v14 = vcombine.high %v1146_v31, %v1150_v32  ;;  %v1010_v54 = vld [vmem:[#allocation6 + $0x1b50] sm:$0xff]  ;;  %v15987_v43 = vcombine.low %v1146_v31, %v1150_v32 }
 0x447   :  { %11187 = vmatprep.subr.bf16.mxu1 %v15892_v5  ;;  %v1014_v15 = vld [vmem:[#allocation6 + $0x1b70] sm:$0xff] }
 0x448   :  { %v1138_v5 = vld [vmem:[#allocation6 + $0x1f50] sm:$0xff]  ;;  %v15852_v37 = vcombine.high %v1010_v54, %v1014_v15  ;;  %v15851_v35 = vcombine.low %v1010_v54, %v1014_v15 }
 0x449   :  { %11147 = vmatpush1.bf16.msra.mxu0 %v15763_v61  ;;  %v1142_v4 = vld [vmem:[#allocation6 + $0x1f70] sm:$0xff] }
 0x44a   :  { %11188 = vmatpush1.bf16.msra.mxu1 %v15891_v12  ;;  %11148 = vmatprep.subr.bf16.mxu0 %v15756_v46  ;;  %v15980_v61 = vcombine.high %v1138_v5, %v1142_v4  ;;  %v1002_v12 = vld [vmem:[#allocation6 + $0x1b10] sm:$0xff]  ;;  %v15979_v56 = vcombine.low %v1138_v5, %v1142_v4 }
 0x44b   :  { %11189 = vmatprep.subr.bf16.mxu1 %v15884_v49  ;;  %v1006_v46 = vld [vmem:[#allocation6 + $0x1b30] sm:$0xff] }
 0x44c   :  { %v1130_v49 = vld [vmem:[#allocation6 + $0x1f10] sm:$0xff]  ;;  %v15844_v36 = vcombine.high %v1002_v12, %v1006_v46  ;;  %v15843_v13 = vcombine.low %v1002_v12, %v1006_v46 }
 0x44d   :  { %11149 = vmatpush1.bf16.msra.mxu0 %v15755_v47  ;;  %v1134_v55 = vld [vmem:[#allocation6 + $0x1f30] sm:$0xff] }
 0x44e   :  { %11190 = vmatpush1.bf16.msra.mxu1 %v15883_v57  ;;  %11150 = vmatprep.subr.bf16.mxu0 %v15748_v17  ;;  %v15972_v47 = vcombine.high %v1130_v49, %v1134_v55  ;;  %v994_v57 = vld [vmem:[#allocation6 + $0x1ad0] sm:$0xff]  ;;  %v15971_v24 = vcombine.low %v1130_v49, %v1134_v55 }
 0x44f   :  { %11191 = vmatprep.subr.bf16.mxu1 %v15876_v3  ;;  %v998_v17 = vld [vmem:[#allocation6 + $0x1af0] sm:$0xff] }
 0x450   :  { %v1122_v3 = vld [vmem:[#allocation6 + $0x1ed0] sm:$0xff]  ;;  %v15836_v0 = vcombine.high %v994_v57, %v998_v17  ;;  %v15835_v45 = vcombine.low %v994_v57, %v998_v17 }
 0x451   :  { %11151 = vmatpush1.bf16.msra.mxu0 %v15747_v62  ;;  %v1126_v18 = vld [vmem:[#allocation6 + $0x1ef0] sm:$0xff] }
 0x452   :  { %11192 = vmatpush1.bf16.msra.mxu1 %v15875_v25  ;;  %11152 = vmatprep.subr.bf16.mxu0 %v15868_v50  ;;  %v15964_v62 = vcombine.high %v1122_v3, %v1126_v18  ;;  %v986_v25 = vld [vmem:[#allocation6 + $0x1a90] sm:$0xff]  ;;  %v15963_v31 = vcombine.low %v1122_v3, %v1126_v18 }
 0x453   :  { %11193 = vmatprep.subr.bf16.mxu1 %v15996_v30  ;;  %v990_v50 = vld [vmem:[#allocation6 + $0x1ab0] sm:$0xff] }
 0x454   :  { %v1114_v30 = vld [vmem:[#allocation6 + $0x1e90] sm:$0xff]  ;;  %v15828_v32 = vcombine.high %v986_v25, %v990_v50  ;;  %v15827_v15 = vcombine.low %v986_v25, %v990_v50 }
 0x455   :  { %11153 = vmatpush2.bf16.msra.mxu0 %v15867_v1  ;;  %v1118_v9 = vld [vmem:[#allocation6 + $0x1eb0] sm:$0xff] }
 0x456   :  { %11194 = vmatpush2.bf16.msra.mxu1 %v15995_v27  ;;  %11154 = vmatprep.subr.bf16.mxu0 %v15860_v34  ;;  %v15956_v1 = vcombine.high %v1114_v30, %v1118_v9  ;;  %v978_v27 = vld [vmem:[#allocation6 + $0x1a50] sm:$0xff]  ;;  %v15955_v5 = vcombine.low %v1114_v30, %v1118_v9 }
 0x457   :  { %11195 = vmatprep.subr.bf16.mxu1 %v15988_v14  ;;  %v982_v34 = vld [vmem:[#allocation6 + $0x1a70] sm:$0xff] }
 0x458   :  { %v1106_v14 = vld [vmem:[#allocation6 + $0x1e50] sm:$0xff]  ;;  %v15820_v4 = vcombine.high %v978_v27, %v982_v34  ;;  %v15819_v46 = vcombine.low %v978_v27, %v982_v34 }
 0x459   :  { %11155 = vmatpush2.bf16.msra.mxu0 %v15859_v41  ;;  %v1110_v54 = vld [vmem:[#allocation6 + $0x1e70] sm:$0xff] }
 0x45a   :  { %11196 = vmatpush2.bf16.msra.mxu1 %v15987_v43  ;;  %11156 = vmatprep.subr.bf16.mxu0 %v15852_v37  ;;  %v15948_v41 = vcombine.high %v1106_v14, %v1110_v54  ;;  %v970_v43 = vld [vmem:[#allocation6 + $0x1a10] sm:$0xff]  ;;  %v15947_v49 = vcombine.low %v1106_v14, %v1110_v54 }
 0x45b   :  { %11197 = vmatprep.subr.bf16.mxu1 %v15980_v61  ;;  %v974_v37 = vld [vmem:[#allocation6 + $0x1a30] sm:$0xff] }
 0x45c   :  { %v1098_v61 = vld [vmem:[#allocation6 + $0x1e10] sm:$0xff]  ;;  %v15812_v55 = vcombine.high %v970_v43, %v974_v37  ;;  %v15811_v17 = vcombine.low %v970_v43, %v974_v37 }
 0x45d   :  { %11157 = vmatpush2.bf16.msra.mxu0 %v15851_v35  ;;  %v1102_v12 = vld [vmem:[#allocation6 + $0x1e30] sm:$0xff] }
 0x45e   :  { %11198 = vmatpush2.bf16.msra.mxu1 %v15979_v56  ;;  %11158 = vmatprep.subr.bf16.mxu0 %v15844_v36  ;;  %v15940_v35 = vcombine.high %v1098_v61, %v1102_v12  ;;  %v1218_v56 = vld [vmem:[#allocation6 + $0x21d0] sm:$0xff]  ;;  %v15939_v3 = vcombine.low %v1098_v61, %v1102_v12 }
 0x45f   :  { %11199 = vmatprep.subr.bf16.mxu1 %v15972_v47  ;;  %v1222_v36 = vld [vmem:[#allocation6 + $0x21f0] sm:$0xff] }
 0x460   :  { %v1346_v47 = vld [vmem:[#allocation6 + $0x25d0] sm:$0xff]  ;;  %v16060_v18 = vcombine.high %v1218_v56, %v1222_v36  ;;  %v16059_v50 = vcombine.low %v1218_v56, %v1222_v36 }
 0x461   :  { %11159 = vmatpush2.bf16.msra.mxu0 %v15843_v13  ;;  %v1350_v57 = vld [vmem:[#allocation6 + $0x25f0] sm:$0xff] }
 0x462   :  { %11200 = vmatpush2.bf16.msra.mxu1 %v15971_v24  ;;  %11160 = vmatprep.subr.bf16.mxu0 %v15836_v0  ;;  %v16188_v13 = vcombine.high %v1346_v47, %v1350_v57  ;;  %v1210_v24 = vld [vmem:[#allocation6 + $0x2190] sm:$0xff]  ;;  %v16187_v30 = vcombine.low %v1346_v47, %v1350_v57 }
 0x463   :  { %11201 = vmatprep.subr.bf16.mxu1 %v15964_v62  ;;  %v1214_v0 = vld [vmem:[#allocation6 + $0x21b0] sm:$0xff] }
 0x464   :  { %v1338_v62 = vld [vmem:[#allocation6 + $0x2590] sm:$0xff]  ;;  %v16052_v9 = vcombine.high %v1210_v24, %v1214_v0  ;;  %v16051_v54 = vcombine.low %v1210_v24, %v1214_v0 }
 0x465   :  { %11161 = vmatpush2.bf16.msra.mxu0 %v15835_v45  ;;  %v1342_v25 = vld [vmem:[#allocation6 + $0x25b0] sm:$0xff] }
 0x466   :  { %11202 = vmatpush2.bf16.msra.mxu1 %v15963_v31  ;;  %11162 = vmatprep.subr.bf16.mxu0 %v15828_v32  ;;  %v16180_v45 = vcombine.high %v1338_v62, %v1342_v25  ;;  %v1202_v31 = vld [vmem:[#allocation6 + $0x2150] sm:$0xff] }
 0x467   :  { %11203 = vmatprep.subr.bf16.mxu1 %v15956_v1  ;;  %v1206_v32 = vld [vmem:[#allocation6 + $0x2170] sm:$0xff] }
 0x468   :  { %v1330_v27 = vld [vmem:[#allocation6 + $0x2550] sm:$0xff]  ;;  %v16043_v36 = vcombine.low %v1202_v31, %v1206_v32 }
 0x469   :  { %11163 = vmatpush2.bf16.msra.mxu0 %v15827_v15  ;;  %v1334_v34 = vld [vmem:[#allocation6 + $0x2570] sm:$0xff] }
 0x46a   :  { %11204 = vmatpush2.bf16.msra.mxu1 %v15955_v5  ;;  %11164 = vmatprep.subr.bf16.mxu0 %v15820_v4  ;;  %v16179_v4 = vcombine.low %v1338_v62, %v1342_v25  ;;  %v16172_v37 = vcombine.high %v1330_v27, %v1334_v34  ;;  %v1194_v61 = vld [vmem:[#allocation6 + $0x2110] sm:$0xff]  ;;  %v16171_v57 = vcombine.low %v1330_v27, %v1334_v34 }
 0x46b   :  { %11205 = vmatprep.subr.bf16.mxu1 %v15948_v41  ;;  %v16044_v41 = vcombine.high %v1202_v31, %v1206_v32  ;;  %v1198_v12 = vld [vmem:[#allocation6 + $0x2130] sm:$0xff] }
 0x46c   :  { %v1190_v24 = vld [vmem:[#allocation6 + $0x20f0] sm:$0xff]  ;;  %v16035_v25 = vcombine.low %v1194_v61, %v1198_v12 }
 0x46d   :  { %11165 = vmatpush2.bf16.msra.mxu0 %v15819_v46  ;;  %v1314_v0 = vld [vmem:[#allocation6 + $0x24d0] sm:$0xff] }
 0x46e   :  { %11206 = vmatpush2.bf16.msra.mxu1 %v15947_v49  ;;  %11166 = vmatprep.subr.bf16.mxu0 %v15812_v55  ;;  %v1322_v55 = vld [vmem:[#allocation6 + $0x2510] sm:$0xff] }
 0x46f   :  { %11207 = vmatprep.subr.bf16.mxu1 %v15940_v35  ;;  %v1326_v35 = vld [vmem:[#allocation6 + $0x2530] sm:$0xff] }
 0x470   :  { %v1318_v62 = vld [vmem:[#allocation6 + $0x24f0] sm:$0xff] }
 0x471   :  { %11167 = vmatpush2.bf16.msra.mxu0 %v15811_v17  ;;  %v16036_v17 = vcombine.high %v1194_v61, %v1198_v12  ;;  %v1182_v31 = vld [vmem:[#allocation6 + $0x20b0] sm:$0xff]  ;;  %v16155_v34 = vcombine.low %v1314_v0, %v1318_v62 }
 0x472   :  { %11208 = vmatpush2.bf16.msra.mxu1 %v15939_v3  ;;  %11218 = vmatprep.subr.bf16.mxu0 %v16060_v18  ;;  %v16164_v18 = vcombine.high %v1322_v55, %v1326_v35  ;;  %v1306_v32 = vld [vmem:[#allocation6 + $0x2490] sm:$0xff] }
 0x473   :  { %11259 = vmatprep.subr.bf16.mxu1 %v16188_v13  ;;  %v1186_v13 = vld [vmem:[#allocation6 + $0x20d0] sm:$0xff] }
 0x474   :  { %v10924_v1 = vpop.f32.mrf.mxu0  ;;  %11169 = vmatmul.mubr.bf16.vlgmr.msra.gmra.mxu0 %v17886_v51  ;;  %v16027_v27 = vcombine.low %v1186_v13, %v1190_v24 }
 0x475   :  { %v10965_v14 = vpop.f32.mrf.mxu1  ;;  %11210 = vmatmul.mubr.bf16.vlgmr.msra.gmra.mxu1 %v17890_v52  ;;  %11219 = vmatpush1.bf16.msra.mxu0 %v16059_v50  ;;  %v16163_v50 = vcombine.low %v1322_v55, %v1326_v35  ;;  %v1162_v55 = vld [vmem:[#allocation6 + $0x2010] sm:$0xff] }
 0x476   :  { %v18092_v15 = vadd.f32 %v10965_v14, %v10924_v1  ;;  %11260 = vmatpush1.bf16.msra.mxu1 %v16187_v30  ;;  %v10926_v5 = vpop.f32.mrf.mxu0  ;;  %11220 = vmatprep.subr.bf16.mxu0 %v16052_v9  ;;  %v16028_v30 = vcombine.high %v1186_v13, %v1190_v24  ;;  %v16156_v9 = vcombine.high %v1314_v0, %v1318_v62  ;;  %v1310_v1 = vld [vmem:[#allocation6 + $0x24b0] sm:$0xff] }
 0x477   :  { %v10967_v43 = vpop.f32.mrf.mxu1  ;;  %11261 = vmatprep.subr.bf16.mxu1 %v16180_v45  ;;  %11250 = vmatprep.mubr.bf16.mxu0 %v17896_v6  ;;  %v1178_v45 = vld [vmem:[#allocation6 + $0x2090] sm:$0xff]  ;;  %v16147_v61 = vcombine.low %v1306_v32, %v1310_v1 }
 0x478   :  { %v18095_v46 = vadd.f32 %v10967_v43, %v10926_v5  ;;  %v10928_v49 = vpop.f32.mrf.mxu0  ;;  %11291 = vmatprep.mubr.bf16.mxu1 %v17901_v10  ;;  %v16020_v14 = vcombine.high %v1178_v45, %v1182_v31  ;;  %v1170_v5 = vld [vmem:[#allocation6 + $0x2050] sm:$0xff] }
 0x479   :  { %v10969_v56 = vpop.f32.mrf.mxu1  ;;  %11221 = vmatpush1.bf16.msra.mxu0 %v16051_v54  ;;  %v16148_v54 = vcombine.high %v1306_v32, %v1310_v1  ;;  %v1302_v43 = vld [vmem:[#allocation6 + $0x2470] sm:$0xff] }
 0x47a   :  { %11262 = vmatpush1.bf16.msra.mxu1 %v16179_v4  ;;  %v10929_v47 = vpop.f32.mrf.mxu0  ;;  %11222 = vmatprep.subr.bf16.mxu0 %v16044_v41  ;;  %v1174_v4 = vld [vmem:[#allocation6 + $0x2070] sm:$0xff] }
 0x47b   :  { %v10970_v3 = vpop.f32.mrf.mxu1  ;;  %11263 = vmatprep.subr.bf16.mxu1 %v16172_v37  ;;  %v1298_v41 = vld [vmem:[#allocation6 + $0x2450] sm:$0xff]  ;;  %v16019_v37 = vcombine.low %v1178_v45, %v1182_v31  ;;  %v16012_v12 = vcombine.high %v1170_v5, %v1174_v4  ;;  %v16011_v47 = vcombine.low %v1170_v5, %v1174_v4 }
 0x47c   :  { %v16140_v49 = vcombine.high %v1298_v41, %v1302_v43  ;;  %v1166_v35 = vld [vmem:[#allocation6 + $0x2030] sm:$0xff] }
 0x47d   :  { %11223 = vmatpush1.bf16.msra.mxu0 %v16043_v36  ;;  %v1290_v56 = vld [vmem:[#allocation6 + $0x2410] sm:$0xff]  ;;  %v16003_v62 = vcombine.low %v1162_v55, %v1166_v35 }
 0x47e   :  { %11264 = vmatpush1.bf16.msra.mxu1 %v16171_v57  ;;  %11224 = vmatprep.subr.bf16.mxu0 %v16036_v17  ;;  %v1294_v36 = vld [vmem:[#allocation6 + $0x2430] sm:$0xff]  ;;  %v16139_v57 = vcombine.low %v1298_v41, %v1302_v43  ;;  %v16004_v17 = vcombine.high %v1162_v55, %v1166_v35 }
 0x47f   :  { %11265 = vmatprep.subr.bf16.mxu1 %v16164_v18  ;;  %v16132_v3 = vcombine.high %v1290_v56, %v1294_v36  ;;  %v1282_v18 = vld [vmem:[#allocation6 + $0x23d0] sm:$0xff] }
 0x480   :  { %v1286_v13 = vld [vmem:[#allocation6 + $0x23f0] sm:$0xff] }
 0x481   :  { %11225 = vmatpush1.bf16.msra.mxu0 %v16035_v25  ;;  %v1410_v24 = vld [vmem:[#allocation6 + $0x27d0] sm:$0xff]  ;;  %v16131_v25 = vcombine.low %v1290_v56, %v1294_v36  ;;  %v16123_v1 = vcombine.low %v1282_v18, %v1286_v13 }
 0x482   :  { %11266 = vmatpush1.bf16.msra.mxu1 %v16163_v50  ;;  %11226 = vmatprep.subr.bf16.mxu0 %v16028_v30  ;;  %v1414_v0 = vld [vmem:[#allocation6 + $0x27f0] sm:$0xff]  ;;  %v16124_v50 = vcombine.high %v1282_v18, %v1286_v13 }
 0x483   :  { %11267 = vmatprep.subr.bf16.mxu1 %v16156_v9  ;;  %v16252_v30 = vcombine.high %v1410_v24, %v1414_v0  ;;  %v1274_v9 = vld [vmem:[#allocation6 + $0x2390] sm:$0xff] }
 0x484   :  { %v1278_v45 = vld [vmem:[#allocation6 + $0x23b0] sm:$0xff] }
 0x485   :  { %11227 = vmatpush1.bf16.msra.mxu0 %v16027_v27  ;;  %v1402_v31 = vld [vmem:[#allocation6 + $0x2790] sm:$0xff]  ;;  %v16251_v27 = vcombine.low %v1410_v24, %v1414_v0  ;;  %v16115_v43 = vcombine.low %v1274_v9, %v1278_v45 }
 0x486   :  { %11268 = vmatpush1.bf16.msra.mxu1 %v16155_v34  ;;  %11228 = vmatprep.subr.bf16.mxu0 %v16020_v14  ;;  %v1406_v32 = vld [vmem:[#allocation6 + $0x27b0] sm:$0xff]  ;;  %v16116_v34 = vcombine.high %v1274_v9, %v1278_v45 }
 0x487   :  { %11269 = vmatprep.subr.bf16.mxu1 %v16148_v54  ;;  %v16244_v14 = vcombine.high %v1402_v31, %v1406_v32  ;;  %v1266_v54 = vld [vmem:[#allocation6 + $0x2350] sm:$0xff] }
 0x488   :  { %v1270_v5 = vld [vmem:[#allocation6 + $0x2370] sm:$0xff] }
 0x489   :  { %11229 = vmatpush1.bf16.msra.mxu0 %v16019_v37  ;;  %v1394_v4 = vld [vmem:[#allocation6 + $0x2750] sm:$0xff]  ;;  %v16243_v37 = vcombine.low %v1402_v31, %v1406_v32  ;;  %v16107_v36 = vcombine.low %v1266_v54, %v1270_v5 }
 0x48a   :  { %11270 = vmatpush1.bf16.msra.mxu1 %v16147_v61  ;;  %11230 = vmatprep.subr.bf16.mxu0 %v16012_v12  ;;  %v1398_v41 = vld [vmem:[#allocation6 + $0x2770] sm:$0xff]  ;;  %v16108_v61 = vcombine.high %v1266_v54, %v1270_v5 }
 0x48b   :  { %11271 = vmatprep.subr.bf16.mxu1 %v16140_v49  ;;  %v16236_v12 = vcombine.high %v1394_v4, %v1398_v41  ;;  %v1258_v49 = vld [vmem:[#allocation6 + $0x2310] sm:$0xff] }
 0x48c   :  { %v1262_v55 = vld [vmem:[#allocation6 + $0x2330] sm:$0xff] }
 0x48d   :  { %11231 = vmatpush1.bf16.msra.mxu0 %v16011_v47  ;;  %v1386_v35 = vld [vmem:[#allocation6 + $0x2710] sm:$0xff]  ;;  %v16235_v47 = vcombine.low %v1394_v4, %v1398_v41  ;;  %v16099_v0 = vcombine.low %v1258_v49, %v1262_v55 }
 0x48e   :  { %11272 = vmatpush1.bf16.msra.mxu1 %v16139_v57  ;;  %11232 = vmatprep.subr.bf16.mxu0 %v16004_v17  ;;  %v1390_v56 = vld [vmem:[#allocation6 + $0x2730] sm:$0xff]  ;;  %v16100_v57 = vcombine.high %v1258_v49, %v1262_v55 }
 0x48f   :  { %11273 = vmatprep.subr.bf16.mxu1 %v16132_v3  ;;  %v16228_v17 = vcombine.high %v1386_v35, %v1390_v56  ;;  %v1250_v3 = vld [vmem:[#allocation6 + $0x22d0] sm:$0xff] }
 0x490   :  { %v1254_v18 = vld [vmem:[#allocation6 + $0x22f0] sm:$0xff] }
 0x491   :  { %11233 = vmatpush1.bf16.msra.mxu0 %v16003_v62  ;;  %v1378_v13 = vld [vmem:[#allocation6 + $0x26d0] sm:$0xff]  ;;  %v16227_v62 = vcombine.low %v1386_v35, %v1390_v56  ;;  %v16091_v32 = vcombine.low %v1250_v3, %v1254_v18 }
 0x492   :  { %11274 = vmatpush1.bf16.msra.mxu1 %v16131_v25  ;;  %11234 = vmatprep.subr.bf16.mxu0 %v16124_v50  ;;  %v1382_v24 = vld [vmem:[#allocation6 + $0x26f0] sm:$0xff]  ;;  %v16092_v25 = vcombine.high %v1250_v3, %v1254_v18 }
 0x493   :  { %11275 = vmatprep.subr.bf16.mxu1 %v16252_v30  ;;  %v16220_v50 = vcombine.high %v1378_v13, %v1382_v24  ;;  %v1242_v30 = vld [vmem:[#allocation6 + $0x2290] sm:$0xff] }
 0x494   :  { %v1246_v9 = vld [vmem:[#allocation6 + $0x22b0] sm:$0xff] }
 0x495   :  { %11235 = vmatpush2.bf16.msra.mxu0 %v16123_v1  ;;  %v1370_v45 = vld [vmem:[#allocation6 + $0x2690] sm:$0xff]  ;;  %v16219_v1 = vcombine.low %v1378_v13, %v1382_v24  ;;  %v16083_v41 = vcombine.low %v1242_v30, %v1246_v9 }
 0x496   :  { %11276 = vmatpush2.bf16.msra.mxu1 %v16251_v27  ;;  %11236 = vmatprep.subr.bf16.mxu0 %v16116_v34  ;;  %v1374_v31 = vld [vmem:[#allocation6 + $0x26b0] sm:$0xff]  ;;  %v16084_v27 = vcombine.high %v1242_v30, %v1246_v9 }
 0x497   :  { %11277 = vmatprep.subr.bf16.mxu1 %v16244_v14  ;;  %v16212_v34 = vcombine.high %v1370_v45, %v1374_v31  ;;  %v1234_v14 = vld [vmem:[#allocation6 + $0x2250] sm:$0xff] }
 0x498   :  { %v1238_v54 = vld [vmem:[#allocation6 + $0x2270] sm:$0xff] }
 0x499   :  { %11237 = vmatpush2.bf16.msra.mxu0 %v16115_v43  ;;  %v1362_v5 = vld [vmem:[#allocation6 + $0x2650] sm:$0xff]  ;;  %v16211_v43 = vcombine.low %v1370_v45, %v1374_v31  ;;  %v16075_v56 = vcombine.low %v1234_v14, %v1238_v54 }
 0x49a   :  { %11278 = vmatpush2.bf16.msra.mxu1 %v16243_v37  ;;  %11238 = vmatprep.subr.bf16.mxu0 %v16108_v61  ;;  %v1366_v4 = vld [vmem:[#allocation6 + $0x2670] sm:$0xff]  ;;  %v16076_v37 = vcombine.high %v1234_v14, %v1238_v54 }
 0x49b   :  { %11279 = vmatprep.subr.bf16.mxu1 %v16236_v12  ;;  %v16204_v61 = vcombine.high %v1362_v5, %v1366_v4  ;;  %v1226_v12 = vld [vmem:[#allocation6 + $0x2210] sm:$0xff] }
 0x49c   :  { %v1230_v49 = vld [vmem:[#allocation6 + $0x2230] sm:$0xff] }
 0x49d   :  { %11239 = vmatpush2.bf16.msra.mxu0 %v16107_v36  ;;  %v1354_v55 = vld [vmem:[#allocation6 + $0x2610] sm:$0xff]  ;;  %v16203_v36 = vcombine.low %v1362_v5, %v1366_v4  ;;  %v16067_v24 = vcombine.low %v1226_v12, %v1230_v49 }
 0x49e   :  { %11280 = vmatpush2.bf16.msra.mxu1 %v16235_v47  ;;  %11240 = vmatprep.subr.bf16.mxu0 %v16100_v57  ;;  %v1358_v35 = vld [vmem:[#allocation6 + $0x2630] sm:$0xff]  ;;  %v16068_v47 = vcombine.high %v1226_v12, %v1230_v49 }
 0x49f   :  { %11281 = vmatprep.subr.bf16.mxu1 %v16228_v17  ;;  %v16196_v57 = vcombine.high %v1354_v55, %v1358_v35  ;;  %v1474_v17 = vld [vmem:[#allocation6 + $0x29d0] sm:$0xff] }
 0x4a0   :  { %v1478_v3 = vld [vmem:[#allocation6 + $0x29f0] sm:$0xff] }
 0x4a1   :  { %11241 = vmatpush2.bf16.msra.mxu0 %v16099_v0  ;;  %v1602_v18 = vld [vmem:[#allocation6 + $0x2dd0] sm:$0xff]  ;;  %v16195_v0 = vcombine.low %v1354_v55, %v1358_v35  ;;  %v16315_v31 = vcombine.low %v1474_v17, %v1478_v3 }
 0x4a2   :  { %11282 = vmatpush2.bf16.msra.mxu1 %v16227_v62  ;;  %11242 = vmatprep.subr.bf16.mxu0 %v16092_v25  ;;  %v1606_v13 = vld [vmem:[#allocation6 + $0x2df0] sm:$0xff]  ;;  %v16316_v62 = vcombine.high %v1474_v17, %v1478_v3 }
 0x4a3   :  { %11283 = vmatprep.subr.bf16.mxu1 %v16220_v50  ;;  %v16444_v25 = vcombine.high %v1602_v18, %v1606_v13  ;;  %v1466_v50 = vld [vmem:[#allocation6 + $0x2990] sm:$0xff] }
 0x4a4   :  { %v1470_v30 = vld [vmem:[#allocation6 + $0x29b0] sm:$0xff] }
 0x4a5   :  { %11243 = vmatpush2.bf16.msra.mxu0 %v16091_v32  ;;  %v1594_v9 = vld [vmem:[#allocation6 + $0x2d90] sm:$0xff]  ;;  %v16443_v32 = vcombine.low %v1602_v18, %v1606_v13 }
 0x4a6   :  { %11284 = vmatpush2.bf16.msra.mxu1 %v16219_v1  ;;  %11244 = vmatprep.subr.bf16.mxu0 %v16084_v27  ;;  %v1598_v45 = vld [vmem:[#allocation6 + $0x2db0] sm:$0xff]  ;;  %v16308_v1 = vcombine.high %v1466_v50, %v1470_v30 }
 0x4a7   :  { %11285 = vmatprep.subr.bf16.mxu1 %v16212_v34  ;;  %v16436_v27 = vcombine.high %v1594_v9, %v1598_v45  ;;  %v1458_v34 = vld [vmem:[#allocation6 + $0x2950] sm:$0xff]  ;;  %v16435_v12 = vcombine.low %v1594_v9, %v1598_v45 }
 0x4a8   :  { %v1462_v14 = vld [vmem:[#allocation6 + $0x2970] sm:$0xff] }
 0x4a9   :  { %11245 = vmatpush2.bf16.msra.mxu0 %v16083_v41  ;;  %v1586_v5 = vld [vmem:[#allocation6 + $0x2d50] sm:$0xff]  ;;  %v16300_v49 = vcombine.high %v1458_v34, %v1462_v14 }
 0x4aa   :  { %11286 = vmatpush2.bf16.msra.mxu1 %v16211_v43  ;;  %11246 = vmatprep.subr.bf16.mxu0 %v16076_v37  ;;  %v1590_v4 = vld [vmem:[#allocation6 + $0x2d70] sm:$0xff]  ;;  %v16307_v37 = vcombine.low %v1466_v50, %v1470_v30 }
 0x4ab   :  { %11287 = vmatprep.subr.bf16.mxu1 %v16204_v61  ;;  %v1578_v17 = vld [vmem:[#allocation6 + $0x2d10] sm:$0xff] }
 0x4ac   :  { %v1582_v3 = vld [vmem:[#allocation6 + $0x2d30] sm:$0xff] }
 0x4ad   :  { %11247 = vmatpush2.bf16.msra.mxu0 %v16075_v56  ;;  %v16420_v50 = vcombine.high %v1578_v17, %v1582_v3  ;;  %v1442_v30 = vld [vmem:[#allocation6 + $0x28d0] sm:$0xff] }
 0x4ae   :  { %11288 = vmatpush2.bf16.msra.mxu1 %v16203_v36  ;;  %11248 = vmatprep.subr.bf16.mxu0 %v16068_v47  ;;  %v16428_v36 = vcombine.high %v1586_v5, %v1590_v4  ;;  %v1450_v47 = vld [vmem:[#allocation6 + $0x2910] sm:$0xff] }
 0x4af   :  { %11289 = vmatprep.subr.bf16.mxu1 %v16196_v57  ;;  %v1454_v57 = vld [vmem:[#allocation6 + $0x2930] sm:$0xff] }
 0x4b0   :  { %v1446_v9 = vld [vmem:[#allocation6 + $0x28f0] sm:$0xff] }
 0x4b1   :  { %11249 = vmatpush2.bf16.msra.mxu0 %v16067_v24  ;;  %v16299_v24 = vcombine.low %v1458_v34, %v1462_v14  ;;  %v1570_v45 = vld [vmem:[#allocation6 + $0x2cd0] sm:$0xff] }
 0x4b2   :  { %11290 = vmatpush2.bf16.msra.mxu1 %v16195_v0  ;;  %11300 = vmatprep.subr.bf16.mxu0 %v16316_v62  ;;  %v16292_v62 = vcombine.high %v1450_v47, %v1454_v57  ;;  %v1434_v14 = vld [vmem:[#allocation6 + $0x2890] sm:$0xff] }
 0x4b3   :  { %11341 = vmatprep.subr.bf16.mxu1 %v16444_v25 }
 0x4b4   :  { %v11006_v54 = vpop.f32.mrf.mxu0  ;;  %11251 = vmatmul.mubr.bf16.vlgmr.msra.gmra.mxu0 %v17912_v2 }
 0x4b5   :  { %v11007_v41 = vadd.f32 %v11006_v54, %v18092_v15  ;;  %v11047_v43 = vpop.f32.mrf.mxu1  ;;  %11292 = vmatmul.mubr.bf16.vlgmr.msra.gmra.mxu1 %v17918_v11  ;;  %11301 = vmatpush1.bf16.msra.mxu0 %v16315_v31  ;;  %v1574_v31 = vld [vmem:[#allocation6 + $0x2cf0] sm:$0xff] }
 0x4b6   :  { %11342 = vmatpush1.bf16.msra.mxu1 %v16443_v32  ;;  %v11008_v61 = vpop.f32.mrf.mxu0  ;;  %11302 = vmatprep.subr.bf16.mxu0 %v16308_v1  ;;  %v16291_v32 = vcombine.low %v1450_v47, %v1454_v57  ;;  %v16419_v1 = vcombine.low %v1578_v17, %v1582_v3  ;;  %v16412_v34 = vcombine.high %v1570_v45, %v1574_v31  ;;  %v1438_v54 = vld [vmem:[#allocation6 + $0x28b0] sm:$0xff] }
 0x4b7   :  { %v18101_v55 = vadd.f32 %v11047_v43, %v11007_v41  ;;  %v11009_v35 = vadd.f32 %v11008_v61, %v18095_v46  ;;  %v11049_v56 = vpop.f32.mrf.mxu1  ;;  %11343 = vmatprep.subr.bf16.mxu1 %v16436_v27  ;;  %11332 = vmatprep.mubr.bf16.mxu0 %v17924_v23  ;;  %v16427_v46 = vcombine.low %v1586_v5, %v1590_v4  ;;  %v1562_v41 = vld [vmem:[#allocation6 + $0x2c90] sm:$0xff] }
 0x4b8   :  { %v11010_v15 = vpop.f32.mrf.mxu0  ;;  %11373 = vmatprep.mubr.bf16.mxu1 %v17929_v53  ;;  %v16284_v27 = vcombine.high %v1442_v30, %v1446_v9  ;;  %v1566_v5 = vld [vmem:[#allocation6 + $0x2cb0] sm:$0xff]  ;;  %v16283_v4 = vcombine.low %v1442_v30, %v1446_v9  ;;  %v16411_v43 = vcombine.low %v1570_v45, %v1574_v31 }
 0x4b9   :  { %v18106_v18 = vadd.f32 %v11049_v56, %v11009_v35  ;;  %v11051_v13 = vpop.f32.mrf.mxu1  ;;  %11303 = vmatpush1.bf16.msra.mxu0 %v16307_v37  ;;  %v16276_v37 = vcombine.high %v1434_v14, %v1438_v54  ;;  %v16404_v61 = vcombine.high %v1562_v41, %v1566_v5  ;;  %v1554_v35 = vld [vmem:[#allocation6 + $0x2c50] sm:$0xff]  ;;  %v16403_v47 = vcombine.low %v1562_v41, %v1566_v5 }
 0x4ba   :  { %11344 = vmatpush1.bf16.msra.mxu1 %v16435_v12  ;;  %v11011_v0 = vpop.f32.mrf.mxu0  ;;  %11304 = vmatprep.subr.bf16.mxu0 %v16300_v49  ;;  %v1426_v12 = vld [vmem:[#allocation6 + $0x2850] sm:$0xff] }
 0x4bb   :  { %v11052_v25 = vpop.f32.mrf.mxu1  ;;  %11345 = vmatprep.subr.bf16.mxu1 %v16428_v36  ;;  %v1430_v49 = vld [vmem:[#allocation6 + $0x2870] sm:$0xff]  ;;  %v16275_v36 = vcombine.low %v1434_v14, %v1438_v54 }
 0x4bc   :  { %v1558_v56 = vld [vmem:[#allocation6 + $0x2c70] sm:$0xff]  ;;  %v16268_v57 = vcombine.high %v1426_v12, %v1430_v49  ;;  %v16267_v0 = vcombine.low %v1426_v12, %v1430_v49 }
 0x4bd   :  { %11305 = vmatpush1.bf16.msra.mxu0 %v16299_v24  ;;  %v16396_v15 = vcombine.high %v1554_v35, %v1558_v56  ;;  %v1418_v17 = vld [vmem:[#allocation6 + $0x2810] sm:$0xff] }
 0x4be   :  { %11346 = vmatpush1.bf16.msra.mxu1 %v16427_v46  ;;  %11306 = vmatprep.subr.bf16.mxu0 %v16292_v62  ;;  %v1422_v3 = vld [vmem:[#allocation6 + $0x2830] sm:$0xff]  ;;  %v16395_v46 = vcombine.low %v1554_v35, %v1558_v56 }
 0x4bf   :  { %11347 = vmatprep.subr.bf16.mxu1 %v16420_v50  ;;  %v1546_v13 = vld [vmem:[#allocation6 + $0x2c10] sm:$0xff]  ;;  %v16260_v62 = vcombine.high %v1418_v17, %v1422_v3  ;;  %v16259_v31 = vcombine.low %v1418_v17, %v1422_v3 }
 0x4c0   :  { %v1550_v24 = vld [vmem:[#allocation6 + $0x2c30] sm:$0xff] }
 0x4c1   :  { %11307 = vmatpush1.bf16.msra.mxu0 %v16291_v32  ;;  %v16388_v25 = vcombine.high %v1546_v13, %v1550_v24  ;;  %v1538_v50 = vld [vmem:[#allocation6 + $0x2bd0] sm:$0xff]  ;;  %v16387_v32 = vcombine.low %v1546_v13, %v1550_v24 }
 0x4c2   :  { %11348 = vmatpush1.bf16.msra.mxu1 %v16419_v1  ;;  %11308 = vmatprep.subr.bf16.mxu0 %v16284_v27  ;;  %v1542_v30 = vld [vmem:[#allocation6 + $0x2bf0] sm:$0xff] }
 0x4c3   :  { %11349 = vmatprep.subr.bf16.mxu1 %v16412_v34  ;;  %v1666_v9 = vld [vmem:[#allocation6 + $0x2fd0] sm:$0xff]  ;;  %v16380_v1 = vcombine.high %v1538_v50, %v1542_v30  ;;  %v16379_v5 = vcombine.low %v1538_v50, %v1542_v30 }
 0x4c4   :  { %v1670_v45 = vld [vmem:[#allocation6 + $0x2ff0] sm:$0xff] }
 0x4c5   :  { %11309 = vmatpush1.bf16.msra.mxu0 %v16283_v4  ;;  %v16508_v27 = vcombine.high %v1666_v9, %v1670_v45  ;;  %v1530_v34 = vld [vmem:[#allocation6 + $0x2b90] sm:$0xff]  ;;  %v16507_v4 = vcombine.low %v1666_v9, %v1670_v45 }
 0x4c6   :  { %11350 = vmatpush1.bf16.msra.mxu1 %v16411_v43  ;;  %11310 = vmatprep.subr.bf16.mxu0 %v16276_v37  ;;  %v1534_v14 = vld [vmem:[#allocation6 + $0x2bb0] sm:$0xff] }
 0x4c7   :  { %11351 = vmatprep.subr.bf16.mxu1 %v16404_v61  ;;  %v1658_v54 = vld [vmem:[#allocation6 + $0x2f90] sm:$0xff]  ;;  %v16372_v43 = vcombine.high %v1530_v34, %v1534_v14  ;;  %v16371_v56 = vcombine.low %v1530_v34, %v1534_v14 }
 0x4c8   :  { %v1662_v41 = vld [vmem:[#allocation6 + $0x2fb0] sm:$0xff] }
 0x4c9   :  { %11311 = vmatpush1.bf16.msra.mxu0 %v16275_v36  ;;  %v16500_v37 = vcombine.high %v1658_v54, %v1662_v41  ;;  %v1522_v61 = vld [vmem:[#allocation6 + $0x2b50] sm:$0xff]  ;;  %v16499_v36 = vcombine.low %v1658_v54, %v1662_v41 }
 0x4ca   :  { %11352 = vmatpush1.bf16.msra.mxu1 %v16403_v47  ;;  %11312 = vmatprep.subr.bf16.mxu0 %v16268_v57  ;;  %v1526_v12 = vld [vmem:[#allocation6 + $0x2b70] sm:$0xff] }
 0x4cb   :  { %11353 = vmatprep.subr.bf16.mxu1 %v16396_v15  ;;  %v1650_v49 = vld [vmem:[#allocation6 + $0x2f50] sm:$0xff]  ;;  %v16364_v47 = vcombine.high %v1522_v61, %v1526_v12  ;;  %v16363_v24 = vcombine.low %v1522_v61, %v1526_v12 }
 0x4cc   :  { %v1654_v35 = vld [vmem:[#allocation6 + $0x2f70] sm:$0xff] }
 0x4cd   :  { %11313 = vmatpush1.bf16.msra.mxu0 %v16267_v0  ;;  %v16492_v57 = vcombine.high %v1650_v49, %v1654_v35  ;;  %v1514_v15 = vld [vmem:[#allocation6 + $0x2b10] sm:$0xff]  ;;  %v16491_v0 = vcombine.low %v1650_v49, %v1654_v35 }
 0x4ce   :  { %11354 = vmatpush1.bf16.msra.mxu1 %v16395_v46  ;;  %11314 = vmatprep.subr.bf16.mxu0 %v16260_v62  ;;  %v1518_v17 = vld [vmem:[#allocation6 + $0x2b30] sm:$0xff] }
 0x4cf   :  { %11355 = vmatprep.subr.bf16.mxu1 %v16388_v25  ;;  %v1642_v3 = vld [vmem:[#allocation6 + $0x2f10] sm:$0xff]  ;;  %v16356_v46 = vcombine.high %v1514_v15, %v1518_v17  ;;  %v16355_v45 = vcombine.low %v1514_v15, %v1518_v17 }
 0x4d0   :  { %v1646_v13 = vld [vmem:[#allocation6 + $0x2f30] sm:$0xff] }
 0x4d1   :  { %11315 = vmatpush1.bf16.msra.mxu0 %v16259_v31  ;;  %v16484_v62 = vcombine.high %v1642_v3, %v1646_v13  ;;  %v1506_v25 = vld [vmem:[#allocation6 + $0x2ad0] sm:$0xff]  ;;  %v16483_v31 = vcombine.low %v1642_v3, %v1646_v13 }
 0x4d2   :  { %11356 = vmatpush1.bf16.msra.mxu1 %v16387_v32  ;;  %11316 = vmatprep.subr.bf16.mxu0 %v16380_v1  ;;  %v1510_v50 = vld [vmem:[#allocation6 + $0x2af0] sm:$0xff] }
 0x4d3   :  { %11357 = vmatprep.subr.bf16.mxu1 %v16508_v27  ;;  %v1634_v30 = vld [vmem:[#allocation6 + $0x2ed0] sm:$0xff]  ;;  %v16348_v32 = vcombine.high %v1506_v25, %v1510_v50  ;;  %v16347_v41 = vcombine.low %v1506_v25, %v1510_v50  ;;  %v195_v50 = vld [vmem:[#allocation6 + $0x1d8] sm:$0xff] }
 0x4d4   :  { %v1638_v9 = vld [vmem:[#allocation6 + $0x2ef0] sm:$0xff] }
 0x4d5   :  { %11317 = vmatpush2.bf16.msra.mxu0 %v16379_v5  ;;  %v16476_v1 = vcombine.high %v1634_v30, %v1638_v9  ;;  %v1498_v27 = vld [vmem:[#allocation6 + $0x2a90] sm:$0xff]  ;;  %v16475_v5 = vcombine.low %v1634_v30, %v1638_v9  ;;  %v199_v30 = vld [vmem:[#allocation6 + $0x1f8] sm:$0xff] }
 0x4d6   :  { %11358 = vmatpush2.bf16.msra.mxu1 %v16507_v4  ;;  %11318 = vmatprep.subr.bf16.mxu0 %v16372_v43  ;;  %v1502_v34 = vld [vmem:[#allocation6 + $0x2ab0] sm:$0xff] }
 0x4d7   :  { %11359 = vmatprep.subr.bf16.mxu1 %v16500_v37  ;;  %v1626_v14 = vld [vmem:[#allocation6 + $0x2e90] sm:$0xff]  ;;  %v16340_v4 = vcombine.high %v1498_v27, %v1502_v34  ;;  %v16339_v35 = vcombine.low %v1498_v27, %v1502_v34  ;;  %v187_v34 = vld [vmem:[#allocation6 + $0x198] sm:$0xff] }
 0x4d8   :  { %v1630_v54 = vld [vmem:[#allocation6 + $0x2eb0] sm:$0xff] }
 0x4d9   :  { %11319 = vmatpush2.bf16.msra.mxu0 %v16371_v56  ;;  %v16468_v43 = vcombine.high %v1626_v14, %v1630_v54  ;;  %v1490_v37 = vld [vmem:[#allocation6 + $0x2a50] sm:$0xff]  ;;  %v16467_v56 = vcombine.low %v1626_v14, %v1630_v54  ;;  %v191_v14 = vld [vmem:[#allocation6 + $0x1b8] sm:$0xff] }
 0x4da   :  { %11360 = vmatpush2.bf16.msra.mxu1 %v16499_v36  ;;  %11320 = vmatprep.subr.bf16.mxu0 %v16364_v47  ;;  %v1494_v61 = vld [vmem:[#allocation6 + $0x2a70] sm:$0xff] }
 0x4db   :  { %11361 = vmatprep.subr.bf16.mxu1 %v16492_v57  ;;  %v1618_v12 = vld [vmem:[#allocation6 + $0x2e50] sm:$0xff]  ;;  %v16332_v36 = vcombine.high %v1490_v37, %v1494_v61  ;;  %v16331_v13 = vcombine.low %v1490_v37, %v1494_v61 }
 0x4dc   :  { %v1622_v49 = vld [vmem:[#allocation6 + $0x2e70] sm:$0xff] }
 0x4dd   :  { %11321 = vmatpush2.bf16.msra.mxu0 %v16363_v24  ;;  %v16460_v47 = vcombine.high %v1618_v12, %v1622_v49  ;;  %v1482_v57 = vld [vmem:[#allocation6 + $0x2a10] sm:$0xff]  ;;  %v16459_v24 = vcombine.low %v1618_v12, %v1622_v49  ;;  %v179_v12 = vld [vmem:[#allocation6 + $0x158] sm:$0xff] }
 0x4de   :  { %11362 = vmatpush2.bf16.msra.mxu1 %v16491_v0  ;;  %11322 = vmatprep.subr.bf16.mxu0 %v16356_v46  ;;  %v1486_v15 = vld [vmem:[#allocation6 + $0x2a30] sm:$0xff]  ;;  %v183_v49 = vld [vmem:[#allocation6 + $0x178] sm:$0xff] }
 0x4df   :  { %11363 = vmatprep.subr.bf16.mxu1 %v16484_v62  ;;  %v1610_v17 = vld [vmem:[#allocation6 + $0x2e10] sm:$0xff]  ;;  %v16324_v0 = vcombine.high %v1482_v57, %v1486_v15  ;;  %v16323_v9 = vcombine.low %v1482_v57, %v1486_v15  ;;  %v15029_v57 = vcombine.low %v187_v34, %v191_v14 }
 0x4e0   :  { %v1614_v3 = vld [vmem:[#allocation6 + $0x2e30] sm:$0xff] }
 0x4e1   :  { %11323 = vmatpush2.bf16.msra.mxu0 %v16355_v45  ;;  %v16452_v46 = vcombine.high %v1610_v17, %v1614_v3  ;;  %v1730_v62 = vld [vmem:[#allocation6 + $0x31d0] sm:$0xff]  ;;  %v16451_v45 = vcombine.low %v1610_v17, %v1614_v3 }
 0x4e2   :  { %11364 = vmatpush2.bf16.msra.mxu1 %v16483_v31  ;;  %11324 = vmatprep.subr.bf16.mxu0 %v16348_v32  ;;  %v1734_v25 = vld [vmem:[#allocation6 + $0x31f0] sm:$0xff]  ;;  %v15038_v32 = vcombine.high %v195_v50, %v199_v30 }
 0x4e3   :  { %11365 = vmatprep.subr.bf16.mxu1 %v16476_v1  ;;  %v16572_v31 = vcombine.high %v1730_v62, %v1734_v25  ;;  %v1722_v1 = vld [vmem:[#allocation6 + $0x3190] sm:$0xff]  ;;  %v16571_v54 = vcombine.low %v1730_v62, %v1734_v25  ;;  %v171_v62 = vld [vmem:[#allocation6 + $0x118] sm:$0xff] }
 0x4e4   :  { %v1726_v27 = vld [vmem:[#allocation6 + $0x31b0] sm:$0xff]  ;;  %v175_v25 = vld [vmem:[#allocation6 + $0x138] sm:$0xff] }
 0x4e5   :  { %11325 = vmatpush2.bf16.msra.mxu0 %v16347_v41  ;;  %v15037_v41 = vcombine.low %v195_v50, %v199_v30  ;;  %v1718_v37 = vld [vmem:[#allocation6 + $0x3170] sm:$0xff] }
 0x4e6   :  { %11366 = vmatpush2.bf16.msra.mxu1 %v16475_v5  ;;  %11326 = vmatprep.subr.bf16.mxu0 %v16340_v4  ;;  %v16564_v5 = vcombine.high %v1722_v1, %v1726_v27  ;;  %v15030_v4 = vcombine.high %v187_v34, %v191_v14  ;;  %v1702_v34 = vld [vmem:[#allocation6 + $0x30f0] sm:$0xff]  ;;  %v163_v14 = vld [vmem:[#allocation6 + $0xd8] sm:$0xff] }
 0x4e7   :  { %11367 = vmatprep.subr.bf16.mxu1 %v16468_v43  ;;  %v1714_v43 = vld [vmem:[#allocation6 + $0x3150] sm:$0xff] }
 0x4e8   :  { %v16556_v15 = vcombine.high %v1714_v43, %v1718_v37 }
 0x4e9   :  { %11327 = vmatpush2.bf16.msra.mxu0 %v16339_v35 }
 0x4ea   :  { %11368 = vmatpush2.bf16.msra.mxu1 %v16467_v56  ;;  %11328 = vmatprep.subr.bf16.mxu0 %v16332_v36  ;;  %v16563_v36 = vcombine.low %v1722_v1, %v1726_v27  ;;  %v15014_v1 = vcombine.high %v171_v62, %v175_v25  ;;  %v1698_v27 = vld [vmem:[#allocation6 + $0x30d0] sm:$0xff] }
 0x4eb   :  { %11369 = vmatprep.subr.bf16.mxu1 %v16460_v47 }
 0x4ed   :  { %11329 = vmatpush2.bf16.msra.mxu0 %v16331_v13 }
 0x4ee   :  { %11370 = vmatpush2.bf16.msra.mxu1 %v16459_v24  ;;  %11330 = vmatprep.subr.bf16.mxu0 %v16324_v0  ;;  %v15022_v24 = vcombine.high %v179_v12, %v183_v49  ;;  %v1706_v0 = vld [vmem:[#allocation6 + $0x3110] sm:$0xff] }
 0x4ef   :  { %11371 = vmatprep.subr.bf16.mxu1 %v16452_v46  ;;  %v1710_v46 = vld [vmem:[#allocation6 + $0x3130] sm:$0xff] }
 0x4f1   :  { %11331 = vmatpush2.bf16.msra.mxu0 %v16323_v9  ;;  %v16555_v9 = vcombine.low %v1714_v43, %v1718_v37  ;;  %v1690_v43 = vld [vmem:[#allocation6 + $0x3090] sm:$0xff] }
 0x4f2   :  { %11372 = vmatpush2.bf16.msra.mxu1 %v16451_v45  ;;  %11382 = vmatprep.subr.bf16.mxu0 %v16572_v31  ;;  %v16548_v31 = vcombine.high %v1706_v0, %v1710_v46  ;;  %v1694_v37 = vld [vmem:[#allocation6 + $0x30b0] sm:$0xff] }
 0x4f3   :  { %11423 = vmatprep.subr.bf16.mxu1 %v15038_v32 }
 0x4f4   :  { %v11088_v61 = vpop.f32.mrf.mxu0  ;;  %11333 = vmatmul.mubr.bf16.vlgmr.msra.gmra.mxu0 %v17942_v44 }
 0x4f5   :  { %v11089_v35 = vadd.f32 %v11088_v61, %v18101_v55  ;;  %v11129_v56 = vpop.f32.mrf.mxu1  ;;  %11374 = vmatmul.mubr.bf16.vlgmr.msra.gmra.mxu1 %v17946_v48  ;;  %11383 = vmatpush1.bf16.msra.mxu0 %v16571_v54  ;;  %v167_v54 = vld [vmem:[#allocation6 + $0xf8] sm:$0xff] }
 0x4f6   :  { %11424 = vmatpush1.bf16.msra.mxu1 %v15037_v41  ;;  %v11090_v47 = vpop.f32.mrf.mxu0  ;;  %11384 = vmatprep.subr.bf16.mxu0 %v16564_v5  ;;  %v16547_v41 = vcombine.low %v1706_v0, %v1710_v46  ;;  %v16540_v5 = vcombine.high %v1698_v27, %v1702_v34  ;;  %v155_v61 = vld [vmem:[#allocation6 + $0x98] sm:$0xff] }
 0x4f7   :  { %v18111_v17 = vadd.f32 %v11129_v56, %v11089_v35  ;;  %v11091_v3 = vadd.f32 %v11090_v47, %v18106_v18  ;;  %v11131_v13 = vpop.f32.mrf.mxu1  ;;  %11425 = vmatprep.subr.bf16.mxu1 %v15030_v4  ;;  %11414 = vmatprep.mubr.bf16.mxu0 %v17741_v33  ;;  %v15021_v18 = vcombine.low %v179_v12, %v183_v49  ;;  %v159_v12 = vld [vmem:[#allocation6 + $0xb8] sm:$0xff]  ;;  %v1682_v47 = vld [vmem:[#allocation6 + $0x3050] sm:$0xff] }
 0x4f8   :  { %v11092_v55 = vpop.f32.mrf.mxu0  ;;  %11455 = vmatprep.mubr.bf16.mxu1 %v17802_v58  ;;  %v15013_v58 = vcombine.low %v171_v62, %v175_v25  ;;  %v15006_v4 = vcombine.high %v163_v14, %v167_v54  ;;  %v16539_v49 = vcombine.low %v1698_v27, %v1702_v34  ;;  %v15005_v35 = vcombine.low %v163_v14, %v167_v54  ;;  %v1678_v62 = vld [vmem:[#allocation6 + $0x3030] sm:$0xff]  ;;  %v139_v25 = vld [vmem:[#allocation6 + $0x18] sm:$0xff] }
 0x4f9   :  { %v18116_v50 = vadd.f32 %v11131_v13, %v11091_v3  ;;  %v11133_v30 = vpop.f32.mrf.mxu1  ;;  %11385 = vmatpush1.bf16.msra.mxu0 %v16563_v36  ;;  %v16532_v56 = vcombine.high %v1690_v43, %v1694_v37  ;;  %v14998_v36 = vcombine.high %v155_v61, %v159_v12  ;;  %v151_v3 = vld [vmem:[#allocation6 + $0x78] sm:$0xff]  ;;  %v16531_v13 = vcombine.low %v1690_v43, %v1694_v37  ;;  %v1674_v55 = vld [vmem:[#allocation6 + $0x3010] sm:$0xff] }
 0x4fa   :  { %11426 = vmatpush1.bf16.msra.mxu1 %v15029_v57  ;;  %v11093_v45 = vpop.f32.mrf.mxu0  ;;  %11386 = vmatprep.subr.bf16.mxu0 %v16556_v15  ;;  %v1686_v57 = vld [vmem:[#allocation6 + $0x3070] sm:$0xff]  ;;  %v147_v15 = vld [vmem:[#allocation6 + $0x58] sm:$0xff]  ;;  %v16515_v14 = vcombine.low %v1674_v55, %v1678_v62 }
 0x4fb   :  { %v11134_v32 = vpop.f32.mrf.mxu1  ;;  %11427 = vmatprep.subr.bf16.mxu1 %v15022_v24  ;;  %v14997_v24 = vcombine.low %v155_v61, %v159_v12  ;;  %v16524_v0 = vcombine.high %v1682_v47, %v1686_v57  ;;  %v14990_v46 = vcombine.high %v147_v15, %v151_v3  ;;  %v143_v30 = vld [vmem:[#allocation6 + $0x38] sm:$0xff]  ;;  %v14989_v45 = vcombine.low %v147_v15, %v151_v3 }
 0x4fc   :  { %v323_v32 = vld [vmem:[#allocation6 + $0x5d8] sm:$0xff]  ;;  %v14981_v54 = vcombine.low %v139_v25, %v143_v30 }
 0x4fd   :  { %11387 = vmatpush1.bf16.msra.mxu0 %v16555_v9  ;;  %v16523_v9 = vcombine.low %v1682_v47, %v1686_v57  ;;  %v259_v27 = vld [vmem:[#allocation6 + $0x3d8] sm:$0xff] }
 0x4fe   :  { %11428 = vmatpush1.bf16.msra.mxu1 %v15021_v18  ;;  %11388 = vmatprep.subr.bf16.mxu0 %v16548_v31  ;;  %v16516_v18 = vcombine.high %v1674_v55, %v1678_v62  ;;  %v14982_v31 = vcombine.high %v139_v25, %v143_v30  ;;  %v263_v34 = vld [vmem:[#allocation6 + $0x3f8] sm:$0xff] }
 0x4ff   :  { %11429 = vmatprep.subr.bf16.mxu1 %v15014_v1  ;;  %v327_v1 = vld [vmem:[#allocation6 + $0x5f8] sm:$0xff]  ;;  %v15101_v12 = vcombine.low %v259_v27, %v263_v34 }
 0x500   :  { %v251_v43 = vld [vmem:[#allocation6 + $0x398] sm:$0xff]  ;;  %v15165_v61 = vcombine.low %v323_v32, %v327_v1 }
 0x501   :  { %11389 = vmatpush1.bf16.msra.mxu0 %v16547_v41  ;;  %v15166_v41 = vcombine.high %v323_v32, %v327_v1  ;;  %v255_v37 = vld [vmem:[#allocation6 + $0x3b8] sm:$0xff] }
 0x502   :  { %11430 = vmatpush1.bf16.msra.mxu1 %v15013_v58  ;;  %11390 = vmatprep.subr.bf16.mxu0 %v16540_v5  ;;  %v15102_v58 = vcombine.high %v259_v27, %v263_v34  ;;  %v315_v5 = vld [vmem:[#allocation6 + $0x598] sm:$0xff] }
 0x503   :  { %11431 = vmatprep.subr.bf16.mxu1 %v15006_v4  ;;  %v319_v4 = vld [vmem:[#allocation6 + $0x5b8] sm:$0xff] }
 0x504   :  { %v17577_v47 = vld [vmem:[#allocation3 + $0x60] ss:$0 sps:$4 sm:$0xff]   ;;  %v15157_v3 = vcombine.low %v315_v5, %v319_v4 }
 0x505   :  { %11391 = vmatpush1.bf16.msra.mxu0 %v16539_v49  ;;  %v15158_v49 = vcombine.high %v315_v5, %v319_v4  ;;  %v243_v57 = vld [vmem:[#allocation6 + $0x358] sm:$0xff] }
 0x506   :  { %11432 = vmatpush1.bf16.msra.mxu1 %v15005_v35  ;;  %11392 = vmatprep.subr.bf16.mxu0 %v16532_v56  ;;  %v15094_v35 = vcombine.high %v251_v43, %v255_v37  ;;  %v307_v56 = vld [vmem:[#allocation6 + $0x558] sm:$0xff] }
 0x507   :  { %11433 = vmatprep.subr.bf16.mxu1 %v14998_v36  ;;  %v311_v36 = vld [vmem:[#allocation6 + $0x578] sm:$0xff] }
 0x508   :  { %v247_v15 = vld [vmem:[#allocation6 + $0x378] sm:$0xff]  ;;  %v15149_v30 = vcombine.low %v307_v56, %v311_v36 }
 0x509   :  { %11393 = vmatpush1.bf16.msra.mxu0 %v16531_v13  ;;  %v15093_v13 = vcombine.low %v251_v43, %v255_v37  ;;  %v303_v55 = vld [vmem:[#allocation6 + $0x538] sm:$0xff] }
 0x50a   :  { %11434 = vmatpush1.bf16.msra.mxu1 %v14997_v24  ;;  %11394 = vmatprep.subr.bf16.mxu0 %v16524_v0  ;;  %v15150_v24 = vcombine.high %v307_v56, %v311_v36  ;;  %v15086_v0 = vcombine.high %v243_v57, %v247_v15  ;;  %v235_v62 = vld [vmem:[#allocation6 + $0x318] sm:$0xff] }
 0x50b   :  { %11435 = vmatprep.subr.bf16.mxu1 %v14990_v46  ;;  %v299_v46 = vld [vmem:[#allocation6 + $0x518] sm:$0xff] }
 0x50c   :  { %v239_v25 = vld [vmem:[#allocation6 + $0x338] sm:$0xff]  ;;  %v15141_v27 = vcombine.low %v299_v46, %v303_v55 }
 0x50d   :  { %11395 = vmatpush1.bf16.msra.mxu0 %v16523_v9  ;;  %v15085_v9 = vcombine.low %v243_v57, %v247_v15  ;;  %v227_v32 = vld [vmem:[#allocation6 + $0x2d8] sm:$0xff]  ;;  %v15077_v34 = vcombine.low %v235_v62, %v239_v25 }
 0x50e   :  { %11436 = vmatpush1.bf16.msra.mxu1 %v14989_v45  ;;  %11396 = vmatprep.subr.bf16.mxu0 %v16516_v18  ;;  %v15142_v45 = vcombine.high %v299_v46, %v303_v55  ;;  %v15078_v18 = vcombine.high %v235_v62, %v239_v25  ;;  %v231_v1 = vld [vmem:[#allocation6 + $0x2f8] sm:$0xff] }
 0x50f   :  { %11437 = vmatprep.subr.bf16.mxu1 %v14982_v31  ;;  %v291_v31 = vld [vmem:[#allocation6 + $0x4d8] sm:$0xff]  ;;  %v15069_v37 = vcombine.low %v227_v32, %v231_v1 }
 0x510   :  { %v219_v5 = vld [vmem:[#allocation6 + $0x298] sm:$0xff] }
 0x511   :  { %11397 = vmatpush1.bf16.msra.mxu0 %v16515_v14  ;;  %v223_v4 = vld [vmem:[#allocation6 + $0x2b8] sm:$0xff] }
 0x512   :  { %11438 = vmatpush1.bf16.msra.mxu1 %v14981_v54  ;;  %11464 = vmatprep.subr.bf16.mxu0 %v15166_v41  ;;  %v15070_v54 = vcombine.high %v227_v32, %v231_v1  ;;  %v283_v41 = vld [vmem:[#allocation6 + $0x498] sm:$0xff]  ;;  %v15061_v57 = vcombine.low %v219_v5, %v223_v4 }
 0x513   :  { %11439 = vmatprep.subr.bf16.mxu1 %v15102_v58  ;;  %v287_v58 = vld [vmem:[#allocation6 + $0x4b8] sm:$0xff] }
 0x514   :  { %11415 = vmatmul.mubr.bf16.vlgmr.msra.gmra.mxu0 %v17577_v47  ;;  %v211_v56 = vld [vmem:[#allocation6 + $0x258] sm:$0xff]  ;;  %v15125_v47 = vcombine.low %v283_v41, %v287_v58 }
 0x515   :  { %11465 = vmatpush1.bf16.msra.mxu0 %v15165_v61  ;;  %11496 = vmatprep.mubr.bf16.mxu0 %v17806_v59  ;;  %v295_v59 = vld [vmem:[#allocation6 + $0x4f8] sm:$0xff]  ;;  %v15126_v61 = vcombine.high %v283_v41, %v287_v58 }
 0x516   :  { %11440 = vmatpush2.bf16.msra.mxu1 %v15101_v12  ;;  %11466 = vmatprep.subr.bf16.mxu0 %v15158_v49  ;;  %v15134_v14 = vcombine.high %v291_v31, %v295_v59  ;;  %v15133_v43 = vcombine.low %v291_v31, %v295_v59  ;;  %v15062_v12 = vcombine.high %v219_v5, %v223_v4  ;;  %v275_v49 = vld [vmem:[#allocation6 + $0x458] sm:$0xff] }
 0x517   :  { %11441 = vmatprep.subr.bf16.mxu1 %v15094_v35  ;;  %v279_v35 = vld [vmem:[#allocation6 + $0x478] sm:$0xff] }
 0x518   :  { %v215_v36 = vld [vmem:[#allocation6 + $0x278] sm:$0xff]  ;;  %v15118_v15 = vcombine.high %v275_v49, %v279_v35  ;;  %v15117_v55 = vcombine.low %v275_v49, %v279_v35 }
 0x519   :  { %11467 = vmatpush1.bf16.msra.mxu0 %v15157_v3  ;;  %v15054_v3 = vcombine.high %v211_v56, %v215_v36  ;;  %v207_v46 = vld [vmem:[#allocation6 + $0x238] sm:$0xff]  ;;  %v15053_v62 = vcombine.low %v211_v56, %v215_v36 }
 0x51a   :  { %11442 = vmatpush2.bf16.msra.mxu1 %v15093_v13  ;;  %11468 = vmatprep.subr.bf16.mxu0 %v15150_v24  ;;  %v267_v13 = vld [vmem:[#allocation6 + $0x418] sm:$0xff] }
 0x51b   :  { %11443 = vmatprep.subr.bf16.mxu1 %v15086_v0  ;;  %v271_v24 = vld [vmem:[#allocation6 + $0x438] sm:$0xff] }
 0x51c   :  { %v203_v0 = vld [vmem:[#allocation6 + $0x218] sm:$0xff]  ;;  %v15110_v25 = vcombine.high %v267_v13, %v271_v24  ;;  %v15109_v59 = vcombine.low %v267_v13, %v271_v24 }
 0x51d   :  { %11469 = vmatpush1.bf16.msra.mxu0 %v15149_v30  ;;  %v15046_v30 = vcombine.high %v203_v0, %v207_v46  ;;  %v455_v31 = vld [vmem:[#allocation6 + $0x9f8] sm:$0xff]  ;;  %v15045_v32 = vcombine.low %v203_v0, %v207_v46 }
 0x51e   :  { %11444 = vmatpush2.bf16.msra.mxu1 %v15085_v9  ;;  %11470 = vmatprep.subr.bf16.mxu0 %v15142_v45  ;;  %v387_v9 = vld [vmem:[#allocation6 + $0x7d8] sm:$0xff] }
 0x51f   :  { %11445 = vmatprep.subr.bf16.mxu1 %v15078_v18  ;;  %v391_v45 = vld [vmem:[#allocation6 + $0x7f8] sm:$0xff] }
 0x520   :  { %v451_v18 = vld [vmem:[#allocation6 + $0x9d8] sm:$0xff]  ;;  %v15230_v1 = vcombine.high %v387_v9, %v391_v45  ;;  %v15229_v58 = vcombine.low %v387_v9, %v391_v45 }
 0x521   :  { %11471 = vmatpush1.bf16.msra.mxu0 %v15141_v27  ;;  %v15294_v27 = vcombine.high %v451_v18, %v455_v31  ;;  %v447_v41 = vld [vmem:[#allocation6 + $0x9b8] sm:$0xff]  ;;  %v15293_v5 = vcombine.low %v451_v18, %v455_v31 }
 0x522   :  { %11446 = vmatpush2.bf16.msra.mxu1 %v15077_v34  ;;  %11472 = vmatprep.subr.bf16.mxu0 %v15134_v14  ;;  %v379_v34 = vld [vmem:[#allocation6 + $0x798] sm:$0xff] }
 0x523   :  { %11447 = vmatprep.subr.bf16.mxu1 %v15070_v54  ;;  %v383_v14 = vld [vmem:[#allocation6 + $0x7b8] sm:$0xff] }
 0x524   :  { %v443_v54 = vld [vmem:[#allocation6 + $0x998] sm:$0xff]  ;;  %v15222_v4 = vcombine.high %v379_v34, %v383_v14 }
 0x525   :  { %11473 = vmatpush1.bf16.msra.mxu0 %v15133_v43  ;;  %v15286_v43 = vcombine.high %v443_v54, %v447_v41  ;;  %v435_v49 = vld [vmem:[#allocation6 + $0x958] sm:$0xff] }
 0x526   :  { %11448 = vmatpush2.bf16.msra.mxu1 %v15069_v37  ;;  %11474 = vmatprep.subr.bf16.mxu0 %v15126_v61  ;;  %v371_v37 = vld [vmem:[#allocation6 + $0x758] sm:$0xff] }
 0x527   :  { %11449 = vmatprep.subr.bf16.mxu1 %v15062_v12  ;;  %v375_v61 = vld [vmem:[#allocation6 + $0x778] sm:$0xff] }
 0x528   :  { %v439_v35 = vld [vmem:[#allocation6 + $0x978] sm:$0xff]  ;;  %v15213_v45 = vcombine.low %v371_v37, %v375_v61 }
 0x529   :  { %11475 = vmatpush1.bf16.msra.mxu0 %v15125_v47  ;;  %v15221_v47 = vcombine.low %v379_v34, %v383_v14  ;;  %v15278_v46 = vcombine.high %v435_v49, %v439_v35  ;;  %v15277_v31 = vcombine.low %v435_v49, %v439_v35  ;;  %v419_v34 = vld [vmem:[#allocation6 + $0x8d8] sm:$0xff] }
 0x52a   :  { %11450 = vmatpush2.bf16.msra.mxu1 %v15061_v57  ;;  %11476 = vmatprep.subr.bf16.mxu0 %v15118_v15  ;;  %v15285_v15 = vcombine.low %v443_v54, %v447_v41 }
 0x52b   :  { %11451 = vmatprep.subr.bf16.mxu1 %v15054_v3  ;;  %v15214_v3 = vcombine.high %v371_v37, %v375_v61  ;;  %v415_v37 = vld [vmem:[#allocation6 + $0x8b8] sm:$0xff] }
 0x52d   :  { %11477 = vmatpush1.bf16.msra.mxu0 %v15117_v55  ;;  %v363_v55 = vld [vmem:[#allocation6 + $0x718] sm:$0xff] }
 0x52e   :  { %11452 = vmatpush2.bf16.msra.mxu1 %v15053_v62  ;;  %11478 = vmatprep.subr.bf16.mxu0 %v15110_v25  ;;  %v367_v62 = vld [vmem:[#allocation6 + $0x738] sm:$0xff] }
 0x52f   :  { %11453 = vmatprep.subr.bf16.mxu1 %v15046_v30  ;;  %v431_v25 = vld [vmem:[#allocation6 + $0x938] sm:$0xff]  ;;  %v15205_v14 = vcombine.low %v363_v55, %v367_v62 }
 0x531   :  { %11479 = vmatpush1.bf16.msra.mxu0 %v15109_v59 }
 0x532   :  { %11454 = vmatpush2.bf16.msra.mxu1 %v15045_v32  ;;  %11480 = vmatprep.subr.bf16.mxu0 %v15230_v1  ;;  %v355_v1 = vld [vmem:[#allocation6 + $0x6d8] sm:$0xff] }
 0x533   :  { %11505 = vmatprep.subr.bf16.mxu1 %v15294_v27  ;;  %v359_v27 = vld [vmem:[#allocation6 + $0x6f8] sm:$0xff] }
 0x534   :  { %v11170_v12 = vpop.f32.mrf.mxu0  ;;  %v15198_v41 = vcombine.high %v355_v1, %v359_v27  ;;  %v15197_v61 = vcombine.low %v355_v1, %v359_v27 }
 0x535   :  { %v11171_v56 = vadd.f32 %v11170_v12, %v18111_v17  ;;  %v11211_v36 = vpop.f32.mrf.mxu1  ;;  %11456 = vmatmul.mubr.bf16.vlgmr.msra.gmra.mxu1 %v17812_v16  ;;  %11481 = vmatpush2.bf16.msra.mxu0 %v15229_v58  ;;  %v427_v16 = vld [vmem:[#allocation6 + $0x918] sm:$0xff] }
 0x536   :  { %11506 = vmatpush1.bf16.msra.mxu1 %v15293_v5  ;;  %v11172_v57 = vpop.f32.mrf.mxu0  ;;  %11482 = vmatprep.subr.bf16.mxu0 %v15222_v4  ;;  %v15270_v32 = vcombine.high %v427_v16, %v431_v25  ;;  %v15269_v54 = vcombine.low %v427_v16, %v431_v25  ;;  %v347_v5 = vld [vmem:[#allocation6 + $0x698] sm:$0xff] }
 0x537   :  { %v18121_v13 = vadd.f32 %v11211_v36, %v11171_v56  ;;  %v11173_v24 = vadd.f32 %v11172_v57, %v18116_v50  ;;  %v11213_v0 = vpop.f32.mrf.mxu1  ;;  %11507 = vmatprep.subr.bf16.mxu1 %v15286_v43  ;;  %11537 = vmatprep.mubr.bf16.mxu1 %v17824_v28  ;;  %v15206_v50 = vcombine.high %v363_v55, %v367_v62  ;;  %v423_v28 = vld [vmem:[#allocation6 + $0x8f8] sm:$0xff] }
 0x538   :  { %v11174_v17 = vpop.f32.mrf.mxu0  ;;  %v15262_v58 = vcombine.high %v419_v34, %v423_v28  ;;  %v351_v4 = vld [vmem:[#allocation6 + $0x6b8] sm:$0xff]  ;;  %v15261_v12 = vcombine.low %v419_v34, %v423_v28 }
 0x539   :  { %v18125_v30 = vadd.f32 %v11213_v0, %v11173_v24  ;;  %v11215_v9 = vpop.f32.mrf.mxu1  ;;  %11483 = vmatpush2.bf16.msra.mxu0 %v15221_v47  ;;  %v411_v43 = vld [vmem:[#allocation6 + $0x898] sm:$0xff]  ;;  %v15190_v49 = vcombine.high %v347_v5, %v351_v4 }
 0x53a   :  { %11508 = vmatpush1.bf16.msra.mxu1 %v15285_v15  ;;  %v11175_v18 = vpop.f32.mrf.mxu0  ;;  %11484 = vmatprep.subr.bf16.mxu0 %v15214_v3  ;;  %v15254_v35 = vcombine.high %v411_v43, %v415_v37  ;;  %v339_v56 = vld [vmem:[#allocation6 + $0x658] sm:$0xff]  ;;  %v15189_v15 = vcombine.low %v347_v5, %v351_v4  ;;  %v15253_v3 = vcombine.low %v411_v43, %v415_v37 }
 0x53b   :  { %v11216_v59 = vpop.f32.mrf.mxu1  ;;  %11509 = vmatprep.subr.bf16.mxu1 %v15278_v46  ;;  %v343_v36 = vld [vmem:[#allocation6 + $0x678] sm:$0xff] }
 0x53c   :  { %v403_v47 = vld [vmem:[#allocation6 + $0x858] sm:$0xff]  ;;  %v15182_v24 = vcombine.high %v339_v56, %v343_v36  ;;  %v15181_v16 = vcombine.low %v339_v56, %v343_v36 }
 0x53d   :  { %11485 = vmatpush2.bf16.msra.mxu0 %v15213_v45  ;;  %v407_v57 = vld [vmem:[#allocation6 + $0x878] sm:$0xff] }
 0x53e   :  { %11510 = vmatpush1.bf16.msra.mxu1 %v15277_v31  ;;  %11486 = vmatprep.subr.bf16.mxu0 %v15206_v50  ;;  %v15246_v0 = vcombine.high %v403_v47, %v407_v57  ;;  %v331_v46 = vld [vmem:[#allocation6 + $0x618] sm:$0xff]  ;;  %v15245_v25 = vcombine.low %v403_v47, %v407_v57 }
 0x53f   :  { %11511 = vmatprep.subr.bf16.mxu1 %v15270_v32  ;;  %v335_v55 = vld [vmem:[#allocation6 + $0x638] sm:$0xff] }
 0x540   :  { %v395_v62 = vld [vmem:[#allocation6 + $0x818] sm:$0xff]  ;;  %v15174_v9 = vcombine.high %v331_v46, %v335_v55  ;;  %v15173_v32 = vcombine.low %v331_v46, %v335_v55 }
 0x541   :  { %11487 = vmatpush2.bf16.msra.mxu0 %v15205_v14  ;;  %v399_v17 = vld [vmem:[#allocation6 + $0x838] sm:$0xff] }
 0x542   :  { %11512 = vmatpush1.bf16.msra.mxu1 %v15269_v54  ;;  %11488 = vmatprep.subr.bf16.mxu0 %v15198_v41  ;;  %v15238_v45 = vcombine.high %v395_v62, %v399_v17  ;;  %v579_v18 = vld [vmem:[#allocation6 + $0xdd8] sm:$0xff]  ;;  %v15237_v1 = vcombine.low %v395_v62, %v399_v17 }
 0x543   :  { %11513 = vmatprep.subr.bf16.mxu1 %v15262_v58  ;;  %v583_v31 = vld [vmem:[#allocation6 + $0xdf8] sm:$0xff] }
 0x544   :  { %v515_v50 = vld [vmem:[#allocation6 + $0xbd8] sm:$0xff]  ;;  %v15422_v27 = vcombine.high %v579_v18, %v583_v31  ;;  %v15421_v58 = vcombine.low %v579_v18, %v583_v31 }
 0x545   :  { %11489 = vmatpush2.bf16.msra.mxu0 %v15197_v61  ;;  %v519_v59 = vld [vmem:[#allocation6 + $0xbf8] sm:$0xff] }
 0x546   :  { %11514 = vmatpush1.bf16.msra.mxu1 %v15261_v12  ;;  %11490 = vmatprep.subr.bf16.mxu0 %v15190_v49  ;;  %v15358_v34 = vcombine.high %v515_v50, %v519_v59  ;;  %v571_v28 = vld [vmem:[#allocation6 + $0xd98] sm:$0xff]  ;;  %v15357_v5 = vcombine.low %v515_v50, %v519_v59 }
 0x547   :  { %11515 = vmatprep.subr.bf16.mxu1 %v15254_v35  ;;  %v575_v14 = vld [vmem:[#allocation6 + $0xdb8] sm:$0xff] }
 0x548   :  { %v507_v54 = vld [vmem:[#allocation6 + $0xb98] sm:$0xff]  ;;  %v15414_v4 = vcombine.high %v571_v28, %v575_v14  ;;  %v15413_v35 = vcombine.low %v571_v28, %v575_v14 }
 0x549   :  { %11491 = vmatpush2.bf16.msra.mxu0 %v15189_v15  ;;  %v511_v41 = vld [vmem:[#allocation6 + $0xbb8] sm:$0xff] }
 0x54a   :  { %11516 = vmatpush1.bf16.msra.mxu1 %v15253_v3  ;;  %11492 = vmatprep.subr.bf16.mxu0 %v15182_v24  ;;  %v15350_v43 = vcombine.high %v507_v54, %v511_v41  ;;  %v563_v37 = vld [vmem:[#allocation6 + $0xd58] sm:$0xff]  ;;  %v15349_v56 = vcombine.low %v507_v54, %v511_v41 }
 0x54b   :  { %11517 = vmatprep.subr.bf16.mxu1 %v15246_v0  ;;  %v567_v61 = vld [vmem:[#allocation6 + $0xd78] sm:$0xff] }
 0x54c   :  { %v499_v12 = vld [vmem:[#allocation6 + $0xb58] sm:$0xff]  ;;  %v15406_v36 = vcombine.high %v563_v37, %v567_v61  ;;  %v15405_v0 = vcombine.low %v563_v37, %v567_v61 }
 0x54d   :  { %11493 = vmatpush2.bf16.msra.mxu0 %v15181_v16  ;;  %v503_v49 = vld [vmem:[#allocation6 + $0xb78] sm:$0xff] }
 0x54e   :  { %11518 = vmatpush1.bf16.msra.mxu1 %v15245_v25  ;;  %11494 = vmatprep.subr.bf16.mxu0 %v15174_v9  ;;  %v15342_v47 = vcombine.high %v499_v12, %v503_v49  ;;  %v555_v57 = vld [vmem:[#allocation6 + $0xd18] sm:$0xff] }
 0x54f   :  { %11519 = vmatprep.subr.bf16.mxu1 %v15238_v45  ;;  %v559_v15 = vld [vmem:[#allocation6 + $0xd38] sm:$0xff] }
 0x550   :  { %v491_v3 = vld [vmem:[#allocation6 + $0xb18] sm:$0xff]  ;;  %v15398_v46 = vcombine.high %v555_v57, %v559_v15  ;;  %v15397_v25 = vcombine.low %v555_v57, %v559_v15 }
 0x551   :  { %11495 = vmatpush2.bf16.msra.mxu0 %v15173_v32  ;;  %v495_v24 = vld [vmem:[#allocation6 + $0xb38] sm:$0xff] }
 0x552   :  { %11520 = vmatpush1.bf16.msra.mxu1 %v15237_v1  ;;  %11546 = vmatprep.subr.bf16.mxu0 %v15422_v27  ;;  %v15334_v55 = vcombine.high %v491_v3, %v495_v24  ;;  %v547_v62 = vld [vmem:[#allocation6 + $0xcd8] sm:$0xff]  ;;  %v15333_v9 = vcombine.low %v491_v3, %v495_v24 }
 0x553   :  { %11521 = vmatprep.subr.bf16.mxu1 %v15358_v34  ;;  %v483_v17 = vld [vmem:[#allocation6 + $0xad8] sm:$0xff] }
 0x554   :  { %11497 = vmatmul.mubr.bf16.vlgmr.msra.gmra.mxu0 %v17818_v20  ;;  %v15341_v20 = vcombine.low %v499_v12, %v503_v49  ;;  %v487_v16 = vld [vmem:[#allocation6 + $0xaf8] sm:$0xff] }
 0x555   :  { %11547 = vmatpush1.bf16.msra.mxu0 %v15421_v58  ;;  %11578 = vmatprep.mubr.bf16.mxu0 %v17829_v29  ;;  %v551_v29 = vld [vmem:[#allocation6 + $0xcf8] sm:$0xff]  ;;  %v15326_v18 = vcombine.high %v483_v17, %v487_v16  ;;  %v15325_v27 = vcombine.low %v483_v17, %v487_v16 }
 0x556   :  { %11522 = vmatpush2.bf16.msra.mxu1 %v15357_v5  ;;  %11548 = vmatprep.subr.bf16.mxu0 %v15414_v4  ;;  %v15390_v45 = vcombine.high %v547_v62, %v551_v29  ;;  %v539_v31 = vld [vmem:[#allocation6 + $0xc98] sm:$0xff]  ;;  %v15389_v1 = vcombine.low %v547_v62, %v551_v29 }
 0x557   :  { %11523 = vmatprep.subr.bf16.mxu1 %v15350_v43  ;;  %v543_v50 = vld [vmem:[#allocation6 + $0xcb8] sm:$0xff] }
 0x558   :  { %v475_v59 = vld [vmem:[#allocation6 + $0xa98] sm:$0xff]  ;;  %v15382_v34 = vcombine.high %v539_v31, %v543_v50  ;;  %v15381_v5 = vcombine.low %v539_v31, %v543_v50 }
 0x559   :  { %11549 = vmatpush1.bf16.msra.mxu0 %v15413_v35  ;;  %v479_v32 = vld [vmem:[#allocation6 + $0xab8] sm:$0xff] }
 0x55a   :  { %11524 = vmatpush2.bf16.msra.mxu1 %v15349_v56  ;;  %11550 = vmatprep.subr.bf16.mxu0 %v15406_v36  ;;  %v15318_v28 = vcombine.high %v475_v59, %v479_v32  ;;  %v531_v14 = vld [vmem:[#allocation6 + $0xc58] sm:$0xff]  ;;  %v15317_v4 = vcombine.low %v475_v59, %v479_v32 }
 0x55b   :  { %11525 = vmatprep.subr.bf16.mxu1 %v15342_v47  ;;  %v535_v54 = vld [vmem:[#allocation6 + $0xc78] sm:$0xff] }
 0x55c   :  { %v467_v41 = vld [vmem:[#allocation6 + $0xa58] sm:$0xff]  ;;  %v15374_v43 = vcombine.high %v531_v14, %v535_v54  ;;  %v15373_v56 = vcombine.low %v531_v14, %v535_v54 }
 0x55d   :  { %11551 = vmatpush1.bf16.msra.mxu0 %v15405_v0  ;;  %v471_v58 = vld [vmem:[#allocation6 + $0xa78] sm:$0xff] }
 0x55e   :  { %11526 = vmatpush2.bf16.msra.mxu1 %v15341_v20  ;;  %11552 = vmatprep.subr.bf16.mxu0 %v15398_v46  ;;  %v15310_v37 = vcombine.high %v467_v41, %v471_v58  ;;  %v523_v61 = vld [vmem:[#allocation6 + $0xc18] sm:$0xff]  ;;  %v15309_v36 = vcombine.low %v467_v41, %v471_v58 }
 0x55f   :  { %11527 = vmatprep.subr.bf16.mxu1 %v15334_v55  ;;  %v527_v12 = vld [vmem:[#allocation6 + $0xc38] sm:$0xff] }
 0x560   :  { %v459_v49 = vld [vmem:[#allocation6 + $0xa18] sm:$0xff]  ;;  %v15366_v47 = vcombine.high %v523_v61, %v527_v12  ;;  %v15365_v20 = vcombine.low %v523_v61, %v527_v12 }
 0x561   :  { %11553 = vmatpush1.bf16.msra.mxu0 %v15397_v25  ;;  %v463_v35 = vld [vmem:[#allocation6 + $0xa38] sm:$0xff] }
 0x562   :  { %11528 = vmatpush2.bf16.msra.mxu1 %v15333_v9  ;;  %11554 = vmatprep.subr.bf16.mxu0 %v15390_v45  ;;  %v15302_v57 = vcombine.high %v459_v49, %v463_v35  ;;  %v643_v15 = vld [vmem:[#allocation6 + $0xfd8] sm:$0xff]  ;;  %v15301_v46 = vcombine.low %v459_v49, %v463_v35 }
 0x563   :  { %11529 = vmatprep.subr.bf16.mxu1 %v15326_v18  ;;  %v647_v3 = vld [vmem:[#allocation6 + $0xff8] sm:$0xff] }
 0x564   :  { %v707_v24 = vld [vmem:[#allocation6 + $0x11d8] sm:$0xff]  ;;  %v15486_v55 = vcombine.high %v643_v15, %v647_v3  ;;  %v15485_v9 = vcombine.low %v643_v15, %v647_v3 }
 0x565   :  { %11555 = vmatpush1.bf16.msra.mxu0 %v15389_v1  ;;  %v711_v0 = vld [vmem:[#allocation6 + $0x11f8] sm:$0xff] }
 0x566   :  { %11530 = vmatpush2.bf16.msra.mxu1 %v15325_v27  ;;  %11556 = vmatprep.subr.bf16.mxu0 %v15382_v34  ;;  %v15550_v62 = vcombine.high %v707_v24, %v711_v0  ;;  %v635_v29 = vld [vmem:[#allocation6 + $0xf98] sm:$0xff]  ;;  %v15549_v45 = vcombine.low %v707_v24, %v711_v0 }
 0x567   :  { %11531 = vmatprep.subr.bf16.mxu1 %v15318_v28  ;;  %v639_v17 = vld [vmem:[#allocation6 + $0xfb8] sm:$0xff] }
 0x568   :  { %v699_v16 = vld [vmem:[#allocation6 + $0x1198] sm:$0xff]  ;;  %v15478_v18 = vcombine.high %v635_v29, %v639_v17  ;;  %v15477_v14 = vcombine.low %v635_v29, %v639_v17 }
 0x569   :  { %11557 = vmatpush1.bf16.msra.mxu0 %v15381_v5  ;;  %v703_v25 = vld [vmem:[#allocation6 + $0x11b8] sm:$0xff] }
 0x56a   :  { %11532 = vmatpush2.bf16.msra.mxu1 %v15317_v4  ;;  %11558 = vmatprep.subr.bf16.mxu0 %v15374_v43  ;;  %v15542_v31 = vcombine.high %v699_v16, %v703_v25  ;;  %v627_v50 = vld [vmem:[#allocation6 + $0xf58] sm:$0xff]  ;;  %v15541_v41 = vcombine.low %v699_v16, %v703_v25 }
 0x56b   :  { %11533 = vmatprep.subr.bf16.mxu1 %v15310_v37  ;;  %v631_v59 = vld [vmem:[#allocation6 + $0xf78] sm:$0xff] }
 0x56c   :  { %v691_v1 = vld [vmem:[#allocation6 + $0x1158] sm:$0xff]  ;;  %v15470_v58 = vcombine.high %v627_v50, %v631_v59 }
 0x56d   :  { %11559 = vmatpush1.bf16.msra.mxu0 %v15373_v56  ;;  %v695_v27 = vld [vmem:[#allocation6 + $0x1178] sm:$0xff] }
 0x56e   :  { %11534 = vmatpush2.bf16.msra.mxu1 %v15309_v36  ;;  %11560 = vmatprep.subr.bf16.mxu0 %v15366_v47  ;;  %v15534_v37 = vcombine.high %v691_v1, %v695_v27  ;;  %v619_v61 = vld [vmem:[#allocation6 + $0xf18] sm:$0xff]  ;;  %v15469_v36 = vcombine.low %v627_v50, %v631_v59 }
 0x56f   :  { %11535 = vmatprep.subr.bf16.mxu1 %v15302_v57  ;;  %v623_v12 = vld [vmem:[#allocation6 + $0xf38] sm:$0xff]  ;;  %v15533_v57 = vcombine.low %v691_v1, %v695_v27 }
 0x570   :  { %v687_v49 = vld [vmem:[#allocation6 + $0x1138] sm:$0xff] }
 0x571   :  { %11561 = vmatpush1.bf16.msra.mxu0 %v15365_v20  ;;  %v611_v24 = vld [vmem:[#allocation6 + $0xed8] sm:$0xff] }
 0x572   :  { %11536 = vmatpush2.bf16.msra.mxu1 %v15301_v46  ;;  %11562 = vmatprep.subr.bf16.mxu0 %v15486_v55  ;;  %v615_v0 = vld [vmem:[#allocation6 + $0xef8] sm:$0xff]  ;;  %v15461_v46 = vcombine.low %v619_v61, %v623_v12 }
 0x573   :  { %11587 = vmatprep.subr.bf16.mxu1 %v15550_v62  ;;  %v675_v20 = vld [vmem:[#allocation6 + $0x10d8] sm:$0xff]  ;;  %v15454_v62 = vcombine.high %v611_v24, %v615_v0 }
 0x574   :  { %v11252_v32 = vpop.f32.mrf.mxu0  ;;  %v603_v17 = vld [vmem:[#allocation6 + $0xe98] sm:$0xff] }
 0x575   :  { %v11253_v34 = vadd.f32 %v11252_v32, %v18121_v13  ;;  %v11293_v28 = vpop.f32.mrf.mxu1  ;;  %11538 = vmatmul.mubr.bf16.vlgmr.msra.gmra.mxu1 %v17838_v39  ;;  %11563 = vmatpush2.bf16.msra.mxu0 %v15485_v9  ;;  %v683_v39 = vld [vmem:[#allocation6 + $0x1118] sm:$0xff] }
 0x576   :  { %11588 = vmatpush1.bf16.msra.mxu1 %v15549_v45  ;;  %v11254_v54 = vpop.f32.mrf.mxu0  ;;  %11564 = vmatprep.subr.bf16.mxu0 %v15478_v18  ;;  %v15526_v3 = vcombine.high %v683_v39, %v687_v49  ;;  %v15525_v55 = vcombine.low %v683_v39, %v687_v49  ;;  %v607_v16 = vld [vmem:[#allocation6 + $0xeb8] sm:$0xff]  ;;  %v15453_v45 = vcombine.low %v611_v24, %v615_v0 }
 0x577   :  { %v18131_v5 = vadd.f32 %v11293_v28, %v11253_v34  ;;  %v11255_v4 = vadd.f32 %v11254_v54, %v18125_v30  ;;  %v11295_v43 = vpop.f32.mrf.mxu1  ;;  %11589 = vmatprep.subr.bf16.mxu1 %v15542_v31  ;;  %11619 = vmatprep.mubr.bf16.mxu1 %v17848_v19  ;;  %v15462_v30 = vcombine.high %v619_v61, %v623_v12  ;;  %v679_v19 = vld [vmem:[#allocation6 + $0x10f8] sm:$0xff] }
 0x578   :  { %v11256_v13 = vpop.f32.mrf.mxu0  ;;  %v15518_v29 = vcombine.high %v675_v20, %v679_v19  ;;  %v667_v25 = vld [vmem:[#allocation6 + $0x1098] sm:$0xff]  ;;  %v15517_v18 = vcombine.low %v675_v20, %v679_v19  ;;  %v15446_v31 = vcombine.high %v603_v17, %v607_v16  ;;  %v15445_v34 = vcombine.low %v603_v17, %v607_v16 }
 0x579   :  { %v18135_v35 = vadd.f32 %v11295_v43, %v11255_v4  ;;  %v11297_v56 = vpop.f32.mrf.mxu1  ;;  %11565 = vmatpush2.bf16.msra.mxu0 %v15477_v14  ;;  %v671_v9 = vld [vmem:[#allocation6 + $0x10b8] sm:$0xff] }
 0x57a   :  { %11590 = vmatpush1.bf16.msra.mxu1 %v15541_v41  ;;  %v11257_v47 = vpop.f32.mrf.mxu0  ;;  %11566 = vmatprep.subr.bf16.mxu0 %v15470_v58  ;;  %v15510_v50 = vcombine.high %v667_v25, %v671_v9  ;;  %v595_v59 = vld [vmem:[#allocation6 + $0xe58] sm:$0xff]  ;;  %v15509_v28 = vcombine.low %v667_v25, %v671_v9 }
 0x57b   :  { %v11298_v15 = vpop.f32.mrf.mxu1  ;;  %11591 = vmatprep.subr.bf16.mxu1 %v15534_v37  ;;  %v599_v32 = vld [vmem:[#allocation6 + $0xe78] sm:$0xff] }
 0x57c   :  { %v659_v1 = vld [vmem:[#allocation6 + $0x1058] sm:$0xff]  ;;  %v15438_v14 = vcombine.high %v595_v59, %v599_v32  ;;  %v15437_v37 = vcombine.low %v595_v59, %v599_v32 }
 0x57d   :  { %11567 = vmatpush2.bf16.msra.mxu0 %v15469_v36  ;;  %v663_v27 = vld [vmem:[#allocation6 + $0x1078] sm:$0xff] }
 0x57e   :  { %11592 = vmatpush1.bf16.msra.mxu1 %v15533_v57  ;;  %11568 = vmatprep.subr.bf16.mxu0 %v15462_v30  ;;  %v15502_v54 = vcombine.high %v659_v1, %v663_v27  ;;  %v587_v41 = vld [vmem:[#allocation6 + $0xe18] sm:$0xff]  ;;  %v15501_v61 = vcombine.low %v659_v1, %v663_v27 }
 0x57f   :  { %11593 = vmatprep.subr.bf16.mxu1 %v15526_v3  ;;  %v591_v58 = vld [vmem:[#allocation6 + $0xe38] sm:$0xff] }
 0x580   :  { %v651_v4 = vld [vmem:[#allocation6 + $0x1018] sm:$0xff]  ;;  %v15430_v12 = vcombine.high %v587_v41, %v591_v58  ;;  %v15429_v47 = vcombine.low %v587_v41, %v591_v58 }
 0x581   :  { %11569 = vmatpush2.bf16.msra.mxu0 %v15461_v46  ;;  %v655_v43 = vld [vmem:[#allocation6 + $0x1038] sm:$0xff] }
 0x582   :  { %11594 = vmatpush1.bf16.msra.mxu1 %v15525_v55  ;;  %11570 = vmatprep.subr.bf16.mxu0 %v15454_v62  ;;  %v15494_v13 = vcombine.high %v651_v4, %v655_v43  ;;  %v835_v39 = vld [vmem:[#allocation6 + $0x15d8] sm:$0xff]  ;;  %v15493_v57 = vcombine.low %v651_v4, %v655_v43 }
 0x583   :  { %11595 = vmatprep.subr.bf16.mxu1 %v15518_v29  ;;  %v839_v49 = vld [vmem:[#allocation6 + $0x15f8] sm:$0xff] }
 0x584   :  { %v771_v56 = vld [vmem:[#allocation6 + $0x13d8] sm:$0xff]  ;;  %v15678_v30 = vcombine.high %v835_v39, %v839_v49  ;;  %v15677_v19 = vcombine.low %v835_v39, %v839_v49 }
 0x585   :  { %11571 = vmatpush2.bf16.msra.mxu0 %v15453_v45  ;;  %v775_v36 = vld [vmem:[#allocation6 + $0x13f8] sm:$0xff] }
 0x586   :  { %11596 = vmatpush1.bf16.msra.mxu1 %v15517_v18  ;;  %11572 = vmatprep.subr.bf16.mxu0 %v15446_v31  ;;  %v15614_v15 = vcombine.high %v771_v56, %v775_v36  ;;  %v827_v3 = vld [vmem:[#allocation6 + $0x1598] sm:$0xff]  ;;  %v15613_v46 = vcombine.low %v771_v56, %v775_v36 }
 0x587   :  { %11597 = vmatprep.subr.bf16.mxu1 %v15510_v50  ;;  %v831_v24 = vld [vmem:[#allocation6 + $0x15b8] sm:$0xff] }
 0x588   :  { %v763_v0 = vld [vmem:[#allocation6 + $0x1398] sm:$0xff]  ;;  %v15670_v55 = vcombine.high %v827_v3, %v831_v24  ;;  %v15669_v9 = vcombine.low %v827_v3, %v831_v24 }
 0x589   :  { %11573 = vmatpush2.bf16.msra.mxu0 %v15445_v34  ;;  %v767_v20 = vld [vmem:[#allocation6 + $0x13b8] sm:$0xff] }
 0x58a   :  { %11598 = vmatpush1.bf16.msra.mxu1 %v15509_v28  ;;  %11574 = vmatprep.subr.bf16.mxu0 %v15438_v14  ;;  %v15606_v62 = vcombine.high %v763_v0, %v767_v20  ;;  %v819_v29 = vld [vmem:[#allocation6 + $0x1558] sm:$0xff]  ;;  %v15605_v45 = vcombine.low %v763_v0, %v767_v20 }
 0x58b   :  { %11599 = vmatprep.subr.bf16.mxu1 %v15502_v54  ;;  %v823_v17 = vld [vmem:[#allocation6 + $0x1578] sm:$0xff] }
 0x58c   :  { %v755_v16 = vld [vmem:[#allocation6 + $0x1358] sm:$0xff]  ;;  %v15662_v18 = vcombine.high %v819_v29, %v823_v17  ;;  %v15661_v27 = vcombine.low %v819_v29, %v823_v17 }
 0x58d   :  { %11575 = vmatpush2.bf16.msra.mxu0 %v15437_v37  ;;  %v759_v25 = vld [vmem:[#allocation6 + $0x1378] sm:$0xff] }
 0x58e   :  { %11600 = vmatpush1.bf16.msra.mxu1 %v15501_v61  ;;  %11576 = vmatprep.subr.bf16.mxu0 %v15430_v12  ;;  %v15598_v31 = vcombine.high %v755_v16, %v759_v25  ;;  %v811_v50 = vld [vmem:[#allocation6 + $0x1518] sm:$0xff] }
 0x58f   :  { %11601 = vmatprep.subr.bf16.mxu1 %v15494_v13  ;;  %v815_v59 = vld [vmem:[#allocation6 + $0x1538] sm:$0xff] }
 0x590   :  { %v747_v32 = vld [vmem:[#allocation6 + $0x1318] sm:$0xff]  ;;  %v15654_v34 = vcombine.high %v811_v50, %v815_v59  ;;  %v15653_v58 = vcombine.low %v811_v50, %v815_v59 }
 0x591   :  { %11577 = vmatpush2.bf16.msra.mxu0 %v15429_v47  ;;  %v751_v1 = vld [vmem:[#allocation6 + $0x1338] sm:$0xff] }
 0x592   :  { %11602 = vmatpush1.bf16.msra.mxu1 %v15493_v57  ;;  %11628 = vmatprep.subr.bf16.mxu0 %v15678_v30  ;;  %v15590_v28 = vcombine.high %v747_v32, %v751_v1  ;;  %v803_v14 = vld [vmem:[#allocation6 + $0x14d8] sm:$0xff]  ;;  %v15589_v4 = vcombine.low %v747_v32, %v751_v1 }
 0x593   :  { %11603 = vmatprep.subr.bf16.mxu1 %v15614_v15  ;;  %v739_v54 = vld [vmem:[#allocation6 + $0x12d8] sm:$0xff] }
 0x594   :  { %11579 = vmatmul.mubr.bf16.vlgmr.msra.gmra.mxu0 %v17842_v40  ;;  %v15597_v40 = vcombine.low %v755_v16, %v759_v25  ;;  %v743_v41 = vld [vmem:[#allocation6 + $0x12f8] sm:$0xff] }
 0x595   :  { %11629 = vmatpush1.bf16.msra.mxu0 %v15677_v19  ;;  %11660 = vmatprep.mubr.bf16.mxu0 %v17853_v22  ;;  %v807_v22 = vld [vmem:[#allocation6 + $0x14f8] sm:$0xff]  ;;  %v15582_v37 = vcombine.high %v739_v54, %v743_v41  ;;  %v15581_v56 = vcombine.low %v739_v54, %v743_v41 }
 0x596   :  { %11604 = vmatpush2.bf16.msra.mxu1 %v15613_v46  ;;  %11630 = vmatprep.subr.bf16.mxu0 %v15670_v55  ;;  %v15646_v43 = vcombine.high %v803_v14, %v807_v22  ;;  %v795_v61 = vld [vmem:[#allocation6 + $0x1498] sm:$0xff]  ;;  %v15645_v49 = vcombine.low %v803_v14, %v807_v22 }
 0x597   :  { %11605 = vmatprep.subr.bf16.mxu1 %v15606_v62  ;;  %v799_v12 = vld [vmem:[#allocation6 + $0x14b8] sm:$0xff] }
 0x598   :  { %v731_v13 = vld [vmem:[#allocation6 + $0x1298] sm:$0xff]  ;;  %v15638_v36 = vcombine.high %v795_v61, %v799_v12  ;;  %v15637_v24 = vcombine.low %v795_v61, %v799_v12 }
 0x599   :  { %11631 = vmatpush1.bf16.msra.mxu0 %v15669_v9  ;;  %v735_v39 = vld [vmem:[#allocation6 + $0x12b8] sm:$0xff] }
 0x59a   :  { %11606 = vmatpush2.bf16.msra.mxu1 %v15605_v45  ;;  %11632 = vmatprep.subr.bf16.mxu0 %v15662_v18  ;;  %v15574_v47 = vcombine.high %v731_v13, %v735_v39  ;;  %v787_v57 = vld [vmem:[#allocation6 + $0x1458] sm:$0xff]  ;;  %v15573_v0 = vcombine.low %v731_v13, %v735_v39 }
 0x59b   :  { %11607 = vmatprep.subr.bf16.mxu1 %v15598_v31  ;;  %v791_v30 = vld [vmem:[#allocation6 + $0x1478] sm:$0xff] }
 0x59c   :  { %v723_v15 = vld [vmem:[#allocation6 + $0x1258] sm:$0xff]  ;;  %v15630_v20 = vcombine.high %v787_v57, %v791_v30  ;;  %v15629_v17 = vcombine.low %v787_v57, %v791_v30 }
 0x59d   :  { %11633 = vmatpush1.bf16.msra.mxu0 %v15661_v27  ;;  %v727_v3 = vld [vmem:[#allocation6 + $0x1278] sm:$0xff] }
 0x59e   :  { %11608 = vmatpush2.bf16.msra.mxu1 %v15597_v40  ;;  %11634 = vmatprep.subr.bf16.mxu0 %v15654_v34  ;;  %v15566_v19 = vcombine.high %v723_v15, %v727_v3  ;;  %v779_v46 = vld [vmem:[#allocation6 + $0x1418] sm:$0xff]  ;;  %v15565_v16 = vcombine.low %v723_v15, %v727_v3 }
 0x59f   :  { %11609 = vmatprep.subr.bf16.mxu1 %v15590_v28  ;;  %v783_v55 = vld [vmem:[#allocation6 + $0x1438] sm:$0xff] }
 0x5a0   :  { %v715_v62 = vld [vmem:[#allocation6 + $0x1218] sm:$0xff]  ;;  %v15622_v25 = vcombine.high %v779_v46, %v783_v55  ;;  %v15621_v59 = vcombine.low %v779_v46, %v783_v55 }
 0x5a1   :  { %11635 = vmatpush1.bf16.msra.mxu0 %v15653_v58  ;;  %v719_v29 = vld [vmem:[#allocation6 + $0x1238] sm:$0xff] }
 0x5a2   :  { %11610 = vmatpush2.bf16.msra.mxu1 %v15589_v4  ;;  %11636 = vmatprep.subr.bf16.mxu0 %v15646_v43  ;;  %v15558_v9 = vcombine.high %v715_v62, %v719_v29  ;;  %v899_v45 = vld [vmem:[#allocation6 + $0x17d8] sm:$0xff]  ;;  %v15557_v32 = vcombine.low %v715_v62, %v719_v29 }
 0x5a3   :  { %11611 = vmatprep.subr.bf16.mxu1 %v15582_v37  ;;  %v903_v18 = vld [vmem:[#allocation6 + $0x17f8] sm:$0xff] }
 0x5a4   :  { %v963_v31 = vld [vmem:[#allocation6 + $0x19d8] sm:$0xff]  ;;  %v15742_v1 = vcombine.high %v899_v45, %v903_v18  ;;  %v15741_v22 = vcombine.low %v899_v45, %v903_v18 }
 0x5a5   :  { %11637 = vmatpush1.bf16.msra.mxu0 %v15645_v49  ;;  %v967_v50 = vld [vmem:[#allocation6 + $0x19f8] sm:$0xff] }
 0x5a6   :  { %11612 = vmatpush2.bf16.msra.mxu1 %v15581_v56  ;;  %11638 = vmatprep.subr.bf16.mxu0 %v15638_v36  ;;  %v15806_v27 = vcombine.high %v963_v31, %v967_v50  ;;  %v891_v40 = vld [vmem:[#allocation6 + $0x1798] sm:$0xff]  ;;  %v15805_v54 = vcombine.low %v963_v31, %v967_v50 }
 0x5a7   :  { %11613 = vmatprep.subr.bf16.mxu1 %v15574_v47  ;;  %v895_v34 = vld [vmem:[#allocation6 + $0x17b8] sm:$0xff] }
 0x5a8   :  { %v955_v28 = vld [vmem:[#allocation6 + $0x1998] sm:$0xff]  ;;  %v15734_v41 = vcombine.high %v891_v40, %v895_v34  ;;  %v15733_v49 = vcombine.low %v891_v40, %v895_v34 }
 0x5a9   :  { %11639 = vmatpush1.bf16.msra.mxu0 %v15637_v24  ;;  %v959_v14 = vld [vmem:[#allocation6 + $0x19b8] sm:$0xff] }
 0x5aa   :  { %11614 = vmatpush2.bf16.msra.mxu1 %v15573_v0  ;;  %11640 = vmatprep.subr.bf16.mxu0 %v15630_v20  ;;  %v15798_v58 = vcombine.high %v955_v28, %v959_v14  ;;  %v883_v4 = vld [vmem:[#allocation6 + $0x1758] sm:$0xff]  ;;  %v15797_v36 = vcombine.low %v955_v28, %v959_v14 }
 0x5ab   :  { %11615 = vmatprep.subr.bf16.mxu1 %v15566_v19  ;;  %v887_v43 = vld [vmem:[#allocation6 + $0x1778] sm:$0xff] }
 0x5ac   :  { %v947_v61 = vld [vmem:[#allocation6 + $0x1958] sm:$0xff]  ;;  %v15726_v47 = vcombine.high %v883_v4, %v887_v43  ;;  %v15725_v55 = vcombine.low %v883_v4, %v887_v43 }
 0x5ad   :  { %11641 = vmatpush1.bf16.msra.mxu0 %v15629_v17  ;;  %v951_v12 = vld [vmem:[#allocation6 + $0x1978] sm:$0xff] }
 0x5ae   :  { %11616 = vmatpush2.bf16.msra.mxu1 %v15565_v16  ;;  %11642 = vmatprep.subr.bf16.mxu0 %v15622_v25  ;;  %v15790_v3 = vcombine.high %v947_v61, %v951_v12  ;;  %v875_v24 = vld [vmem:[#allocation6 + $0x1718] sm:$0xff]  ;;  %v15789_v29 = vcombine.low %v947_v61, %v951_v12 }
 0x5af   :  { %11617 = vmatprep.subr.bf16.mxu1 %v15558_v9  ;;  %v879_v0 = vld [vmem:[#allocation6 + $0x1738] sm:$0xff] }
 0x5b0   :  { %v943_v20 = vld [vmem:[#allocation6 + $0x1938] sm:$0xff]  ;;  %v15717_v18 = vcombine.low %v875_v24, %v879_v0 }
 0x5b1   :  { %11643 = vmatpush1.bf16.msra.mxu0 %v15621_v59  ;;  %v867_v25 = vld [vmem:[#allocation6 + $0x16d8] sm:$0xff] }
 0x5b2   :  { %11618 = vmatpush2.bf16.msra.mxu1 %v15557_v32  ;;  %11644 = vmatprep.subr.bf16.mxu0 %v15742_v1  ;;  %v871_v9 = vld [vmem:[#allocation6 + $0x16f8] sm:$0xff] }
 0x5b3   :  { %11669 = vmatprep.subr.bf16.mxu1 %v15806_v27  ;;  %v931_v45 = vld [vmem:[#allocation6 + $0x18d8] sm:$0xff]  ;;  %v15710_v50 = vcombine.high %v867_v25, %v871_v9  ;;  %v15709_v34 = vcombine.low %v867_v25, %v871_v9 }
 0x5b4   :  { %v11334_v37 = vpop.f32.mrf.mxu0  ;;  %v859_v32 = vld [vmem:[#allocation6 + $0x1698] sm:$0xff] }
 0x5b5   :  { %v11335_v13 = vadd.f32 %v11334_v37, %v18131_v5  ;;  %v11375_v39 = vpop.f32.mrf.mxu1  ;;  %11620 = vmatmul.mubr.bf16.vlgmr.msra.gmra.mxu1 %v17862_v7  ;;  %11645 = vmatpush2.bf16.msra.mxu0 %v15741_v22  ;;  %v939_v7 = vld [vmem:[#allocation6 + $0x1918] sm:$0xff] }
 0x5b6   :  { %11670 = vmatpush1.bf16.msra.mxu1 %v15805_v54  ;;  %v11336_v56 = vpop.f32.mrf.mxu0  ;;  %11646 = vmatprep.subr.bf16.mxu0 %v15734_v41  ;;  %v15782_v16 = vcombine.high %v939_v7, %v943_v20  ;;  %v15781_v31 = vcombine.low %v939_v7, %v943_v20  ;;  %v863_v1 = vld [vmem:[#allocation6 + $0x16b8] sm:$0xff] }
 0x5b7   :  { %v18141_v57 = vadd.f32 %v11375_v39, %v11335_v13  ;;  %v11337_v30 = vadd.f32 %v11336_v56, %v18135_v35  ;;  %v11377_v15 = vpop.f32.mrf.mxu1  ;;  %11671 = vmatprep.subr.bf16.mxu1 %v15798_v58  ;;  %11701 = vmatprep.mubr.bf16.mxu1 %v17872_v38  ;;  %v15718_v35 = vcombine.high %v875_v24, %v879_v0  ;;  %v935_v38 = vld [vmem:[#allocation6 + $0x18f8] sm:$0xff] }
 0x5b8   :  { %v11338_v5 = vpop.f32.mrf.mxu0  ;;  %v15774_v59 = vcombine.high %v931_v45, %v935_v38  ;;  %v923_v27 = vld [vmem:[#allocation6 + $0x1898] sm:$0xff]  ;;  %v15773_v28 = vcombine.low %v931_v45, %v935_v38  ;;  %v15702_v14 = vcombine.high %v859_v32, %v863_v1  ;;  %v15701_v43 = vcombine.low %v859_v32, %v863_v1 }
 0x5b9   :  { %v18145_v19 = vadd.f32 %v11377_v15, %v11337_v30  ;;  %v11379_v46 = vpop.f32.mrf.mxu1  ;;  %11647 = vmatpush2.bf16.msra.mxu0 %v15733_v49  ;;  %v927_v40 = vld [vmem:[#allocation6 + $0x18b8] sm:$0xff] }
 0x5ba   :  { %11672 = vmatpush1.bf16.msra.mxu1 %v15797_v36  ;;  %v11339_v62 = vpop.f32.mrf.mxu0  ;;  %11648 = vmatprep.subr.bf16.mxu0 %v15726_v47  ;;  %v15766_v22 = vcombine.high %v923_v27, %v927_v40  ;;  %v851_v54 = vld [vmem:[#allocation6 + $0x1658] sm:$0xff]  ;;  %v15765_v37 = vcombine.low %v923_v27, %v927_v40 }
 0x5bb   :  { %v11380_v17 = vpop.f32.mrf.mxu1  ;;  %11673 = vmatprep.subr.bf16.mxu1 %v15790_v3  ;;  %v855_v41 = vld [vmem:[#allocation6 + $0x1678] sm:$0xff] }
 0x5bc   :  { %v915_v58 = vld [vmem:[#allocation6 + $0x1858] sm:$0xff]  ;;  %v15694_v61 = vcombine.high %v851_v54, %v855_v41  ;;  %v15693_v36 = vcombine.low %v851_v54, %v855_v41 }
 0x5bd   :  { %11649 = vmatpush2.bf16.msra.mxu0 %v15725_v55  ;;  %v919_v4 = vld [vmem:[#allocation6 + $0x1878] sm:$0xff] }
 0x5be   :  { %11674 = vmatpush1.bf16.msra.mxu1 %v15789_v29  ;;  %11650 = vmatprep.subr.bf16.mxu0 %v15718_v35  ;;  %v15758_v12 = vcombine.high %v915_v58, %v919_v4  ;;  %v843_v13 = vld [vmem:[#allocation6 + $0x1618] sm:$0xff]  ;;  %v15757_v47 = vcombine.low %v915_v58, %v919_v4 }
 0x5bf   :  { %11675 = vmatprep.subr.bf16.mxu1 %v15782_v16  ;;  %v847_v39 = vld [vmem:[#allocation6 + $0x1638] sm:$0xff] }
 0x5c0   :  { %v907_v49 = vld [vmem:[#allocation6 + $0x1818] sm:$0xff]  ;;  %v15686_v30 = vcombine.high %v843_v13, %v847_v39  ;;  %v15685_v7 = vcombine.low %v843_v13, %v847_v39 }
 0x5c1   :  { %11651 = vmatpush2.bf16.msra.mxu0 %v15717_v18  ;;  %v911_v56 = vld [vmem:[#allocation6 + $0x1838] sm:$0xff] }
 0x5c2   :  { %11676 = vmatpush1.bf16.msra.mxu1 %v15781_v31  ;;  %11652 = vmatprep.subr.bf16.mxu0 %v15710_v50  ;;  %v15750_v15 = vcombine.high %v907_v49, %v911_v56  ;;  %v1091_v3 = vld [vmem:[#allocation6 + $0x1dd8] sm:$0xff]  ;;  %v15749_v20 = vcombine.low %v907_v49, %v911_v56 }
 0x5c3   :  { %11677 = vmatprep.subr.bf16.mxu1 %v15774_v59  ;;  %v1095_v24 = vld [vmem:[#allocation6 + $0x1df8] sm:$0xff] }
 0x5c4   :  { %v1027_v0 = vld [vmem:[#allocation6 + $0x1bd8] sm:$0xff]  ;;  %v15934_v46 = vcombine.high %v1091_v3, %v1095_v24  ;;  %v15933_v16 = vcombine.low %v1091_v3, %v1095_v24 }
 0x5c5   :  { %11653 = vmatpush2.bf16.msra.mxu0 %v15709_v34  ;;  %v1031_v5 = vld [vmem:[#allocation6 + $0x1bf8] sm:$0xff] }
 0x5c6   :  { %11678 = vmatpush1.bf16.msra.mxu1 %v15773_v28  ;;  %11654 = vmatprep.subr.bf16.mxu0 %v15702_v14  ;;  %v15870_v55 = vcombine.high %v1027_v0, %v1031_v5  ;;  %v1083_v62 = vld [vmem:[#allocation6 + $0x1d98] sm:$0xff]  ;;  %v15869_v25 = vcombine.low %v1027_v0, %v1031_v5 }
 0x5c7   :  { %11679 = vmatprep.subr.bf16.mxu1 %v15766_v22  ;;  %v1087_v29 = vld [vmem:[#allocation6 + $0x1db8] sm:$0xff] }
 0x5c8   :  { %v1019_v35 = vld [vmem:[#allocation6 + $0x1b98] sm:$0xff]  ;;  %v15926_v9 = vcombine.high %v1083_v62, %v1087_v29  ;;  %v15925_v1 = vcombine.low %v1083_v62, %v1087_v29 }
 0x5c9   :  { %11655 = vmatpush2.bf16.msra.mxu0 %v15701_v43  ;;  %v1023_v17 = vld [vmem:[#allocation6 + $0x1bb8] sm:$0xff] }
 0x5ca   :  { %11680 = vmatpush1.bf16.msra.mxu1 %v15765_v37  ;;  %11656 = vmatprep.subr.bf16.mxu0 %v15694_v61  ;;  %v15862_v45 = vcombine.high %v1019_v35, %v1023_v17  ;;  %v1075_v38 = vld [vmem:[#allocation6 + $0x1d58] sm:$0xff]  ;;  %v15861_v40 = vcombine.low %v1019_v35, %v1023_v17 }
 0x5cb   :  { %11681 = vmatprep.subr.bf16.mxu1 %v15758_v12  ;;  %v1079_v18 = vld [vmem:[#allocation6 + $0x1d78] sm:$0xff] }
 0x5cc   :  { %v1011_v50 = vld [vmem:[#allocation6 + $0x1b58] sm:$0xff]  ;;  %v15918_v34 = vcombine.high %v1075_v38, %v1079_v18  ;;  %v15917_v58 = vcombine.low %v1075_v38, %v1079_v18 }
 0x5cd   :  { %11657 = vmatpush2.bf16.msra.mxu0 %v15693_v36  ;;  %v1015_v59 = vld [vmem:[#allocation6 + $0x1b78] sm:$0xff] }
 0x5ce   :  { %11682 = vmatpush1.bf16.msra.mxu1 %v15757_v47  ;;  %11658 = vmatprep.subr.bf16.mxu0 %v15686_v30  ;;  %v15854_v14 = vcombine.high %v1011_v50, %v1015_v59  ;;  %v1071_v22 = vld [vmem:[#allocation6 + $0x1d38] sm:$0xff] }
 0x5cf   :  { %11683 = vmatprep.subr.bf16.mxu1 %v15750_v15  ;;  %v1003_v41 = vld [vmem:[#allocation6 + $0x1b18] sm:$0xff] }
 0x5d0   :  { %v1059_v61 = vld [vmem:[#allocation6 + $0x1cd8] sm:$0xff] }
 0x5d1   :  { %11659 = vmatpush2.bf16.msra.mxu0 %v15685_v7  ;;  %v1063_v12 = vld [vmem:[#allocation6 + $0x1cf8] sm:$0xff] }
 0x5d2   :  { %11684 = vmatpush1.bf16.msra.mxu1 %v15749_v20  ;;  %11710 = vmatprep.subr.bf16.mxu0 %v15934_v46  ;;  %v999_v13 = vld [vmem:[#allocation6 + $0x1af8] sm:$0xff]  ;;  %v15902_v56 = vcombine.high %v1059_v61, %v1063_v12  ;;  %v15901_v24 = vcombine.low %v1059_v61, %v1063_v12 }
 0x5d3   :  { %11685 = vmatprep.subr.bf16.mxu1 %v15870_v55  ;;  %v1051_v47 = vld [vmem:[#allocation6 + $0x1c98] sm:$0xff] }
 0x5d4   :  { %v11416_v31 = vpop.f32.mrf.mxu0  ;;  %11661 = vmatmul.mubr.bf16.vlgmr.msra.gmra.mxu0 %v17866_v8  ;;  %v1067_v8 = vld [vmem:[#allocation6 + $0x1d18] sm:$0xff] }
 0x5d5   :  { %v18149_v32 = vadd.f32 %v11416_v31, %v18141_v57  ;;  %11711 = vmatpush1.bf16.msra.mxu0 %v15933_v16  ;;  %11742 = vmatprep.mubr.bf16.mxu0 %v17877_v42  ;;  %v1007_v57 = vld [vmem:[#allocation6 + $0x1b38] sm:$0xff]  ;;  %v15853_v42 = vcombine.low %v1011_v50, %v1015_v59  ;;  %v15910_v43 = vcombine.high %v1067_v8, %v1071_v22 }
 0x5d6   :  { %11686 = vmatpush2.bf16.msra.mxu1 %v15869_v25  ;;  %v11418_v27 = vpop.f32.mrf.mxu0  ;;  %11712 = vmatprep.subr.bf16.mxu0 %v15926_v9  ;;  %v15846_v37 = vcombine.high %v1003_v41, %v1007_v57  ;;  %v15909_v39 = vcombine.low %v1067_v8, %v1071_v22  ;;  %v15845_v49 = vcombine.low %v1003_v41, %v1007_v57  ;;  %v1055_v30 = vld [vmem:[#allocation6 + $0x1cb8] sm:$0xff] }
 0x5d7   :  { %v18153_v28 = vadd.f32 %v11418_v27, %v18145_v19  ;;  %11687 = vmatprep.subr.bf16.mxu1 %v15862_v45  ;;  %v995_v19 = vld [vmem:[#allocation6 + $0x1ad8] sm:$0xff]  ;;  %v15894_v5 = vcombine.high %v1051_v47, %v1055_v30  ;;  %v15893_v29 = vcombine.low %v1051_v47, %v1055_v30 }
 0x5d8   :  { %v11420_v54 = vpop.f32.mrf.mxu0  ;;  %v15838_v36 = vcombine.high %v995_v19, %v999_v13  ;;  %v987_v15 = vld [vmem:[#allocation6 + $0x1a98] sm:$0xff]  ;;  %v15837_v0 = vcombine.low %v995_v19, %v999_v13 }
 0x5d9   :  { %11713 = vmatpush1.bf16.msra.mxu0 %v15925_v1  ;;  %v991_v3 = vld [vmem:[#allocation6 + $0x1ab8] sm:$0xff] }
 0x5da   :  { %11688 = vmatpush2.bf16.msra.mxu1 %v15861_v40  ;;  %v11421_v4 = vpop.f32.mrf.mxu0  ;;  %11714 = vmatprep.subr.bf16.mxu0 %v15918_v34  ;;  %v15830_v7 = vcombine.high %v987_v15, %v991_v3  ;;  %v1043_v20 = vld [vmem:[#allocation6 + $0x1c58] sm:$0xff]  ;;  %v15829_v35 = vcombine.low %v987_v15, %v991_v3 }
 0x5db   :  { %11689 = vmatprep.subr.bf16.mxu1 %v15854_v14  ;;  %v1047_v46 = vld [vmem:[#allocation6 + $0x1c78] sm:$0xff] }
 0x5dc   :  { %v979_v55 = vld [vmem:[#allocation6 + $0x1a58] sm:$0xff]  ;;  %v15886_v17 = vcombine.high %v1043_v20, %v1047_v46  ;;  %v15885_v18 = vcombine.low %v1043_v20, %v1047_v46 }
 0x5dd   :  { %11715 = vmatpush1.bf16.msra.mxu0 %v15917_v58  ;;  %v983_v62 = vld [vmem:[#allocation6 + $0x1a78] sm:$0xff] }
 0x5de   :  { %11690 = vmatpush2.bf16.msra.mxu1 %v15853_v42  ;;  %11716 = vmatprep.subr.bf16.mxu0 %v15910_v43  ;;  %v15822_v16 = vcombine.high %v979_v55, %v983_v62  ;;  %v1035_v25 = vld [vmem:[#allocation6 + $0x1c18] sm:$0xff]  ;;  %v15821_v31 = vcombine.low %v979_v55, %v983_v62 }
 0x5df   :  { %11691 = vmatprep.subr.bf16.mxu1 %v15846_v37  ;;  %v1039_v9 = vld [vmem:[#allocation6 + $0x1c38] sm:$0xff] }
 0x5e0   :  { %v971_v45 = vld [vmem:[#allocation6 + $0x1a18] sm:$0xff]  ;;  %v15878_v50 = vcombine.high %v1035_v25, %v1039_v9  ;;  %v15877_v14 = vcombine.low %v1035_v25, %v1039_v9 }
 0x5e1   :  { %11717 = vmatpush1.bf16.msra.mxu0 %v15909_v39  ;;  %v975_v38 = vld [vmem:[#allocation6 + $0x1a38] sm:$0xff] }
 0x5e2   :  { %11692 = vmatpush2.bf16.msra.mxu1 %v15845_v49  ;;  %11718 = vmatprep.subr.bf16.mxu0 %v15902_v56  ;;  %v15814_v59 = vcombine.high %v971_v45, %v975_v38  ;;  %v1155_v1 = vld [vmem:[#allocation6 + $0x1fd8] sm:$0xff]  ;;  %v15813_v8 = vcombine.low %v971_v45, %v975_v38 }
 0x5e3   :  { %11693 = vmatprep.subr.bf16.mxu1 %v15838_v36  ;;  %v1159_v27 = vld [vmem:[#allocation6 + $0x1ff8] sm:$0xff] }
 0x5e4   :  { %v1219_v40 = vld [vmem:[#allocation6 + $0x21d8] sm:$0xff]  ;;  %v15998_v22 = vcombine.high %v1155_v1, %v1159_v27  ;;  %v15997_v42 = vcombine.low %v1155_v1, %v1159_v27 }
 0x5e5   :  { %11719 = vmatpush1.bf16.msra.mxu0 %v15901_v24  ;;  %v1223_v34 = vld [vmem:[#allocation6 + $0x21f8] sm:$0xff] }
 0x5e6   :  { %11694 = vmatpush2.bf16.msra.mxu1 %v15837_v0  ;;  %11720 = vmatprep.subr.bf16.mxu0 %v15894_v5  ;;  %v16062_v54 = vcombine.high %v1219_v40, %v1223_v34  ;;  %v1147_v41 = vld [vmem:[#allocation6 + $0x1f98] sm:$0xff]  ;;  %v16061_v43 = vcombine.low %v1219_v40, %v1223_v34 }
 0x5e7   :  { %11695 = vmatprep.subr.bf16.mxu1 %v15830_v7  ;;  %v1151_v57 = vld [vmem:[#allocation6 + $0x1fb8] sm:$0xff] }
 0x5e8   :  { %v1211_v58 = vld [vmem:[#allocation6 + $0x2198] sm:$0xff]  ;;  %v15990_v37 = vcombine.high %v1147_v41, %v1151_v57  ;;  %v15989_v56 = vcombine.low %v1147_v41, %v1151_v57 }
 0x5e9   :  { %11721 = vmatpush1.bf16.msra.mxu0 %v15893_v29  ;;  %v1215_v4 = vld [vmem:[#allocation6 + $0x21b8] sm:$0xff] }
 0x5ea   :  { %11696 = vmatpush2.bf16.msra.mxu1 %v15829_v35  ;;  %11722 = vmatprep.subr.bf16.mxu0 %v15886_v17  ;;  %v16054_v61 = vcombine.high %v1211_v58, %v1215_v4  ;;  %v1139_v12 = vld [vmem:[#allocation6 + $0x1f58] sm:$0xff]  ;;  %v16053_v36 = vcombine.low %v1211_v58, %v1215_v4 }
 0x5eb   :  { %11697 = vmatprep.subr.bf16.mxu1 %v15822_v16  ;;  %v1143_v19 = vld [vmem:[#allocation6 + $0x1f78] sm:$0xff] }
 0x5ec   :  { %v1203_v13 = vld [vmem:[#allocation6 + $0x2158] sm:$0xff]  ;;  %v15982_v47 = vcombine.high %v1139_v12, %v1143_v19  ;;  %v15981_v20 = vcombine.low %v1139_v12, %v1143_v19 }
 0x5ed   :  { %11723 = vmatpush1.bf16.msra.mxu0 %v15885_v18  ;;  %v1207_v39 = vld [vmem:[#allocation6 + $0x2178] sm:$0xff] }
 0x5ee   :  { %11698 = vmatpush2.bf16.msra.mxu1 %v15821_v31  ;;  %11724 = vmatprep.subr.bf16.mxu0 %v15878_v50  ;;  %v16046_v15 = vcombine.high %v1203_v13, %v1207_v39  ;;  %v1131_v3 = vld [vmem:[#allocation6 + $0x1f18] sm:$0xff] }
 0x5ef   :  { %11699 = vmatprep.subr.bf16.mxu1 %v15814_v59  ;;  %v1135_v24 = vld [vmem:[#allocation6 + $0x1f38] sm:$0xff] }
 0x5f0   :  { %v1195_v0 = vld [vmem:[#allocation6 + $0x2118] sm:$0xff]  ;;  %v15974_v46 = vcombine.high %v1131_v3, %v1135_v24  ;;  %v15973_v25 = vcombine.low %v1131_v3, %v1135_v24 }
 0x5f1   :  { %11725 = vmatpush1.bf16.msra.mxu0 %v15877_v14  ;;  %v1199_v5 = vld [vmem:[#allocation6 + $0x2138] sm:$0xff] }
 0x5f2   :  { %11700 = vmatpush2.bf16.msra.mxu1 %v15813_v8  ;;  %11726 = vmatprep.subr.bf16.mxu0 %v15998_v22  ;;  %v16038_v62 = vcombine.high %v1195_v0, %v1199_v5  ;;  %v1123_v29 = vld [vmem:[#allocation6 + $0x1ed8] sm:$0xff] }
 0x5f3   :  { %11751 = vmatprep.subr.bf16.mxu1 %v16062_v54  ;;  %v1127_v35 = vld [vmem:[#allocation6 + $0x1ef8] sm:$0xff] }
 0x5f4   :  { %v1187_v17 = vld [vmem:[#allocation6 + $0x20d8] sm:$0xff]  ;;  %v15966_v9 = vcombine.high %v1123_v29, %v1127_v35  ;;  %v15965_v59 = vcombine.low %v1123_v29, %v1127_v35 }
 0x5f5   :  { %v18155_v49 = vpop.f32.mrf.mxu1  ;;  %11702 = vmatmul.mubr.bf16.vlgmr.msra.gmra.mxu1 %v17886_v51  ;;  %11727 = vmatpush2.bf16.msra.mxu0 %v15997_v42  ;;  %v16045_v51 = vcombine.low %v1203_v13, %v1207_v39  ;;  %v1191_v16 = vld [vmem:[#allocation6 + $0x20f8] sm:$0xff] }
 0x5f6   :  { %11752 = vmatpush1.bf16.msra.mxu1 %v16061_v43  ;;  %11728 = vmatprep.subr.bf16.mxu0 %v15990_v37  ;;  %v16030_v45 = vcombine.high %v1187_v17, %v1191_v16  ;;  %v1115_v38 = vld [vmem:[#allocation6 + $0x1e98] sm:$0xff]  ;;  %v16029_v1 = vcombine.low %v1187_v17, %v1191_v16 }
 0x5f7   :  { %v18158_v30 = vpop.f32.mrf.mxu1  ;;  %11753 = vmatprep.subr.bf16.mxu1 %v16054_v61  ;;  %11783 = vmatprep.mubr.bf16.mxu1 %v17896_v6  ;;  %v16037_v6 = vcombine.low %v1195_v0, %v1199_v5  ;;  %v1119_v18 = vld [vmem:[#allocation6 + $0x1eb8] sm:$0xff] }
 0x5f8   :  { %v1179_v31 = vld [vmem:[#allocation6 + $0x2098] sm:$0xff]  ;;  %v15958_v27 = vcombine.high %v1115_v38, %v1119_v18  ;;  %v15957_v54 = vcombine.low %v1115_v38, %v1119_v18 }
 0x5f9   :  { %v11461_v7 = vpop.f32.mrf.mxu1  ;;  %11729 = vmatpush2.bf16.msra.mxu0 %v15989_v56  ;;  %v1183_v50 = vld [vmem:[#allocation6 + $0x20b8] sm:$0xff] }
 0x5fa   :  { %11754 = vmatpush1.bf16.msra.mxu1 %v16053_v36  ;;  %11730 = vmatprep.subr.bf16.mxu0 %v15982_v47  ;;  %v16022_v40 = vcombine.high %v1179_v31, %v1183_v50  ;;  %v1107_v34 = vld [vmem:[#allocation6 + $0x1e58] sm:$0xff]  ;;  %v16021_v41 = vcombine.low %v1179_v31, %v1183_v50 }
 0x5fb   :  { %v11462_v55 = vpop.f32.mrf.mxu1  ;;  %11755 = vmatprep.subr.bf16.mxu1 %v16046_v15  ;;  %v1111_v14 = vld [vmem:[#allocation6 + $0x1e78] sm:$0xff] }
 0x5fc   :  { %v1171_v8 = vld [vmem:[#allocation6 + $0x2058] sm:$0xff]  ;;  %v15950_v57 = vcombine.high %v1107_v34, %v1111_v14  ;;  %v15949_v61 = vcombine.low %v1107_v34, %v1111_v14 }
 0x5fd   :  { %11731 = vmatpush2.bf16.msra.mxu0 %v15981_v20  ;;  %v1175_v22 = vld [vmem:[#allocation6 + $0x2078] sm:$0xff] }
 0x5fe   :  { %11756 = vmatpush1.bf16.msra.mxu1 %v16045_v51  ;;  %11732 = vmatprep.subr.bf16.mxu0 %v15974_v46  ;;  %v16014_v58 = vcombine.high %v1171_v8, %v1175_v22  ;;  %v1099_v4 = vld [vmem:[#allocation6 + $0x1e18] sm:$0xff]  ;;  %v16013_v12 = vcombine.low %v1171_v8, %v1175_v22 }
 0x5ff   :  { %11757 = vmatprep.subr.bf16.mxu1 %v16038_v62  ;;  %v1103_v42 = vld [vmem:[#allocation6 + $0x1e38] sm:$0xff] }
 0x600   :  { %v1163_v43 = vld [vmem:[#allocation6 + $0x2018] sm:$0xff]  ;;  %v15942_v19 = vcombine.high %v1099_v4, %v1103_v42  ;;  %v15941_v15 = vcombine.low %v1099_v4, %v1103_v42 }
 0x601   :  { %11733 = vmatpush2.bf16.msra.mxu0 %v15973_v25  ;;  %v1167_v37 = vld [vmem:[#allocation6 + $0x2038] sm:$0xff] }
 0x602   :  { %11758 = vmatpush1.bf16.msra.mxu1 %v16037_v6  ;;  %11734 = vmatprep.subr.bf16.mxu0 %v15966_v9  ;;  %v16006_v13 = vcombine.high %v1163_v43, %v1167_v37  ;;  %v1347_v39 = vld [vmem:[#allocation6 + $0x25d8] sm:$0xff]  ;;  %v16005_v3 = vcombine.low %v1163_v43, %v1167_v37 }
 0x603   :  { %11759 = vmatprep.subr.bf16.mxu1 %v16030_v45  ;;  %v1351_v56 = vld [vmem:[#allocation6 + $0x25f8] sm:$0xff] }
 0x604   :  { %v1283_v36 = vld [vmem:[#allocation6 + $0x23d8] sm:$0xff]  ;;  %v16190_v24 = vcombine.high %v1347_v39, %v1351_v56  ;;  %v16189_v46 = vcombine.low %v1347_v39, %v1351_v56 }
 0x605   :  { %11735 = vmatpush2.bf16.msra.mxu0 %v15965_v59  ;;  %v1287_v47 = vld [vmem:[#allocation6 + $0x23f8] sm:$0xff] }
 0x606   :  { %11760 = vmatpush1.bf16.msra.mxu1 %v16029_v1  ;;  %11736 = vmatprep.subr.bf16.mxu0 %v15958_v27  ;;  %v16126_v0 = vcombine.high %v1283_v36, %v1287_v47  ;;  %v1339_v5 = vld [vmem:[#allocation6 + $0x2598] sm:$0xff]  ;;  %v16125_v55 = vcombine.low %v1283_v36, %v1287_v47 }
 0x607   :  { %11761 = vmatprep.subr.bf16.mxu1 %v16022_v40  ;;  %v1343_v7 = vld [vmem:[#allocation6 + $0x25b8] sm:$0xff] }
 0x608   :  { %v1275_v20 = vld [vmem:[#allocation6 + $0x2398] sm:$0xff]  ;;  %v16182_v62 = vcombine.high %v1339_v5, %v1343_v7  ;;  %v16181_v45 = vcombine.low %v1339_v5, %v1343_v7 }
 0x609   :  { %11737 = vmatpush2.bf16.msra.mxu0 %v15957_v54  ;;  %v1279_v51 = vld [vmem:[#allocation6 + $0x23b8] sm:$0xff] }
 0x60a   :  { %11762 = vmatpush1.bf16.msra.mxu1 %v16021_v41  ;;  %11738 = vmatprep.subr.bf16.mxu0 %v15950_v57  ;;  %v16118_v29 = vcombine.high %v1275_v20, %v1279_v51  ;;  %v1331_v35 = vld [vmem:[#allocation6 + $0x2558] sm:$0xff]  ;;  %v16117_v18 = vcombine.low %v1275_v20, %v1279_v51 }
 0x60b   :  { %11763 = vmatprep.subr.bf16.mxu1 %v16014_v58  ;;  %v1335_v17 = vld [vmem:[#allocation6 + $0x2578] sm:$0xff] }
 0x60c   :  { %v1267_v25 = vld [vmem:[#allocation6 + $0x2358] sm:$0xff]  ;;  %v16174_v31 = vcombine.high %v1331_v35, %v1335_v17  ;;  %v16173_v34 = vcombine.low %v1331_v35, %v1335_v17 }
 0x60d   :  { %11739 = vmatpush2.bf16.msra.mxu0 %v15949_v61  ;;  %v1271_v6 = vld [vmem:[#allocation6 + $0x2378] sm:$0xff] }
 0x60e   :  { %11764 = vmatpush1.bf16.msra.mxu1 %v16013_v12  ;;  %11740 = vmatprep.subr.bf16.mxu0 %v15942_v19  ;;  %v16110_v59 = vcombine.high %v1267_v25, %v1271_v6  ;;  %v1327_v1 = vld [vmem:[#allocation6 + $0x2538] sm:$0xff] }
 0x60f   :  { %11765 = vmatprep.subr.bf16.mxu1 %v16006_v13  ;;  %v1259_v40 = vld [vmem:[#allocation6 + $0x2318] sm:$0xff] }
 0x610   :  { %v1315_v54 = vld [vmem:[#allocation6 + $0x24d8] sm:$0xff] }
 0x611   :  { %11741 = vmatpush2.bf16.msra.mxu0 %v15941_v15  ;;  %v1319_v41 = vld [vmem:[#allocation6 + $0x24f8] sm:$0xff] }
 0x612   :  { %11766 = vmatpush1.bf16.msra.mxu1 %v16005_v3  ;;  %11792 = vmatprep.subr.bf16.mxu0 %v16190_v24  ;;  %v1255_v57 = vld [vmem:[#allocation6 + $0x22f8] sm:$0xff]  ;;  %v16158_v42 = vcombine.high %v1315_v54, %v1319_v41  ;;  %v16157_v13 = vcombine.low %v1315_v54, %v1319_v41 }
 0x613   :  { %11767 = vmatprep.subr.bf16.mxu1 %v16126_v0  ;;  %v1307_v37 = vld [vmem:[#allocation6 + $0x2498] sm:$0xff] }
 0x614   :  { %v11498_v16 = vpop.f32.mrf.mxu0  ;;  %11743 = vmatmul.mubr.bf16.vlgmr.msra.gmra.mxu0 %v17890_v52  ;;  %v1323_v52 = vld [vmem:[#allocation6 + $0x2518] sm:$0xff] }
 0x615   :  { %v18163_v9 = vadd.f32 %v11498_v16, %v18155_v49  ;;  %11793 = vmatpush1.bf16.msra.mxu0 %v16189_v46  ;;  %11824 = vmatprep.mubr.bf16.mxu0 %v17901_v10  ;;  %v1263_v49 = vld [vmem:[#allocation6 + $0x2338] sm:$0xff]  ;;  %v16109_v10 = vcombine.low %v1267_v25, %v1271_v6  ;;  %v16166_v8 = vcombine.high %v1323_v52, %v1327_v1 }
 0x616   :  { %11768 = vmatpush2.bf16.msra.mxu1 %v16125_v55  ;;  %v11500_v38 = vpop.f32.mrf.mxu0  ;;  %11794 = vmatprep.subr.bf16.mxu0 %v16182_v62  ;;  %v16102_v22 = vcombine.high %v1259_v40, %v1263_v49  ;;  %v16165_v58 = vcombine.low %v1323_v52, %v1327_v1  ;;  %v16101_v4 = vcombine.low %v1259_v40, %v1263_v49  ;;  %v1311_v61 = vld [vmem:[#allocation6 + $0x24b8] sm:$0xff] }
 0x617   :  { %v18167_v50 = vadd.f32 %v11500_v38, %v18158_v30  ;;  %11769 = vmatprep.subr.bf16.mxu1 %v16118_v29  ;;  %v1251_v30 = vld [vmem:[#allocation6 + $0x22d8] sm:$0xff]  ;;  %v16150_v56 = vcombine.high %v1307_v37, %v1311_v61  ;;  %v16149_v0 = vcombine.low %v1307_v37, %v1311_v61 }
 0x618   :  { %v11502_v27 = vpop.f32.mrf.mxu0  ;;  %v16094_v43 = vcombine.high %v1251_v30, %v1255_v57  ;;  %v1243_v12 = vld [vmem:[#allocation6 + $0x2298] sm:$0xff]  ;;  %v16093_v39 = vcombine.low %v1251_v30, %v1255_v57 }
 0x619   :  { %11795 = vmatpush1.bf16.msra.mxu0 %v16181_v45  ;;  %v1247_v19 = vld [vmem:[#allocation6 + $0x22b8] sm:$0xff] }
 0x61a   :  { %11770 = vmatpush2.bf16.msra.mxu1 %v16117_v18  ;;  %v11503_v14 = vpop.f32.mrf.mxu0  ;;  %11796 = vmatprep.subr.bf16.mxu0 %v16174_v31  ;;  %v16086_v36 = vcombine.high %v1243_v12, %v1247_v19  ;;  %v1299_v47 = vld [vmem:[#allocation6 + $0x2458] sm:$0xff]  ;;  %v16085_v5 = vcombine.low %v1243_v12, %v1247_v19 }
 0x61b   :  { %11771 = vmatprep.subr.bf16.mxu1 %v16110_v59  ;;  %v1303_v15 = vld [vmem:[#allocation6 + $0x2478] sm:$0xff] }
 0x61c   :  { %v1235_v3 = vld [vmem:[#allocation6 + $0x2258] sm:$0xff]  ;;  %v16142_v7 = vcombine.high %v1299_v47, %v1303_v15  ;;  %v16141_v29 = vcombine.low %v1299_v47, %v1303_v15 }
 0x61d   :  { %11797 = vmatpush1.bf16.msra.mxu0 %v16173_v34  ;;  %v1239_v24 = vld [vmem:[#allocation6 + $0x2278] sm:$0xff] }
 0x61e   :  { %11772 = vmatpush2.bf16.msra.mxu1 %v16109_v10  ;;  %11798 = vmatprep.subr.bf16.mxu0 %v16166_v8  ;;  %v16078_v20 = vcombine.high %v1235_v3, %v1239_v24  ;;  %v1291_v51 = vld [vmem:[#allocation6 + $0x2418] sm:$0xff]  ;;  %v16077_v35 = vcombine.low %v1235_v3, %v1239_v24 }
 0x61f   :  { %11773 = vmatprep.subr.bf16.mxu1 %v16102_v22  ;;  %v1295_v46 = vld [vmem:[#allocation6 + $0x2438] sm:$0xff] }
 0x620   :  { %v1227_v55 = vld [vmem:[#allocation6 + $0x2218] sm:$0xff]  ;;  %v16134_v17 = vcombine.high %v1291_v51, %v1295_v46  ;;  %v16133_v18 = vcombine.low %v1291_v51, %v1295_v46 }
 0x621   :  { %11799 = vmatpush1.bf16.msra.mxu0 %v16165_v58  ;;  %v1231_v62 = vld [vmem:[#allocation6 + $0x2238] sm:$0xff] }
 0x622   :  { %11774 = vmatpush2.bf16.msra.mxu1 %v16101_v4  ;;  %11800 = vmatprep.subr.bf16.mxu0 %v16158_v42  ;;  %v16070_v16 = vcombine.high %v1227_v55, %v1231_v62  ;;  %v1411_v25 = vld [vmem:[#allocation6 + $0x27d8] sm:$0xff]  ;;  %v16069_v31 = vcombine.low %v1227_v55, %v1231_v62 }
 0x623   :  { %11775 = vmatprep.subr.bf16.mxu1 %v16094_v43  ;;  %v1415_v6 = vld [vmem:[#allocation6 + $0x27f8] sm:$0xff] }
 0x624   :  { %v1475_v45 = vld [vmem:[#allocation6 + $0x29d8] sm:$0xff]  ;;  %v16254_v59 = vcombine.high %v1411_v25, %v1415_v6  ;;  %v16253_v34 = vcombine.low %v1411_v25, %v1415_v6 }
 0x625   :  { %11801 = vmatpush1.bf16.msra.mxu0 %v16157_v13  ;;  %v1479_v38 = vld [vmem:[#allocation6 + $0x29f8] sm:$0xff] }
 0x626   :  { %11776 = vmatpush2.bf16.msra.mxu1 %v16093_v39  ;;  %11802 = vmatprep.subr.bf16.mxu0 %v16150_v56  ;;  %v16318_v52 = vcombine.high %v1475_v45, %v1479_v38  ;;  %v1403_v1 = vld [vmem:[#allocation6 + $0x2798] sm:$0xff]  ;;  %v16317_v14 = vcombine.low %v1475_v45, %v1479_v38 }
 0x627   :  { %11777 = vmatprep.subr.bf16.mxu1 %v16086_v36  ;;  %v1407_v27 = vld [vmem:[#allocation6 + $0x27b8] sm:$0xff] }
 0x628   :  { %v1467_v40 = vld [vmem:[#allocation6 + $0x2998] sm:$0xff]  ;;  %v16246_v10 = vcombine.high %v1403_v1, %v1407_v27  ;;  %v16245_v58 = vcombine.low %v1403_v1, %v1407_v27 }
 0x629   :  { %11803 = vmatpush1.bf16.msra.mxu0 %v16149_v0  ;;  %v1471_v49 = vld [vmem:[#allocation6 + $0x29b8] sm:$0xff] }
 0x62a   :  { %11778 = vmatpush2.bf16.msra.mxu1 %v16085_v5  ;;  %11804 = vmatprep.subr.bf16.mxu0 %v16142_v7  ;;  %v16310_v8 = vcombine.high %v1467_v40, %v1471_v49  ;;  %v1395_v22 = vld [vmem:[#allocation6 + $0x2758] sm:$0xff]  ;;  %v16309_v42 = vcombine.low %v1467_v40, %v1471_v49 }
 0x62b   :  { %11779 = vmatprep.subr.bf16.mxu1 %v16078_v20  ;;  %v1399_v54 = vld [vmem:[#allocation6 + $0x2778] sm:$0xff] }
 0x62c   :  { %v1459_v41 = vld [vmem:[#allocation6 + $0x2958] sm:$0xff]  ;;  %v16238_v43 = vcombine.high %v1395_v22, %v1399_v54 }
 0x62d   :  { %11805 = vmatpush1.bf16.msra.mxu0 %v16141_v29  ;;  %v1463_v30 = vld [vmem:[#allocation6 + $0x2978] sm:$0xff] }
 0x62e   :  { %11780 = vmatpush2.bf16.msra.mxu1 %v16077_v35  ;;  %11806 = vmatprep.subr.bf16.mxu0 %v16134_v17  ;;  %v16302_v61 = vcombine.high %v1459_v41, %v1463_v30  ;;  %v1387_v12 = vld [vmem:[#allocation6 + $0x2718] sm:$0xff]  ;;  %v16301_v36 = vcombine.low %v1459_v41, %v1463_v30 }
 0x62f   :  { %11781 = vmatprep.subr.bf16.mxu1 %v16070_v16  ;;  %v1391_v19 = vld [vmem:[#allocation6 + $0x2738] sm:$0xff] }
 0x630   :  { %v1455_v39 = vld [vmem:[#allocation6 + $0x2938] sm:$0xff]  ;;  %v16230_v47 = vcombine.high %v1387_v12, %v1391_v19 }
 0x631   :  { %11807 = vmatpush1.bf16.msra.mxu0 %v16133_v18  ;;  %v1379_v24 = vld [vmem:[#allocation6 + $0x26d8] sm:$0xff] }
 0x632   :  { %11782 = vmatpush2.bf16.msra.mxu1 %v16069_v31  ;;  %11808 = vmatprep.subr.bf16.mxu0 %v16254_v59  ;;  %v1383_v0 = vld [vmem:[#allocation6 + $0x26f8] sm:$0xff] }
 0x633   :  { %11833 = vmatprep.subr.bf16.mxu1 %v16318_v52  ;;  %v1443_v5 = vld [vmem:[#allocation6 + $0x28d8] sm:$0xff]  ;;  %v16222_v20 = vcombine.high %v1379_v24, %v1383_v0  ;;  %v16221_v35 = vcombine.low %v1379_v24, %v1383_v0 }
 0x634   :  { %v1447_v7 = vld [vmem:[#allocation6 + $0x28f8] sm:$0xff] }
 0x635   :  { %v11539_v57 = vpop.f32.mrf.mxu1  ;;  %11784 = vmatmul.mubr.bf16.vlgmr.msra.gmra.mxu1 %v17912_v2  ;;  %11809 = vmatpush2.bf16.msra.mxu0 %v16253_v34  ;;  %v1451_v2 = vld [vmem:[#allocation6 + $0x2918] sm:$0xff]  ;;  %v16286_v51 = vcombine.high %v1443_v5, %v1447_v7  ;;  %v16285_v17 = vcombine.low %v1443_v5, %v1447_v7 }
 0x636   :  { %v18171_v4 = vadd.f32 %v11539_v57, %v18163_v9  ;;  %11834 = vmatpush1.bf16.msra.mxu1 %v16317_v14  ;;  %11810 = vmatprep.subr.bf16.mxu0 %v16246_v10  ;;  %v16237_v9 = vcombine.low %v1395_v22, %v1399_v54  ;;  %v16294_v3 = vcombine.high %v1451_v2, %v1455_v39  ;;  %v1371_v46 = vld [vmem:[#allocation6 + $0x2698] sm:$0xff] }
 0x637   :  { %v11541_v37 = vpop.f32.mrf.mxu1  ;;  %11835 = vmatprep.subr.bf16.mxu1 %v16310_v8  ;;  %11865 = vmatprep.mubr.bf16.mxu1 %v17924_v23  ;;  %v16229_v23 = vcombine.low %v1387_v12, %v1391_v19  ;;  %v1375_v55 = vld [vmem:[#allocation6 + $0x26b8] sm:$0xff] }
 0x638   :  { %v18175_v13 = vadd.f32 %v11541_v37, %v18167_v50  ;;  %v16293_v50 = vcombine.low %v1451_v2, %v1455_v39  ;;  %v1435_v62 = vld [vmem:[#allocation6 + $0x2898] sm:$0xff]  ;;  %v16214_v16 = vcombine.high %v1371_v46, %v1375_v55  ;;  %v16213_v31 = vcombine.low %v1371_v46, %v1375_v55 }
 0x639   :  { %v11543_v56 = vpop.f32.mrf.mxu1  ;;  %11811 = vmatpush2.bf16.msra.mxu0 %v16245_v58  ;;  %v1439_v29 = vld [vmem:[#allocation6 + $0x28b8] sm:$0xff] }
 0x63a   :  { %11836 = vmatpush1.bf16.msra.mxu1 %v16309_v42  ;;  %11812 = vmatprep.subr.bf16.mxu0 %v16238_v43  ;;  %v16278_v25 = vcombine.high %v1435_v62, %v1439_v29  ;;  %v1363_v6 = vld [vmem:[#allocation6 + $0x2658] sm:$0xff]  ;;  %v16277_v59 = vcombine.low %v1435_v62, %v1439_v29 }
 0x63b   :  { %v11544_v15 = vpop.f32.mrf.mxu1  ;;  %11837 = vmatprep.subr.bf16.mxu1 %v16302_v61  ;;  %v1367_v45 = vld [vmem:[#allocation6 + $0x2678] sm:$0xff] }
 0x63c   :  { %v1427_v38 = vld [vmem:[#allocation6 + $0x2858] sm:$0xff]  ;;  %v16206_v52 = vcombine.high %v1363_v6, %v1367_v45  ;;  %v16205_v14 = vcombine.low %v1363_v6, %v1367_v45 }
 0x63d   :  { %11813 = vmatpush2.bf16.msra.mxu0 %v16237_v9  ;;  %v1431_v18 = vld [vmem:[#allocation6 + $0x2878] sm:$0xff] }
 0x63e   :  { %11838 = vmatpush1.bf16.msra.mxu1 %v16301_v36  ;;  %11814 = vmatprep.subr.bf16.mxu0 %v16230_v47  ;;  %v16270_v1 = vcombine.high %v1427_v38, %v1431_v18  ;;  %v1355_v27 = vld [vmem:[#allocation6 + $0x2618] sm:$0xff]  ;;  %v16269_v10 = vcombine.low %v1427_v38, %v1431_v18 }
 0x63f   :  { %11839 = vmatprep.subr.bf16.mxu1 %v16294_v3  ;;  %v1359_v40 = vld [vmem:[#allocation6 + $0x2638] sm:$0xff] }
 0x640   :  { %v1419_v49 = vld [vmem:[#allocation6 + $0x2818] sm:$0xff]  ;;  %v16198_v8 = vcombine.high %v1355_v27, %v1359_v40  ;;  %v16197_v58 = vcombine.low %v1355_v27, %v1359_v40 }
 0x641   :  { %11815 = vmatpush2.bf16.msra.mxu0 %v16229_v23  ;;  %v1423_v34 = vld [vmem:[#allocation6 + $0x2838] sm:$0xff] }
 0x642   :  { %11840 = vmatpush1.bf16.msra.mxu1 %v16293_v50  ;;  %11816 = vmatprep.subr.bf16.mxu0 %v16222_v20  ;;  %v16262_v22 = vcombine.high %v1419_v49, %v1423_v34  ;;  %v1603_v54 = vld [vmem:[#allocation6 + $0x2dd8] sm:$0xff]  ;;  %v16261_v42 = vcombine.low %v1419_v49, %v1423_v34 }
 0x643   :  { %11841 = vmatprep.subr.bf16.mxu1 %v16286_v51  ;;  %v1607_v41 = vld [vmem:[#allocation6 + $0x2df8] sm:$0xff] }
 0x644   :  { %v1539_v30 = vld [vmem:[#allocation6 + $0x2bd8] sm:$0xff]  ;;  %v16446_v43 = vcombine.high %v1603_v54, %v1607_v41  ;;  %v16445_v39 = vcombine.low %v1603_v54, %v1607_v41 }
 0x645   :  { %11817 = vmatpush2.bf16.msra.mxu0 %v16221_v35  ;;  %v1543_v57 = vld [vmem:[#allocation6 + $0x2bf8] sm:$0xff] }
 0x646   :  { %11842 = vmatpush1.bf16.msra.mxu1 %v16285_v17  ;;  %11818 = vmatprep.subr.bf16.mxu0 %v16214_v16  ;;  %v16382_v37 = vcombine.high %v1539_v30, %v1543_v57  ;;  %v1595_v61 = vld [vmem:[#allocation6 + $0x2d98] sm:$0xff]  ;;  %v16381_v56 = vcombine.low %v1539_v30, %v1543_v57 }
 0x647   :  { %11843 = vmatprep.subr.bf16.mxu1 %v16278_v25  ;;  %v1599_v12 = vld [vmem:[#allocation6 + $0x2db8] sm:$0xff] }
 0x648   :  { %v1531_v19 = vld [vmem:[#allocation6 + $0x2b98] sm:$0xff]  ;;  %v16438_v9 = vcombine.high %v1595_v61, %v1599_v12  ;;  %v16437_v7 = vcombine.low %v1595_v61, %v1599_v12 }
 0x649   :  { %11819 = vmatpush2.bf16.msra.mxu0 %v16213_v31  ;;  %v1535_v2 = vld [vmem:[#allocation6 + $0x2bb8] sm:$0xff] }
 0x64a   :  { %11844 = vmatpush1.bf16.msra.mxu1 %v16277_v59  ;;  %11820 = vmatprep.subr.bf16.mxu0 %v16206_v52  ;;  %v16374_v36 = vcombine.high %v1531_v19, %v1535_v2  ;;  %v1587_v47 = vld [vmem:[#allocation6 + $0x2d58] sm:$0xff]  ;;  %v16373_v50 = vcombine.low %v1531_v19, %v1535_v2 }
 0x64b   :  { %11845 = vmatprep.subr.bf16.mxu1 %v16270_v1  ;;  %v1591_v15 = vld [vmem:[#allocation6 + $0x2d78] sm:$0xff] }
 0x64c   :  { %v1523_v24 = vld [vmem:[#allocation6 + $0x2b58] sm:$0xff]  ;;  %v16430_v20 = vcombine.high %v1587_v47, %v1591_v15  ;;  %v16429_v35 = vcombine.low %v1587_v47, %v1591_v15 }
 0x64d   :  { %11821 = vmatpush2.bf16.msra.mxu0 %v16205_v14  ;;  %v1527_v0 = vld [vmem:[#allocation6 + $0x2b78] sm:$0xff] }
 0x64e   :  { %11846 = vmatpush1.bf16.msra.mxu1 %v16269_v10  ;;  %11822 = vmatprep.subr.bf16.mxu0 %v16198_v8  ;;  %v16366_v46 = vcombine.high %v1523_v24, %v1527_v0  ;;  %v1583_v55 = vld [vmem:[#allocation6 + $0x2d38] sm:$0xff] }
 0x64f   :  { %11847 = vmatprep.subr.bf16.mxu1 %v16262_v22  ;;  %v1515_v29 = vld [vmem:[#allocation6 + $0x2b18] sm:$0xff] }
 0x650   :  { %v1571_v6 = vld [vmem:[#allocation6 + $0x2cd8] sm:$0xff] }
 0x651   :  { %11823 = vmatpush2.bf16.msra.mxu0 %v16197_v58  ;;  %v1575_v45 = vld [vmem:[#allocation6 + $0x2cf8] sm:$0xff] }
 0x652   :  { %11848 = vmatpush1.bf16.msra.mxu1 %v16261_v42  ;;  %11874 = vmatprep.subr.bf16.mxu0 %v16446_v43  ;;  %v1511_v38 = vld [vmem:[#allocation6 + $0x2af8] sm:$0xff]  ;;  %v16414_v59 = vcombine.high %v1571_v6, %v1575_v45  ;;  %v16413_v34 = vcombine.low %v1571_v6, %v1575_v45 }
 0x653   :  { %11849 = vmatprep.subr.bf16.mxu1 %v16382_v37  ;;  %v1563_v1 = vld [vmem:[#allocation6 + $0x2c98] sm:$0xff] }
 0x654   :  { %v11580_v3 = vpop.f32.mrf.mxu0  ;;  %11825 = vmatmul.mubr.bf16.vlgmr.msra.gmra.mxu0 %v17918_v11  ;;  %v1579_v11 = vld [vmem:[#allocation6 + $0x2d18] sm:$0xff] }
 0x655   :  { %v18179_v5 = vadd.f32 %v11580_v3, %v18171_v4  ;;  %11875 = vmatpush1.bf16.msra.mxu0 %v16445_v39  ;;  %11906 = vmatprep.mubr.bf16.mxu0 %v17929_v53  ;;  %v1519_v4 = vld [vmem:[#allocation6 + $0x2b38] sm:$0xff]  ;;  %v16365_v53 = vcombine.low %v1523_v24, %v1527_v0  ;;  %v16422_v16 = vcombine.high %v1579_v11, %v1583_v55 }
 0x656   :  { %11850 = vmatpush2.bf16.msra.mxu1 %v16381_v56  ;;  %v11582_v23 = vpop.f32.mrf.mxu0  ;;  %11876 = vmatprep.subr.bf16.mxu0 %v16438_v9  ;;  %v16358_v25 = vcombine.high %v1515_v29, %v1519_v4  ;;  %v16421_v18 = vcombine.low %v1579_v11, %v1583_v55  ;;  %v16357_v31 = vcombine.low %v1515_v29, %v1519_v4  ;;  %v1567_v27 = vld [vmem:[#allocation6 + $0x2cb8] sm:$0xff] }
 0x657   :  { %v18183_v51 = vadd.f32 %v11582_v23, %v18175_v13  ;;  %11851 = vmatprep.subr.bf16.mxu1 %v16374_v36  ;;  %v1507_v13 = vld [vmem:[#allocation6 + $0x2ad8] sm:$0xff]  ;;  %v16406_v10 = vcombine.high %v1563_v1, %v1567_v27  ;;  %v16405_v57 = vcombine.low %v1563_v1, %v1567_v27 }
 0x658   :  { %v11584_v62 = vpop.f32.mrf.mxu0  ;;  %v16350_v52 = vcombine.high %v1507_v13, %v1511_v38  ;;  %v1499_v40 = vld [vmem:[#allocation6 + $0x2a98] sm:$0xff]  ;;  %v16349_v14 = vcombine.low %v1507_v13, %v1511_v38 }
 0x659   :  { %11877 = vmatpush1.bf16.msra.mxu0 %v16437_v7  ;;  %v1503_v49 = vld [vmem:[#allocation6 + $0x2ab8] sm:$0xff] }
 0x65a   :  { %11852 = vmatpush2.bf16.msra.mxu1 %v16373_v50  ;;  %v11585_v17 = vpop.f32.mrf.mxu0  ;;  %11878 = vmatprep.subr.bf16.mxu0 %v16430_v20  ;;  %v16342_v8 = vcombine.high %v1499_v40, %v1503_v49  ;;  %v1555_v22 = vld [vmem:[#allocation6 + $0x2c58] sm:$0xff]  ;;  %v16341_v58 = vcombine.low %v1499_v40, %v1503_v49 }
 0x65b   :  { %11853 = vmatprep.subr.bf16.mxu1 %v16366_v46  ;;  %v1559_v54 = vld [vmem:[#allocation6 + $0x2c78] sm:$0xff] }
 0x65c   :  { %v1491_v41 = vld [vmem:[#allocation6 + $0x2a58] sm:$0xff]  ;;  %v16398_v42 = vcombine.high %v1555_v22, %v1559_v54  ;;  %v16397_v2 = vcombine.low %v1555_v22, %v1559_v54 }
 0x65d   :  { %11879 = vmatpush1.bf16.msra.mxu0 %v16429_v35  ;;  %v1495_v30 = vld [vmem:[#allocation6 + $0x2a78] sm:$0xff] }
 0x65e   :  { %11854 = vmatpush2.bf16.msra.mxu1 %v16365_v53  ;;  %11880 = vmatprep.subr.bf16.mxu0 %v16422_v16  ;;  %v16334_v43 = vcombine.high %v1491_v41, %v1495_v30  ;;  %v1547_v37 = vld [vmem:[#allocation6 + $0x2c18] sm:$0xff]  ;;  %v16333_v39 = vcombine.low %v1491_v41, %v1495_v30 }
 0x65f   :  { %11855 = vmatprep.subr.bf16.mxu1 %v16358_v25  ;;  %v1551_v61 = vld [vmem:[#allocation6 + $0x2c38] sm:$0xff] }
 0x660   :  { %v1483_v12 = vld [vmem:[#allocation6 + $0x2a18] sm:$0xff]  ;;  %v16390_v56 = vcombine.high %v1547_v37, %v1551_v61  ;;  %v16389_v24 = vcombine.low %v1547_v37, %v1551_v61 }
 0x661   :  { %11881 = vmatpush1.bf16.msra.mxu0 %v16421_v18  ;;  %v1487_v19 = vld [vmem:[#allocation6 + $0x2a38] sm:$0xff] }
 0x662   :  { %11856 = vmatpush2.bf16.msra.mxu1 %v16357_v31  ;;  %11882 = vmatprep.subr.bf16.mxu0 %v16414_v59  ;;  %v16326_v9 = vcombine.high %v1483_v12, %v1487_v19  ;;  %v1667_v36 = vld [vmem:[#allocation6 + $0x2fd8] sm:$0xff]  ;;  %v16325_v0 = vcombine.low %v1483_v12, %v1487_v19 }
 0x663   :  { %11857 = vmatprep.subr.bf16.mxu1 %v16350_v52  ;;  %v1671_v47 = vld [vmem:[#allocation6 + $0x2ff8] sm:$0xff] }
 0x664   :  { %v1731_v15 = vld [vmem:[#allocation6 + $0x31d8] sm:$0xff]  ;;  %v16510_v7 = vcombine.high %v1667_v36, %v1671_v47  ;;  %v16509_v55 = vcombine.low %v1667_v36, %v1671_v47 }
 0x665   :  { %11883 = vmatpush1.bf16.msra.mxu0 %v16413_v34  ;;  %v1735_v3 = vld [vmem:[#allocation6 + $0x31f8] sm:$0xff] }
 0x666   :  { %11858 = vmatpush2.bf16.msra.mxu1 %v16349_v14  ;;  %11884 = vmatprep.subr.bf16.mxu0 %v16406_v10  ;;  %v16574_v23 = vcombine.high %v1731_v15, %v1735_v3  ;;  %v1659_v50 = vld [vmem:[#allocation6 + $0x2f98] sm:$0xff]  ;;  %v16573_v62 = vcombine.low %v1731_v15, %v1735_v3 }
 0x667   :  { %11859 = vmatprep.subr.bf16.mxu1 %v16342_v8  ;;  %v1663_v20 = vld [vmem:[#allocation6 + $0x2fb8] sm:$0xff] }
 0x668   :  { %v1723_v46 = vld [vmem:[#allocation6 + $0x3198] sm:$0xff]  ;;  %v16502_v29 = vcombine.high %v1659_v50, %v1663_v20  ;;  %v16501_v6 = vcombine.low %v1659_v50, %v1663_v20  ;;  %v18201_v50 = vld [vmem:[#allocation12] sm:$0xff] }
 0x669   :  { %11885 = vmatpush1.bf16.msra.mxu0 %v16405_v57  ;;  %v1727_v11 = vld [vmem:[#allocation6 + $0x31b8] sm:$0xff] }
 0x66a   :  { %11860 = vmatpush2.bf16.msra.mxu1 %v16341_v58  ;;  %11886 = vmatprep.subr.bf16.mxu0 %v16398_v42  ;;  %v16566_v4 = vcombine.high %v1723_v46, %v1727_v11  ;;  %v1651_v35 = vld [vmem:[#allocation6 + $0x2f58] sm:$0xff]  ;;  %v16565_v13 = vcombine.low %v1723_v46, %v1727_v11 }
 0x66b   :  { %11861 = vmatprep.subr.bf16.mxu1 %v16334_v43  ;;  %v1655_v17 = vld [vmem:[#allocation6 + $0x2f78] sm:$0xff] }
 0x66c   :  { %v1715_v53 = vld [vmem:[#allocation6 + $0x3158] sm:$0xff]  ;;  %v16494_v38 = vcombine.high %v1651_v35, %v1655_v17 }
 0x66d   :  { %11887 = vmatpush1.bf16.msra.mxu0 %v16397_v2  ;;  %v1719_v16 = vld [vmem:[#allocation6 + $0x3178] sm:$0xff] }
 0x66e   :  { %11862 = vmatpush2.bf16.msra.mxu1 %v16333_v39  ;;  %11888 = vmatprep.subr.bf16.mxu0 %v16390_v56  ;;  %v16558_v31 = vcombine.high %v1715_v53, %v1719_v16  ;;  %v1643_v59 = vld [vmem:[#allocation6 + $0x2f18] sm:$0xff]  ;;  %v16557_v49 = vcombine.low %v1715_v53, %v1719_v16 }
 0x66f   :  { %11863 = vmatprep.subr.bf16.mxu1 %v16326_v9  ;;  %v1647_v52 = vld [vmem:[#allocation6 + $0x2f38] sm:$0xff] }
 0x670   :  { %v1711_v27 = vld [vmem:[#allocation6 + $0x3138] sm:$0xff]  ;;  %v16486_v34 = vcombine.high %v1643_v59, %v1647_v52 }
 0x671   :  { %11889 = vmatpush1.bf16.msra.mxu0 %v16389_v24  ;;  %v1635_v8 = vld [vmem:[#allocation6 + $0x2ed8] sm:$0xff] }
 0x672   :  { %11864 = vmatpush2.bf16.msra.mxu1 %v16325_v0  ;;  %11890 = vmatprep.subr.bf16.mxu0 %v16510_v7  ;;  %v1639_v22 = vld [vmem:[#allocation6 + $0x2ef8] sm:$0xff] }
 0x673   :  { %11915 = vmatprep.subr.bf16.mxu1 %v16574_v23  ;;  %v1699_v54 = vld [vmem:[#allocation6 + $0x30d8] sm:$0xff]  ;;  %v16478_v57 = vcombine.high %v1635_v8, %v1639_v22  ;;  %v16477_v12 = vcombine.low %v1635_v8, %v1639_v22  ;;  %v17007_v22 = vld [vmem:[#allocation8 + $0x2c0] ss:$16 sps:$4 sm:$0xff]  }
 0x674   :  { %v1703_v41 = vld [vmem:[#allocation6 + $0x30f8] sm:$0xff] }
 0x675   :  { %v11621_v25 = vpop.f32.mrf.mxu1  ;;  %11866 = vmatmul.mubr.bf16.vlgmr.msra.gmra.mxu1 %v17942_v44  ;;  %11891 = vmatpush2.bf16.msra.mxu0 %v16509_v55  ;;  %v1707_v44 = vld [vmem:[#allocation6 + $0x3118] sm:$0xff]  ;;  %v16542_v58 = vcombine.high %v1699_v54, %v1703_v41  ;;  %v16541_v2 = vcombine.low %v1699_v54, %v1703_v41  ;;  %v17012_v54 = vld [vmem:[#allocation8 + $0xa4] ss:$16 sps:$4 sm:$0xff]  }
 0x676   :  { %v18187_v45 = vadd.f32 %v11621_v25, %v18179_v5  ;;  %11916 = vmatpush1.bf16.msra.mxu1 %v16573_v62  ;;  %11892 = vmatprep.subr.bf16.mxu0 %v16502_v29  ;;  %v16493_v5 = vcombine.low %v1651_v35, %v1655_v17  ;;  %v16550_v10 = vcombine.high %v1707_v44, %v1711_v27  ;;  %v1627_v42 = vld [vmem:[#allocation6 + $0x2e98] sm:$0xff]  ;;  %v17015_v41 = vld [vmem:[#allocation8 + $0x2a4] ss:$16 sps:$4 sm:$0xff]  }
 0x677   :  { %v11623_v18 = vpop.f32.mrf.mxu1  ;;  %11917 = vmatprep.subr.bf16.mxu1 %v16566_v4  ;;  %11947 = vmatprep.mubr.bf16.mxu1 %v17741_v33  ;;  %v16485_v33 = vcombine.low %v1643_v59, %v1647_v52  ;;  %v16549_v30 = vcombine.low %v1707_v44, %v1711_v27  ;;  %v1631_v43 = vld [vmem:[#allocation6 + $0x2eb8] sm:$0xff]  ;;  %v16998_v44 = vld [vmem:[#allocation8 + $0xe0] ss:$16 sps:$4 sm:$0xff]  }
 0x678   :  { %v18191_v1 = vadd.f32 %v11623_v18, %v18183_v51  ;;  %v11988_v51 = vlaneseq  ;;  %v1691_v37 = vld [vmem:[#allocation6 + $0x3098] sm:$0xff]  ;;  %v16470_v39 = vcombine.high %v1627_v42, %v1631_v43  ;;  %v16469_v0 = vcombine.low %v1627_v42, %v1631_v43  ;;  %v17000_v18 = vld [vmem:[#allocation8 + $0xe4] ss:$16 sps:$4 sm:$0xff]   ;;  %v17001_v27 = vld [vmem:[#allocation8 + $0x2e0] ss:$16 sps:$4 sm:$0xff]  }
 0x679   :  { %v11625_v40 = vpop.f32.mrf.mxu1  ;;  %11893 = vmatpush2.bf16.msra.mxu0 %v16501_v6  ;;  %v1695_v61 = vld [vmem:[#allocation6 + $0x30b8] sm:$0xff]  ;;  %v17016_v42 = vld [vmem:[#allocation8 + $0x80] ss:$16 sps:$4 sm:$0xff]  }
 0x67a   :  { %11918 = vmatpush1.bf16.msra.mxu1 %v16565_v13  ;;  %11894 = vmatprep.subr.bf16.mxu0 %v16494_v38  ;;  %v18193_v19 = vshrl.u32 %v11988_v51, 7  ;;  %v16534_v56 = vcombine.high %v1691_v37, %v1695_v61  ;;  %v1619_v9 = vld [vmem:[#allocation6 + $0x2e58] sm:$0xff]  ;;  %v16533_v7 = vcombine.low %v1691_v37, %v1695_v61  ;;  %v17006_v40 = vld [vmem:[#allocation8 + $0xc4] ss:$16 sps:$4 sm:$0xff]   ;;  %v17019_v43 = vld [vmem:[#allocation8 + $0x280] ss:$16 sps:$4 sm:$0xff]  }
 0x67b   :  { %v11626_v14 = vpop.f32.mrf.mxu1  ;;  %11919 = vmatprep.subr.bf16.mxu1 %v16558_v31  ;;  %v1623_v36 = vld [vmem:[#allocation6 + $0x2e78] sm:$0xff]  ;;  %v17003_v31 = vld [vmem:[#allocation8 + $0x2e4] ss:$16 sps:$4 sm:$0xff]   ;;  %v17022_v61 = vld [vmem:[#allocation8 + $0x60] ss:$16 sps:$4 sm:$0xff]  }
 0x67c   :  { %v18196_v47 = vsub.s32 1, %v18193_v19  ;;  %v1683_v15 = vld [vmem:[#allocation6 + $0x3058] sm:$0xff]  ;;  %v18199_v24 = vsub.s32 3, %v18193_v19  ;;  %v16462_v23 = vcombine.high %v1619_v9, %v1623_v36  ;;  %v16461_v35 = vcombine.low %v1619_v9, %v1623_v36  ;;  %v17027_v37 = vld [vmem:[#allocation8 + $0x264] ss:$16 sps:$4 sm:$0xff]  }
 0x67d   :  { %11895 = vmatpush2.bf16.msra.mxu0 %v16493_v5  ;;  %v1687_v3 = vld [vmem:[#allocation6 + $0x3078] sm:$0xff]  ;;  %v17009_v5 = vld [vmem:[#allocation8 + $0x2c4] ss:$16 sps:$4 sm:$0xff]   ;;  %v17031_v9 = vld [vmem:[#allocation8 + $0x240] ss:$16 sps:$4 sm:$0xff]  }
 0x67e   :  { %11920 = vmatpush1.bf16.msra.mxu1 %v16557_v49  ;;  %11896 = vmatprep.subr.bf16.mxu0 %v16486_v34  ;;  %v16526_v20 = vcombine.high %v1683_v15, %v1687_v3  ;;  %v1611_v46 = vld [vmem:[#allocation6 + $0x2e18] sm:$0xff]  ;;  %v11995_v55 = vrot.slane %v18201_v50, %v18196_v47  ;;  %v12003_v4 = vrot.slane %v18201_v50, %v18199_v24  ;;  %v17036_v36 = vld [vmem:[#allocation8 + $0x24] ss:$16 sps:$4 sm:$0xff]  }
 0x67f   :  { %11921 = vmatprep.subr.bf16.mxu1 %v16550_v10  ;;  %v1615_v11 = vld [vmem:[#allocation6 + $0x2e38] sm:$0xff]  ;;  %v16525_v17 = vcombine.low %v1683_v15, %v1687_v3  ;;  %v17004_v10 = vld [vmem:[#allocation8 + $0xc0] ss:$16 sps:$4 sm:$0xff]   ;;  %v17039_v15 = vld [vmem:[#allocation8 + $0x224] ss:$16 sps:$4 sm:$0xff]  }
 0x680   :  { %v1675_v62 = vld [vmem:[#allocation6 + $0x3018] sm:$0xff]  ;;  %v16454_v53 = vcombine.high %v1611_v46, %v1615_v11  ;;  %v12029_v25 = vadd.f32 %v11995_v55, %v17993_v26  ;;  %v12031_v6 = vadd.f32 %v12003_v4, %v18088_v63  ;;  %v16453_v13 = vcombine.low %v1611_v46, %v1615_v11  ;;  %v17034_v3 = vld [vmem:[#allocation8 + $0x20] ss:$16 sps:$4 sm:$0xff]   ;;  %v17048_v11 = vld [vmem:[#allocation8 + $0x1e4] ss:$16 sps:$4 sm:$0xff]  }
 0x681   :  { %11897 = vmatpush2.bf16.msra.mxu0 %v16485_v33  ;;  %v1679_v29 = vld [vmem:[#allocation6 + $0x3038] sm:$0xff]  ;;  %v17043_v46 = vld [vmem:[#allocation8 + $0x200] ss:$16 sps:$4 sm:$0xff]   ;;  %v17051_v55 = vld [vmem:[#allocation8 + $0x3e4] ss:$16 sps:$4 sm:$0xff]  }
 0x682   :  { %11922 = vmatpush1.bf16.msra.mxu1 %v16549_v30  ;;  %11898 = vmatprep.subr.bf16.mxu0 %v16478_v57  ;;  %v16518_v16 = vcombine.high %v1675_v62, %v1679_v29  ;;  %v16517_v38 = vcombine.low %v1675_v62, %v1679_v29  ;;  %v12037_v59 = vmax.f32 %v12029_v25, 0.0  ;;  %v12039_v52 = vmax.f32 %v12031_v6, 0.0  ;;  %v17578_v14 = vld [vmem:[#allocation3 + $0x60] ss:$0 sps:$4 sm:$0xff]   ;;  %v17013_v30 = vld [vmem:[#allocation8 + $0x2a0] ss:$16 sps:$4 sm:$0xff]  }
 0x683   :  { %11923 = vmatprep.subr.bf16.mxu1 %v16542_v58  ;;  %v17018_v57 = vld [vmem:[#allocation8 + $0x84] ss:$16 sps:$4 sm:$0xff]   ;;  %v17046_v62 = vld [vmem:[#allocation8 + $0x1e0] ss:$16 sps:$4 sm:$0xff]  }
 0x684   :  { %v18209_v26 = vpack.c.bf16 %v12037_v59, %v12037_v59  ;;  %v18212_v49 = vpack.c.bf16 %v12039_v52, %v12039_v52  ;;  %v17021_v58 = vld [vmem:[#allocation8 + $0x284] ss:$16 sps:$4 sm:$0xff]   ;;  %v17049_v29 = vld [vmem:[#allocation8 + $0x3e0] ss:$16 sps:$4 sm:$0xff]  }
 0x685   :  { %11899 = vmatpush2.bf16.msra.mxu0 %v16477_v12  ;;  %v17025_v12 = vld [vmem:[#allocation8 + $0x260] ss:$16 sps:$4 sm:$0xff]   ;;  %v17054_v4 = vld [vmem:[#allocation8 + $0x1c4] ss:$16 sps:$4 sm:$0xff]  }
 0x686   :  { %11924 = vmatpush1.bf16.msra.mxu1 %v16541_v2  ;;  %11900 = vmatprep.subr.bf16.mxu0 %v16470_v39  ;;  %v17030_v2 = vld [vmem:[#allocation8 + $0x44] ss:$16 sps:$4 sm:$0xff]   ;;  %v17055_v25 = vld [vmem:[#allocation8 + $0x3c0] ss:$16 sps:$4 sm:$0xff]  }
 0x687   :  { %11925 = vmatprep.subr.bf16.mxu1 %v16534_v56  ;;  %v17033_v39 = vld [vmem:[#allocation8 + $0x244] ss:$16 sps:$4 sm:$0xff]   ;;  %v17028_v56 = vld [vmem:[#allocation8 + $0x40] ss:$16 sps:$4 sm:$0xff]  }
 0x688   :  { %v17060_v6 = vld [vmem:[#allocation8 + $0x1a4] ss:$16 sps:$4 sm:$0xff]   ;;  %v17058_v59 = vld [vmem:[#allocation8 + $0x1a0] ss:$16 sps:$4 sm:$0xff]  }
 0x689   :  { %11901 = vmatpush2.bf16.msra.mxu0 %v16469_v0  ;;  %v17037_v0 = vld [vmem:[#allocation8 + $0x220] ss:$16 sps:$4 sm:$0xff]  }
 0x68a   :  { %11926 = vmatpush1.bf16.msra.mxu1 %v16533_v7  ;;  %11902 = vmatprep.subr.bf16.mxu0 %v16462_v23  ;;  %v17042_v7 = vld [vmem:[#allocation8 + $0x4] ss:$16 sps:$4 sm:$0xff]   ;;  %v17061_v52 = vld [vmem:[#allocation8 + $0x3a0] ss:$16 sps:$4 sm:$0xff]  }
 0x68b   :  { %11927 = vmatprep.subr.bf16.mxu1 %v16526_v20  ;;  %v17045_v23 = vld [vmem:[#allocation8 + $0x204] ss:$16 sps:$4 sm:$0xff]   ;;  %v17040_v20 = vld [vmem:[#allocation8] ss:$16 sps:$4 sm:$0xff]  }
 0x68d   :  { %11903 = vmatpush2.bf16.msra.mxu0 %v16461_v35  ;;  %v17057_v35 = vld [vmem:[#allocation8 + $0x3c4] ss:$16 sps:$4 sm:$0xff]  }
 0x68e   :  { %11928 = vmatpush1.bf16.msra.mxu1 %v16525_v17  ;;  %11904 = vmatprep.subr.bf16.mxu0 %v16454_v53  ;;  %v17052_v53 = vld [vmem:[#allocation8 + $0x1c0] ss:$16 sps:$4 sm:$0xff]  }
 0x68f   :  { %11929 = vmatprep.subr.bf16.mxu1 %v16518_v16 }
 0x691   :  { %11905 = vmatpush2.bf16.msra.mxu0 %v16453_v13 }
 0x692   :  { %11930 = vmatpush1.bf16.msra.mxu1 %v16517_v38  ;;  %13609 = vmatprep.subr.bf16.mxu0 %v17000_v18  ;;  %v17063_v38 = vld [vmem:[#allocation8 + $0x3a4] ss:$16 sps:$4 sm:$0xff]  }
 0x693   :  { %13650 = vmatprep.subr.bf16.mxu1 %v17003_v31 }
 0x694   :  { %v11662_v63 = vpop.f32.mrf.mxu0  ;;  %11907 = vmatmul.mubr.bf16.vlgmr.msra.gmra.mxu0 %v17946_v48 }
 0x695   :  { %v18215_v34 = vadd.f32 %v11662_v63, %v18187_v45  ;;  %11948 = vmatmul.mubr.bf16.vlgmr.msra.gmra.mxu1 %v17578_v14  ;;  %13610 = vmatpush1.bf16.msra.mxu0 %v16998_v44  ;;  %v17010_v45 = vld [vmem:[#allocation8 + $0xa0] ss:$16 sps:$4 sm:$0xff]   ;;  %v17066_v44 = vld [vmem:[#allocation8 + $0x184] ss:$16 sps:$4 sm:$0xff]  }
 0x696   :  { %13641 = vmatprep.mubr.bf16.mxu0 %v18209_v26  ;;  %13651 = vmatpush1.bf16.msra.mxu1 %v17001_v27  ;;  %v11664_v8 = vpop.f32.mrf.mxu0  ;;  %v17064_v63 = vld [vmem:[#allocation8 + $0x180] ss:$16 sps:$4 sm:$0xff]   ;;  %v17075_v14 = vld [vmem:[#allocation8 + $0x364] ss:$16 sps:$4 sm:$0xff]  }
 0x697   :  { %13682 = vmatprep.mubr.bf16.mxu1 %v18212_v49  ;;  %v18220_v48 = vadd.f32 %v11664_v8, %v18191_v1  ;;  %13611 = vmatprep.subr.bf16.mxu0 %v17006_v40  ;;  %v17024_v1 = vld [vmem:[#allocation8 + $0x64] ss:$16 sps:$4 sm:$0xff]   ;;  %v18229_v8 = vsub.s32 0, %v18193_v19 }
 0x698   :  { %v11666_v33 = vpop.f32.mrf.mxu0  ;;  %13652 = vmatprep.subr.bf16.mxu1 %v17009_v5  ;;  %v17069_v40 = vld [vmem:[#allocation8 + $0x384] ss:$16 sps:$4 sm:$0xff]   ;;  %v17067_v5 = vld [vmem:[#allocation8 + $0x380] ss:$16 sps:$4 sm:$0xff]  }
 0x699   :  { %13612 = vmatpush1.bf16.msra.mxu0 %v17004_v10  ;;  %v17070_v10 = vld [vmem:[#allocation8 + $0x160] ss:$16 sps:$4 sm:$0xff]   ;;  %v12010_v33 = vsub.s32 5, %v18193_v19 }
 0x69a   :  { %13653 = vmatpush1.bf16.msra.mxu1 %v17007_v22  ;;  %v11667_v51 = vpop.f32.mrf.mxu0  ;;  %13613 = vmatprep.subr.bf16.mxu0 %v17012_v54  ;;  %v17073_v22 = vld [vmem:[#allocation8 + $0x360] ss:$16 sps:$4 sm:$0xff]   ;;  %v17078_v54 = vld [vmem:[#allocation8 + $0x144] ss:$16 sps:$4 sm:$0xff]  }
 0x69b   :  { %13654 = vmatprep.subr.bf16.mxu1 %v17015_v41  ;;  %v17081_v41 = vld [vmem:[#allocation8 + $0x344] ss:$16 sps:$4 sm:$0xff]   ;;  %v11991_v51 = vrot.slane %v18201_v50, %v18229_v8 }
 0x69d   :  { %13614 = vmatpush1.bf16.msra.mxu0 %v17010_v45  ;;  %v17076_v45 = vld [vmem:[#allocation8 + $0x140] ss:$16 sps:$4 sm:$0xff]  }
 0x69e   :  { %13655 = vmatpush1.bf16.msra.mxu1 %v17013_v30  ;;  %13615 = vmatprep.subr.bf16.mxu0 %v17018_v57  ;;  %v17079_v30 = vld [vmem:[#allocation8 + $0x340] ss:$16 sps:$4 sm:$0xff]   ;;  %v17084_v57 = vld [vmem:[#allocation8 + $0x124] ss:$16 sps:$4 sm:$0xff]  }
 0x69f   :  { %13656 = vmatprep.subr.bf16.mxu1 %v17021_v58 }
 0x6a1   :  { %13616 = vmatpush1.bf16.msra.mxu0 %v17016_v42  ;;  %v17087_v42 = vld [vmem:[#allocation8 + $0x324] ss:$16 sps:$4 sm:$0xff]  }
 0x6a2   :  { %13657 = vmatpush1.bf16.msra.mxu1 %v17019_v43  ;;  %13617 = vmatprep.subr.bf16.mxu0 %v17024_v1  ;;  %v12011_v43 = vrot.slane %v18201_v50, %v12010_v33  ;;  %v17082_v1 = vld [vmem:[#allocation8 + $0x120] ss:$16 sps:$4 sm:$0xff]  }
 0x6a3   :  { %13658 = vmatprep.subr.bf16.mxu1 %v17027_v37  ;;  %v12028_v37 = vadd.f32 %v11991_v51, %v17989_v21  ;;  %v17156_v21 = vld [vmem:[#allocation8 + $0x6e4] ss:$16 sps:$4 sm:$0xff]   ;;  %v17112_v33 = vld [vmem:[#allocation8 + $0x420] ss:$16 sps:$4 sm:$0xff]  }
 0x6a4   :  { %v17190_v51 = vld [vmem:[#allocation8 + $0x620] ss:$16 sps:$4 sm:$0xff]  }
 0x6a5   :  { %13618 = vmatpush1.bf16.msra.mxu0 %v17022_v61  ;;  %v17085_v61 = vld [vmem:[#allocation8 + $0x320] ss:$16 sps:$4 sm:$0xff]  }
 0x6a6   :  { %13659 = vmatpush1.bf16.msra.mxu1 %v17025_v12  ;;  %13619 = vmatprep.subr.bf16.mxu0 %v17030_v2  ;;  %v17090_v12 = vld [vmem:[#allocation8 + $0x104] ss:$16 sps:$4 sm:$0xff]  }
 0x6a7   :  { %13660 = vmatprep.subr.bf16.mxu1 %v17033_v39  ;;  %v17093_v39 = vld [vmem:[#allocation8 + $0x304] ss:$16 sps:$4 sm:$0xff]  }
 0x6a9   :  { %13620 = vmatpush1.bf16.msra.mxu0 %v17028_v56  ;;  %v12033_v56 = vadd.f32 %v12011_v43, %v18153_v28  ;;  %v17154_v28 = vld [vmem:[#allocation8 + $0x6e0] ss:$16 sps:$4 sm:$0xff]   ;;  %v17204_v43 = vld [vmem:[#allocation8 + $0x7e4] ss:$16 sps:$4 sm:$0xff]  }
 0x6aa   :  { %13661 = vmatpush1.bf16.msra.mxu1 %v17031_v9  ;;  %13621 = vmatprep.subr.bf16.mxu0 %v17036_v36  ;;  %v17088_v9 = vld [vmem:[#allocation8 + $0x100] ss:$16 sps:$4 sm:$0xff]   ;;  %v12036_v36 = vmax.f32 %v12028_v37, 0.0  ;;  %v17123_v37 = vld [vmem:[#allocation8 + $0x5c4] ss:$16 sps:$4 sm:$0xff]  }
 0x6ab   :  { %13662 = vmatprep.subr.bf16.mxu1 %v17039_v15  ;;  %v17091_v15 = vld [vmem:[#allocation8 + $0x300] ss:$16 sps:$4 sm:$0xff]  }
 0x6ad   :  { %13622 = vmatpush1.bf16.msra.mxu0 %v17034_v3  ;;  %v17096_v3 = vld [vmem:[#allocation8 + $0x4e4] ss:$16 sps:$4 sm:$0xff]  }
 0x6ae   :  { %13663 = vmatpush1.bf16.msra.mxu1 %v17037_v0  ;;  %13623 = vmatprep.subr.bf16.mxu0 %v17042_v7  ;;  %v12041_v7 = vmax.f32 %v12033_v56, 0.0 }
 0x6af   :  { %13664 = vmatprep.subr.bf16.mxu1 %v17045_v23  ;;  %v17094_v23 = vld [vmem:[#allocation8 + $0x4e0] ss:$16 sps:$4 sm:$0xff]  }
 0x6b1   :  { %13624 = vmatpush1.bf16.msra.mxu0 %v17040_v20  ;;  %v18243_v20 = vpack.c.bf16 %v12036_v36, %v12036_v36 }
 0x6b2   :  { %13665 = vmatpush1.bf16.msra.mxu1 %v17043_v46  ;;  %13625 = vmatprep.subr.bf16.mxu0 %v17048_v11  ;;  %v18247_v11 = vpack.c.bf16 %v12041_v7, %v12041_v7  ;;  %v17124_v7 = vld [vmem:[#allocation8 + $0x5a0] ss:$16 sps:$4 sm:$0xff]  }
 0x6b3   :  { %13666 = vmatprep.subr.bf16.mxu1 %v17051_v55 }
 0x6b5   :  { %v11703_v17 = vpop.f32.mrf.mxu1  ;;  %13626 = vmatpush2.bf16.msra.mxu0 %v17046_v62  ;;  %v17162_v62 = vld [vmem:[#allocation8 + $0x6c4] ss:$16 sps:$4 sm:$0xff]  }
 0x6b6   :  { %v18223_v16 = vadd.f32 %v11703_v17, %v18215_v34  ;;  %13667 = vmatpush2.bf16.msra.mxu1 %v17049_v29  ;;  %13627 = vmatprep.subr.bf16.mxu0 %v17054_v4  ;;  %v17072_v34 = vld [vmem:[#allocation8 + $0x164] ss:$16 sps:$4 sm:$0xff]   ;;  %v17097_v4 = vld [vmem:[#allocation8 + $0x4c0] ss:$16 sps:$4 sm:$0xff]  }
 0x6b7   :  { %v11705_v13 = vpop.f32.mrf.mxu1  ;;  %13668 = vmatprep.subr.bf16.mxu1 %v17057_v35  ;;  %v17102_v17 = vld [vmem:[#allocation8 + $0x4a4] ss:$16 sps:$4 sm:$0xff]  }
 0x6b8   :  { %v18226_v18 = vadd.f32 %v11705_v13, %v18220_v48  ;;  %v18232_v48 = vsub.s32 2, %v18193_v19  ;;  %v17168_v13 = vld [vmem:[#allocation8 + $0x6a4] ss:$16 sps:$4 sm:$0xff]  }
 0x6b9   :  { %v11707_v31 = vpop.f32.mrf.mxu1  ;;  %13628 = vmatpush2.bf16.msra.mxu0 %v17052_v53 }
 0x6ba   :  { %13669 = vmatpush2.bf16.msra.mxu1 %v17055_v25  ;;  %13629 = vmatprep.subr.bf16.mxu0 %v17060_v6  ;;  %v11999_v58 = vrot.slane %v18201_v50, %v18232_v48  ;;  %v17160_v25 = vld [vmem:[#allocation8 + $0x6c0] ss:$16 sps:$4 sm:$0xff]   ;;  %v17105_v31 = vld [vmem:[#allocation8 + $0x484] ss:$16 sps:$4 sm:$0xff]  }
 0x6bb   :  { %v11708_v27 = vpop.f32.mrf.mxu1  ;;  %13670 = vmatprep.subr.bf16.mxu1 %v17063_v38 }
 0x6bc   :  { %v12030_v2 = vadd.f32 %v11999_v58, %v18083_v60  ;;  %v17099_v60 = vld [vmem:[#allocation8 + $0x4c4] ss:$16 sps:$4 sm:$0xff]  }
 0x6bd   :  { %13630 = vmatpush2.bf16.msra.mxu0 %v17058_v59  ;;  %v17166_v59 = vld [vmem:[#allocation8 + $0x6a0] ss:$16 sps:$4 sm:$0xff]   ;;  %v17108_v27 = vld [vmem:[#allocation8 + $0x464] ss:$16 sps:$4 sm:$0xff]  }
 0x6be   :  { %13671 = vmatpush2.bf16.msra.mxu1 %v17061_v52  ;;  %13631 = vmatprep.subr.bf16.mxu0 %v17066_v44  ;;  %v12038_v0 = vmax.f32 %v12030_v2, 0.0  ;;  %v17174_v52 = vld [vmem:[#allocation8 + $0x684] ss:$16 sps:$4 sm:$0xff]   ;;  %v17103_v44 = vld [vmem:[#allocation8 + $0x480] ss:$16 sps:$4 sm:$0xff]  }
 0x6bf   :  { %13672 = vmatprep.subr.bf16.mxu1 %v17069_v40  ;;  %v17180_v40 = vld [vmem:[#allocation8 + $0x664] ss:$16 sps:$4 sm:$0xff]  }
 0x6c0   :  { %v18245_v46 = vpack.c.bf16 %v12038_v0, %v12038_v0  ;;  %v17120_v58 = vld [vmem:[#allocation8 + $0x5e4] ss:$16 sps:$4 sm:$0xff]  }
 0x6c1   :  { %13632 = vmatpush2.bf16.msra.mxu0 %v17064_v63  ;;  %v17106_v63 = vld [vmem:[#allocation8 + $0x460] ss:$16 sps:$4 sm:$0xff]   ;;  %v17216_v0 = vld [vmem:[#allocation8 + $0x7a4] ss:$16 sps:$4 sm:$0xff]  }
 0x6c2   :  { %13673 = vmatpush2.bf16.msra.mxu1 %v17067_v5  ;;  %13633 = vmatprep.subr.bf16.mxu0 %v17072_v34  ;;  %v17111_v5 = vld [vmem:[#allocation8 + $0x444] ss:$16 sps:$4 sm:$0xff]   ;;  %v17178_v34 = vld [vmem:[#allocation8 + $0x660] ss:$16 sps:$4 sm:$0xff]  }
 0x6c3   :  { %13674 = vmatprep.subr.bf16.mxu1 %v17075_v14  ;;  %v17186_v14 = vld [vmem:[#allocation8 + $0x644] ss:$16 sps:$4 sm:$0xff]  }
 0x6c5   :  { %13634 = vmatpush2.bf16.msra.mxu0 %v17070_v10  ;;  %v17109_v10 = vld [vmem:[#allocation8 + $0x440] ss:$16 sps:$4 sm:$0xff]  }
 0x6c6   :  { %13675 = vmatpush2.bf16.msra.mxu1 %v17073_v22  ;;  %13635 = vmatprep.subr.bf16.mxu0 %v17078_v54  ;;  %v17114_v22 = vld [vmem:[#allocation8 + $0x424] ss:$16 sps:$4 sm:$0xff]   ;;  %v17184_v54 = vld [vmem:[#allocation8 + $0x640] ss:$16 sps:$4 sm:$0xff]  }
 0x6c7   :  { %13676 = vmatprep.subr.bf16.mxu1 %v17081_v41  ;;  %v17192_v41 = vld [vmem:[#allocation8 + $0x624] ss:$16 sps:$4 sm:$0xff]  }
 0x6c9   :  { %13636 = vmatpush2.bf16.msra.mxu0 %v17076_v45  ;;  %v17117_v45 = vld [vmem:[#allocation8 + $0x404] ss:$16 sps:$4 sm:$0xff]  }
 0x6ca   :  { %13677 = vmatpush2.bf16.msra.mxu1 %v17079_v30  ;;  %13637 = vmatprep.subr.bf16.mxu0 %v17084_v57  ;;  %v17198_v30 = vld [vmem:[#allocation8 + $0x604] ss:$16 sps:$4 sm:$0xff]   ;;  %v17115_v57 = vld [vmem:[#allocation8 + $0x400] ss:$16 sps:$4 sm:$0xff]  }
 0x6cb   :  { %13678 = vmatprep.subr.bf16.mxu1 %v17087_v42  ;;  %v17196_v42 = vld [vmem:[#allocation8 + $0x600] ss:$16 sps:$4 sm:$0xff]  }
 0x6cd   :  { %13638 = vmatpush2.bf16.msra.mxu0 %v17082_v1  ;;  %v17118_v1 = vld [vmem:[#allocation8 + $0x5e0] ss:$16 sps:$4 sm:$0xff]  }
 0x6ce   :  { %13679 = vmatpush2.bf16.msra.mxu1 %v17085_v61  ;;  %13639 = vmatprep.subr.bf16.mxu0 %v17090_v12  ;;  %v17202_v61 = vld [vmem:[#allocation8 + $0x7e0] ss:$16 sps:$4 sm:$0xff]   ;;  %v17210_v12 = vld [vmem:[#allocation8 + $0x7c4] ss:$16 sps:$4 sm:$0xff]  }
 0x6cf   :  { %13680 = vmatprep.subr.bf16.mxu1 %v17093_v39  ;;  %v17121_v39 = vld [vmem:[#allocation8 + $0x5c0] ss:$16 sps:$4 sm:$0xff]  }
 0x6d1   :  { %13640 = vmatpush2.bf16.msra.mxu0 %v17088_v9  ;;  %v17126_v9 = vld [vmem:[#allocation8 + $0x5a4] ss:$16 sps:$4 sm:$0xff]  }
 0x6d2   :  { %13681 = vmatpush2.bf16.msra.mxu1 %v17091_v15  ;;  %13691 = vmatprep.subr.bf16.mxu0 %v17096_v3  ;;  %v17208_v15 = vld [vmem:[#allocation8 + $0x7c0] ss:$16 sps:$4 sm:$0xff]  }
 0x6d3   :  { %13732 = vmatprep.subr.bf16.mxu1 %v17156_v21 }
 0x6d4   :  { %v11744_v55 = vpop.f32.mrf.mxu0  ;;  %13642 = vmatmul.mubr.bf16.vlgmr.msra.gmra.mxu0 %v18243_v20 }
 0x6d5   :  { %v18251_v29 = vadd.f32 %v11744_v55, %v18223_v16  ;;  %13683 = vmatmul.mubr.bf16.vlgmr.msra.gmra.mxu1 %v18245_v46  ;;  %13692 = vmatpush1.bf16.msra.mxu0 %v17094_v23  ;;  %v17100_v16 = vld [vmem:[#allocation8 + $0x4a0] ss:$16 sps:$4 sm:$0xff]   ;;  %v17129_v23 = vld [vmem:[#allocation8 + $0x584] ss:$16 sps:$4 sm:$0xff]  }
 0x6d6   :  { %13723 = vmatprep.mubr.bf16.mxu0 %v18247_v11  ;;  %v11746_v35 = vpop.f32.mrf.mxu0  ;;  %13693 = vmatprep.subr.bf16.mxu0 %v17099_v60  ;;  %v17222_v55 = vld [vmem:[#allocation8 + $0x784] ss:$16 sps:$4 sm:$0xff]  }
 0x6d7   :  { %v18256_v53 = vadd.f32 %v11746_v35, %v18226_v18  ;;  %13733 = vmatpush1.bf16.msra.mxu1 %v17154_v28  ;;  %v17172_v18 = vld [vmem:[#allocation8 + $0x680] ss:$16 sps:$4 sm:$0xff]   ;;  %v17228_v35 = vld [vmem:[#allocation8 + $0x764] ss:$16 sps:$4 sm:$0xff]  }
 0x6d8   :  { %v11748_v6 = vpop.f32.mrf.mxu0  ;;  %13734 = vmatprep.subr.bf16.mxu1 %v17162_v62  ;;  %v17214_v28 = vld [vmem:[#allocation8 + $0x7a0] ss:$16 sps:$4 sm:$0xff]  }
 0x6d9   :  { %13694 = vmatpush1.bf16.msra.mxu0 %v17097_v4  ;;  %v17127_v62 = vld [vmem:[#allocation8 + $0x580] ss:$16 sps:$4 sm:$0xff]  }
 0x6da   :  { %v11749_v38 = vpop.f32.mrf.mxu0  ;;  %13695 = vmatprep.subr.bf16.mxu0 %v17102_v17  ;;  %v17220_v4 = vld [vmem:[#allocation8 + $0x780] ss:$16 sps:$4 sm:$0xff]  }
 0x6db   :  { %13735 = vmatpush1.bf16.msra.mxu1 %v17160_v25  ;;  %v17130_v17 = vld [vmem:[#allocation8 + $0x560] ss:$16 sps:$4 sm:$0xff]   ;;  %v17135_v25 = vld [vmem:[#allocation8 + $0x544] ss:$16 sps:$4 sm:$0xff]  }
 0x6dc   :  { %13736 = vmatprep.subr.bf16.mxu1 %v17168_v13  ;;  %v17226_v6 = vld [vmem:[#allocation8 + $0x760] ss:$16 sps:$4 sm:$0xff]   ;;  %v17234_v13 = vld [vmem:[#allocation8 + $0x744] ss:$16 sps:$4 sm:$0xff]  }
 0x6dd   :  { %13696 = vmatpush1.bf16.msra.mxu0 %v17100_v16  ;;  %v17133_v16 = vld [vmem:[#allocation8 + $0x540] ss:$16 sps:$4 sm:$0xff]  }
 0x6de   :  { %13697 = vmatprep.subr.bf16.mxu0 %v17105_v31  ;;  %v17138_v31 = vld [vmem:[#allocation8 + $0x524] ss:$16 sps:$4 sm:$0xff]  }
 0x6df   :  { %13737 = vmatpush1.bf16.msra.mxu1 %v17166_v59  ;;  %v17232_v59 = vld [vmem:[#allocation8 + $0x740] ss:$16 sps:$4 sm:$0xff]  }
 0x6e0   :  { %13738 = vmatprep.subr.bf16.mxu1 %v17174_v52  ;;  %v17240_v52 = vld [vmem:[#allocation8 + $0x724] ss:$16 sps:$4 sm:$0xff]  }
 0x6e1   :  { %13698 = vmatpush1.bf16.msra.mxu0 %v17103_v44  ;;  %v17136_v44 = vld [vmem:[#allocation8 + $0x520] ss:$16 sps:$4 sm:$0xff]  }
 0x6e2   :  { %13699 = vmatprep.subr.bf16.mxu0 %v17108_v27 }
 0x6e3   :  { %13739 = vmatpush1.bf16.msra.mxu1 %v17172_v18  ;;  %v17141_v18 = vld [vmem:[#allocation8 + $0x504] ss:$16 sps:$4 sm:$0xff]  }
 0x6e4   :  { %13740 = vmatprep.subr.bf16.mxu1 %v17180_v40  ;;  %v17238_v40 = vld [vmem:[#allocation8 + $0x720] ss:$16 sps:$4 sm:$0xff]  }
 0x6e5   :  { %13700 = vmatpush1.bf16.msra.mxu0 %v17106_v63  ;;  %v17246_v63 = vld [vmem:[#allocation8 + $0x704] ss:$16 sps:$4 sm:$0xff]  }
 0x6e6   :  { %13701 = vmatprep.subr.bf16.mxu0 %v17111_v5  ;;  %v17139_v5 = vld [vmem:[#allocation8 + $0x500] ss:$16 sps:$4 sm:$0xff]  }
 0x6e7   :  { %13741 = vmatpush1.bf16.msra.mxu1 %v17178_v34 }
 0x6e8   :  { %13742 = vmatprep.subr.bf16.mxu1 %v17186_v14  ;;  %v17144_v14 = vld [vmem:[#allocation8 + $0xec] ss:$16 sps:$4 sm:$0xff]  }
 0x6e9   :  { %13702 = vmatpush1.bf16.msra.mxu0 %v17109_v10  ;;  %v17244_v10 = vld [vmem:[#allocation8 + $0x700] ss:$16 sps:$4 sm:$0xff]  }
 0x6ea   :  { %13703 = vmatprep.subr.bf16.mxu0 %v17114_v22  ;;  %v17252_v22 = vld [vmem:[#allocation8 + $0x2ec] ss:$16 sps:$4 sm:$0xff]  }
 0x6eb   :  { %13743 = vmatpush1.bf16.msra.mxu1 %v17184_v54  ;;  %v17142_v54 = vld [vmem:[#allocation8 + $0xe8] ss:$16 sps:$4 sm:$0xff]  }
 0x6ec   :  { %13744 = vmatprep.subr.bf16.mxu1 %v17192_v41 }
 0x6ed   :  { %13704 = vmatpush1.bf16.msra.mxu0 %v17112_v33 }
 0x6ee   :  { %13705 = vmatprep.subr.bf16.mxu0 %v17117_v45  ;;  %v17145_v45 = vld [vmem:[#allocation8 + $0xc8] ss:$16 sps:$4 sm:$0xff]  }
 0x6ef   :  { %13745 = vmatpush1.bf16.msra.mxu1 %v17190_v51 }
 0x6f0   :  { %13746 = vmatprep.subr.bf16.mxu1 %v17198_v30  ;;  %v17150_v30 = vld [vmem:[#allocation8 + $0xac] ss:$16 sps:$4 sm:$0xff]  }
 0x6f1   :  { %13706 = vmatpush1.bf16.msra.mxu0 %v17115_v57 }
 0x6f2   :  { %13707 = vmatprep.subr.bf16.mxu0 %v17120_v58  ;;  %v17148_v58 = vld [vmem:[#allocation8 + $0xa8] ss:$16 sps:$4 sm:$0xff]  }
 0x6f3   :  { %13747 = vmatpush1.bf16.msra.mxu1 %v17196_v42 }
 0x6f4   :  { %13748 = vmatprep.subr.bf16.mxu1 %v17204_v43  ;;  %v17153_v43 = vld [vmem:[#allocation8 + $0x8c] ss:$16 sps:$4 sm:$0xff]  }
 0x6f5   :  { %v11785_v2 = vpop.f32.mrf.mxu1  ;;  %13708 = vmatpush2.bf16.msra.mxu0 %v17118_v1  ;;  %v17151_v1 = vld [vmem:[#allocation8 + $0x88] ss:$16 sps:$4 sm:$0xff]  }
 0x6f6   :  { %v18259_v56 = vadd.f32 %v11785_v2, %v18251_v29  ;;  %13709 = vmatprep.subr.bf16.mxu0 %v17123_v37  ;;  %v17132_v29 = vld [vmem:[#allocation8 + $0x564] ss:$16 sps:$4 sm:$0xff]   ;;  %v17159_v37 = vld [vmem:[#allocation8 + $0x6c] ss:$16 sps:$4 sm:$0xff]  }
 0x6f7   :  { %v11787_v36 = vpop.f32.mrf.mxu1  ;;  %13749 = vmatpush2.bf16.msra.mxu1 %v17202_v61  ;;  %v17157_v61 = vld [vmem:[#allocation8 + $0x68] ss:$16 sps:$4 sm:$0xff]   ;;  %v17171_v2 = vld [vmem:[#allocation8 + $0x2c] ss:$16 sps:$4 sm:$0xff]  }
 0x6f8   :  { %v18262_v3 = vadd.f32 %v11787_v36, %v18256_v53  ;;  %13750 = vmatprep.subr.bf16.mxu1 %v17210_v12  ;;  %v12006_v53 = vsub.s32 4, %v18193_v19  ;;  %v17165_v12 = vld [vmem:[#allocation8 + $0x4c] ss:$16 sps:$4 sm:$0xff]   ;;  %v17175_v36 = vld [vmem:[#allocation8 + $0x8] ss:$16 sps:$4 sm:$0xff]  }
 0x6f9   :  { %v11789_v21 = vpop.f32.mrf.mxu1  ;;  %13710 = vmatpush2.bf16.msra.mxu0 %v17121_v39  ;;  %v17169_v39 = vld [vmem:[#allocation8 + $0x28] ss:$16 sps:$4 sm:$0xff]  }
 0x6fa   :  { %13711 = vmatprep.subr.bf16.mxu0 %v17126_v9  ;;  %v12007_v38 = vrot.slane %v18201_v50, %v12006_v53  ;;  %v17177_v9 = vld [vmem:[#allocation8 + $0xc] ss:$16 sps:$4 sm:$0xff]   ;;  %v17205_v53 = vld [vmem:[#allocation8 + $0x168] ss:$16 sps:$4 sm:$0xff]  }
 0x6fb   :  { %v11790_v60 = vpop.f32.mrf.mxu1  ;;  %13751 = vmatpush2.bf16.msra.mxu1 %v17208_v15  ;;  %v17183_v15 = vld [vmem:[#allocation8 + $0x1ec] ss:$16 sps:$4 sm:$0xff]  }
 0x6fc   :  { %13752 = vmatprep.subr.bf16.mxu1 %v17216_v0  ;;  %v12032_v27 = vadd.f32 %v12007_v38, %v18149_v32  ;;  %v17147_v32 = vld [vmem:[#allocation8 + $0xcc] ss:$16 sps:$4 sm:$0xff]   ;;  %v17181_v0 = vld [vmem:[#allocation8 + $0x1e8] ss:$16 sps:$4 sm:$0xff]  }
 0x6fd   :  { %13712 = vmatpush2.bf16.msra.mxu0 %v17124_v7  ;;  %v17189_v21 = vld [vmem:[#allocation8 + $0x1cc] ss:$16 sps:$4 sm:$0xff]  }
 0x6fe   :  { %13713 = vmatprep.subr.bf16.mxu0 %v17129_v23  ;;  %v12040_v34 = vmax.f32 %v12032_v27, 0.0  ;;  %v17187_v23 = vld [vmem:[#allocation8 + $0x1c8] ss:$16 sps:$4 sm:$0xff]   ;;  %v17195_v60 = vld [vmem:[#allocation8 + $0x1ac] ss:$16 sps:$4 sm:$0xff]  }
 0x6ff   :  { %13753 = vmatpush2.bf16.msra.mxu1 %v17214_v28  ;;  %v17225_v38 = vld [vmem:[#allocation8 + $0x10c] ss:$16 sps:$4 sm:$0xff]   ;;  %v17229_v27 = vld [vmem:[#allocation8 + $0x4e8] ss:$16 sps:$4 sm:$0xff]  }
 0x700   :  { %13754 = vmatprep.subr.bf16.mxu1 %v17222_v55  ;;  %v18267_v41 = vpack.c.bf16 %v12040_v34, %v12040_v34 }
 0x701   :  { %13714 = vmatpush2.bf16.msra.mxu0 %v17127_v62  ;;  %v17193_v62 = vld [vmem:[#allocation8 + $0x1a8] ss:$16 sps:$4 sm:$0xff]  }
 0x702   :  { %13715 = vmatprep.subr.bf16.mxu0 %v17132_v29  ;;  %v17201_v29 = vld [vmem:[#allocation8 + $0x18c] ss:$16 sps:$4 sm:$0xff]  }
 0x703   :  { %13755 = vmatpush2.bf16.msra.mxu1 %v17220_v4 }
 0x704   :  { %13756 = vmatprep.subr.bf16.mxu1 %v17228_v35  ;;  %v17199_v35 = vld [vmem:[#allocation8 + $0x188] ss:$16 sps:$4 sm:$0xff]  }
 0x705   :  { %13716 = vmatpush2.bf16.msra.mxu0 %v17130_v17  ;;  %v17207_v17 = vld [vmem:[#allocation8 + $0x16c] ss:$16 sps:$4 sm:$0xff]  }
 0x706   :  { %13717 = vmatprep.subr.bf16.mxu0 %v17135_v25  ;;  %v17213_v25 = vld [vmem:[#allocation8 + $0x14c] ss:$16 sps:$4 sm:$0xff]  }
 0x707   :  { %13757 = vmatpush2.bf16.msra.mxu1 %v17226_v6  ;;  %v17211_v6 = vld [vmem:[#allocation8 + $0x148] ss:$16 sps:$4 sm:$0xff]  }
 0x708   :  { %13758 = vmatprep.subr.bf16.mxu1 %v17234_v13  ;;  %v17219_v13 = vld [vmem:[#allocation8 + $0x12c] ss:$16 sps:$4 sm:$0xff]  }
 0x709   :  { %13718 = vmatpush2.bf16.msra.mxu0 %v17133_v16  ;;  %v17217_v16 = vld [vmem:[#allocation8 + $0x128] ss:$16 sps:$4 sm:$0xff]  }
 0x70a   :  { %13719 = vmatprep.subr.bf16.mxu0 %v17138_v31  ;;  %v17223_v31 = vld [vmem:[#allocation8 + $0x108] ss:$16 sps:$4 sm:$0xff]  }
 0x70b   :  { %13759 = vmatpush2.bf16.msra.mxu1 %v17232_v59  ;;  %v17231_v59 = vld [vmem:[#allocation8 + $0x4ec] ss:$16 sps:$4 sm:$0xff]  }
 0x70c   :  { %13760 = vmatprep.subr.bf16.mxu1 %v17240_v52 }
 0x70d   :  { %13720 = vmatpush2.bf16.msra.mxu0 %v17136_v44  ;;  %v12014_v44 = vsub.s32 6, %v18193_v19 }
 0x70e   :  { %13721 = vmatprep.subr.bf16.mxu0 %v17141_v18  ;;  %v17237_v18 = vld [vmem:[#allocation8 + $0x4cc] ss:$16 sps:$4 sm:$0xff]  }
 0x70f   :  { %13761 = vmatpush2.bf16.msra.mxu1 %v17238_v40 }
 0x710   :  { %13762 = vmatprep.subr.bf16.mxu1 %v17246_v63 }
 0x711   :  { %13722 = vmatpush2.bf16.msra.mxu0 %v17139_v5  ;;  %v12018_v5 = vsub.s32 7, %v18193_v19 }
 0x712   :  { %13773 = vmatprep.subr.bf16.mxu0 %v17144_v14 }
 0x713   :  { %13763 = vmatpush2.bf16.msra.mxu1 %v17244_v10  ;;  %v12019_v19 = vrot.slane %v18201_v50, %v12018_v5  ;;  %v17295_v5 = vld [vmem:[#allocation8 + $0x588] ss:$16 sps:$4 sm:$0xff]  }
 0x714   :  { %v18269_v33 = vpop.f32.mrf.mxu0  ;;  %13724 = vmatmul.mubr.bf16.vlgmr.msra.gmra.mxu0 %v18267_v41  ;;  %13814 = vmatprep.subr.bf16.mxu1 %v17252_v22 }
 0x715   :  { %13774 = vmatpush1.bf16.msra.mxu0 %v17142_v54  ;;  %13805 = vmatprep.mubr.bf16.mxu0 %v18209_v26  ;;  %v17163_v26 = vld [vmem:[#allocation8 + $0x48] ss:$16 sps:$4 sm:$0xff]   ;;  %v11827_v52 = vadd.f32 %v18269_v33, %v18259_v56  ;;  %v12015_v56 = vrot.slane %v18201_v50, %v12014_v44  ;;  %v17243_v33 = vld [vmem:[#allocation8 + $0x4ac] ss:$16 sps:$4 sm:$0xff]  }
 0x716   :  { %v18273_v51 = vpop.f32.mrf.mxu0  ;;  %13775 = vmatprep.subr.bf16.mxu0 %v17147_v32  ;;  %v17235_v54 = vld [vmem:[#allocation8 + $0x4c8] ss:$16 sps:$4 sm:$0xff]   ;;  %v17294_v44 = vld [vmem:[#allocation8 + $0x20c] ss:$16 sps:$4 sm:$0xff]  }
 0x717   :  { %v11829_v40 = vadd.f32 %v18273_v51, %v18262_v3  ;;  %v17250_v50 = vld [vmem:[#allocation8 + $0x2e8] ss:$16 sps:$4 sm:$0xff]  }
 0x718   :  { %v11830_v57 = vpop.f32.mrf.mxu0 }
 0x719   :  { %13776 = vmatpush1.bf16.msra.mxu0 %v17145_v45 }
 0x71a   :  { %v11831_v42 = vpop.f32.mrf.mxu0  ;;  %13777 = vmatprep.subr.bf16.mxu0 %v17150_v30 }
 0x71b   :  { %v17241_v42 = vld [vmem:[#allocation8 + $0x4a8] ss:$16 sps:$4 sm:$0xff]  }
 0x71d   :  { %13778 = vmatpush1.bf16.msra.mxu0 %v17148_v58 }
 0x71e   :  { %13779 = vmatprep.subr.bf16.mxu0 %v17153_v43 }
 0x721   :  { %13780 = vmatpush1.bf16.msra.mxu0 %v17151_v1  ;;  %v17249_v1 = vld [vmem:[#allocation8 + $0x48c] ss:$16 sps:$4 sm:$0xff]  }
 0x722   :  { %13781 = vmatprep.subr.bf16.mxu0 %v17159_v37 }
 0x725   :  { %13782 = vmatpush1.bf16.msra.mxu0 %v17157_v61 }
 0x726   :  { %13783 = vmatprep.subr.bf16.mxu0 %v17165_v12 }
 0x729   :  { %13784 = vmatpush1.bf16.msra.mxu0 %v17163_v26  ;;  %v17247_v26 = vld [vmem:[#allocation8 + $0x488] ss:$16 sps:$4 sm:$0xff]  }
 0x72a   :  { %13785 = vmatprep.subr.bf16.mxu0 %v17171_v2  ;;  %v17255_v2 = vld [vmem:[#allocation8 + $0x46c] ss:$16 sps:$4 sm:$0xff]  }
 0x72d   :  { %13786 = vmatpush1.bf16.msra.mxu0 %v17169_v39 }
 0x72e   :  { %13787 = vmatprep.subr.bf16.mxu0 %v17177_v9 }
 0x731   :  { %13788 = vmatpush1.bf16.msra.mxu0 %v17175_v36  ;;  %v17258_v36 = vld [vmem:[#allocation8 + $0x2cc] ss:$16 sps:$4 sm:$0xff]  }
 0x732   :  { %13789 = vmatprep.subr.bf16.mxu0 %v17183_v15  ;;  %v17253_v15 = vld [vmem:[#allocation8 + $0x468] ss:$16 sps:$4 sm:$0xff]  }
 0x735   :  { %v11867_v7 = vpop.f32.mrf.mxu1  ;;  %13790 = vmatpush2.bf16.msra.mxu0 %v17181_v0  ;;  %v17261_v0 = vld [vmem:[#allocation8 + $0x44c] ss:$16 sps:$4 sm:$0xff]  }
 0x736   :  { %13791 = vmatprep.subr.bf16.mxu0 %v17189_v21  ;;  %v11868_v63 = vadd.f32 %v11867_v7, %v11827_v52  ;;  %v17256_v21 = vld [vmem:[#allocation8 + $0x2c8] ss:$16 sps:$4 sm:$0xff]   ;;  %v17264_v7 = vld [vmem:[#allocation8 + $0x2ac] ss:$16 sps:$4 sm:$0xff]  }
 0x737   :  { %v11869_v28 = vpop.f32.mrf.mxu1  ;;  %v17286_v52 = vld [vmem:[#allocation8 + $0x228] ss:$16 sps:$4 sm:$0xff]  }
 0x738   :  { %v11870_v14 = vadd.f32 %v11869_v28, %v11829_v40  ;;  %v17262_v28 = vld [vmem:[#allocation8 + $0x2a8] ss:$16 sps:$4 sm:$0xff]  }
 0x739   :  { %v11871_v55 = vpop.f32.mrf.mxu1  ;;  %13792 = vmatpush2.bf16.msra.mxu0 %v17187_v23  ;;  %v17259_v23 = vld [vmem:[#allocation8 + $0x448] ss:$16 sps:$4 sm:$0xff]  }
 0x73a   :  { %13793 = vmatprep.subr.bf16.mxu0 %v17195_v60  ;;  %v17267_v60 = vld [vmem:[#allocation8 + $0x42c] ss:$16 sps:$4 sm:$0xff]   ;;  %v17292_v40 = vld [vmem:[#allocation8 + $0x208] ss:$16 sps:$4 sm:$0xff]  }
 0x73b   :  { %v11872_v4 = vpop.f32.mrf.mxu1  ;;  %v17270_v55 = vld [vmem:[#allocation8 + $0x28c] ss:$16 sps:$4 sm:$0xff]  }
 0x73c   :  { %v17268_v4 = vld [vmem:[#allocation8 + $0x288] ss:$16 sps:$4 sm:$0xff]  }
 0x73d   :  { %13794 = vmatpush2.bf16.msra.mxu0 %v17193_v62  ;;  %v17265_v62 = vld [vmem:[#allocation8 + $0x428] ss:$16 sps:$4 sm:$0xff]  }
 0x73e   :  { %13795 = vmatprep.subr.bf16.mxu0 %v17201_v29  ;;  %v17273_v29 = vld [vmem:[#allocation8 + $0x40c] ss:$16 sps:$4 sm:$0xff]  }
 0x741   :  { %13796 = vmatpush2.bf16.msra.mxu0 %v17199_v35  ;;  %v17276_v35 = vld [vmem:[#allocation8 + $0x26c] ss:$16 sps:$4 sm:$0xff]  }
 0x742   :  { %13797 = vmatprep.subr.bf16.mxu0 %v17207_v17  ;;  %v17279_v17 = vld [vmem:[#allocation8 + $0x5ec] ss:$16 sps:$4 sm:$0xff]  }
 0x745   :  { %13798 = vmatpush2.bf16.msra.mxu0 %v17205_v53  ;;  %v17274_v53 = vld [vmem:[#allocation8 + $0x268] ss:$16 sps:$4 sm:$0xff]  }
 0x746   :  { %13799 = vmatprep.subr.bf16.mxu0 %v17213_v25  ;;  %v17282_v25 = vld [vmem:[#allocation8 + $0x24c] ss:$16 sps:$4 sm:$0xff]  }
 0x749   :  { %13800 = vmatpush2.bf16.msra.mxu0 %v17211_v6  ;;  %v17277_v6 = vld [vmem:[#allocation8 + $0x5e8] ss:$16 sps:$4 sm:$0xff]  }
 0x74a   :  { %13801 = vmatprep.subr.bf16.mxu0 %v17219_v13  ;;  %v17285_v13 = vld [vmem:[#allocation8 + $0x5cc] ss:$16 sps:$4 sm:$0xff]  }
 0x74d   :  { %13802 = vmatpush2.bf16.msra.mxu0 %v17217_v16  ;;  %v17280_v16 = vld [vmem:[#allocation8 + $0x248] ss:$16 sps:$4 sm:$0xff]  }
 0x74e   :  { %13803 = vmatprep.subr.bf16.mxu0 %v17225_v38  ;;  %v17288_v38 = vld [vmem:[#allocation8 + $0x22c] ss:$16 sps:$4 sm:$0xff]  }
 0x751   :  { %13804 = vmatpush2.bf16.msra.mxu0 %v17223_v31  ;;  %v17283_v31 = vld [vmem:[#allocation8 + $0x5c8] ss:$16 sps:$4 sm:$0xff]  }
 0x752   :  { %13855 = vmatprep.subr.bf16.mxu0 %v17231_v59  ;;  %v17291_v59 = vld [vmem:[#allocation8 + $0x5ac] ss:$16 sps:$4 sm:$0xff]  }
 0x754   :  { %v11908_v34 = vpop.f32.mrf.mxu0  ;;  %13806 = vmatmul.mubr.bf16.vlgmr.msra.gmra.mxu0 %v18243_v20 }
 0x755   :  { %v11909_v10 = vadd.f32 %v11908_v34, %v11868_v63  ;;  %v11949_v22 = vpop.f32.mrf.mxu1  ;;  %13856 = vmatpush1.bf16.msra.mxu0 %v17229_v27  ;;  %13887 = vmatprep.mubr.bf16.mxu0 %v18247_v11  ;;  %v17289_v27 = vld [vmem:[#allocation8 + $0x5a8] ss:$16 sps:$4 sm:$0xff]   ;;  %v17300_v63 = vld [vmem:[#allocation8 + $0x3ec] ss:$16 sps:$4 sm:$0xff]  }
 0x756   :  { %v11910_v32 = vpop.f32.mrf.mxu0  ;;  %13857 = vmatprep.subr.bf16.mxu0 %v17237_v18  ;;  %v17297_v18 = vld [vmem:[#allocation8 + $0x58c] ss:$16 sps:$4 sm:$0xff]  }
 0x757   :  { %v11950_v45 = vadd.f32 %v11949_v22, %v11909_v10  ;;  %v11911_v3 = vadd.f32 %v11910_v32, %v11870_v14  ;;  %v11951_v51 = vpop.f32.mrf.mxu1  ;;  %v17303_v34 = vld [vmem:[#allocation8 + $0x56c] ss:$16 sps:$4 sm:$0xff]   ;;  %v17298_v14 = vld [vmem:[#allocation8 + $0x3e8] ss:$16 sps:$4 sm:$0xff]  }
 0x758   :  { %v11912_v30 = vpop.f32.mrf.mxu0  ;;  %v17306_v10 = vld [vmem:[#allocation8 + $0x3cc] ss:$16 sps:$4 sm:$0xff]   ;;  %v17301_v22 = vld [vmem:[#allocation8 + $0x568] ss:$16 sps:$4 sm:$0xff]  }
 0x759   :  { %v12034_v57 = vadd.f32 %v12015_v56, %v11950_v45  ;;  %v11952_v20 = vadd.f32 %v11951_v51, %v11911_v3  ;;  %v11953_v58 = vpop.f32.mrf.mxu1  ;;  %13858 = vmatpush1.bf16.msra.mxu0 %v17235_v54  ;;  %v17309_v56 = vld [vmem:[#allocation8 + $0x54c] ss:$16 sps:$4 sm:$0xff]   ;;  %v17304_v54 = vld [vmem:[#allocation8 + $0x3c8] ss:$16 sps:$4 sm:$0xff]  }
 0x75a   :  { %v11913_v43 = vpop.f32.mrf.mxu0  ;;  %13859 = vmatprep.subr.bf16.mxu0 %v17243_v33  ;;  %v17312_v32 = vld [vmem:[#allocation8 + $0x3ac] ss:$16 sps:$4 sm:$0xff]   ;;  %v17307_v33 = vld [vmem:[#allocation8 + $0x548] ss:$16 sps:$4 sm:$0xff]  }
 0x75b   :  { %v12035_v37 = vadd.f32 %v12019_v19, %v11952_v20  ;;  %v11954_v11 = vpop.f32.mrf.mxu1  ;;  %v12042_v61 = vmax.f32 %v12034_v57, 0.0  ;;  %v17315_v45 = vld [vmem:[#allocation8 + $0x52c] ss:$16 sps:$4 sm:$0xff]   ;;  %v17310_v3 = vld [vmem:[#allocation8 + $0x3a8] ss:$16 sps:$4 sm:$0xff]  }
 0x75c   :  { %v17318_v51 = vld [vmem:[#allocation8 + $0x38c] ss:$16 sps:$4 sm:$0xff]   ;;  %v17313_v19 = vld [vmem:[#allocation8 + $0x528] ss:$16 sps:$4 sm:$0xff]  }
 0x75d   :  { %v12043_v12 = vmax.f32 %v12035_v37, 0.0  ;;  %13860 = vmatpush1.bf16.msra.mxu0 %v17241_v42  ;;  %v18287_v9 = vpack.c.bf16 %v12042_v61, %v12042_v61  ;;  %v17321_v30 = vld [vmem:[#allocation8 + $0x50c] ss:$16 sps:$4 sm:$0xff]   ;;  %v17316_v57 = vld [vmem:[#allocation8 + $0x388] ss:$16 sps:$4 sm:$0xff]  }
 0x75e   :  { %13861 = vmatprep.subr.bf16.mxu0 %v17249_v1  ;;  %v17324_v20 = vld [vmem:[#allocation8 + $0x36c] ss:$16 sps:$4 sm:$0xff]   ;;  %v17319_v58 = vld [vmem:[#allocation8 + $0x508] ss:$16 sps:$4 sm:$0xff]  }
 0x75f   :  { %v18285_v39 = vpack.c.bf16 %v12043_v12, %v12043_v12  ;;  %v18292_v42 = vld [vmem:[#allocation12 + $0x8] sm:$0xf]  ;;  %v17384_v43 = vld [vmem:[#allocation9 + $0x74] ss:$8 sps:$4 sm:$0xff]   ;;  %v17382_v61 = vld [vmem:[#allocation9 + $0x70] ss:$8 sps:$4 sm:$0xff]  }
 0x760   :  { %v17322_v1 = vld [vmem:[#allocation8 + $0x368] ss:$16 sps:$4 sm:$0xff]   ;;  %v17327_v37 = vld [vmem:[#allocation8 + $0x34c] ss:$16 sps:$4 sm:$0xff]   ;;  %v12312_v11 = vrot.slane %v18292_v42, %v18229_v8 }
 0x761   :  { %13764 = vmatprep.mubr.bf16.mxu1 %v18285_v39  ;;  %13862 = vmatpush1.bf16.msra.mxu0 %v17247_v26  ;;  %v17387_v12 = vld [vmem:[#allocation9 + $0x64] ss:$8 sps:$4 sm:$0xff]   ;;  %v17325_v26 = vld [vmem:[#allocation8 + $0x348] ss:$16 sps:$4 sm:$0xff]  }
 0x762   :  { %13765 = vmatmul.mubr.bf16.vlgmr.msra.gmra.mxu1 %v18287_v9  ;;  %13863 = vmatprep.subr.bf16.mxu0 %v17255_v2  ;;  %v12316_v2 = vrot.slane %v18292_v42, %v18196_v47 }
 0x763   :  { %13815 = vmatpush1.bf16.msra.mxu1 %v17250_v50  ;;  %13846 = vmatprep.mubr.bf16.mxu1 %v18212_v49  ;;  %v17271_v49 = vld [vmem:[#allocation8 + $0x408] ss:$16 sps:$4 sm:$0xff]  }
 0x764   :  { %13816 = vmatprep.subr.bf16.mxu1 %v17258_v36  ;;  %v17330_v36 = vld [vmem:[#allocation8 + $0x32c] ss:$16 sps:$4 sm:$0xff]  }
 0x765   :  { %13864 = vmatpush1.bf16.msra.mxu0 %v17253_v15 }
 0x766   :  { %13865 = vmatprep.subr.bf16.mxu0 %v17261_v0 }
 0x767   :  { %13817 = vmatpush1.bf16.msra.mxu1 %v17256_v21  ;;  %v17385_v21 = vld [vmem:[#allocation9 + $0x60] ss:$8 sps:$4 sm:$0xff]  }
 0x768   :  { %13818 = vmatprep.subr.bf16.mxu1 %v17264_v7 }
 0x769   :  { %13866 = vmatpush1.bf16.msra.mxu0 %v17259_v23  ;;  %v17390_v23 = vld [vmem:[#allocation9 + $0x54] ss:$8 sps:$4 sm:$0xff]  }
 0x76a   :  { %13867 = vmatprep.subr.bf16.mxu0 %v17267_v60 }
 0x76b   :  { %13819 = vmatpush1.bf16.msra.mxu1 %v17262_v28 }
 0x76c   :  { %13820 = vmatprep.subr.bf16.mxu1 %v17270_v55 }
 0x76d   :  { %13868 = vmatpush1.bf16.msra.mxu0 %v17265_v62  ;;  %v17328_v62 = vld [vmem:[#allocation8 + $0x328] ss:$16 sps:$4 sm:$0xff]  }
 0x76e   :  { %13869 = vmatprep.subr.bf16.mxu0 %v17273_v29 }
 0x76f   :  { %13821 = vmatpush1.bf16.msra.mxu1 %v17268_v4  ;;  %v17333_v4 = vld [vmem:[#allocation8 + $0x30c] ss:$16 sps:$4 sm:$0xff]  }
 0x770   :  { %13822 = vmatprep.subr.bf16.mxu1 %v17276_v35 }
 0x771   :  { %13870 = vmatpush1.bf16.msra.mxu0 %v17271_v49  ;;  %v17388_v49 = vld [vmem:[#allocation9 + $0x50] ss:$8 sps:$4 sm:$0xff]  }
 0x772   :  { %13871 = vmatprep.subr.bf16.mxu0 %v17279_v17 }
 0x773   :  { %13823 = vmatpush1.bf16.msra.mxu1 %v17274_v53  ;;  %v17393_v53 = vld [vmem:[#allocation9 + $0x44] ss:$8 sps:$4 sm:$0xff]  }
 0x774   :  { %13824 = vmatprep.subr.bf16.mxu1 %v17282_v25 }
 0x775   :  { %13872 = vmatpush2.bf16.msra.mxu0 %v17277_v6  ;;  %v17331_v6 = vld [vmem:[#allocation8 + $0x308] ss:$16 sps:$4 sm:$0xff]  }
 0x776   :  { %13873 = vmatprep.subr.bf16.mxu0 %v17285_v13  ;;  %v17336_v13 = vld [vmem:[#allocation8 + $0x6ec] ss:$16 sps:$4 sm:$0xff]  }
 0x777   :  { %13825 = vmatpush1.bf16.msra.mxu1 %v17280_v16  ;;  %v17391_v16 = vld [vmem:[#allocation9 + $0x40] ss:$8 sps:$4 sm:$0xff]  }
 0x778   :  { %13826 = vmatprep.subr.bf16.mxu1 %v17288_v38  ;;  %v17396_v38 = vld [vmem:[#allocation9 + $0x34] ss:$8 sps:$4 sm:$0xff]  }
 0x779   :  { %13874 = vmatpush2.bf16.msra.mxu0 %v17283_v31  ;;  %v17334_v31 = vld [vmem:[#allocation8 + $0x6e8] ss:$16 sps:$4 sm:$0xff]  }
 0x77a   :  { %13875 = vmatprep.subr.bf16.mxu0 %v17291_v59  ;;  %v17339_v59 = vld [vmem:[#allocation8 + $0x6cc] ss:$16 sps:$4 sm:$0xff]  }
 0x77b   :  { %13827 = vmatpush1.bf16.msra.mxu1 %v17286_v52  ;;  %v17394_v52 = vld [vmem:[#allocation9 + $0x30] ss:$8 sps:$4 sm:$0xff]  }
 0x77c   :  { %13828 = vmatprep.subr.bf16.mxu1 %v17294_v44  ;;  %v17399_v44 = vld [vmem:[#allocation9 + $0x24] ss:$8 sps:$4 sm:$0xff]  }
 0x77d   :  { %13876 = vmatpush2.bf16.msra.mxu0 %v17289_v27  ;;  %v17337_v27 = vld [vmem:[#allocation8 + $0x6c8] ss:$16 sps:$4 sm:$0xff]  }
 0x77e   :  { %13877 = vmatprep.subr.bf16.mxu0 %v17297_v18  ;;  %v17342_v18 = vld [vmem:[#allocation8 + $0x6ac] ss:$16 sps:$4 sm:$0xff]  }
 0x77f   :  { %13829 = vmatpush1.bf16.msra.mxu1 %v17292_v40  ;;  %v17397_v40 = vld [vmem:[#allocation9 + $0x20] ss:$8 sps:$4 sm:$0xff]  }
 0x780   :  { %13830 = vmatprep.subr.bf16.mxu1 %v17300_v63  ;;  %v17402_v63 = vld [vmem:[#allocation9 + $0x14] ss:$8 sps:$4 sm:$0xff]  }
 0x781   :  { %13878 = vmatpush2.bf16.msra.mxu0 %v17295_v5  ;;  %v17340_v5 = vld [vmem:[#allocation8 + $0x6a8] ss:$16 sps:$4 sm:$0xff]  }
 0x782   :  { %13879 = vmatprep.subr.bf16.mxu0 %v17303_v34  ;;  %v17345_v34 = vld [vmem:[#allocation8 + $0x68c] ss:$16 sps:$4 sm:$0xff]  }
 0x783   :  { %13831 = vmatpush2.bf16.msra.mxu1 %v17298_v14  ;;  %v17400_v14 = vld [vmem:[#allocation9 + $0x10] ss:$8 sps:$4 sm:$0xff]  }
 0x784   :  { %13832 = vmatprep.subr.bf16.mxu1 %v17306_v10  ;;  %v17343_v10 = vld [vmem:[#allocation8 + $0x688] ss:$16 sps:$4 sm:$0xff]  }
 0x785   :  { %13880 = vmatpush2.bf16.msra.mxu0 %v17301_v22  ;;  %v17348_v22 = vld [vmem:[#allocation8 + $0x66c] ss:$16 sps:$4 sm:$0xff]  }
 0x786   :  { %13881 = vmatprep.subr.bf16.mxu0 %v17309_v56  ;;  %v17408_v56 = vld [vmem:[#allocation9 + $0xf4] ss:$8 sps:$4 sm:$0xff]  }
 0x787   :  { %13833 = vmatpush2.bf16.msra.mxu1 %v17304_v54  ;;  %v17346_v54 = vld [vmem:[#allocation8 + $0x668] ss:$16 sps:$4 sm:$0xff]  }
 0x788   :  { %13834 = vmatprep.subr.bf16.mxu1 %v17312_v32  ;;  %v17351_v32 = vld [vmem:[#allocation8 + $0x64c] ss:$16 sps:$4 sm:$0xff]  }
 0x789   :  { %13882 = vmatpush2.bf16.msra.mxu0 %v17307_v33  ;;  %v17406_v33 = vld [vmem:[#allocation9 + $0xf0] ss:$8 sps:$4 sm:$0xff]  }
 0x78a   :  { %13883 = vmatprep.subr.bf16.mxu0 %v17315_v45  ;;  %v17411_v45 = vld [vmem:[#allocation9 + $0xe4] ss:$8 sps:$4 sm:$0xff]  }
 0x78b   :  { %13835 = vmatpush2.bf16.msra.mxu1 %v17310_v3  ;;  %v17349_v3 = vld [vmem:[#allocation8 + $0x648] ss:$16 sps:$4 sm:$0xff]  }
 0x78c   :  { %13836 = vmatprep.subr.bf16.mxu1 %v17318_v51  ;;  %v17354_v51 = vld [vmem:[#allocation8 + $0x62c] ss:$16 sps:$4 sm:$0xff]  }
 0x78d   :  { %13884 = vmatpush2.bf16.msra.mxu0 %v17313_v19  ;;  %v17409_v19 = vld [vmem:[#allocation9 + $0xe0] ss:$8 sps:$4 sm:$0xff]  }
 0x78e   :  { %13885 = vmatprep.subr.bf16.mxu0 %v17321_v30  ;;  %v17414_v30 = vld [vmem:[#allocation9 + $0xd4] ss:$8 sps:$4 sm:$0xff]  }
 0x78f   :  { %13837 = vmatpush2.bf16.msra.mxu1 %v17316_v57  ;;  %v17352_v57 = vld [vmem:[#allocation8 + $0x628] ss:$16 sps:$4 sm:$0xff]  }
 0x790   :  { %13838 = vmatprep.subr.bf16.mxu1 %v17324_v20  ;;  %v17357_v20 = vld [vmem:[#allocation8 + $0x60c] ss:$16 sps:$4 sm:$0xff]  }
 0x791   :  { %13886 = vmatpush2.bf16.msra.mxu0 %v17319_v58  ;;  %v17412_v58 = vld [vmem:[#allocation9 + $0xd0] ss:$8 sps:$4 sm:$0xff]  }
 0x792   :  { %14340 = vmatprep.subr.bf16.mxu0 %v17384_v43  ;;  %v17417_v43 = vld [vmem:[#allocation9 + $0xc4] ss:$8 sps:$4 sm:$0xff]  }
 0x793   :  { %13839 = vmatpush2.bf16.msra.mxu1 %v17322_v1  ;;  %v17355_v1 = vld [vmem:[#allocation8 + $0x608] ss:$16 sps:$4 sm:$0xff]  }
 0x794   :  { %v13643_v50 = vpop.f32.mrf.mxu0  ;;  %13888 = vmatmul.mubr.bf16.vlgmr.msra.gmra.mxu0 %v18267_v41  ;;  %13840 = vmatprep.subr.bf16.mxu1 %v17327_v37  ;;  %v17360_v37 = vld [vmem:[#allocation8 + $0x7ec] ss:$16 sps:$4 sm:$0xff]  }
 0x795   :  { %v13644_v15 = vadd.f32 %v13643_v50, %v12312_v11  ;;  %v13684_v0 = vpop.f32.mrf.mxu1  ;;  %14341 = vmatpush1.bf16.msra.mxu0 %v17382_v61  ;;  %v17415_v11 = vld [vmem:[#allocation9 + $0xc0] ss:$8 sps:$4 sm:$0xff]   ;;  %v17420_v61 = vld [vmem:[#allocation9 + $0xb4] ss:$8 sps:$4 sm:$0xff]   ;;  %v17423_v50 = vld [vmem:[#allocation9 + $0xa4] ss:$8 sps:$4 sm:$0xff]  }
 0x796   :  { %v13645_v7 = vpop.f32.mrf.mxu0  ;;  %14342 = vmatprep.subr.bf16.mxu0 %v17387_v12  ;;  %v17358_v12 = vld [vmem:[#allocation8 + $0x7e8] ss:$16 sps:$4 sm:$0xff]  }
 0x797   :  { %v18299_v60 = vadd.f32 %v13684_v0, %v13644_v15  ;;  %v13646_v28 = vadd.f32 %v13645_v7, %v12316_v2  ;;  %v13686_v55 = vpop.f32.mrf.mxu1  ;;  %13841 = vmatpush2.bf16.msra.mxu1 %v17325_v26  ;;  %v17363_v26 = vld [vmem:[#allocation8 + $0x7cc] ss:$16 sps:$4 sm:$0xff]   ;;  %v17418_v2 = vld [vmem:[#allocation9 + $0xb0] ss:$8 sps:$4 sm:$0xff]   ;;  %v17421_v0 = vld [vmem:[#allocation9 + $0xa0] ss:$8 sps:$4 sm:$0xff]  }
 0x798   :  { %v13647_v29 = vpop.f32.mrf.mxu0  ;;  %13842 = vmatprep.subr.bf16.mxu1 %v17330_v36  ;;  %v17361_v36 = vld [vmem:[#allocation8 + $0x7c8] ss:$16 sps:$4 sm:$0xff]   ;;  %v17366_v15 = vld [vmem:[#allocation8 + $0x7ac] ss:$16 sps:$4 sm:$0xff]  }
 0x799   :  { %v18301_v35 = vadd.f32 %v13686_v55, %v13646_v28  ;;  %v13688_v41 = vpop.f32.mrf.mxu1  ;;  %14343 = vmatpush1.bf16.msra.mxu0 %v17385_v21  ;;  %v17426_v21 = vld [vmem:[#allocation9 + $0x94] ss:$8 sps:$4 sm:$0xff]   ;;  %v17364_v7 = vld [vmem:[#allocation8 + $0x7a8] ss:$16 sps:$4 sm:$0xff]   ;;  %v17429_v55 = vld [vmem:[#allocation9 + $0x84] ss:$8 sps:$4 sm:$0xff]  }
 0x79a   :  { %v13648_v17 = vpop.f32.mrf.mxu0  ;;  %14344 = vmatprep.subr.bf16.mxu0 %v17390_v23  ;;  %v17369_v23 = vld [vmem:[#allocation8 + $0x78c] ss:$16 sps:$4 sm:$0xff]   ;;  %v17424_v28 = vld [vmem:[#allocation9 + $0x90] ss:$8 sps:$4 sm:$0xff]  }
 0x79b   :  { %v13689_v25 = vpop.f32.mrf.mxu1  ;;  %13843 = vmatpush2.bf16.msra.mxu1 %v17328_v62  ;;  %v17367_v62 = vld [vmem:[#allocation8 + $0x788] ss:$16 sps:$4 sm:$0xff]   ;;  %v17372_v29 = vld [vmem:[#allocation8 + $0x76c] ss:$16 sps:$4 sm:$0xff]  }
 0x79c   :  { %13844 = vmatprep.subr.bf16.mxu1 %v17333_v4  ;;  %v17427_v4 = vld [vmem:[#allocation9 + $0x80] ss:$8 sps:$4 sm:$0xff]   ;;  %v17378_v25 = vld [vmem:[#allocation8 + $0x72c] ss:$16 sps:$4 sm:$0xff]  }
 0x79d   :  { %14345 = vmatpush1.bf16.msra.mxu0 %v17388_v49  ;;  %v17370_v41 = vld [vmem:[#allocation8 + $0x768] ss:$16 sps:$4 sm:$0xff]   ;;  %v17375_v49 = vld [vmem:[#allocation8 + $0x74c] ss:$16 sps:$4 sm:$0xff]  }
 0x79e   :  { %14346 = vmatprep.subr.bf16.mxu0 %v17393_v53  ;;  %v17373_v17 = vld [vmem:[#allocation8 + $0x748] ss:$16 sps:$4 sm:$0xff]  }
 0x79f   :  { %13845 = vmatpush2.bf16.msra.mxu1 %v17331_v6 }
 0x7a0   :  { %13896 = vmatprep.subr.bf16.mxu1 %v17336_v13 }
 0x7a1   :  { %14347 = vmatpush1.bf16.msra.mxu0 %v17391_v16 }
 0x7a2   :  { %13847 = vmatmul.mubr.bf16.vlgmr.msra.gmra.mxu1 %v18245_v46  ;;  %14348 = vmatprep.subr.bf16.mxu0 %v17396_v38  ;;  %v17405_v46 = vld [vmem:[#allocation9 + $0x4] ss:$8 sps:$4 sm:$0xff]   ;;  %v17376_v38 = vld [vmem:[#allocation8 + $0x728] ss:$16 sps:$4 sm:$0xff]  }
 0x7a3   :  { %13897 = vmatpush1.bf16.msra.mxu1 %v17334_v31  ;;  %13928 = vmatprep.mubr.bf16.mxu1 %v18285_v39  ;;  %v17403_v39 = vld [vmem:[#allocation9] ss:$8 sps:$4 sm:$0xff]  }
 0x7a4   :  { %13898 = vmatprep.subr.bf16.mxu1 %v17339_v59  ;;  %v17381_v59 = vld [vmem:[#allocation8 + $0x70c] ss:$16 sps:$4 sm:$0xff]  }
 0x7a5   :  { %14349 = vmatpush1.bf16.msra.mxu0 %v17394_v52 }
 0x7a6   :  { %14350 = vmatprep.subr.bf16.mxu0 %v17399_v44  ;;  %v17379_v44 = vld [vmem:[#allocation8 + $0x708] ss:$16 sps:$4 sm:$0xff]  }
 0x7a7   :  { %13899 = vmatpush1.bf16.msra.mxu1 %v17337_v27  ;;  %v17430_v27 = vld [vmem:[#allocation9 + $0x170] ss:$8 sps:$4 sm:$0xff]  }
 0x7a8   :  { %13900 = vmatprep.subr.bf16.mxu1 %v17342_v18  ;;  %v17432_v18 = vld [vmem:[#allocation9 + $0x174] ss:$8 sps:$4 sm:$0xff]  }
 0x7a9   :  { %14351 = vmatpush1.bf16.msra.mxu0 %v17397_v40  ;;  %v17433_v40 = vld [vmem:[#allocation9 + $0x160] ss:$8 sps:$4 sm:$0xff]  }
 0x7aa   :  { %14352 = vmatprep.subr.bf16.mxu0 %v17402_v63  ;;  %v17436_v63 = vld [vmem:[#allocation9 + $0x150] ss:$8 sps:$4 sm:$0xff]  }
 0x7ab   :  { %13901 = vmatpush1.bf16.msra.mxu1 %v17340_v5  ;;  %v17441_v5 = vld [vmem:[#allocation9 + $0x144] ss:$8 sps:$4 sm:$0xff]  }
 0x7ac   :  { %13902 = vmatprep.subr.bf16.mxu1 %v17345_v34  ;;  %v17439_v34 = vld [vmem:[#allocation9 + $0x140] ss:$8 sps:$4 sm:$0xff]  }
 0x7ad   :  { %14353 = vmatpush1.bf16.msra.mxu0 %v17400_v14  ;;  %v17444_v14 = vld [vmem:[#allocation9 + $0x134] ss:$8 sps:$4 sm:$0xff]  }
 0x7ae   :  { %14354 = vmatprep.subr.bf16.mxu0 %v17405_v46  ;;  %v17442_v46 = vld [vmem:[#allocation9 + $0x130] ss:$8 sps:$4 sm:$0xff]  }
 0x7af   :  { %13903 = vmatpush1.bf16.msra.mxu1 %v17343_v10  ;;  %v17445_v10 = vld [vmem:[#allocation9 + $0x120] ss:$8 sps:$4 sm:$0xff]  }
 0x7b0   :  { %13904 = vmatprep.subr.bf16.mxu1 %v17348_v22  ;;  %v17450_v22 = vld [vmem:[#allocation9 + $0x114] ss:$8 sps:$4 sm:$0xff]  }
 0x7b1   :  { %14355 = vmatpush1.bf16.msra.mxu0 %v17403_v39  ;;  %v17448_v39 = vld [vmem:[#allocation9 + $0x110] ss:$8 sps:$4 sm:$0xff]  }
 0x7b2   :  { %14356 = vmatprep.subr.bf16.mxu0 %v17408_v56  ;;  %v17453_v56 = vld [vmem:[#allocation9 + $0x104] ss:$8 sps:$4 sm:$0xff]  }
 0x7b3   :  { %13905 = vmatpush1.bf16.msra.mxu1 %v17346_v54  ;;  %v17451_v54 = vld [vmem:[#allocation9 + $0x100] ss:$8 sps:$4 sm:$0xff]  }
 0x7b4   :  { %13906 = vmatprep.subr.bf16.mxu1 %v17351_v32  ;;  %v17456_v32 = vld [vmem:[#allocation9 + $0x1f4] ss:$8 sps:$4 sm:$0xff]  }
 0x7b5   :  { %14357 = vmatpush2.bf16.msra.mxu0 %v17406_v33  ;;  %v17454_v33 = vld [vmem:[#allocation9 + $0x1f0] ss:$8 sps:$4 sm:$0xff]  }
 0x7b6   :  { %14358 = vmatprep.subr.bf16.mxu0 %v17411_v45  ;;  %v17459_v45 = vld [vmem:[#allocation9 + $0x1e4] ss:$8 sps:$4 sm:$0xff]  }
 0x7b7   :  { %13907 = vmatpush1.bf16.msra.mxu1 %v17349_v3  ;;  %v17457_v3 = vld [vmem:[#allocation9 + $0x1e0] ss:$8 sps:$4 sm:$0xff]  }
 0x7b8   :  { %13908 = vmatprep.subr.bf16.mxu1 %v17354_v51  ;;  %v17462_v51 = vld [vmem:[#allocation9 + $0x1d4] ss:$8 sps:$4 sm:$0xff]  }
 0x7b9   :  { %14359 = vmatpush2.bf16.msra.mxu0 %v17409_v19  ;;  %v17460_v19 = vld [vmem:[#allocation9 + $0x1d0] ss:$8 sps:$4 sm:$0xff]  }
 0x7ba   :  { %14360 = vmatprep.subr.bf16.mxu0 %v17414_v30  ;;  %v17465_v30 = vld [vmem:[#allocation9 + $0x1c4] ss:$8 sps:$4 sm:$0xff]  }
 0x7bb   :  { %13909 = vmatpush1.bf16.msra.mxu1 %v17352_v57  ;;  %v17463_v57 = vld [vmem:[#allocation9 + $0x1c0] ss:$8 sps:$4 sm:$0xff]  }
 0x7bc   :  { %13910 = vmatprep.subr.bf16.mxu1 %v17357_v20 }
 0x7bd   :  { %14361 = vmatpush2.bf16.msra.mxu0 %v17412_v58  ;;  %v17468_v58 = vld [vmem:[#allocation9 + $0x1b4] ss:$8 sps:$4 sm:$0xff]  }
 0x7be   :  { %14362 = vmatprep.subr.bf16.mxu0 %v17417_v43 }
 0x7bf   :  { %13911 = vmatpush1.bf16.msra.mxu1 %v17355_v1  ;;  %v17466_v1 = vld [vmem:[#allocation9 + $0x1b0] ss:$8 sps:$4 sm:$0xff]  }
 0x7c0   :  { %13912 = vmatprep.subr.bf16.mxu1 %v17360_v37 }
 0x7c1   :  { %14363 = vmatpush2.bf16.msra.mxu0 %v17415_v11  ;;  %v17471_v11 = vld [vmem:[#allocation9 + $0x1a4] ss:$8 sps:$4 sm:$0xff]  }
 0x7c2   :  { %14364 = vmatprep.subr.bf16.mxu0 %v17420_v61 }
 0x7c3   :  { %13913 = vmatpush2.bf16.msra.mxu1 %v17358_v12  ;;  %v17469_v12 = vld [vmem:[#allocation9 + $0x1a0] ss:$8 sps:$4 sm:$0xff]  }
 0x7c4   :  { %13914 = vmatprep.subr.bf16.mxu1 %v17363_v26 }
 0x7c5   :  { %14365 = vmatpush2.bf16.msra.mxu0 %v17418_v2 }
 0x7c6   :  { %14366 = vmatprep.subr.bf16.mxu0 %v17423_v50  ;;  %v17474_v50 = vld [vmem:[#allocation9 + $0x194] ss:$8 sps:$4 sm:$0xff]  }
 0x7c7   :  { %13915 = vmatpush2.bf16.msra.mxu1 %v17361_v36 }
 0x7c8   :  { %13916 = vmatprep.subr.bf16.mxu1 %v17366_v15  ;;  %v17472_v15 = vld [vmem:[#allocation9 + $0x190] ss:$8 sps:$4 sm:$0xff]  }
 0x7c9   :  { %14367 = vmatpush2.bf16.msra.mxu0 %v17421_v0 }
 0x7ca   :  { %14368 = vmatprep.subr.bf16.mxu0 %v17426_v21 }
 0x7cb   :  { %13917 = vmatpush2.bf16.msra.mxu1 %v17364_v7 }
 0x7cc   :  { %13918 = vmatprep.subr.bf16.mxu1 %v17369_v23 }
 0x7cd   :  { %14369 = vmatpush2.bf16.msra.mxu0 %v17424_v28  ;;  %v17477_v28 = vld [vmem:[#allocation9 + $0x184] ss:$8 sps:$4 sm:$0xff]  }
 0x7ce   :  { %14370 = vmatprep.subr.bf16.mxu0 %v17429_v55 }
 0x7cf   :  { %13919 = vmatpush2.bf16.msra.mxu1 %v17367_v62  ;;  %v17475_v62 = vld [vmem:[#allocation9 + $0x180] ss:$8 sps:$4 sm:$0xff]  }
 0x7d0   :  { %13920 = vmatprep.subr.bf16.mxu1 %v17372_v29 }
 0x7d1   :  { %14371 = vmatpush2.bf16.msra.mxu0 %v17427_v4 }
 0x7d3   :  { %13921 = vmatpush2.bf16.msra.mxu1 %v17370_v41 }
 0x7d4   :  { %v13725_v53 = vpop.f32.mrf.mxu0  ;;  %13922 = vmatprep.subr.bf16.mxu1 %v17375_v49 }
 0x7d5   :  { %v18306_v6 = vadd.f32 %v13725_v53, %v18299_v60  ;;  %v17435_v60 = vld [vmem:[#allocation9 + $0x164] ss:$8 sps:$4 sm:$0xff]  }
 0x7d6   :  { %v13727_v13 = vpop.f32.mrf.mxu0 }
 0x7d7   :  { %v18309_v16 = vadd.f32 %v13727_v13, %v18301_v35  ;;  %13923 = vmatpush2.bf16.msra.mxu1 %v17373_v17  ;;  %v17438_v35 = vld [vmem:[#allocation9 + $0x154] ss:$8 sps:$4 sm:$0xff]  }
 0x7d8   :  { %v13729_v31 = vpop.f32.mrf.mxu0  ;;  %13924 = vmatprep.subr.bf16.mxu1 %v17378_v25  ;;  %v12320_v25 = vrot.slane %v18292_v42, %v18232_v48 }
 0x7da   :  { %v13730_v52 = vpop.f32.mrf.mxu0 }
 0x7db   :  { %13925 = vmatpush2.bf16.msra.mxu1 %v17376_v38 }
 0x7dc   :  { %13926 = vmatprep.subr.bf16.mxu1 %v17381_v59 }
 0x7df   :  { %13927 = vmatpush2.bf16.msra.mxu1 %v17379_v44 }
 0x7e0   :  { %14381 = vmatprep.subr.bf16.mxu1 %v17432_v18 }
 0x7e2   :  { %13929 = vmatmul.mubr.bf16.vlgmr.msra.gmra.mxu1 %v18287_v9  ;;  %v17447_v9 = vld [vmem:[#allocation9 + $0x124] ss:$8 sps:$4 sm:$0xff]  }
 0x7e3   :  { %14382 = vmatpush1.bf16.msra.mxu1 %v17430_v27 }
 0x7e4   :  { %14383 = vmatprep.subr.bf16.mxu1 %v17435_v60 }
 0x7e7   :  { %14384 = vmatpush1.bf16.msra.mxu1 %v17433_v40  ;;  %v17478_v40 = vld [vmem:[#allocation11 + $0xe0] ss:$16 sps:$4 sm:$0xff]  }
 0x7e8   :  { %14385 = vmatprep.subr.bf16.mxu1 %v17438_v35  ;;  %v17480_v35 = vld [vmem:[#allocation11 + $0xe4] ss:$16 sps:$4 sm:$0xff]  }
 0x7e9   :  { %14831 = vmatprep.subr.bf16.mxu0 %v17480_v35  ;;  %v17547_v35 = vld [vmem:[#allocation11 + $0x188] ss:$16 sps:$4 sm:$0xff]  }
 0x7eb   :  { %14386 = vmatpush1.bf16.msra.mxu1 %v17436_v63  ;;  %v17483_v63 = vld [vmem:[#allocation11 + $0xec] ss:$16 sps:$4 sm:$0xff]  }
 0x7ec   :  { %14387 = vmatprep.subr.bf16.mxu1 %v17441_v5  ;;  %v17486_v5 = vld [vmem:[#allocation11 + $0xc4] ss:$16 sps:$4 sm:$0xff]  }
 0x7ef   :  { %14388 = vmatpush1.bf16.msra.mxu1 %v17439_v34  ;;  %v17484_v34 = vld [vmem:[#allocation11 + $0xc0] ss:$16 sps:$4 sm:$0xff]  }
 0x7f0   :  { %14389 = vmatprep.subr.bf16.mxu1 %v17444_v14  ;;  %v17490_v14 = vld [vmem:[#allocation11 + $0xa0] ss:$16 sps:$4 sm:$0xff]  }
 0x7f3   :  { %14390 = vmatpush1.bf16.msra.mxu1 %v17442_v46  ;;  %v17498_v46 = vld [vmem:[#allocation11 + $0x84] ss:$16 sps:$4 sm:$0xff]  }
 0x7f4   :  { %14391 = vmatprep.subr.bf16.mxu1 %v17447_v9  ;;  %v17496_v9 = vld [vmem:[#allocation11 + $0x80] ss:$16 sps:$4 sm:$0xff]  }
 0x7f7   :  { %14392 = vmatpush1.bf16.msra.mxu1 %v17445_v10  ;;  %v17504_v10 = vld [vmem:[#allocation11 + $0x64] ss:$16 sps:$4 sm:$0xff]  }
 0x7f8   :  { %14393 = vmatprep.subr.bf16.mxu1 %v17450_v22  ;;  %v17502_v22 = vld [vmem:[#allocation11 + $0x60] ss:$16 sps:$4 sm:$0xff]  }
 0x7fb   :  { %14394 = vmatpush1.bf16.msra.mxu1 %v17448_v39  ;;  %v17510_v39 = vld [vmem:[#allocation11 + $0x44] ss:$16 sps:$4 sm:$0xff]  }
 0x7fc   :  { %14395 = vmatprep.subr.bf16.mxu1 %v17453_v56  ;;  %v17508_v56 = vld [vmem:[#allocation11 + $0x40] ss:$16 sps:$4 sm:$0xff]  }
 0x7ff   :  { %14396 = vmatpush1.bf16.msra.mxu1 %v17451_v54  ;;  %v17516_v54 = vld [vmem:[#allocation11 + $0x24] ss:$16 sps:$4 sm:$0xff]  }
 0x800   :  { %14397 = vmatprep.subr.bf16.mxu1 %v17456_v32  ;;  %v17514_v32 = vld [vmem:[#allocation11 + $0x20] ss:$16 sps:$4 sm:$0xff]  }
 0x803   :  { %14398 = vmatpush2.bf16.msra.mxu1 %v17454_v33  ;;  %v17522_v33 = vld [vmem:[#allocation11 + $0x4] ss:$16 sps:$4 sm:$0xff]  }
 0x804   :  { %14399 = vmatprep.subr.bf16.mxu1 %v17459_v45  ;;  %v17520_v45 = vld [vmem:[#allocation11] ss:$16 sps:$4 sm:$0xff]  }
 0x807   :  { %14400 = vmatpush2.bf16.msra.mxu1 %v17457_v3  ;;  %v17528_v3 = vld [vmem:[#allocation11 + $0x1e4] ss:$16 sps:$4 sm:$0xff]  }
 0x808   :  { %14401 = vmatprep.subr.bf16.mxu1 %v17462_v51  ;;  %v17526_v51 = vld [vmem:[#allocation11 + $0x1e0] ss:$16 sps:$4 sm:$0xff]  }
 0x80b   :  { %14402 = vmatpush2.bf16.msra.mxu1 %v17460_v19  ;;  %v17534_v19 = vld [vmem:[#allocation11 + $0x1c4] ss:$16 sps:$4 sm:$0xff]  }
 0x80c   :  { %14403 = vmatprep.subr.bf16.mxu1 %v17465_v30  ;;  %v17532_v30 = vld [vmem:[#allocation11 + $0x1c0] ss:$16 sps:$4 sm:$0xff]  }
 0x80f   :  { %14404 = vmatpush2.bf16.msra.mxu1 %v17463_v57  ;;  %v17540_v57 = vld [vmem:[#allocation11 + $0x1a4] ss:$16 sps:$4 sm:$0xff]  }
 0x810   :  { %14405 = vmatprep.subr.bf16.mxu1 %v17468_v58  ;;  %v17546_v58 = vld [vmem:[#allocation11 + $0x184] ss:$16 sps:$4 sm:$0xff]  }
 0x813   :  { %14406 = vmatpush2.bf16.msra.mxu1 %v17466_v1  ;;  %v17552_v1 = vld [vmem:[#allocation11 + $0x164] ss:$16 sps:$4 sm:$0xff]  }
 0x814   :  { %v13807_v20 = vpop.f32.mrf.mxu0  ;;  %14407 = vmatprep.subr.bf16.mxu1 %v17471_v11 }
 0x815   :  { %v13808_v13 = vadd.f32 %v13807_v20, %v12320_v25  ;;  %v17538_v20 = vld [vmem:[#allocation11 + $0x1a0] ss:$16 sps:$4 sm:$0xff]   ;;  %v17513_v25 = vld [vmem:[#allocation11 + $0x4c] ss:$16 sps:$4 sm:$0xff]  }
 0x816   :  { %v13809_v43 = vpop.f32.mrf.mxu0 }
 0x817   :  { %14408 = vmatpush2.bf16.msra.mxu1 %v17469_v12 }
 0x818   :  { %v13811_v37 = vpop.f32.mrf.mxu0  ;;  %14409 = vmatprep.subr.bf16.mxu1 %v17474_v50  ;;  %v17556_v50 = vld [vmem:[#allocation11 + $0x140] ss:$16 sps:$4 sm:$0xff]  }
 0x819   :  { %v17550_v37 = vld [vmem:[#allocation11 + $0x160] ss:$16 sps:$4 sm:$0xff]  }
 0x81a   :  { %v13812_v61 = vpop.f32.mrf.mxu0 }
 0x81b   :  { %14410 = vmatpush2.bf16.msra.mxu1 %v17472_v15  ;;  %v17558_v61 = vld [vmem:[#allocation11 + $0x144] ss:$16 sps:$4 sm:$0xff]  }
 0x81c   :  { %14411 = vmatprep.subr.bf16.mxu1 %v17477_v28 }
 0x81f   :  { %14412 = vmatpush2.bf16.msra.mxu1 %v17475_v62  ;;  %v17487_v62 = vld [vmem:[#allocation11 + $0xc8] ss:$16 sps:$4 sm:$0xff]  }
 0x820   :  { %14872 = vmatprep.subr.bf16.mxu1 %v17483_v63  ;;  %v17555_v63 = vld [vmem:[#allocation11 + $0x16c] ss:$16 sps:$4 sm:$0xff]  }
 0x822   :  { %v13766_v26 = vpop.f32.mrf.mxu1 }
 0x823   :  { %v13767_v2 = vadd.f32 %v13766_v26, %v18306_v6  ;;  %v12324_v6 = vrot.slane %v18292_v42, %v18199_v24  ;;  %v17492_v42 = vld [vmem:[#allocation11 + $0xa4] ss:$16 sps:$4 sm:$0xff]  }
 0x824   :  { %v13768_v36 = vpop.f32.mrf.mxu1 }
 0x825   :  { %v13769_v0 = vadd.f32 %v13768_v36, %v18309_v16  ;;  %v13937_v21 = vmax.f32 %v13767_v2, 0.0  ;;  %v13810_v38 = vadd.f32 %v13809_v43, %v12324_v6  ;;  %v17544_v43 = vld [vmem:[#allocation11 + $0x180] ss:$16 sps:$4 sm:$0xff]   ;;  %v17511_v6 = vld [vmem:[#allocation11 + $0x48] ss:$16 sps:$4 sm:$0xff]  }
 0x826   :  { %v13770_v7 = vpop.f32.mrf.mxu1 }
 0x827   :  { %v13938_v23 = vmax.f32 %v13769_v0, 0.0  ;;  %v13941_v4 = vpack.c.bf16 %v13937_v21, %v13937_v21 }
 0x828   :  { %v13771_v55 = vpop.f32.mrf.mxu1 }
 0x829   :  { %v13942_v29 = vpack.c.bf16 %v13938_v23, %v13938_v23  ;;  %v17481_v23 = vld [vmem:[#allocation11 + $0xe8] ss:$16 sps:$4 sm:$0xff]   ;;  %v17489_v55 = vld [vmem:[#allocation11 + $0xcc] ss:$16 sps:$4 sm:$0xff]  }
 0x82b   :  { %14372 = vmatprep.mubr.bf16.mxu0 %v13942_v29  ;;  %v17495_v29 = vld [vmem:[#allocation11 + $0xac] ss:$16 sps:$4 sm:$0xff]  }
 0x82c   :  { %14373 = vmatmul.mubr.bf16.vlgmr.msra.gmra.mxu0 %v13941_v4  ;;  %v17493_v4 = vld [vmem:[#allocation11 + $0xa8] ss:$16 sps:$4 sm:$0xff]  }
 0x82d   :  { %14832 = vmatpush1.bf16.msra.mxu0 %v17478_v40  ;;  %v17549_v40 = vld [vmem:[#allocation11 + $0x18c] ss:$16 sps:$4 sm:$0xff]  }
 0x82e   :  { %14833 = vmatprep.subr.bf16.mxu0 %v17486_v5  ;;  %v17553_v5 = vld [vmem:[#allocation11 + $0x168] ss:$16 sps:$4 sm:$0xff]  }
 0x831   :  { %14834 = vmatpush1.bf16.msra.mxu0 %v17484_v34  ;;  %v17561_v34 = vld [vmem:[#allocation11 + $0x14c] ss:$16 sps:$4 sm:$0xff]  }
 0x832   :  { %14835 = vmatprep.subr.bf16.mxu0 %v17492_v42  ;;  %v17559_v42 = vld [vmem:[#allocation11 + $0x148] ss:$16 sps:$4 sm:$0xff]  }
 0x835   :  { %14836 = vmatpush1.bf16.msra.mxu0 %v17490_v14 }
 0x836   :  { %14837 = vmatprep.subr.bf16.mxu0 %v17498_v46  ;;  %v17564_v46 = vld [vmem:[#allocation11 + $0x124] ss:$16 sps:$4 sm:$0xff]  }
 0x839   :  { %14838 = vmatpush1.bf16.msra.mxu0 %v17496_v9  ;;  %v17567_v9 = vld [vmem:[#allocation11 + $0x12c] ss:$16 sps:$4 sm:$0xff]  }
 0x83a   :  { %14839 = vmatprep.subr.bf16.mxu0 %v17504_v10 }
 0x83d   :  { %14840 = vmatpush1.bf16.msra.mxu0 %v17502_v22  ;;  %v17562_v22 = vld [vmem:[#allocation11 + $0x120] ss:$16 sps:$4 sm:$0xff]  }
 0x83e   :  { %14841 = vmatprep.subr.bf16.mxu0 %v17510_v39  ;;  %v17565_v39 = vld [vmem:[#allocation11 + $0x128] ss:$16 sps:$4 sm:$0xff]  }
 0x841   :  { %14842 = vmatpush1.bf16.msra.mxu0 %v17508_v56 }
 0x842   :  { %14843 = vmatprep.subr.bf16.mxu0 %v17516_v54  ;;  %v17570_v54 = vld [vmem:[#allocation11 + $0x104] ss:$16 sps:$4 sm:$0xff]  }
 0x845   :  { %14844 = vmatpush1.bf16.msra.mxu0 %v17514_v32  ;;  %v17573_v32 = vld [vmem:[#allocation11 + $0x10c] ss:$16 sps:$4 sm:$0xff]  }
 0x846   :  { %14845 = vmatprep.subr.bf16.mxu0 %v17522_v33 }
 0x849   :  { %14846 = vmatpush1.bf16.msra.mxu0 %v17520_v45  ;;  %v17568_v45 = vld [vmem:[#allocation11 + $0x100] ss:$16 sps:$4 sm:$0xff]  }
 0x84a   :  { %14847 = vmatprep.subr.bf16.mxu0 %v17528_v3  ;;  %v17571_v3 = vld [vmem:[#allocation11 + $0x108] ss:$16 sps:$4 sm:$0xff]  }
 0x84d   :  { %14848 = vmatpush2.bf16.msra.mxu0 %v17526_v51  ;;  %v11977_v51 = vld [vmem:[#allocation12 + $0xc] sm:$0x3] }
 0x84e   :  { %14849 = vmatprep.subr.bf16.mxu0 %v17534_v19  ;;  %v14013_v19 = vrot.slane %v11977_v51, %v18229_v8 }
 0x851   :  { %14850 = vmatpush2.bf16.msra.mxu0 %v17532_v30  ;;  %v14017_v30 = vrot.slane %v11977_v51, %v18196_v47 }
 0x852   :  { %14851 = vmatprep.subr.bf16.mxu0 %v17540_v57 }
 0x854   :  { %v13889_v41 = vpop.f32.mrf.mxu0 }
 0x855   :  { %14852 = vmatpush2.bf16.msra.mxu0 %v17538_v20 }
 0x856   :  { %v13891_v49 = vpop.f32.mrf.mxu0  ;;  %14853 = vmatprep.subr.bf16.mxu0 %v17546_v58 }
 0x858   :  { %v13893_v17 = vpop.f32.mrf.mxu0 }
 0x859   :  { %14854 = vmatpush2.bf16.msra.mxu0 %v17544_v43  ;;  %v17507_v17 = vld [vmem:[#allocation11 + $0x6c] ss:$16 sps:$4 sm:$0xff]  }
 0x85a   :  { %v13894_v53 = vpop.f32.mrf.mxu0  ;;  %14855 = vmatprep.subr.bf16.mxu0 %v17552_v1 }
 0x85b   :  { %v17505_v53 = vld [vmem:[#allocation11 + $0x68] ss:$16 sps:$4 sm:$0xff]  }
 0x85d   :  { %14856 = vmatpush2.bf16.msra.mxu0 %v17550_v37 }
 0x85e   :  { %14857 = vmatprep.subr.bf16.mxu0 %v17558_v61 }
 0x861   :  { %14858 = vmatpush2.bf16.msra.mxu0 %v17556_v50 }
 0x862   :  { %v13848_v16 = vpop.f32.mrf.mxu1  ;;  %14859 = vmatprep.subr.bf16.mxu0 %v17564_v46 }
 0x863   :  { %v13849_v31 = vadd.f32 %v13848_v16, %v13808_v13  ;;  %v17519_v13 = vld [vmem:[#allocation11 + $0x2c] ss:$16 sps:$4 sm:$0xff]   ;;  %v17517_v16 = vld [vmem:[#allocation11 + $0x28] ss:$16 sps:$4 sm:$0xff]  }
 0x864   :  { %v13850_v59 = vpop.f32.mrf.mxu1 }
 0x865   :  { %v13851_v52 = vadd.f32 %v13850_v59, %v13810_v38  ;;  %v13890_v44 = vadd.f32 %v13889_v41, %v13849_v31  ;;  %v17501_v41 = vld [vmem:[#allocation11 + $0x8c] ss:$16 sps:$4 sm:$0xff]   ;;  %v17523_v31 = vld [vmem:[#allocation11 + $0x8] ss:$16 sps:$4 sm:$0xff]   ;;  %14860 = vmatpush2.bf16.msra.mxu0 %v17562_v22 }
 0x866   :  { %v13852_v27 = vpop.f32.mrf.mxu1  ;;  %v17525_v38 = vld [vmem:[#allocation11 + $0xc] ss:$16 sps:$4 sm:$0xff]   ;;  %14861 = vmatprep.subr.bf16.mxu0 %v17570_v54 }
 0x867   :  { %v13892_v18 = vadd.f32 %v13891_v49, %v13851_v52  ;;  %v17499_v49 = vld [vmem:[#allocation11 + $0x88] ss:$16 sps:$4 sm:$0xff]   ;;  %v17531_v59 = vld [vmem:[#allocation11 + $0x1ec] ss:$16 sps:$4 sm:$0xff]  }
 0x868   :  { %v13853_v60 = vpop.f32.mrf.mxu1  ;;  %v17529_v52 = vld [vmem:[#allocation11 + $0x1e8] ss:$16 sps:$4 sm:$0xff]  }
 0x869   :  { %v17535_v27 = vld [vmem:[#allocation11 + $0x1c8] ss:$16 sps:$4 sm:$0xff]   ;;  %14862 = vmatpush2.bf16.msra.mxu0 %v17568_v45 }
 0x86a   :  { %v17541_v60 = vld [vmem:[#allocation11 + $0x1a8] ss:$16 sps:$4 sm:$0xff]  }
 0x8a2   :  { %v13930_v11 = vpop.f32.mrf.mxu1 }
 0x8a3   :  { %v13931_v12 = vadd.f32 %v13930_v11, %v13890_v44  ;;  %v17537_v44 = vld [vmem:[#allocation11 + $0x1cc] ss:$16 sps:$4 sm:$0xff]  }
 0x8a4   :  { %v13932_v26 = vpop.f32.mrf.mxu1 }
 0x8a5   :  { %v13933_v2 = vadd.f32 %v13932_v26, %v13892_v18  ;;  %v13939_v36 = vmax.f32 %v13931_v12, 0.0  ;;  %v17543_v18 = vld [vmem:[#allocation11 + $0x1ac] ss:$16 sps:$4 sm:$0xff]  }
 0x8a6   :  { %v13934_v15 = vpop.f32.mrf.mxu1 }
 0x8a7   :  { %v13940_v0 = vmax.f32 %v13933_v2, 0.0  ;;  %v13943_v28 = vpack.c.bf16 %v13939_v36, %v13939_v36  ;;  %v11978_v36 = vld [vmem:[#allocation12 + $0xe] sm:$0xf] }
 0x8a8   :  { %v13935_v21 = vpop.f32.mrf.mxu1  ;;  %v14494_v15 = vrot.slane %v11978_v36, %v18229_v8 }
 0x8a9   :  { %v13944_v7 = vpack.c.bf16 %v13940_v0, %v13940_v0  ;;  %v14502_v0 = vrot.slane %v11978_v36, %v18232_v48  ;;  %v14498_v21 = vrot.slane %v11978_v36, %v18196_v47 }
 0x8ab   :  { %14413 = vmatprep.mubr.bf16.mxu1 %v13944_v7 }
 0x8ac   :  { %14414 = vmatmul.mubr.bf16.vlgmr.msra.gmra.mxu1 %v13943_v28 }
 0x8ad   :  { %14873 = vmatpush1.bf16.msra.mxu1 %v17481_v23 }
 0x8ae   :  { %14874 = vmatprep.subr.bf16.mxu1 %v17489_v55  ;;  %v14506_v55 = vrot.slane %v11978_v36, %v18199_v24 }
 0x8b1   :  { %14875 = vmatpush1.bf16.msra.mxu1 %v17487_v62 }
 0x8b2   :  { %14876 = vmatprep.subr.bf16.mxu1 %v17495_v29 }
 0x8b5   :  { %14877 = vmatpush1.bf16.msra.mxu1 %v17493_v4 }
 0x8b6   :  { %14878 = vmatprep.subr.bf16.mxu1 %v17501_v41 }
 0x8b9   :  { %14879 = vmatpush1.bf16.msra.mxu1 %v17499_v49 }
 0x8ba   :  { %14880 = vmatprep.subr.bf16.mxu1 %v17507_v17 }
 0x8bd   :  { %14881 = vmatpush1.bf16.msra.mxu1 %v17505_v53 }
 0x8be   :  { %14882 = vmatprep.subr.bf16.mxu1 %v17513_v25 }
 0x8c1   :  { %14883 = vmatpush1.bf16.msra.mxu1 %v17511_v6 }
 0x8c2   :  { %14884 = vmatprep.subr.bf16.mxu1 %v17519_v13 }
 0x8c5   :  { %14885 = vmatpush1.bf16.msra.mxu1 %v17517_v16 }
 0x8c6   :  { %14886 = vmatprep.subr.bf16.mxu1 %v17525_v38 }
 0x8c9   :  { %14887 = vmatpush1.bf16.msra.mxu1 %v17523_v31 }
 0x8ca   :  { %14888 = vmatprep.subr.bf16.mxu1 %v17531_v59 }
 0x8cd   :  { %14889 = vmatpush2.bf16.msra.mxu1 %v17529_v52 }
 0x8ce   :  { %14890 = vmatprep.subr.bf16.mxu1 %v17537_v44 }
 0x8d1   :  { %14891 = vmatpush2.bf16.msra.mxu1 %v17535_v27 }
 0x8d2   :  { %14892 = vmatprep.subr.bf16.mxu1 %v17543_v18 }
 0x8d5   :  { %14893 = vmatpush2.bf16.msra.mxu1 %v17541_v60 }
 0x8d6   :  { %14894 = vmatprep.subr.bf16.mxu1 %v17549_v40 }
 0x8d9   :  { %14895 = vmatpush2.bf16.msra.mxu1 %v17547_v35 }
 0x8da   :  { %14896 = vmatprep.subr.bf16.mxu1 %v17555_v63 }
 0x8dd   :  { %14897 = vmatpush2.bf16.msra.mxu1 %v17553_v5 }
 0x8de   :  { %14898 = vmatprep.subr.bf16.mxu1 %v17561_v34 }
 0x8e1   :  { %14899 = vmatpush2.bf16.msra.mxu1 %v17559_v42 }
 0x8e2   :  { %14900 = vmatprep.subr.bf16.mxu1 %v17567_v9 }
 0x8e5   :  { %14901 = vmatpush2.bf16.msra.mxu1 %v17565_v39 }
 0x8e6   :  { %14902 = vmatprep.subr.bf16.mxu1 %v17573_v32 }
 0x8e9   :  { %14903 = vmatpush2.bf16.msra.mxu1 %v17571_v3 }
 0x8ec   :  { %v14374_v14 = vpop.f32.mrf.mxu0 }
 0x8ed   :  { %v14375_v57 = vadd.f32 %v14374_v14, %v14013_v19 }
 0x8ee   :  { %v14376_v10 = vpop.f32.mrf.mxu0 }
 0x8ef   :  { %v14377_v58 = vadd.f32 %v14376_v10, %v14017_v30 }
 0x8f0   :  { %v14378_v56 = vpop.f32.mrf.mxu0 }
 0x8f2   :  { %v14379_v33 = vpop.f32.mrf.mxu0 }
 0x96c   :  { %v14415_v20 = vpop.f32.mrf.mxu1 }
 0x96d   :  { %v14416_v43 = vadd.f32 %v14415_v20, %v14375_v57 }
 0x96e   :  { %v14417_v1 = vpop.f32.mrf.mxu1 }
 0x96f   :  { %v14418_v37 = vadd.f32 %v14417_v1, %v14377_v58  ;;  %v14422_v11 = vmax.f32 %v14416_v43, 0.0 }
 0x970   :  { %v14419_v61 = vpop.f32.mrf.mxu1 }
 0x971   :  { %v14423_v12 = vmax.f32 %v14418_v37, 0.0  ;;  %v14424_v50 = vpack.c.bf16 %v14422_v11, %v14422_v11 }
 0x972   :  { %v14420_v26 = vpop.f32.mrf.mxu1 }
 0x973   :  { %v14425_v2 = vpack.c.bf16 %v14423_v12, %v14423_v12 }
 0x975   :  { %14863 = vmatprep.mubr.bf16.mxu0 %v14425_v2  ;;  %14904 = vmatprep.mubr.bf16.mxu1 %v14425_v2 }
 0x976   :  { %14864 = vmatmul.mubr.bf16.vlgmr.msra.gmra.mxu0 %v14424_v50  ;;  %14905 = vmatmul.mubr.bf16.vlgmr.msra.gmra.mxu1 %v14424_v50 }
 0xa36   :  { %v14865_v7 = vpop.f32.mrf.mxu0  ;;  %v14906_v23 = vpop.f32.mrf.mxu1 }
 0xa37   :  { %v14866_v28 = vadd.f32 %v14865_v7, %v14494_v15  ;;  %v14907_v4 = vadd.f32 %v14906_v23, %v14502_v0 }
 0xa38   :  { %v14867_v62 = vpop.f32.mrf.mxu0  ;;  %v14908_v29 = vpop.f32.mrf.mxu1 }
 0xa39   :  { %v14868_v41 = vadd.f32 %v14867_v62, %v14498_v21  ;;  %v14913_v53 = vmul.f32 %v14866_v28, %v14866_v28  ;;  %v14909_v6 = vadd.f32 %v14908_v29, %v14506_v55  ;;  %v14915_v16 = vmul.f32 %v14907_v4, %v14907_v4 }
 0xa3a   :  { %v14869_v49 = vpop.f32.mrf.mxu0  ;;  %v14910_v17 = vpop.f32.mrf.mxu1 }
 0xa3b   :  { %v14914_v25 = vmul.f32 %v14868_v41, %v14868_v41  ;;  %v14916_v38 = vmul.f32 %v14909_v6, %v14909_v6 }
 0xa3c   :  { %v14870_v13 = vpop.f32.mrf.mxu0  ;;  %v14911_v8 = vpop.f32.mrf.mxu1 }
 0xa3d   :  { %v14917_v48 = vadd.f32 %v14914_v25, %v14913_v53 }
 0xa3f   :  { %v14918_v47 = vadd.f32 %v14917_v48, %v14915_v16 }
 0xa41   :  { %v14919_v31 = vadd.f32 %v14918_v47, %v14916_v38 }
 0xa43   :  { %14920 = vadd.xlane.f32.xlu0 %v14919_v31 }
 0xacc   :  { %v14921_v59 = vpop.xlane.xlu0 %14920 }
 0xacd   :  { %v14922_v52 = vmax.f32 %v14921_v59, 1e-24 }
 0xacf   :  { %17574 = vrsqrt.f32 %v14922_v52 }
 0xadc   :  { %v17575_v24 = vpop.eup %17574 }
 0xadd   :  { %v14924_v44 = vmul.f32 %v17575_v24, %v14866_v28  ;;  %v14925_v27 = vmul.f32 %v17575_v24, %v14868_v41  ;;  %v14926_v18 = vmul.f32 %v17575_v24, %v14907_v4  ;;  %v14927_v60 = vmul.f32 %v17575_v24, %v14909_v6 }
 0xadf   :  { %14928 = vst [vmem:[#allocation14] sm:$0xff] %v14924_v44  ;;  %14929 = vst [vmem:[#allocation14 + $0x8] sm:$0xff] %v14925_v27 }
 0xae0   :  { %14930 = vst [vmem:[#allocation14 + $0x10] sm:$0xff] %v14926_v18  ;;  %14931 = vst [vmem:[#allocation14 + $0x18] sm:$0xff] %v14927_v60 }
 0xae1   :  { %17710 = shalt.err (!%p17707_p6)
}
 0xae2   :  { %14941 = dma.vmem_to_hbm [thread:$0]  %s14939_s5, 512, %s18333_s6, [#allocation5]  }
 0xae3   :  { %17727 = dma.done.wait [#allocation5], 512  }
 0xae4   :  { %17728 = vsyncadd [#allocation5], 4294966784 }
 0xae5   :  { %14945 = vsyncpa [#allocation4], 1 }
 0xae6   :  { %14946 = vsyncpa [#allocation7], 1 }
 0xae7   :  { %14947 = vsyncpa [#allocation10], 1 }
 0xae8   :  { %14948 = vsyncpa [#allocation13], 1 }
 0xae9   :  { %14949 = vsyncpa [#allocation5], 1 }

</bundles_post_ra>
